<compile_context>
chip_gen: v5e
topology: v5e:2x2
jax: 0.10.0
libtpu: 0.0.40
codegen_flags: <defaults>
</compile_context>

<pallas_src>
import functools

import jax
import jax.numpy as jnp
import numpy as np
from jax.experimental import pallas as pl
from jax.experimental.pallas import tpu as pltpu

FEATURES = 30
IN_CHANNELS = 3
FIN = [FEATURES * 16, FEATURES * 8, FEATURES * 4, FEATURES * 2, FEATURES]
FOUT = [FEATURES * 8, FEATURES * 4, FEATURES * 2, FEATURES, IN_CHANNELS]

# features = nn.Sequential(...) layout: index -> (Cin, Cout)
CONV_LAYERS = {
    0: (FIN[0], FIN[0]), 2: (FIN[0], FOUT[0]),
    5: (FIN[1], FIN[1]), 7: (FIN[1], FOUT[1]),
    10: (FIN[2], FIN[2]), 12: (FIN[2], FOUT[2]),
    15: (FIN[3], FIN[3]), 17: (FIN[3], FOUT[3]),
    20: (FIN[4], FIN[4]), 22: (FIN[4], FOUT[4]),
}
UNPOOL_LAYERS = (4, 9, 14, 19)
NUM_LAYERS = 24
LAST_CONV_IDX = 22
CONV2DECONV = {0: 22, 3: 20, 7: 17, 10: 15, 14: 12, 17: 10, 21: 7, 24: 5, 28: 2, 31: 0}
UNPOOL2POOL = {6: 19, 13: 14, 20: 9, 27: 4}
NEG_SLOPE = 0.01

# Set to False automatically if this jax version rejects an untiled VMEM weight operand.
_UNTILED_WEIGHTS_OK = [True]


# ----------------------------------------------------------------------------- Pallas kernel
def _band_conv_lrelu_kernel(x_ref, w_ref, o_ref, *, D, H, W, cin, cout, slope, final):
    """One batch per grid step (the whole padded volume of that batch is resident in VMEM).

    x_ref : (1, D+2, H+2, (W+2)*cin)  f32   padded NDHWC volume, W and C merged on the lane dim
    w_ref : (9, (W+2)*cin, W*cout)    bf16  banded weights (kw folded into the weight), one
                                            (kd, kh) pair per leading index
    o_ref : intermediate: (1, D+2, H+2, (W+2)*cout) f32   (halo zeros written here too, so the
                                                           next layer needs no jnp.pad)
            final:        (1, D*H, W*cout)            f32
    """
    m2 = D * H
    kcols = (W + 2) * cin

    acc = jnp.zeros((m2, W * cout), jnp.float32)
    for kd in range(3):
        for kh in range(3):
            # Static sublane slices only -- the lane dim ((W+2)*cin) is never sliced.
            xs = x_ref[0, kd:kd + D, kh:kh + H, :]                 # (D, H, (W+2)*cin)
            xs = xs.reshape(m2, kcols).astype(jnp.bfloat16)        # lane dim unchanged
            acc = acc + jnp.dot(xs, w_ref[kd * 3 + kh],
                                preferred_element_type=jnp.float32)

    acc = jnp.where(acc >= 0, acc, slope * acc)                    # fused LeakyReLU

    if final:
        # Unpadded output, (D*H, W*cout) rows written densely.
        o_ref[...] = acc.reshape(1, m2, W * cout).astype(o_ref.dtype)
    else:
        # Padded output: zero the halo with one dense full-block store, then write the interior.
        o_ref[...] = jnp.zeros(o_ref.shape, o_ref.dtype)
        o_ref[:, 1:1 + D, 1:1 + H, cout:cout + W * cout] = (
            acc.reshape(1, D, H, W * cout).astype(o_ref.dtype))


# ----------------------------------------------------------------------------- helpers
def _round_up(x, m):
    return ((x + m - 1) // m) * m


def _tile_padded_bytes(shape, dtype):
    """VMEM bytes of a block, padded to the (8*packing, 128) tile grid (not raw element count)."""
    itemsize = int(np.dtype(dtype).itemsize)
    sublane = 8 * max(1, 4 // itemsize)
    dims = list(shape)
    dims[-1] = _round_up(dims[-1], 128)
    if len(dims) >= 2:
        dims[-2] = _round_up(dims[-2], sublane)
    return int(np.prod(dims)) * itemsize


def _vmem_capacity_bytes():
    try:
        cap = getattr(pltpu.get_tpu_info(), "vmem_capacity_bytes", None)
        if cap:
            return int(cap)
    except Exception:
        pass
    return 64 << 20        # conservative fallback (v7x per-TensorCore VMEM)


def _make_band_weights(w_t, W):
    """Banded effective weights for ConvTranspose3d(k=3, s=1, p=1) in channels-last layout.

    band[kd*3+kh, u*Cin+ci, w*Cout+co] = w_eff[kd, kh, kw, ci, co]  if u == w + kw else 0,
    with w_eff[kd,kh,kw,ci,co] = w_t[ci, co, 2-kd, 2-kh, 2-kw]  (flip + in/out swap).
    This folds the kw taps (and the conv along W) into the weight, so the kernel never slices
    the lane dim of the activations.
    """
    cin, cout = int(w_t.shape[0]), int(w_t.shape[1])
    w_eff = jnp.transpose(jnp.flip(w_t, axis=(2, 3, 4)), (2, 3, 4, 0, 1))   # (3,3,3,Cin,Cout)
    w_eff = w_eff.reshape(9, 3, cin, cout)                                   # (kd*3+kh, kw, ci, co)
    s = np.zeros((3, W + 2, W), np.float32)                                  # shift/selection matrix
    for kw in range(3):
        for w in range(W):
            s[kw, w + kw, w] = 1.0
    band = jnp.einsum('kuw,pkio->puiwo', jnp.asarray(s), w_eff)              # (9, W+2, Cin, W, Cout)
    return band.reshape(9, (W + 2) * cin, W * cout)


def conv_transpose3d_leaky_relu(xp, w_t, *, final, slope=NEG_SLOPE):
    """ConvTranspose3d(k=3, s=1, p=1, bias=False) + LeakyReLU(slope).

    xp  : (N, D+2, H+2, W+2, Cin)  halo-padded NDHWC input
    w_t : (Cin, Cout, 3, 3, 3)     PyTorch ConvTranspose3d weight layout
    Returns padded NDHWC (N, D+2, H+2, W+2, Cout) when not final (halo zeros already written),
    else unpadded NDHWC (N, D, H, W, Cout).
    """
    N, Dp, Hp, Wp, Cin = (int(d) for d in xp.shape)
    D, H, W = Dp - 2, Hp - 2, Wp - 2
    Cout = int(w_t.shape[1])

    band = _make_band_weights(w_t, W).astype(jnp.bfloat16)     # bf16 weights: half VMEM/DMA
    xm = xp.reshape(N, Dp, Hp, Wp * Cin)                       # merge W & C on lanes (free)

    if final:
        out_shape = jax.ShapeDtypeStruct((N, D * H, W * Cout), jnp.float32)
        out_block = (1, D * H, W * Cout)
        out_index = lambda n: (n, 0, 0)
    else:
        out_shape = jax.ShapeDtypeStruct((N, Dp, Hp, Wp * Cout), jnp.float32)
        out_block = (1, Dp, Hp, Wp * Cout)
        out_index = lambda n: (n, 0, 0, 0)

    # --- VMEM budget from (8,128)-tile-padded block sizes, capped per hardware generation ---
    in_bytes = _tile_padded_bytes((1, Dp, Hp, Wp * Cin), jnp.float32)
    w_bytes = _tile_padded_bytes(band.shape, jnp.bfloat16)
    out_bytes = _tile_padded_bytes(out_block, jnp.float32)
    # input/output are pipelined (2 buffers each); weights counted x2 to also cover the
    # double-buffered fallback spec; + headroom for compiler scratch.
    need = 2 * in_bytes + 2 * w_bytes + 2 * out_bytes + (8 << 20)
    budget = int(_vmem_capacity_bytes() * 0.85)
    if need > budget:
        raise NotImplementedError(
            "TODO(synk): volume/channel count too large for the resident-per-batch kernel; "
            "needs a depth-halo manual-DMA variant and a Cout-tile grid axis.")
    vmem_limit = int(min(max(need, 24 << 20), budget))

    cost = pl.CostEstimate(
        flops=2 * N * D * H * W * 27 * Cin * Cout,
        transcendentals=0,
        bytes_accessed=int(xm.size) * 4 + int(band.size) * 2 + int(np.prod(out_shape.shape)) * 4)

    kernel = functools.partial(_band_conv_lrelu_kernel, D=D, H=H, W=W,
                               cin=Cin, cout=Cout, slope=slope, final=final)

    def run(untiled_weights):
        if untiled_weights:
            # Whole weight array copied to VMEM once, single buffer (no double-buffering).
            w_spec = pl.BlockSpec(memory_space=pltpu.MemorySpace.VMEM)
        else:
            # Fallback: blocked spec with constant index_map (fetched once, 2 buffers allocated).
            w_spec = pl.BlockSpec(band.shape, lambda n: (0, 0, 0))
        return pl.pallas_call(
            kernel,
            out_shape=out_shape,
            grid=(N,),
            in_specs=[
                pl.BlockSpec((1, Dp, Hp, Wp * Cin), lambda n: (n, 0, 0, 0)),
                w_spec,
            ],
            out_specs=pl.BlockSpec(out_block, out_index),
            compiler_params=pltpu.CompilerParams(
                dimension_semantics=("parallel",),
                vmem_limit_bytes=vmem_limit),
            cost_estimate=cost,
        )(xm, band)

    if _UNTILED_WEIGHTS_OK[0]:
        try:
            out = run(True)
        except Exception:
            _UNTILED_WEIGHTS_OK[0] = False
            out = run(False)
    else:
        out = run(False)

    if final:
        return out.reshape(N, D, H, W, Cout)
    return out.reshape(N, Dp, Hp, Wp, Cout)


# ----------------------------------------------------------------------------- glue (plain JAX)
def max_unpool3d(x_ncdhw, indices, stride=2):
    """nn.MaxUnpool3d(2, stride=2): scatter x into a 2x-upsampled zero volume at `indices`
    (indices are flat per-(n, c) positions in the output spatial volume, PyTorch convention)."""
    N, C, D, H, W = x_ncdhw.shape
    Do, Ho, Wo = D * stride, H * stride, W * stride
    xf = x_ncdhw.reshape(N, C, -1)
    idxf = indices.reshape(N, C, -1).astype(jnp.int32)
    out = jnp.zeros((N, C, Do * Ho * Wo), x_ncdhw.dtype)
    out = jax.vmap(jax.vmap(lambda o, i, v: o.at[i].set(v)))(out, idxf, xf)
    return out.reshape(N, C, Do, Ho, Wo)


def init_params(key):
    """Deterministic weights, same shapes as the module's ConvTranspose3d layers."""
    params = {}
    keys = jax.random.split(key, len(CONV_LAYERS))
    for (idx, (cin, cout)), k in zip(sorted(CONV_LAYERS.items()), keys):
        fan = cin * 27
        params[idx] = jax.random.normal(k, (cin, cout, 3, 3, 3), jnp.float32) / np.sqrt(fan)
    return params


def unet3d_ef_deconv_forward(params, x, layer, activationin_channels_idx, pool_locs):
    """Reproduces UNet3D_ef_deconv.forward(x, layer, activationin_channels_idx, pool_locs).

    x is NCDHW at the API boundary (PyTorch convention).  Internal format is halo-padded NDHWC:
    the halo is created once at entry; every intermediate conv kernel writes the next layer's
    halo-padded input directly (no per-layer jnp.pad HBM round trip).
    """
    del activationin_channels_idx  # unused by the original forward as well
    if layer not in CONV2DECONV:
        raise ValueError('layer is not a conv feature map')
    idx = CONV2DECONV[layer]

    def to_padded(x_ncdhw):
        return jnp.pad(jnp.transpose(x_ncdhw, (0, 2, 3, 4, 1)),
                       ((0, 0), (1, 1), (1, 1), (1, 1), (0, 0)))

    xp = to_padded(x)
    result = None
    while idx < NUM_LAYERS:
        if idx in UNPOOL_LAYERS:
            # faithful to the original lookup chain (KeyError for the buggy mapping is preserved)
            locs = pool_locs[UNPOOL2POOL[idx]]
            x_ncdhw = jnp.transpose(xp[:, 1:-1, 1:-1, 1:-1, :], (0, 4, 1, 2, 3))
            xp = to_padded(max_unpool3d(x_ncdhw, locs))
            idx += 1
        elif idx in CONV_LAYERS:
            # every ConvTranspose3d in `features` is followed by LeakyReLU -> fused kernel
            final = (idx == LAST_CONV_IDX)
            out = conv_transpose3d_leaky_relu(xp, params[idx], final=final)
            if final:
                result = out               # unpadded NDHWC (N, D, H, W, 3)
            else:
                xp = out                   # padded NDHWC, feeds the next conv directly
            idx += 2
        else:
            # standalone LeakyReLU (never a start index for a valid `layer`)
            xp = jnp.where(xp >= 0, xp, NEG_SLOPE * xp)
            idx += 1

    # Exit NDHWC -> NCDHW kept in XLA: the final tensor has Cout=3 and is tiny.
    # TODO(synk): write channels-first directly once Mosaic lane-crossing reshapes are cheap.
    return jnp.transpose(result, (0, 4, 1, 2, 3))


def _reference_forward(params, x, layer):
    """XLA reference for the conv/relu path (verification only).  Weights are rounded through
    bf16 to match the kernel's bf16 weight storage; activations stay f32 (the kernel's bf16
    matmul-operand rounding is absorbed by the comparison tolerance)."""
    idx = CONV2DECONV[layer]
    while idx < NUM_LAYERS:
        if idx in CONV_LAYERS:
            w_t = params[idx].astype(jnp.bfloat16).astype(jnp.float32)
            w_conv = jnp.transpose(jnp.flip(w_t, axis=(2, 3, 4)), (1, 0, 2, 3, 4))  # (Cout,Cin,3,3,3)
            x = jax.lax.conv_general_dilated(
                x, w_conv, window_strides=(1, 1, 1), padding='SAME',
                dimension_numbers=('NCDHW', 'OIDHW', 'NCDHW'))
            x = jnp.where(x >= 0, x, NEG_SLOPE * x)
            idx += 2
        else:
            idx += 1
    return x


if __name__ == "__main__":
    key = jax.random.PRNGKey(0)
    pkey, xkey = jax.random.split(key)
    params = init_params(pkey)

    # layer=3 -> start_idx=20: ConvT(30,30)+LReLU, ConvT(30,3)+LReLU
    # layer=0 -> start_idx=22: ConvT(30,3)+LReLU
    # (the only entry points the original module can execute without hitting its unpool-index bug)
    N, C, D, H, W = 2, FEATURES, 4, 8, 8
    x = jax.random.normal(xkey, (N, C, D, H, W), jnp.float32)

    for layer in (3, 0):
        out = unet3d_ef_deconv_forward(params, x, layer=layer,
                                       activationin_channels_idx=None, pool_locs={})
        out = jax.block_until_ready(out)
        assert out.shape == (N, IN_CHANNELS, D, H, W), out.shape

        ref = _reference_forward(params, x, layer)
        # bf16 matmul operands (f32 accumulation): tolerance covers the activation rounding
        # (~1e-3 RMS over two layers); genuine bugs would produce O(0.1-1) errors.
        np.testing.assert_allclose(np.asarray(out), np.asarray(ref), rtol=2e-2, atol=2e-2)

    print("KERNEL_OK")
</pallas_src>

<mosaic_0001>
module attributes {stable_mosaic.version = 11 : i64} {
  func.func @_band_conv_lrelu_kernel(%arg0: i32, %arg1: memref<1x6x10x300xf32, #tpu.memory_space<vmem>>, %arg2: memref<9x300x240xbf16, #tpu.memory_space<vmem>>, %arg3: memref<1x6x10x300xf32, #tpu.memory_space<vmem>>) attributes {dimension_semantics = [#tpu.dimension_semantics<parallel>], iteration_bounds = array<i64: 2>, scalar_prefetch = 0 : i64, scratch_operands = 0 : i64, tpu.core_type = #tpu.core_type<tc>, window_params = [{transform_indices = @transform_0, window_bounds = array<i64: 1, 6, 10, 300>}, {pipeline_mode = #tpu.pipeline_mode<synchronous>, transform_indices = @transform_1, window_bounds = array<i64: 9, 300, 240>}, {transform_indices = @transform_2, window_bounds = array<i64: 1, 6, 10, 300>}]} {
    %cst = arith.constant 0.000000e+00 : f32
    %0 = vector.broadcast %cst : f32 to vector<32x240xf32>
    %c0 = arith.constant 0 : index
    %c0_0 = arith.constant 0 : index
    %c0_1 = arith.constant 0 : index
    %c0_2 = arith.constant 0 : index
    %1 = vector.load %arg1[%c0, %c0_0, %c0_1, %c0_2] : memref<1x6x10x300xf32, #tpu.memory_space<vmem>>, vector<1x4x8x300xf32>
    %2 = vector.shape_cast %1 : vector<1x4x8x300xf32> to vector<4x8x300xf32>
    %3 = vector.shape_cast %2 : vector<4x8x300xf32> to vector<32x300xf32>
    %4 = arith.truncf %3 : vector<32x300xf32> to vector<32x300xbf16>
    %c0_3 = arith.constant 0 : index
    %c0_4 = arith.constant 0 : index
    %c0_5 = arith.constant 0 : index
    %5 = vector.load %arg2[%c0_3, %c0_4, %c0_5] : memref<9x300x240xbf16, #tpu.memory_space<vmem>>, vector<1x300x240xbf16>
    %6 = vector.shape_cast %5 : vector<1x300x240xbf16> to vector<300x240xbf16>
    %cst_6 = arith.constant dense<0.000000e+00> : vector<32x240xf32>
    %7 = tpu.matmul %4, %6, %cst_6 {dimension_numbers = #tpu.dot_dimension_numbers<[1], [0], [0], [1], [0, 0, 1, 1], [], []>} : vector<32x300xbf16>, vector<300x240xbf16>, vector<32x240xf32> -> vector<32x240xf32>
    %8 = arith.addf %0, %7 : vector<32x240xf32>
    %c0_7 = arith.constant 0 : index
    %c0_8 = arith.constant 0 : index
    %c1 = arith.constant 1 : index
    %c0_9 = arith.constant 0 : index
    %9 = vector.load %arg1[%c0_7, %c0_8, %c1, %c0_9] : memref<1x6x10x300xf32, #tpu.memory_space<vmem>>, vector<1x4x8x300xf32>
    %10 = vector.shape_cast %9 : vector<1x4x8x300xf32> to vector<4x8x300xf32>
    %11 = vector.shape_cast %10 : vector<4x8x300xf32> to vector<32x300xf32>
    %12 = arith.truncf %11 : vector<32x300xf32> to vector<32x300xbf16>
    %c1_10 = arith.constant 1 : index
    %c0_11 = arith.constant 0 : index
    %c0_12 = arith.constant 0 : index
    %13 = vector.load %arg2[%c1_10, %c0_11, %c0_12] : memref<9x300x240xbf16, #tpu.memory_space<vmem>>, vector<1x300x240xbf16>
    %14 = vector.shape_cast %13 : vector<1x300x240xbf16> to vector<300x240xbf16>
    %cst_13 = arith.constant dense<0.000000e+00> : vector<32x240xf32>
    %15 = tpu.matmul %12, %14, %cst_13 {dimension_numbers = #tpu.dot_dimension_numbers<[1], [0], [0], [1], [0, 0, 1, 1], [], []>} : vector<32x300xbf16>, vector<300x240xbf16>, vector<32x240xf32> -> vector<32x240xf32>
    %16 = arith.addf %8, %15 : vector<32x240xf32>
    %c0_14 = arith.constant 0 : index
    %c0_15 = arith.constant 0 : index
    %c2 = arith.constant 2 : index
    %c0_16 = arith.constant 0 : index
    %17 = vector.load %arg1[%c0_14, %c0_15, %c2, %c0_16] : memref<1x6x10x300xf32, #tpu.memory_space<vmem>>, vector<1x4x8x300xf32>
    %18 = vector.shape_cast %17 : vector<1x4x8x300xf32> to vector<4x8x300xf32>
    %19 = vector.shape_cast %18 : vector<4x8x300xf32> to vector<32x300xf32>
    %20 = arith.truncf %19 : vector<32x300xf32> to vector<32x300xbf16>
    %c2_17 = arith.constant 2 : index
    %c0_18 = arith.constant 0 : index
    %c0_19 = arith.constant 0 : index
    %21 = vector.load %arg2[%c2_17, %c0_18, %c0_19] : memref<9x300x240xbf16, #tpu.memory_space<vmem>>, vector<1x300x240xbf16>
    %22 = vector.shape_cast %21 : vector<1x300x240xbf16> to vector<300x240xbf16>
    %cst_20 = arith.constant dense<0.000000e+00> : vector<32x240xf32>
    %23 = tpu.matmul %20, %22, %cst_20 {dimension_numbers = #tpu.dot_dimension_numbers<[1], [0], [0], [1], [0, 0, 1, 1], [], []>} : vector<32x300xbf16>, vector<300x240xbf16>, vector<32x240xf32> -> vector<32x240xf32>
    %24 = arith.addf %16, %23 : vector<32x240xf32>
    %c0_21 = arith.constant 0 : index
    %c1_22 = arith.constant 1 : index
    %c0_23 = arith.constant 0 : index
    %c0_24 = arith.constant 0 : index
    %25 = vector.load %arg1[%c0_21, %c1_22, %c0_23, %c0_24] : memref<1x6x10x300xf32, #tpu.memory_space<vmem>>, vector<1x4x8x300xf32>
    %26 = vector.shape_cast %25 : vector<1x4x8x300xf32> to vector<4x8x300xf32>
    %27 = vector.shape_cast %26 : vector<4x8x300xf32> to vector<32x300xf32>
    %28 = arith.truncf %27 : vector<32x300xf32> to vector<32x300xbf16>
    %c3 = arith.constant 3 : index
    %c0_25 = arith.constant 0 : index
    %c0_26 = arith.constant 0 : index
    %29 = vector.load %arg2[%c3, %c0_25, %c0_26] : memref<9x300x240xbf16, #tpu.memory_space<vmem>>, vector<1x300x240xbf16>
    %30 = vector.shape_cast %29 : vector<1x300x240xbf16> to vector<300x240xbf16>
    %cst_27 = arith.constant dense<0.000000e+00> : vector<32x240xf32>
    %31 = tpu.matmul %28, %30, %cst_27 {dimension_numbers = #tpu.dot_dimension_numbers<[1], [0], [0], [1], [0, 0, 1, 1], [], []>} : vector<32x300xbf16>, vector<300x240xbf16>, vector<32x240xf32> -> vector<32x240xf32>
    %32 = arith.addf %24, %31 : vector<32x240xf32>
    %c0_28 = arith.constant 0 : index
    %c1_29 = arith.constant 1 : index
    %c1_30 = arith.constant 1 : index
    %c0_31 = arith.constant 0 : index
    %33 = vector.load %arg1[%c0_28, %c1_29, %c1_30, %c0_31] : memref<1x6x10x300xf32, #tpu.memory_space<vmem>>, vector<1x4x8x300xf32>
    %34 = vector.shape_cast %33 : vector<1x4x8x300xf32> to vector<4x8x300xf32>
    %35 = vector.shape_cast %34 : vector<4x8x300xf32> to vector<32x300xf32>
    %36 = arith.truncf %35 : vector<32x300xf32> to vector<32x300xbf16>
    %c4 = arith.constant 4 : index
    %c0_32 = arith.constant 0 : index
    %c0_33 = arith.constant 0 : index
    %37 = vector.load %arg2[%c4, %c0_32, %c0_33] : memref<9x300x240xbf16, #tpu.memory_space<vmem>>, vector<1x300x240xbf16>
    %38 = vector.shape_cast %37 : vector<1x300x240xbf16> to vector<300x240xbf16>
    %cst_34 = arith.constant dense<0.000000e+00> : vector<32x240xf32>
    %39 = tpu.matmul %36, %38, %cst_34 {dimension_numbers = #tpu.dot_dimension_numbers<[1], [0], [0], [1], [0, 0, 1, 1], [], []>} : vector<32x300xbf16>, vector<300x240xbf16>, vector<32x240xf32> -> vector<32x240xf32>
    %40 = arith.addf %32, %39 : vector<32x240xf32>
    %c0_35 = arith.constant 0 : index
    %c1_36 = arith.constant 1 : index
    %c2_37 = arith.constant 2 : index
    %c0_38 = arith.constant 0 : index
    %41 = vector.load %arg1[%c0_35, %c1_36, %c2_37, %c0_38] : memref<1x6x10x300xf32, #tpu.memory_space<vmem>>, vector<1x4x8x300xf32>
    %42 = vector.shape_cast %41 : vector<1x4x8x300xf32> to vector<4x8x300xf32>
    %43 = vector.shape_cast %42 : vector<4x8x300xf32> to vector<32x300xf32>
    %44 = arith.truncf %43 : vector<32x300xf32> to vector<32x300xbf16>
    %c5 = arith.constant 5 : index
    %c0_39 = arith.constant 0 : index
    %c0_40 = arith.constant 0 : index
    %45 = vector.load %arg2[%c5, %c0_39, %c0_40] : memref<9x300x240xbf16, #tpu.memory_space<vmem>>, vector<1x300x240xbf16>
    %46 = vector.shape_cast %45 : vector<1x300x240xbf16> to vector<300x240xbf16>
    %cst_41 = arith.constant dense<0.000000e+00> : vector<32x240xf32>
    %47 = tpu.matmul %44, %46, %cst_41 {dimension_numbers = #tpu.dot_dimension_numbers<[1], [0], [0], [1], [0, 0, 1, 1], [], []>} : vector<32x300xbf16>, vector<300x240xbf16>, vector<32x240xf32> -> vector<32x240xf32>
    %48 = arith.addf %40, %47 : vector<32x240xf32>
    %c0_42 = arith.constant 0 : index
    %c2_43 = arith.constant 2 : index
    %c0_44 = arith.constant 0 : index
    %c0_45 = arith.constant 0 : index
    %49 = vector.load %arg1[%c0_42, %c2_43, %c0_44, %c0_45] : memref<1x6x10x300xf32, #tpu.memory_space<vmem>>, vector<1x4x8x300xf32>
    %50 = vector.shape_cast %49 : vector<1x4x8x300xf32> to vector<4x8x300xf32>
    %51 = vector.shape_cast %50 : vector<4x8x300xf32> to vector<32x300xf32>
    %52 = arith.truncf %51 : vector<32x300xf32> to vector<32x300xbf16>
    %c6 = arith.constant 6 : index
    %c0_46 = arith.constant 0 : index
    %c0_47 = arith.constant 0 : index
    %53 = vector.load %arg2[%c6, %c0_46, %c0_47] : memref<9x300x240xbf16, #tpu.memory_space<vmem>>, vector<1x300x240xbf16>
    %54 = vector.shape_cast %53 : vector<1x300x240xbf16> to vector<300x240xbf16>
    %cst_48 = arith.constant dense<0.000000e+00> : vector<32x240xf32>
    %55 = tpu.matmul %52, %54, %cst_48 {dimension_numbers = #tpu.dot_dimension_numbers<[1], [0], [0], [1], [0, 0, 1, 1], [], []>} : vector<32x300xbf16>, vector<300x240xbf16>, vector<32x240xf32> -> vector<32x240xf32>
    %56 = arith.addf %48, %55 : vector<32x240xf32>
    %c0_49 = arith.constant 0 : index
    %c2_50 = arith.constant 2 : index
    %c1_51 = arith.constant 1 : index
    %c0_52 = arith.constant 0 : index
    %57 = vector.load %arg1[%c0_49, %c2_50, %c1_51, %c0_52] : memref<1x6x10x300xf32, #tpu.memory_space<vmem>>, vector<1x4x8x300xf32>
    %58 = vector.shape_cast %57 : vector<1x4x8x300xf32> to vector<4x8x300xf32>
    %59 = vector.shape_cast %58 : vector<4x8x300xf32> to vector<32x300xf32>
    %60 = arith.truncf %59 : vector<32x300xf32> to vector<32x300xbf16>
    %c7 = arith.constant 7 : index
    %c0_53 = arith.constant 0 : index
    %c0_54 = arith.constant 0 : index
    %61 = vector.load %arg2[%c7, %c0_53, %c0_54] : memref<9x300x240xbf16, #tpu.memory_space<vmem>>, vector<1x300x240xbf16>
    %62 = vector.shape_cast %61 : vector<1x300x240xbf16> to vector<300x240xbf16>
    %cst_55 = arith.constant dense<0.000000e+00> : vector<32x240xf32>
    %63 = tpu.matmul %60, %62, %cst_55 {dimension_numbers = #tpu.dot_dimension_numbers<[1], [0], [0], [1], [0, 0, 1, 1], [], []>} : vector<32x300xbf16>, vector<300x240xbf16>, vector<32x240xf32> -> vector<32x240xf32>
    %64 = arith.addf %56, %63 : vector<32x240xf32>
    %c0_56 = arith.constant 0 : index
    %c2_57 = arith.constant 2 : index
    %c2_58 = arith.constant 2 : index
    %c0_59 = arith.constant 0 : index
    %65 = vector.load %arg1[%c0_56, %c2_57, %c2_58, %c0_59] : memref<1x6x10x300xf32, #tpu.memory_space<vmem>>, vector<1x4x8x300xf32>
    %66 = vector.shape_cast %65 : vector<1x4x8x300xf32> to vector<4x8x300xf32>
    %67 = vector.shape_cast %66 : vector<4x8x300xf32> to vector<32x300xf32>
    %68 = arith.truncf %67 : vector<32x300xf32> to vector<32x300xbf16>
    %c8 = arith.constant 8 : index
    %c0_60 = arith.constant 0 : index
    %c0_61 = arith.constant 0 : index
    %69 = vector.load %arg2[%c8, %c0_60, %c0_61] : memref<9x300x240xbf16, #tpu.memory_space<vmem>>, vector<1x300x240xbf16>
    %70 = vector.shape_cast %69 : vector<1x300x240xbf16> to vector<300x240xbf16>
    %cst_62 = arith.constant dense<0.000000e+00> : vector<32x240xf32>
    %71 = tpu.matmul %68, %70, %cst_62 {dimension_numbers = #tpu.dot_dimension_numbers<[1], [0], [0], [1], [0, 0, 1, 1], [], []>} : vector<32x300xbf16>, vector<300x240xbf16>, vector<32x240xf32> -> vector<32x240xf32>
    %72 = arith.addf %64, %71 : vector<32x240xf32>
    %cst_63 = arith.constant 0.000000e+00 : f32
    %73 = vector.broadcast %cst_63 : f32 to vector<32x240xf32>
    %74 = arith.cmpf oge, %72, %73 : vector<32x240xf32>
    %cst_64 = arith.constant 0.00999999977 : f32
    %75 = vector.broadcast %cst_64 : f32 to vector<32x240xf32>
    %76 = arith.mulf %75, %72 : vector<32x240xf32>
    %77 = arith.select %74, %72, %76 : vector<32x240xi1>, vector<32x240xf32>
    %cst_65 = arith.constant 0.000000e+00 : f32
    %78 = vector.broadcast %cst_65 : f32 to vector<1x6x10x300xf32>
    %c0_66 = arith.constant 0 : index
    %c0_67 = arith.constant 0 : index
    %c0_68 = arith.constant 0 : index
    %c0_69 = arith.constant 0 : index
    %79 = vector.load %arg3[%c0_66, %c0_67, %c0_68, %c0_69] : memref<1x6x10x300xf32, #tpu.memory_space<vmem>>, vector<1x6x10x300xf32>
    tpu.vector_store %arg3[%c0_66, %c0_67, %c0_68, %c0_69], %78 {strides = array<i32>} : memref<1x6x10x300xf32, #tpu.memory_space<vmem>>, vector<1x6x10x300xf32>,
    %80 = vector.shape_cast %77 : vector<32x240xf32> to vector<1x4x8x240xf32>
    %c0_70 = arith.constant 0 : index
    %c1_71 = arith.constant 1 : index
    %c1_72 = arith.constant 1 : index
    %c30 = arith.constant 30 : index
    %81 = vector.load %arg3[%c0_70, %c1_71, %c1_72, %c30] : memref<1x6x10x300xf32, #tpu.memory_space<vmem>>, vector<1x4x8x240xf32>
    tpu.vector_store %arg3[%c0_70, %c1_71, %c1_72, %c30], %80 {strides = array<i32>} : memref<1x6x10x300xf32, #tpu.memory_space<vmem>>, vector<1x4x8x240xf32>,
    return
  }
  func.func @transform_0(%arg0: i32) -> (i32, i32, i32, i32) {
    %c0_i32 = arith.constant 0 : i32
    %c0_i32_0 = arith.constant 0 : i32
    %c0_i32_1 = arith.constant 0 : i32
    %c0_i32_2 = arith.constant 0 : i32
    return %arg0, %c0_i32, %c0_i32_0, %c0_i32_1 : i32, i32, i32, i32
  }
  func.func @transform_1(%arg0: i32) -> (i32, i32, i32) {
    %c0_i32 = arith.constant 0 : i32
    %c0_i32_0 = arith.constant 0 : i32
    %c0_i32_1 = arith.constant 0 : i32
    %c0_i32_2 = arith.constant 0 : i32
    return %c0_i32, %c0_i32_0, %c0_i32_1 : i32, i32, i32
  }
  func.func @transform_2(%arg0: i32) -> (i32, i32, i32, i32) {
    %c0_i32 = arith.constant 0 : i32
    %c0_i32_0 = arith.constant 0 : i32
    %c0_i32_1 = arith.constant 0 : i32
    %c0_i32_2 = arith.constant 0 : i32
    return %arg0, %c0_i32, %c0_i32_0, %c0_i32_1 : i32, i32, i32, i32
  }
}

module attributes {stable_mosaic.version = 11 : i64} {
  func.func @_band_conv_lrelu_kernel(%arg0: i32, %arg1: memref<1x6x10x300xf32, #tpu.memory_space<vmem>>, %arg2: memref<9x300x240xbf16, #tpu.memory_space<vmem>>, %arg3: memref<1x6x10x300xf32, #tpu.memory_space<vmem>>) attributes {dimension_semantics = [#tpu.dimension_semantics<parallel>], iteration_bounds = array<i64: 2>, scalar_prefetch = 0 : i64, scratch_operands = 0 : i64, tpu.core_type = #tpu.core_type<tc>, window_params = [{transform_indices = @transform_0, window_bounds = array<i64: 1, 6, 10, 300>}, {pipeline_mode = #tpu.pipeline_mode<synchronous>, transform_indices = @transform_1, window_bounds = array<i64: 9, 300, 240>}, {transform_indices = @transform_2, window_bounds = array<i64: 1, 6, 10, 300>}]} {
    %cst = arith.constant 0.000000e+00 : f32
    %0 = vector.broadcast %cst : f32 to vector<32x240xf32>
    %c0 = arith.constant 0 : index
    %c0_0 = arith.constant 0 : index
    %c0_1 = arith.constant 0 : index
    %c0_2 = arith.constant 0 : index
    %1 = vector.load %arg1[%c0, %c0_0, %c0_1, %c0_2] : memref<1x6x10x300xf32, #tpu.memory_space<vmem>>, vector<1x4x8x300xf32>
    %2 = vector.shape_cast %1 : vector<1x4x8x300xf32> to vector<4x8x300xf32>
    %3 = vector.shape_cast %2 : vector<4x8x300xf32> to vector<32x300xf32>
    %4 = arith.truncf %3 : vector<32x300xf32> to vector<32x300xbf16>
    %c0_3 = arith.constant 0 : index
    %c0_4 = arith.constant 0 : index
    %c0_5 = arith.constant 0 : index
    %5 = vector.load %arg2[%c0_3, %c0_4, %c0_5] : memref<9x300x240xbf16, #tpu.memory_space<vmem>>, vector<1x300x240xbf16>
    %6 = vector.shape_cast %5 : vector<1x300x240xbf16> to vector<300x240xbf16>
    %cst_6 = arith.constant dense<0.000000e+00> : vector<32x240xf32>
    %7 = tpu.matmul %4, %6, %cst_6 {dimension_numbers = #tpu.dot_dimension_numbers<[1], [0], [0], [1], [0, 0, 1, 1], [], []>} : vector<32x300xbf16>, vector<300x240xbf16>, vector<32x240xf32> -> vector<32x240xf32>
    %8 = arith.addf %0, %7 : vector<32x240xf32>
    %c0_7 = arith.constant 0 : index
    %c0_8 = arith.constant 0 : index
    %c1 = arith.constant 1 : index
    %c0_9 = arith.constant 0 : index
    %9 = vector.load %arg1[%c0_7, %c0_8, %c1, %c0_9] : memref<1x6x10x300xf32, #tpu.memory_space<vmem>>, vector<1x4x8x300xf32>
    %10 = vector.shape_cast %9 : vector<1x4x8x300xf32> to vector<4x8x300xf32>
    %11 = vector.shape_cast %10 : vector<4x8x300xf32> to vector<32x300xf32>
    %12 = arith.truncf %11 : vector<32x300xf32> to vector<32x300xbf16>
    %c1_10 = arith.constant 1 : index
    %c0_11 = arith.constant 0 : index
    %c0_12 = arith.constant 0 : index
    %13 = vector.load %arg2[%c1_10, %c0_11, %c0_12] : memref<9x300x240xbf16, #tpu.memory_space<vmem>>, vector<1x300x240xbf16>
    %14 = vector.shape_cast %13 : vector<1x300x240xbf16> to vector<300x240xbf16>
    %cst_13 = arith.constant dense<0.000000e+00> : vector<32x240xf32>
    %15 = tpu.matmul %12, %14, %cst_13 {dimension_numbers = #tpu.dot_dimension_numbers<[1], [0], [0], [1], [0, 0, 1, 1], [], []>} : vector<32x300xbf16>, vector<300x240xbf16>, vector<32x240xf32> -> vector<32x240xf32>
    %16 = arith.addf %8, %15 : vector<32x240xf32>
    %c0_14 = arith.constant 0 : index
    %c0_15 = arith.constant 0 : index
    %c2 = arith.constant 2 : index
    %c0_16 = arith.constant 0 : index
    %17 = vector.load %arg1[%c0_14, %c0_15, %c2, %c0_16] : memref<1x6x10x300xf32, #tpu.memory_space<vmem>>, vector<1x4x8x300xf32>
    %18 = vector.shape_cast %17 : vector<1x4x8x300xf32> to vector<4x8x300xf32>
    %19 = vector.shape_cast %18 : vector<4x8x300xf32> to vector<32x300xf32>
    %20 = arith.truncf %19 : vector<32x300xf32> to vector<32x300xbf16>
    %c2_17 = arith.constant 2 : index
    %c0_18 = arith.constant 0 : index
    %c0_19 = arith.constant 0 : index
    %21 = vector.load %arg2[%c2_17, %c0_18, %c0_19] : memref<9x300x240xbf16, #tpu.memory_space<vmem>>, vector<1x300x240xbf16>
    %22 = vector.shape_cast %21 : vector<1x300x240xbf16> to vector<300x240xbf16>
    %cst_20 = arith.constant dense<0.000000e+00> : vector<32x240xf32>
    %23 = tpu.matmul %20, %22, %cst_20 {dimension_numbers = #tpu.dot_dimension_numbers<[1], [0], [0], [1], [0, 0, 1, 1], [], []>} : vector<32x300xbf16>, vector<300x240xbf16>, vector<32x240xf32> -> vector<32x240xf32>
    %24 = arith.addf %16, %23 : vector<32x240xf32>
    %c0_21 = arith.constant 0 : index
    %c1_22 = arith.constant 1 : index
    %c0_23 = arith.constant 0 : index
    %c0_24 = arith.constant 0 : index
    %25 = vector.load %arg1[%c0_21, %c1_22, %c0_23, %c0_24] : memref<1x6x10x300xf32, #tpu.memory_space<vmem>>, vector<1x4x8x300xf32>
    %26 = vector.shape_cast %25 : vector<1x4x8x300xf32> to vector<4x8x300xf32>
    %27 = vector.shape_cast %26 : vector<4x8x300xf32> to vector<32x300xf32>
    %28 = arith.truncf %27 : vector<32x300xf32> to vector<32x300xbf16>
    %c3 = arith.constant 3 : index
    %c0_25 = arith.constant 0 : index
    %c0_26 = arith.constant 0 : index
    %29 = vector.load %arg2[%c3, %c0_25, %c0_26] : memref<9x300x240xbf16, #tpu.memory_space<vmem>>, vector<1x300x240xbf16>
    %30 = vector.shape_cast %29 : vector<1x300x240xbf16> to vector<300x240xbf16>
    %cst_27 = arith.constant dense<0.000000e+00> : vector<32x240xf32>
    %31 = tpu.matmul %28, %30, %cst_27 {dimension_numbers = #tpu.dot_dimension_numbers<[1], [0], [0], [1], [0, 0, 1, 1], [], []>} : vector<32x300xbf16>, vector<300x240xbf16>, vector<32x240xf32> -> vector<32x240xf32>
    %32 = arith.addf %24, %31 : vector<32x240xf32>
    %c0_28 = arith.constant 0 : index
    %c1_29 = arith.constant 1 : index
    %c1_30 = arith.constant 1 : index
    %c0_31 = arith.constant 0 : index
    %33 = vector.load %arg1[%c0_28, %c1_29, %c1_30, %c0_31] : memref<1x6x10x300xf32, #tpu.memory_space<vmem>>, vector<1x4x8x300xf32>
    %34 = vector.shape_cast %33 : vector<1x4x8x300xf32> to vector<4x8x300xf32>
    %35 = vector.shape_cast %34 : vector<4x8x300xf32> to vector<32x300xf32>
    %36 = arith.truncf %35 : vector<32x300xf32> to vector<32x300xbf16>
    %c4 = arith.constant 4 : index
    %c0_32 = arith.constant 0 : index
    %c0_33 = arith.constant 0 : index
    %37 = vector.load %arg2[%c4, %c0_32, %c0_33] : memref<9x300x240xbf16, #tpu.memory_space<vmem>>, vector<1x300x240xbf16>
    %38 = vector.shape_cast %37 : vector<1x300x240xbf16> to vector<300x240xbf16>
    %cst_34 = arith.constant dense<0.000000e+00> : vector<32x240xf32>
    %39 = tpu.matmul %36, %38, %cst_34 {dimension_numbers = #tpu.dot_dimension_numbers<[1], [0], [0], [1], [0, 0, 1, 1], [], []>} : vector<32x300xbf16>, vector<300x240xbf16>, vector<32x240xf32> -> vector<32x240xf32>
    %40 = arith.addf %32, %39 : vector<32x240xf32>
    %c0_35 = arith.constant 0 : index
    %c1_36 = arith.constant 1 : index
    %c2_37 = arith.constant 2 : index
    %c0_38 = arith.constant 0 : index
    %41 = vector.load %arg1[%c0_35, %c1_36, %c2_37, %c0_38] : memref<1x6x10x300xf32, #tpu.memory_space<vmem>>, vector<1x4x8x300xf32>
    %42 = vector.shape_cast %41 : vector<1x4x8x300xf32> to vector<4x8x300xf32>
    %43 = vector.shape_cast %42 : vector<4x8x300xf32> to vector<32x300xf32>
    %44 = arith.truncf %43 : vector<32x300xf32> to vector<32x300xbf16>
    %c5 = arith.constant 5 : index
    %c0_39 = arith.constant 0 : index
    %c0_40 = arith.constant 0 : index
    %45 = vector.load %arg2[%c5, %c0_39, %c0_40] : memref<9x300x240xbf16, #tpu.memory_space<vmem>>, vector<1x300x240xbf16>
    %46 = vector.shape_cast %45 : vector<1x300x240xbf16> to vector<300x240xbf16>
    %cst_41 = arith.constant dense<0.000000e+00> : vector<32x240xf32>
    %47 = tpu.matmul %44, %46, %cst_41 {dimension_numbers = #tpu.dot_dimension_numbers<[1], [0], [0], [1], [0, 0, 1, 1], [], []>} : vector<32x300xbf16>, vector<300x240xbf16>, vector<32x240xf32> -> vector<32x240xf32>
    %48 = arith.addf %40, %47 : vector<32x240xf32>
    %c0_42 = arith.constant 0 : index
    %c2_43 = arith.constant 2 : index
    %c0_44 = arith.constant 0 : index
    %c0_45 = arith.constant 0 : index
    %49 = vector.load %arg1[%c0_42, %c2_43, %c0_44, %c0_45] : memref<1x6x10x300xf32, #tpu.memory_space<vmem>>, vector<1x4x8x300xf32>
    %50 = vector.shape_cast %49 : vector<1x4x8x300xf32> to vector<4x8x300xf32>
    %51 = vector.shape_cast %50 : vector<4x8x300xf32> to vector<32x300xf32>
    %52 = arith.truncf %51 : vector<32x300xf32> to vector<32x300xbf16>
    %c6 = arith.constant 6 : index
    %c0_46 = arith.constant 0 : index
    %c0_47 = arith.constant 0 : index
    %53 = vector.load %arg2[%c6, %c0_46, %c0_47] : memref<9x300x240xbf16, #tpu.memory_space<vmem>>, vector<1x300x240xbf16>
    %54 = vector.shape_cast %53 : vector<1x300x240xbf16> to vector<300x240xbf16>
    %cst_48 = arith.constant dense<0.000000e+00> : vector<32x240xf32>
    %55 = tpu.matmul %52, %54, %cst_48 {dimension_numbers = #tpu.dot_dimension_numbers<[1], [0], [0], [1], [0, 0, 1, 1], [], []>} : vector<32x300xbf16>, vector<300x240xbf16>, vector<32x240xf32> -> vector<32x240xf32>
    %56 = arith.addf %48, %55 : vector<32x240xf32>
    %c0_49 = arith.constant 0 : index
    %c2_50 = arith.constant 2 : index
    %c1_51 = arith.constant 1 : index
    %c0_52 = arith.constant 0 : index
    %57 = vector.load %arg1[%c0_49, %c2_50, %c1_51, %c0_52] : memref<1x6x10x300xf32, #tpu.memory_space<vmem>>, vector<1x4x8x300xf32>
    %58 = vector.shape_cast %57 : vector<1x4x8x300xf32> to vector<4x8x300xf32>
    %59 = vector.shape_cast %58 : vector<4x8x300xf32> to vector<32x300xf32>
    %60 = arith.truncf %59 : vector<32x300xf32> to vector<32x300xbf16>
    %c7 = arith.constant 7 : index
    %c0_53 = arith.constant 0 : index
    %c0_54 = arith.constant 0 : index
    %61 = vector.load %arg2[%c7, %c0_53, %c0_54] : memref<9x300x240xbf16, #tpu.memory_space<vmem>>, vector<1x300x240xbf16>
    %62 = vector.shape_cast %61 : vector<1x300x240xbf16> to vector<300x240xbf16>
    %cst_55 = arith.constant dense<0.000000e+00> : vector<32x240xf32>
    %63 = tpu.matmul %60, %62, %cst_55 {dimension_numbers = #tpu.dot_dimension_numbers<[1], [0], [0], [1], [0, 0, 1, 1], [], []>} : vector<32x300xbf16>, vector<300x240xbf16>, vector<32x240xf32> -> vector<32x240xf32>
    %64 = arith.addf %56, %63 : vector<32x240xf32>
    %c0_56 = arith.constant 0 : index
    %c2_57 = arith.constant 2 : index
    %c2_58 = arith.constant 2 : index
    %c0_59 = arith.constant 0 : index
    %65 = vector.load %arg1[%c0_56, %c2_57, %c2_58, %c0_59] : memref<1x6x10x300xf32, #tpu.memory_space<vmem>>, vector<1x4x8x300xf32>
    %66 = vector.shape_cast %65 : vector<1x4x8x300xf32> to vector<4x8x300xf32>
    %67 = vector.shape_cast %66 : vector<4x8x300xf32> to vector<32x300xf32>
    %68 = arith.truncf %67 : vector<32x300xf32> to vector<32x300xbf16>
    %c8 = arith.constant 8 : index
    %c0_60 = arith.constant 0 : index
    %c0_61 = arith.constant 0 : index
    %69 = vector.load %arg2[%c8, %c0_60, %c0_61] : memref<9x300x240xbf16, #tpu.memory_space<vmem>>, vector<1x300x240xbf16>
    %70 = vector.shape_cast %69 : vector<1x300x240xbf16> to vector<300x240xbf16>
    %cst_62 = arith.constant dense<0.000000e+00> : vector<32x240xf32>
    %71 = tpu.matmul %68, %70, %cst_62 {dimension_numbers = #tpu.dot_dimension_numbers<[1], [0], [0], [1], [0, 0, 1, 1], [], []>} : vector<32x300xbf16>, vector<300x240xbf16>, vector<32x240xf32> -> vector<32x240xf32>
    %72 = arith.addf %64, %71 : vector<32x240xf32>
    %cst_63 = arith.constant 0.000000e+00 : f32
    %73 = vector.broadcast %cst_63 : f32 to vector<32x240xf32>
    %74 = arith.cmpf oge, %72, %73 : vector<32x240xf32>
    %cst_64 = arith.constant 0.00999999977 : f32
    %75 = vector.broadcast %cst_64 : f32 to vector<32x240xf32>
    %76 = arith.mulf %75, %72 : vector<32x240xf32>
    %77 = arith.select %74, %72, %76 : vector<32x240xi1>, vector<32x240xf32>
    %cst_65 = arith.constant 0.000000e+00 : f32
    %78 = vector.broadcast %cst_65 : f32 to vector<1x6x10x300xf32>
    %c0_66 = arith.constant 0 : index
    %c0_67 = arith.constant 0 : index
    %c0_68 = arith.constant 0 : index
    %c0_69 = arith.constant 0 : index
    %79 = vector.load %arg3[%c0_66, %c0_67, %c0_68, %c0_69] : memref<1x6x10x300xf32, #tpu.memory_space<vmem>>, vector<1x6x10x300xf32>
    tpu.vector_store %arg3[%c0_66, %c0_67, %c0_68, %c0_69], %78 {strides = array<i32>} : memref<1x6x10x300xf32, #tpu.memory_space<vmem>>, vector<1x6x10x300xf32>,
    %80 = vector.shape_cast %77 : vector<32x240xf32> to vector<1x4x8x240xf32>
    %c0_70 = arith.constant 0 : index
    %c1_71 = arith.constant 1 : index
    %c1_72 = arith.constant 1 : index
    %c30 = arith.constant 30 : index
    %81 = vector.load %arg3[%c0_70, %c1_71, %c1_72, %c30] : memref<1x6x10x300xf32, #tpu.memory_space<vmem>>, vector<1x4x8x240xf32>
    tpu.vector_store %arg3[%c0_70, %c1_71, %c1_72, %c30], %80 {strides = array<i32>} : memref<1x6x10x300xf32, #tpu.memory_space<vmem>>, vector<1x4x8x240xf32>,
    return
  }
  func.func @transform_0(%arg0: i32) -> (i32, i32, i32, i32) {
    %c0_i32 = arith.constant 0 : i32
    %c0_i32_0 = arith.constant 0 : i32
    %c0_i32_1 = arith.constant 0 : i32
    %c0_i32_2 = arith.constant 0 : i32
    return %arg0, %c0_i32, %c0_i32_0, %c0_i32_1 : i32, i32, i32, i32
  }
  func.func @transform_1(%arg0: i32) -> (i32, i32, i32) {
    %c0_i32 = arith.constant 0 : i32
    %c0_i32_0 = arith.constant 0 : i32
    %c0_i32_1 = arith.constant 0 : i32
    %c0_i32_2 = arith.constant 0 : i32
    return %c0_i32, %c0_i32_0, %c0_i32_1 : i32, i32, i32
  }
  func.func @transform_2(%arg0: i32) -> (i32, i32, i32, i32) {
    %c0_i32 = arith.constant 0 : i32
    %c0_i32_0 = arith.constant 0 : i32
    %c0_i32_1 = arith.constant 0 : i32
    %c0_i32_2 = arith.constant 0 : i32
    return %arg0, %c0_i32, %c0_i32_0, %c0_i32_1 : i32, i32, i32, i32
  }
}

</mosaic_0001>

<bundles_post_ra>
// kernel: tpu_custom_call.1
= control target key start
LH: loop header
LB: loop body
LE: loop exit
PB: predicated region body
PF: predicated region fallthrough
CT: control target
= control target key end

     0   :  { %7 = vsyncpa [#allocation3], 0  ;;  %s6267_s9 = smov 0   ;;  %s7383_s0 = inlined_call_operand.vmem [shape: f32[2,6,10,300], index: 0, kind: input, shape index: {}]   ;;  %s7384_s1 = inlined_call_operand.hbm [shape: bf16[9,300,240], index: 1, kind: input, shape index: {}]   ;;  %s7385_s2 = inlined_call_operand.vmem [shape: f32[2,6,10,300], index: 2, kind: output, shape index: {}]  }
   0x1 LB: > { %s102_s12 = sshll.u32 %s7384_s1, 4  ;;  %s4271_s13 = sadd.s32 4294967295, %s6245_s9   ;;  %s6245_s9 = sphi %s6267_s9, %s13_s9   ;;  %s103_s12 = int_to_ptr.hbm [resolvable:$true] %s102_s12 }
   0x2   : > { %p4273_p0 = scmp.ge.s32.totalorder %s6245_s9, 1  ;;  %p91_p1 = scmp.lt.s32.totalorder %s6245_s9, 3 }
   0x3   : > { %p6189_p2 = scmp.eq.s32.totalorder %s4271_s13, 0  ;;  %s6247_s14 = smov [#allocation2]  }
   0x4   : > { %p92_p3 = pnand %p4273_p0, %p91_p1  ;;  %s104_s15 = sshll.u32 %s6247_s14, 4  ;;  %s105_s15 = int_to_ptr.vmem [resolvable:$true] %s104_s15 }
   0x5   : > { %s6248_s16 = smov 128   ;;  %s6249_s17 = smov 8  }
   0x6   : > { %p6185_p4 = pneg %p92_p3  ;;  %128 = sbr.rel (%p92_p3) target bundleno = 736 (0x2e0), region = 28 }
   0x8   : > { %p6186_p5 = pnand %p6189_p2, %p6185_p4 }
   0xa   : > { %6188 = dma.hbm_to_vmem [thread:$0]  (!%p6186_p5), %s103_s12, 43776, %s105_s15, [#allocation3], %s6248_s16, %s6248_s16, %s6249_s17  }
   0xb   : > { %6240 = dma.done.wait (%p6189_p2), [#allocation3], 43776  }
   0xc   : > { %6242 = vsyncadd (%p6189_p2), [#allocation3], 4294923520  ;;  %p151_p6 = scmp.lt.s32.totalorder %s4271_s13, 1  ;;  %vm555_vm0 = vcmask 1045504   ;;  %v4338_v0 = vld [vmem:[#allocation2 + $0x1a0] sm:$0xf] }
   0xd   : > { %v5883_v1 = vld [vmem:[#allocation2 + $0x1a4] sm:$0xf0]  ;;  %v4402_v2 = vld [vmem:[#allocation2 + $0x220] sm:$0xf]  ;;  %v5882_v5 = vld [vmem:[#allocation2 + $0x1a4] sm:$0xf] }
   0xe   : > { %s7387_s13 = smov (!%p151_p6, %s4271_s13), 1  ;;  %v4339_v3 = vor.u32 %v5883_v1, %v4338_v0  ;;  %v5899_v4 = vld [vmem:[#allocation2 + $0x224] sm:$0xf0]  ;;  %v4340_v6 = vld [vmem:[#allocation2 + $0x1a8] sm:$0xf0]  ;;  %vm266_vm1 = vcmask 1046528  }
   0xf   : > { %s6180_s18 = smul.u32 288, %s7387_s13  ;;  %v4403_v7 = vor.u32 %v5899_v4, %v4402_v2  ;;  %v4343_v8 = vor.u32 %v5882_v5, %v4340_v6  ;;  %v4426_v9 = vld [vmem:[#allocation2 + $0x250] sm:$0xf]  ;;  %v5905_v10 = vld [vmem:[#allocation2 + $0x254] sm:$0x30]  ;;  %vm548_vm2 = vcmask 359424  }
  0x10   : > { %v4330_v11 = vld [vmem:[#allocation2 + $0x190] sm:$0xf]  ;;  %562 = vmatpush.bf16.msra.mxu0 %v4339_v3  ;;  %v4427_v12 = vor.u32 %v5905_v10, %v4426_v9  ;;  %v5881_v13 = vld [vmem:[#allocation2 + $0x194] sm:$0xf0]  ;;  %v5880_v18 = vld [vmem:[#allocation2 + $0x194] sm:$0xf] }
  0x11   : > { %v4394_v14 = vld [vmem:[#allocation2 + $0x210] sm:$0xf]  ;;  %v5897_v15 = vld [vmem:[#allocation2 + $0x214] sm:$0xf0]  ;;  %581 = vmatpush.bf16.msra.mxu1 %v4403_v7  ;;  %619 = vmatpush.bf16.msra.mxu3 %v4343_v8  ;;  %v4331_v16 = vor.u32 %v5881_v13, %v4330_v11  ;;  %v4332_v19 = vld [vmem:[#allocation2 + $0x198] sm:$0xf0]  ;;  %s6287_s21 = scalar_lea.vmem %s7383_s0, %s6180_s18  ;;  %s7232_s24 = scalar_lea.vmem %s7385_s2, %s6180_s18 }
  0x12   : > { %v4395_v17 = vor.u32 %v5897_v15, %v4394_v14  ;;  %v4418_v20 = vld [vmem:[#allocation2 + $0x240] sm:$0xf]  ;;  %v557_v21 = vsel %vm555_vm0, %v4427_v12, 0  ;;  %v4335_v22 = vor.u32 %v5880_v18, %v4332_v19  ;;  %v5903_v23 = vld [vmem:[#allocation2 + $0x244] sm:$0xf0]  ;;  %s6251_s25 = smov 30  }
  0x13   : > { %v4322_v24 = vld [vmem:[#allocation2 + $0x180] sm:$0xf]  ;;  %605 = vmatpush.bf16.msra.mxu2 %v557_v21  ;;  %v4419_v25 = vor.u32 %v5903_v23, %v4418_v20  ;;  %v5879_v26 = vld [vmem:[#allocation2 + $0x184] sm:$0xf0]  ;;  %v5878_v30 = vld [vmem:[#allocation2 + $0x184] sm:$0xf] }
  0x14   : > { %v4386_v27 = vld [vmem:[#allocation2 + $0x200] sm:$0xf]  ;;  %v5895_v28 = vld [vmem:[#allocation2 + $0x204] sm:$0xf0]  ;;  %563 = vmatpush.bf16.msra.mxu0 %v4331_v16  ;;  %v4323_v29 = vor.u32 %v5879_v26, %v4322_v24  ;;  %v4324_v31 = vld [vmem:[#allocation2 + $0x188] sm:$0xf0] }
  0x15   : > { %v4410_v32 = vld [vmem:[#allocation2 + $0x230] sm:$0xf]  ;;  %582 = vmatpush.bf16.msra.mxu1 %v4395_v17  ;;  %620 = vmatpush.bf16.msra.mxu3 %v4335_v22  ;;  %v4387_v33 = vor.u32 %v5895_v28, %v4386_v27  ;;  %v4327_v34 = vor.u32 %v5878_v30, %v4324_v31  ;;  %v5901_v35 = vld [vmem:[#allocation2 + $0x234] sm:$0xf0]  ;;  %v223_v43 = vld [vmem:[%s6287_s21 + $0x28] sm:$0x1] }
  0x16   : > { %v4314_v36 = vld [vmem:[#allocation2 + $0x170] sm:$0xf]  ;;  %v5877_v37 = vld [vmem:[#allocation2 + $0x174] sm:$0xf0]  ;;  %v4411_v41 = vor.u32 %v5901_v35, %v4410_v32  ;;  %v226_v44 = vld [vmem:[%s6287_s21 + $0x40] sm:$0xfe] }
  0x17   : > { %v4378_v38 = vld [vmem:[#allocation2 + $0x1f0] sm:$0xf]  ;;  %v5893_v39 = vld [vmem:[#allocation2 + $0x1f4] sm:$0xf0]  ;;  %606 = vmatpush.bf16.msra.mxu2 %v4419_v25  ;;  %v4315_v42 = vor.u32 %v5877_v37, %v4314_v36  ;;  %v274_v47 = vrot.slane %v223_v43, 1  ;;  %v282_v48 = vrot.slane %v226_v44, 1 }
  0x18   : > { %v220_v40 = vld [vmem:[%s6287_s21 + $0x10] sm:$0xfe]  ;;  %v229_v45 = vld [vmem:[%s6287_s21 + $0x58] sm:$0x1]  ;;  %564 = vmatpush.bf16.msra.mxu0 %v4323_v29  ;;  %v4379_v51 = vor.u32 %v5893_v39, %v4378_v38  ;;  %v4316_v52 = vld [vmem:[#allocation2 + $0x178] sm:$0xf0] }
  0x19   : > { %v273_v46 = vrot.slane %v220_v40, 1  ;;  %v283_v49 = vrot.slane %v229_v45, 1  ;;  %v5876_v50 = vld [vmem:[#allocation2 + $0x174] sm:$0xf]  ;;  %583 = vmatpush.bf16.msra.mxu1 %v4387_v33  ;;  %621 = vmatpush.bf16.msra.mxu3 %v4327_v34  ;;  %v5898_v53 = vld [vmem:[#allocation2 + $0x224] sm:$0xf] }
  0x1a   : > { %v4404_v54 = vld [vmem:[#allocation2 + $0x228] sm:$0xf0]  ;;  %v4319_v57 = vor.u32 %v5876_v50, %v4316_v52  ;;  %v4306_v59 = vld [vmem:[#allocation2 + $0x160] sm:$0xf]  ;;  %v5875_v60 = vld [vmem:[#allocation2 + $0x164] sm:$0xf0] }
  0x1b   : > { %v275_v55 = vsel %vm266_vm1, %v273_v46, %v274_v47  ;;  %v284_v56 = vsel %vm266_vm1, %v282_v48, %v283_v49  ;;  %v4407_v58 = vor.u32 %v5898_v53, %v4404_v54  ;;  %v4370_v61 = vld [vmem:[#allocation2 + $0x1e0] sm:$0xf]  ;;  %607 = vmatpush.bf16.msra.mxu2 %v4411_v41  ;;  %v5891_v63 = vld [vmem:[#allocation2 + $0x1e4] sm:$0xf0]  ;;  %v5874_v0 = vld [vmem:[#allocation2 + $0x164] sm:$0xf]  ;;  %v4307_v2 = vor.u32 %v5875_v60, %v4306_v59 }
  0x1c   : > { %v6295_v62 = vpack.c.bf16 %v284_v56, %v275_v55  ;;  %v4308_v1 = vld [vmem:[#allocation2 + $0x168] sm:$0xf0]  ;;  %565 = vmatpush.bf16.msra.mxu0 %v4315_v42  ;;  %v5896_v3 = vld [vmem:[#allocation2 + $0x214] sm:$0xf]  ;;  %v4396_v4 = vld [vmem:[#allocation2 + $0x218] sm:$0xf0]  ;;  %v4371_v6 = vor.u32 %v5891_v63, %v4370_v61 }
  0x1d   : > { %v4298_v5 = vld [vmem:[#allocation2 + $0x150] sm:$0xf]  ;;  %584 = vmatpush.bf16.msra.mxu1 %v4379_v51  ;;  %622 = vmatpush.bf16.msra.mxu3 %v4319_v57  ;;  %v4311_v7 = vor.u32 %v5874_v0, %v4308_v1  ;;  %v4399_v8 = vor.u32 %v5896_v3, %v4396_v4  ;;  %v5873_v9 = vld [vmem:[#allocation2 + $0x154] sm:$0xf0]  ;;  %v5872_v12 = vld [vmem:[#allocation2 + $0x154] sm:$0xf] }
  0x1e   : > { %v4362_v10 = vld [vmem:[#allocation2 + $0x1d0] sm:$0xf]  ;;  %v5889_v11 = vld [vmem:[#allocation2 + $0x1d4] sm:$0xf0]  ;;  %4432 = vmatmul.msk.bf16.vlgmr.msra.gmra.mxu2 %vm548_vm2, %v6295_v62  ;;  %v4300_v13 = vld [vmem:[#allocation2 + $0x158] sm:$0xf0]  ;;  %v4299_v16 = vor.u32 %v5873_v9, %v4298_v5 }
  0x1f   : > { %638 = vmatpush.bf16.msrb.mxu2 %v4407_v58  ;;  %v5894_v14 = vld [vmem:[#allocation2 + $0x204] sm:$0xf]  ;;  %v4388_v15 = vld [vmem:[#allocation2 + $0x208] sm:$0xf0]  ;;  %v4290_v18 = vld [vmem:[#allocation2 + $0x140] sm:$0xf]  ;;  %v4363_v21 = vor.u32 %v5889_v11, %v4362_v10  ;;  %v4303_v22 = vor.u32 %v5872_v12, %v4300_v13 }
  0x20   : > { %566 = vmatpush.bf16.msra.mxu0 %v4307_v2  ;;  %v4391_v17 = vor.u32 %v5894_v14, %v4388_v15  ;;  %v5871_v19 = vld [vmem:[#allocation2 + $0x144] sm:$0xf0]  ;;  %v4354_v20 = vld [vmem:[#allocation2 + $0x1c0] sm:$0xf]  ;;  %v5892_v24 = vld [vmem:[#allocation2 + $0x1f4] sm:$0xf] }
  0x21   : > { %585 = vmatpush.bf16.msra.mxu1 %v4371_v6  ;;  %623 = vmatpush.bf16.msra.mxu3 %v4311_v7  ;;  %v5887_v23 = vld [vmem:[#allocation2 + $0x1c4] sm:$0xf0]  ;;  %v4380_v25 = vld [vmem:[#allocation2 + $0x1f8] sm:$0xf0]  ;;  %v5870_v26 = vld [vmem:[#allocation2 + $0x144] sm:$0xf]  ;;  %v4291_v32 = vor.u32 %v5871_v19, %v4290_v18 }
  0x22   : > { %v4292_v27 = vld [vmem:[#allocation2 + $0x148] sm:$0xf0]  ;;  %v4282_v28 = vld [vmem:[#allocation2 + $0x130] sm:$0xf]  ;;  %v5869_v29 = vld [vmem:[#allocation2 + $0x134] sm:$0xf0]  ;;  %v4383_v33 = vor.u32 %v5892_v24, %v4380_v25  ;;  %v4355_v40 = vor.u32 %v5887_v23, %v4354_v20 }
  0x23   : > { %639 = vmatpush.bf16.msrb.mxu2 %v4399_v8  ;;  %v232_v30 = vld [vmem:[%s6287_s21 + $0x70] sm:$0xfe]  ;;  %v235_v31 = vld [vmem:[%s6287_s21 + $0x88] sm:$0x1]  ;;  %v5885_v35 = vld [vmem:[#allocation2 + $0x1b4] sm:$0xf0]  ;;  %v4295_v41 = vor.u32 %v5870_v26, %v4292_v27  ;;  %v4283_v49 = vor.u32 %v5869_v29, %v4282_v28 }
  0x24   : > { %567 = vmatpush.bf16.msra.mxu0 %v4299_v16  ;;  %v4346_v34 = vld [vmem:[#allocation2 + $0x1b0] sm:$0xf]  ;;  %v238_v36 = vld [vmem:[%s6287_s21 + $0xa0] sm:$0xfe]  ;;  %v241_v37 = vld [vmem:[%s6287_s21 + $0xb8] sm:$0x1] }
  0x25   : > { %v291_v38 = vrot.slane %v232_v30, 1  ;;  %v292_v39 = vrot.slane %v235_v31, 1  ;;  %586 = vmatpush.bf16.msra.mxu1 %v4363_v21  ;;  %624 = vmatpush.bf16.msra.mxu3 %v4303_v22  ;;  %v300_v42 = vrot.slane %v238_v36, 1  ;;  %v301_v43 = vrot.slane %v241_v37, 1  ;;  %v5868_v44 = vld [vmem:[#allocation2 + $0x134] sm:$0xf] }
  0x26   : > { %v4284_v45 = vld [vmem:[#allocation2 + $0x138] sm:$0xf0]  ;;  %v5890_v46 = vld [vmem:[#allocation2 + $0x1e4] sm:$0xf]  ;;  %v4372_v47 = vld [vmem:[#allocation2 + $0x1e8] sm:$0xf0]  ;;  %v4347_v60 = vor.u32 %v5885_v35, %v4346_v34 }
  0x27   : > { %640 = vmatpush.bf16.msrb.mxu2 %v4391_v17  ;;  %v218_v48 = vld [vmem:[%s6287_s21] sm:$0xfe]  ;;  %v293_v50 = vsel %vm266_vm1, %v291_v38, %v292_v39  ;;  %v302_v51 = vsel %vm266_vm1, %v300_v42, %v301_v43  ;;  %v221_v52 = vld [vmem:[%s6287_s21 + $0x18] sm:$0x1]  ;;  %v224_v53 = vld [vmem:[%s6287_s21 + $0x30] sm:$0xfe]  ;;  %v4375_v55 = vor.u32 %v5890_v46, %v4372_v47  ;;  %v4287_v61 = vor.u32 %v5868_v44, %v4284_v45 }
  0x28   : > { %v227_v54 = vld [vmem:[%s6287_s21 + $0x48] sm:$0x1]  ;;  %568 = vmatpush.bf16.msra.mxu0 %v4291_v32  ;;  %v267_v56 = vrot.slane %v218_v48, 1  ;;  %v268_v57 = vrot.slane %v221_v52, 1  ;;  %v276_v58 = vrot.slane %v224_v53, 1  ;;  %v6312_v3 = vpack.c.bf16 %v302_v51, %v293_v50 }
  0x29   : > { %v219_v59 = vld [vmem:[%s6287_s21 + $0x8] sm:$0xfe]  ;;  %587 = vmatpush.bf16.msra.mxu1 %v4355_v40  ;;  %625 = vmatpush.bf16.msra.mxu3 %v4295_v41  ;;  %v277_v63 = vrot.slane %v227_v54, 1  ;;  %v222_v0 = vld [vmem:[%s6287_s21 + $0x20] sm:$0x1]  ;;  %vm4094_vm11 = vcmask 353280  }
  0x2a   : > { %v225_v1 = vld [vmem:[%s6287_s21 + $0x38] sm:$0xfe]  ;;  %v270_v2 = vrot.slane %v219_v59, 1  ;;  %v269_v4 = vsel %vm266_vm1, %v267_v56, %v268_v57  ;;  %v228_v5 = vld [vmem:[%s6287_s21 + $0x50] sm:$0x1]  ;;  %v271_v6 = vrot.slane %v222_v0, 1 }
  0x2b   : > { %641 = vmatpush.bf16.msrb.mxu2 %v4383_v33  ;;  %v279_v7 = vrot.slane %v225_v1, 1  ;;  %v5888_v8 = vld [vmem:[#allocation2 + $0x1d4] sm:$0xf]  ;;  %v278_v9 = vsel %vm266_vm1, %v276_v58, %v277_v63  ;;  %v280_v10 = vrot.slane %v228_v5, 1  ;;  %v4364_v11 = vld [vmem:[#allocation2 + $0x1d8] sm:$0xf0] }
  0x2c   : > { %v4494_v12 = vld [vmem:[#allocation2 + $0x70] sm:$0xf]  ;;  %569 = vmatpush.bf16.msra.mxu0 %v4283_v49  ;;  %v315_v13 = vpack.c.bf16 %v278_v9, %v269_v4  ;;  %v272_v14 = vsel %vm266_vm1, %v270_v2, %v271_v6  ;;  %v4367_v15 = vor.u32 %v5888_v8, %v4364_v11  ;;  %v5845_v16 = vld [vmem:[#allocation2 + $0x74] sm:$0xf0]  ;;  %v5886_v22 = vld [vmem:[#allocation2 + $0x1c4] sm:$0xf] }
  0x2d   : > { %v4558_v17 = vld [vmem:[#allocation2 + $0xf0] sm:$0xf]  ;;  %v5861_v18 = vld [vmem:[#allocation2 + $0xf4] sm:$0xf0]  ;;  %588 = vmatpush.bf16.msra.mxu1 %v4347_v60  ;;  %626 = vmatpush.bf16.msra.mxu3 %v4287_v61  ;;  %v281_v19 = vsel %vm266_vm1, %v279_v7, %v280_v10  ;;  %v4495_v20 = vor.u32 %v5845_v16, %v4494_v12  ;;  %v4356_v23 = vld [vmem:[#allocation2 + $0x1c8] sm:$0xf0] }
  0x2e   : > { %v4559_v21 = vor.u32 %v5861_v18, %v4558_v17  ;;  %v5904_v24 = vld [vmem:[#allocation2 + $0x254] sm:$0xf]  ;;  %4433 = vmatmul.msk.bf16.gmra.mxu2 %vm548_vm2, %v6312_v3  ;;  %v6321_v25 = vpack.c.bf16 %v281_v19, %v272_v14  ;;  %v4428_v26 = vld [vmem:[#allocation2 + $0x258] sm:$0x30]  ;;  %v4486_v27 = vld [vmem:[#allocation2 + $0x60] sm:$0xf]  ;;  %v4359_v35 = vor.u32 %v5886_v22, %v4356_v23 }
  0x2f   : > { %642 = vmatpush.bf16.msrb.mxu2 %v4375_v55  ;;  %v5843_v28 = vld [vmem:[#allocation2 + $0x64] sm:$0xf0]  ;;  %570 = vmatmul.bf16.vlgmr.msra.gmra.mxu0 %v315_v13  ;;  %v4431_v29 = vor.u32 %v5904_v24, %v4428_v26  ;;  %v4550_v31 = vld [vmem:[#allocation2 + $0xe0] sm:$0xf]  ;;  %v4478_v33 = vld [vmem:[#allocation2 + $0x50] sm:$0xf] }
  0x30   : > { %v4487_v30 = vor.u32 %v5843_v28, %v4486_v27  ;;  %v5859_v32 = vld [vmem:[#allocation2 + $0xe4] sm:$0xf0]  ;;  %589 = vmatmul.bf16.vlgmr.msra.gmra.mxu1 %v6321_v25  ;;  %627 = vmatmul.bf16.vlgmr.msra.gmra.mxu3 %v315_v13  ;;  %v5841_v34 = vld [vmem:[#allocation2 + $0x54] sm:$0xf0]  ;;  %v5884_v38 = vld [vmem:[#allocation2 + $0x1b4] sm:$0xf] }
  0x31   : > { %876 = vmatpush.bf16.msrb.mxu1 %v4495_v20  ;;  %895 = vmatpush.bf16.msrb.mxu3 %v4559_v21  ;;  %v560_v36 = vsel %vm555_vm0, %v4431_v29, 0  ;;  %v4551_v37 = vor.u32 %v5859_v32, %v4550_v31  ;;  %v4348_v39 = vld [vmem:[#allocation2 + $0x1b8] sm:$0xf0]  ;;  %v4542_v40 = vld [vmem:[#allocation2 + $0xd0] sm:$0xf]  ;;  %v4479_v43 = vor.u32 %v5841_v34, %v4478_v33  ;;  %vm4176_vm12 = vcmask 1047793  }
  0x32   : > { %662 = vmatpush.bf16.msrb.mxu0 %v560_v36  ;;  %v5857_v41 = vld [vmem:[#allocation2 + $0xd4] sm:$0xf0]  ;;  %v4470_v42 = vld [vmem:[#allocation2 + $0x40] sm:$0xf]  ;;  %v5839_v44 = vld [vmem:[#allocation2 + $0x44] sm:$0xf0]  ;;  %v4351_v47 = vor.u32 %v5884_v38, %v4348_v39 }
  0x33   : > { %643 = vmatpush.bf16.msrb.mxu2 %v4367_v15  ;;  %v4582_v45 = vld [vmem:[#allocation2 + $0x120] sm:$0xf]  ;;  %v5867_v46 = vld [vmem:[#allocation2 + $0x124] sm:$0x30]  ;;  %v233_v52 = vld [vmem:[%s6287_s21 + $0x78] sm:$0x1]  ;;  %v4543_v54 = vor.u32 %v5857_v41, %v4542_v40  ;;  %v4471_v0 = vor.u32 %v5839_v44, %v4470_v42 }
  0x34   : > { %v4534_v48 = vld [vmem:[#allocation2 + $0xc0] sm:$0xf]  ;;  %v5855_v49 = vld [vmem:[#allocation2 + $0xc4] sm:$0xf0]  ;;  %v4583_v50 = vor.u32 %v5867_v46, %v4582_v45  ;;  %v236_v53 = vld [vmem:[%s6287_s21 + $0x90] sm:$0xfe] }
  0x35   : > { %877 = vmatpush.bf16.msrb.mxu1 %v4487_v30  ;;  %v230_v51 = vld [vmem:[%s6287_s21 + $0x60] sm:$0xfe]  ;;  %896 = vmatpush.bf16.msrb.mxu3 %v4551_v37  ;;  %v239_v55 = vld [vmem:[%s6287_s21 + $0xa8] sm:$0x1]  ;;  %v286_v57 = vrot.slane %v233_v52, 1  ;;  %v294_v58 = vrot.slane %v236_v53, 1  ;;  %v4535_v12 = vor.u32 %v5855_v49, %v4534_v48 }
  0x36   : > { %v285_v56 = vrot.slane %v230_v51, 1  ;;  %v871_v59 = vsel %vm555_vm0, %v4583_v50, 0  ;;  %v295_v60 = vrot.slane %v239_v55, 1  ;;  %v231_v61 = vld [vmem:[%s6287_s21 + $0x68] sm:$0xfe]  ;;  %vm4181_vm13 = vcmask 1040624  }
  0x37   : > { %644 = vmatpush.bf16.msrb.mxu2 %v4359_v35  ;;  %v234_v63 = vld [vmem:[%s6287_s21 + $0x80] sm:$0x1]  ;;  %v237_v1 = vld [vmem:[%s6287_s21 + $0x98] sm:$0xfe]  ;;  %v240_v2 = vld [vmem:[%s6287_s21 + $0xb0] sm:$0x1] }
  0x38   : > { %v288_v4 = vrot.slane %v231_v61, 1  ;;  %v289_v5 = vrot.slane %v234_v63, 1  ;;  %v287_v6 = vsel %vm266_vm1, %v285_v56, %v286_v57  ;;  %v296_v7 = vsel %vm266_vm1, %v294_v58, %v295_v60  ;;  %v5902_v10 = vld [vmem:[#allocation2 + $0x244] sm:$0xf]  ;;  %v4420_v11 = vld [vmem:[#allocation2 + $0x248] sm:$0xf0] }
  0x39   : > { %878 = vmatpush.bf16.msrb.mxu1 %v4479_v43  ;;  %v297_v8 = vrot.slane %v237_v1, 1  ;;  %v298_v9 = vrot.slane %v240_v2, 1  ;;  %897 = vmatpush.bf16.msrb.mxu3 %v4543_v54  ;;  %v4423_v14 = vor.u32 %v5902_v10, %v4420_v11  ;;  %v4462_v15 = vld [vmem:[#allocation2 + $0x30] sm:$0xf]  ;;  %v5837_v16 = vld [vmem:[#allocation2 + $0x34] sm:$0xf0]  ;;  %v318_v20 = vpack.c.bf16 %v296_v7, %v287_v6 }
  0x3a   : > { %v290_v13 = vsel %vm266_vm1, %v288_v4, %v289_v5  ;;  %v4526_v18 = vld [vmem:[#allocation2 + $0xb0] sm:$0xf]  ;;  %v5853_v19 = vld [vmem:[#allocation2 + $0xb4] sm:$0xf0]  ;;  %v4463_v21 = vor.u32 %v5837_v16, %v4462_v15  ;;  %v4454_v24 = vld [vmem:[#allocation2 + $0x20] sm:$0xf] }
  0x3b   : > { %645 = vmatpush.bf16.msrb.mxu2 %v4351_v47  ;;  %v299_v17 = vsel %vm266_vm1, %v297_v8, %v298_v9  ;;  %663 = vmatpush.bf16.msrb.mxu0 %v4423_v14  ;;  %v4574_v22 = vld [vmem:[#allocation2 + $0x110] sm:$0xf]  ;;  %v5835_v26 = vld [vmem:[#allocation2 + $0x24] sm:$0xf0]  ;;  %v5865_v27 = vld [vmem:[#allocation2 + $0x114] sm:$0xf0]  ;;  %v4527_v28 = vor.u32 %v5853_v19, %v4526_v18 }
  0x3c   : > { %v6338_v23 = vpack.c.bf16 %v299_v17, %v290_v13  ;;  %v4575_v29 = vor.u32 %v5865_v27, %v4574_v22  ;;  %v5900_v30 = vld [vmem:[#allocation2 + $0x234] sm:$0xf]  ;;  %v4518_v31 = vld [vmem:[#allocation2 + $0xa0] sm:$0xf]  ;;  %v5851_v32 = vld [vmem:[#allocation2 + $0xa4] sm:$0xf0]  ;;  %v4455_v34 = vor.u32 %v5835_v26, %v4454_v24 }
  0x3d   : > { %879 = vmatpush.bf16.msrb.mxu1 %v4471_v0  ;;  %898 = vmatpush.bf16.msrb.mxu3 %v4535_v12  ;;  %v4412_v33 = vld [vmem:[#allocation2 + $0x238] sm:$0xf0]  ;;  %v4446_v35 = vld [vmem:[#allocation2 + $0x10] sm:$0xf]  ;;  %v5833_v37 = vld [vmem:[#allocation2 + $0x14] sm:$0xf0]  ;;  %v4519_v40 = vor.u32 %v5851_v32, %v4518_v31 }
  0x3e   : > { %646 = vmatmul.bf16.vlgmr.msrb.gmra.mxu2 %v6321_v25  ;;  %v4415_v36 = vor.u32 %v5900_v30, %v4412_v33  ;;  %v5844_v38 = vld [vmem:[#allocation2 + $0x74] sm:$0xf]  ;;  %v4496_v39 = vld [vmem:[#allocation2 + $0x78] sm:$0xf0]  ;;  %v4510_v41 = vld [vmem:[#allocation2 + $0x90] sm:$0xf]  ;;  %v4447_v47 = vor.u32 %v5833_v37, %v4446_v35 }
  0x3f   : > { %919 = vmatpush.bf16.msra.mxu2 %v871_v59  ;;  %575 = vmatmul.bf16.gmra.mxu0 %v318_v20  ;;  %v5849_v42 = vld [vmem:[#allocation2 + $0x94] sm:$0xf0]  ;;  %v4499_v25 = vor.u32 %v5844_v38, %v4496_v39  ;;  %v4566_v43 = vld [vmem:[#allocation2 + $0x100] sm:$0xf]  ;;  %v5863_v44 = vld [vmem:[#allocation2 + $0x104] sm:$0xf0] }
  0x40   : > { %594 = vmatmul.bf16.gmra.mxu1 %v6338_v23  ;;  %632 = vmatmul.bf16.gmra.mxu3 %v318_v20  ;;  %v5842_v45 = vld [vmem:[#allocation2 + $0x64] sm:$0xf]  ;;  %v4488_v46 = vld [vmem:[#allocation2 + $0x68] sm:$0xf0]  ;;  %v4438_v48 = vld [vmem:[#allocation2] sm:$0xf]  ;;  %v4567_v49 = vor.u32 %v5863_v44, %v4566_v43  ;;  %v4511_v54 = vor.u32 %v5849_v42, %v4510_v41 }
  0x41   : > { %880 = vmatpush.bf16.msrb.mxu1 %v4463_v21  ;;  %899 = vmatpush.bf16.msrb.mxu3 %v4527_v28  ;;  %v4491_v50 = vor.u32 %v5842_v45, %v4488_v46  ;;  %v5831_v51 = vld [vmem:[#allocation2 + $0x4] sm:$0xf0]  ;;  %v5840_v52 = vld [vmem:[#allocation2 + $0x54] sm:$0xf]  ;;  %v4480_v53 = vld [vmem:[#allocation2 + $0x58] sm:$0xf0] }
  0x42   : > { %664 = vmatpush.bf16.msrb.mxu0 %v4415_v36  ;;  %v5860_v55 = vld [vmem:[#allocation2 + $0xf4] sm:$0xf]  ;;  %v4560_v56 = vld [vmem:[#allocation2 + $0xf8] sm:$0xf0]  ;;  %v4502_v57 = vld [vmem:[#allocation2 + $0x80] sm:$0xf]  ;;  %v4439_v59 = vor.u32 %v5831_v51, %v4438_v48  ;;  %v4483_v60 = vor.u32 %v5840_v52, %v4480_v53 }
  0x43   : > { %920 = vmatpush.bf16.msra.mxu2 %v4575_v29  ;;  %v5847_v58 = vld [vmem:[#allocation2 + $0x84] sm:$0xf0]  ;;  %v5866_v61 = vld [vmem:[#allocation2 + $0x124] sm:$0xf]  ;;  %v4584_v63 = vld [vmem:[#allocation2 + $0x128] sm:$0x30]  ;;  %v4563_v4 = vor.u32 %v5860_v55, %v4560_v56 }
  0x44   : > { %v4650_v0 = vld [vmem:[#allocation2 + $0x2d0] sm:$0xf]  ;;  %v162_v1 = vld [vmem:[%s6287_s21] sm:$0xff]  ;;  %v4587_v5 = vor.u32 %v5866_v61, %v4584_v63  ;;  %v5921_v6 = vld [vmem:[#allocation2 + $0x2d4] sm:$0xf0]  ;;  %v4503_v7 = vor.u32 %v5847_v58, %v4502_v57  ;;  %vm4158_vm14 = vcmask 244736  }
  0x45   : > { %881 = vmatpush.bf16.msrb.mxu1 %v4455_v34  ;;  %900 = vmatpush.bf16.msrb.mxu3 %v4519_v40  ;;  %v165_v2 = vld [vmem:[%s6287_s21 + $0x30] sm:$0xff]  ;;  %v163_v8 = vld [vmem:[%s6287_s21 + $0x8] sm:$0xff]  ;;  %v6346_v9 = vld [vmem:[%s6287_s21 + $0x38] sm:$0xff]  ;;  %v4651_v11 = vor.u32 %v5921_v6, %v4650_v0  ;;  %vm4179_vm15 = vcmask 113665  }
  0x46   : > { %933 = vmatpush.bf16.msra.mxu0 %v4499_v25  ;;  %v5858_v10 = vld [vmem:[#allocation2 + $0xe4] sm:$0xf]  ;;  %v4552_v12 = vld [vmem:[#allocation2 + $0xe8] sm:$0xf0]  ;;  %v874_v15 = vsel %vm555_vm0, %v4587_v5, 0  ;;  %v6349_v18 = vpack.c.bf16 %v165_v2, %v162_v1  ;;  %v6352_v19 = vpack.c.bf16 %v6346_v9, %v163_v8  ;;  %v164_v43 = vld [vmem:[%s6287_s21 + $0x10] sm:$0xff] }
  0x47   : > { %921 = vmatpush.bf16.msra.mxu2 %v4567_v49  ;;  %v5838_v13 = vld [vmem:[#allocation2 + $0x44] sm:$0xf]  ;;  %v4472_v14 = vld [vmem:[#allocation2 + $0x48] sm:$0xf0]  ;;  %v4642_v16 = vld [vmem:[#allocation2 + $0x2c0] sm:$0xf]  ;;  %v4555_v20 = vor.u32 %v5858_v10, %v4552_v12 }
  0x48   : > { %v5919_v17 = vld [vmem:[#allocation2 + $0x2c4] sm:$0xf0]  ;;  %v5856_v21 = vld [vmem:[#allocation2 + $0xd4] sm:$0xf]  ;;  %v4544_v22 = vld [vmem:[#allocation2 + $0xd8] sm:$0xf0]  ;;  %v4475_v24 = vor.u32 %v5838_v13, %v4472_v14 }
  0x49   : > { %882 = vmatpush.bf16.msrb.mxu1 %v4447_v47  ;;  %901 = vmatpush.bf16.msrb.mxu3 %v4511_v54  ;;  %v5836_v26 = vld [vmem:[#allocation2 + $0x34] sm:$0xf]  ;;  %v4464_v27 = vld [vmem:[#allocation2 + $0x38] sm:$0xf0]  ;;  %v4643_v28 = vor.u32 %v5919_v17, %v4642_v16  ;;  %v4634_v31 = vld [vmem:[#allocation2 + $0x2b0] sm:$0xf]  ;;  %v4547_v34 = vor.u32 %v5856_v21, %v4544_v22 }
  0x4a   : > { %934 = vmatpush.bf16.msra.mxu0 %v4491_v50  ;;  %v5864_v29 = vld [vmem:[#allocation2 + $0x114] sm:$0xf]  ;;  %v4576_v30 = vld [vmem:[#allocation2 + $0x118] sm:$0xf0]  ;;  %v5917_v32 = vld [vmem:[#allocation2 + $0x2b4] sm:$0xf0]  ;;  %v4467_v36 = vor.u32 %v5836_v26, %v4464_v27 }
  0x4b   : > { %1331 = vmatpush.bf16.msrb.mxu2 %v4651_v11  ;;  %v4579_v33 = vor.u32 %v5864_v29, %v4576_v30  ;;  %v4536_v35 = vld [vmem:[#allocation2 + $0xc8] sm:$0xf0]  ;;  %v5834_v37 = vld [vmem:[#allocation2 + $0x24] sm:$0xf]  ;;  %v4635_v39 = vor.u32 %v5917_v32, %v4634_v31  ;;  %v4626_v41 = vld [vmem:[#allocation2 + $0x2a0] sm:$0xf] }
  0x4c   : > { %v4456_v38 = vld [vmem:[#allocation2 + $0x28] sm:$0xf0]  ;;  %v5915_v42 = vld [vmem:[#allocation2 + $0x2a4] sm:$0xf0]  ;;  %v6361_v44 = vld [vmem:[%s6287_s21 + $0x40] sm:$0xff] }
  0x4d   : > { %883 = vmatpush.bf16.msrb.mxu1 %v4439_v59  ;;  %902 = vmatpush.bf16.msrb.mxu3 %v4503_v7  ;;  %v4568_v40 = vld [vmem:[#allocation2 + $0x108] sm:$0xf0]  ;;  %v5852_v46 = vld [vmem:[#allocation2 + $0xb4] sm:$0xf]  ;;  %v4528_v47 = vld [vmem:[#allocation2 + $0xb8] sm:$0xf0]  ;;  %v4459_v48 = vor.u32 %v5834_v37, %v4456_v38  ;;  %v4627_v51 = vor.u32 %v5915_v42, %v4626_v41 }
  0x4e   : > { %935 = vmatpush.bf16.msra.mxu0 %v4483_v60  ;;  %651 = vmatmul.bf16.gmra.mxu2 %v6338_v23  ;;  %v5854_v23 = vld [vmem:[#allocation2 + $0xc4] sm:$0xf]  ;;  %v5832_v49 = vld [vmem:[#allocation2 + $0x14] sm:$0xf]  ;;  %v4448_v50 = vld [vmem:[#allocation2 + $0x18] sm:$0xf0]  ;;  %v4531_v0 = vor.u32 %v5852_v46, %v4528_v47 }
  0x4f   : > { %4434 = vmatmul.msk.bf16.vlgmr.msrb.gmra.mxu0 %vm548_vm2, %v6295_v62  ;;  %1332 = vmatpush.bf16.msrb.mxu2 %v4643_v28  ;;  %v5862_v62 = vld [vmem:[#allocation2 + $0x104] sm:$0xf]  ;;  %v4539_v45 = vor.u32 %v5854_v23, %v4536_v35  ;;  %v5920_v52 = vld [vmem:[#allocation2 + $0x2d4] sm:$0xf]  ;;  %v4652_v53 = vld [vmem:[#allocation2 + $0x2d8] sm:$0xf0]  ;;  %v4451_v2 = vor.u32 %v5832_v49, %v4448_v50 }
  0x50   : > { %884 = vmatmul.bf16.vlgmr.msrb.gmra.mxu1 %v6349_v18  ;;  %903 = vmatmul.bf16.vlgmr.msrb.gmra.mxu3 %v6352_v19  ;;  %v4571_v25 = vor.u32 %v5862_v62, %v4568_v40  ;;  %v6364_v54 = vld [vmem:[%s6287_s21 + $0x60] sm:$0xff]  ;;  %v171_v55 = vld [vmem:[%s6287_s21 + $0x90] sm:$0xff]  ;;  %v4655_v57 = vor.u32 %v5920_v52, %v4652_v53  ;;  %v5913_v58 = vld [vmem:[#allocation2 + $0x294] sm:$0xf0] }
  0x51   : > { %952 = vmatpush.bf16.msra.mxu1 %v4563_v4  ;;  %976 = vmatpush.bf16.msra.mxu3 %v874_v15  ;;  %v4618_v56 = vld [vmem:[#allocation2 + $0x290] sm:$0xf]  ;;  %v5918_v59 = vld [vmem:[#allocation2 + $0x2c4] sm:$0xf]  ;;  %v4644_v60 = vld [vmem:[#allocation2 + $0x2c8] sm:$0xf0]  ;;  %v6374_v4 = vpack.c.bf16 %v6361_v44, %v164_v43  ;;  %v6377_v13 = vpack.c.bf16 %v171_v55, %v6364_v54 }
  0x52   : > { %936 = vmatpush.bf16.msra.mxu0 %v4475_v24  ;;  %v6368_v61 = vld [vmem:[%s6287_s21 + $0x68] sm:$0xff]  ;;  %v6371_v63 = vld [vmem:[%s6287_s21 + $0x98] sm:$0xff]  ;;  %v5850_v1 = vld [vmem:[#allocation2 + $0xa4] sm:$0xf]  ;;  %v4647_v8 = vor.u32 %v5918_v59, %v4644_v60  ;;  %v4619_v10 = vor.u32 %v5913_v58, %v4618_v56 }
  0x53   : > { %1333 = vmatpush.bf16.msrb.mxu2 %v4635_v39  ;;  %v4520_v5 = vld [vmem:[#allocation2 + $0xa8] sm:$0xf0]  ;;  %v5830_v6 = vld [vmem:[#allocation2 + $0x4] sm:$0xf]  ;;  %v4714_v11 = vld [vmem:[#allocation2 + $0x350] sm:$0xf]  ;;  %v6381_v14 = vpack.c.bf16 %v6371_v63, %v6368_v61 }
  0x54   : > { %v4440_v7 = vld [vmem:[#allocation2 + $0x8] sm:$0xf0]  ;;  %v5937_v12 = vld [vmem:[#allocation2 + $0x354] sm:$0xf0]  ;;  %v4610_v15 = vld [vmem:[#allocation2 + $0x280] sm:$0xf] }
  0x55   : > { %953 = vmatpush.bf16.msra.mxu1 %v4555_v20  ;;  %977 = vmatpush.bf16.msra.mxu3 %v4579_v33  ;;  %v5911_v16 = vld [vmem:[#allocation2 + $0x284] sm:$0xf0]  ;;  %v5916_v17 = vld [vmem:[#allocation2 + $0x2b4] sm:$0xf]  ;;  %v4523_v20 = vor.u32 %v5850_v1, %v4520_v5  ;;  %v4443_v21 = vor.u32 %v5830_v6, %v4440_v7  ;;  %v4636_v22 = vld [vmem:[#allocation2 + $0x2b8] sm:$0xf0]  ;;  %v4715_v27 = vor.u32 %v5937_v12, %v4714_v11 }
  0x56   : > { %937 = vmatpush.bf16.msra.mxu0 %v4467_v36  ;;  %v5848_v24 = vld [vmem:[#allocation2 + $0x94] sm:$0xf]  ;;  %v4512_v26 = vld [vmem:[#allocation2 + $0x98] sm:$0xf0]  ;;  %v4639_v28 = vor.u32 %v5916_v17, %v4636_v22  ;;  %v4611_v29 = vor.u32 %v5911_v16, %v4610_v15  ;;  %v4706_v30 = vld [vmem:[#allocation2 + $0x340] sm:$0xf] }
  0x57   : > { %1334 = vmatpush.bf16.msrb.mxu2 %v4627_v51  ;;  %v5935_v31 = vld [vmem:[#allocation2 + $0x344] sm:$0xf0]  ;;  %v4602_v32 = vld [vmem:[#allocation2 + $0x270] sm:$0xf]  ;;  %v5909_v33 = vld [vmem:[#allocation2 + $0x274] sm:$0xf0]  ;;  %v4515_v23 = vor.u32 %v5848_v24, %v4512_v26 }
  0x58   : > { %v4628_v35 = vld [vmem:[#allocation2 + $0x2a8] sm:$0xf0]  ;;  %v5846_v36 = vld [vmem:[#allocation2 + $0x84] sm:$0xf]  ;;  %v4707_v38 = vor.u32 %v5935_v31, %v4706_v30  ;;  %v4603_v39 = vor.u32 %v5909_v33, %v4602_v32  ;;  %v4594_v62 = vld [vmem:[#allocation2 + $0x260] sm:$0xf] }
  0x59   : > { %954 = vmatpush.bf16.msra.mxu1 %v4547_v34  ;;  %978 = vmatpush.bf16.msra.mxu3 %v4571_v25  ;;  %v5914_v34 = vld [vmem:[#allocation2 + $0x2a4] sm:$0xf]  ;;  %v4504_v37 = vld [vmem:[#allocation2 + $0x88] sm:$0xf0]  ;;  %v4698_v40 = vld [vmem:[#allocation2 + $0x330] sm:$0xf] }
  0x5a   : > { %938 = vmatpush.bf16.msra.mxu0 %v4459_v48  ;;  %v5933_v41 = vld [vmem:[#allocation2 + $0x334] sm:$0xf0]  ;;  %v5907_v42 = vld [vmem:[#allocation2 + $0x264] sm:$0xf0]  ;;  %v5912_v25 = vld [vmem:[#allocation2 + $0x294] sm:$0xf] }
  0x5b   : > { %1335 = vmatpush.bf16.msrb.mxu2 %v4619_v10  ;;  %v4620_v43 = vld [vmem:[#allocation2 + $0x298] sm:$0xf0]  ;;  %v5936_v46 = vld [vmem:[#allocation2 + $0x354] sm:$0xf]  ;;  %v4699_v48 = vor.u32 %v5933_v41, %v4698_v40  ;;  %v6393_v50 = vld [vmem:[%s6287_s21 + $0xa0] sm:$0xff]  ;;  %v4595_v51 = vor.u32 %v5907_v42, %v4594_v62 }
  0x5c   : > { %v4716_v47 = vld [vmem:[#allocation2 + $0x358] sm:$0xf0]  ;;  %v6390_v49 = vld [vmem:[%s6287_s21 + $0x70] sm:$0xff]  ;;  %v4623_v52 = vor.u32 %v5912_v25, %v4620_v43  ;;  %v5910_v55 = vld [vmem:[#allocation2 + $0x284] sm:$0xf] }
  0x5d   : > { %955 = vmatpush.bf16.msra.mxu1 %v4539_v45  ;;  %1388 = vmatpush.bf16.msrb.mxu3 %v4655_v57  ;;  %v4507_v45 = vor.u32 %v5846_v36, %v4504_v37  ;;  %v4719_v53 = vor.u32 %v5936_v46, %v4716_v47  ;;  %v4612_v56 = vld [vmem:[#allocation2 + $0x288] sm:$0xf0]  ;;  %v4690_v57 = vld [vmem:[#allocation2 + $0x320] sm:$0xf]  ;;  %v6397_v58 = vpack.c.bf16 %v6393_v50, %v6390_v49  ;;  %v5931_v59 = vld [vmem:[#allocation2 + $0x324] sm:$0xf0] }
  0x5e   : > { %939 = vmatpush.bf16.msra.mxu0 %v4451_v2  ;;  %4588 = vmatmul.msk.bf16.vlgmr.msra.gmra.mxu2 %vm548_vm2, %v6374_v4  ;;  %v5934_v60 = vld [vmem:[#allocation2 + $0x344] sm:$0xf]  ;;  %v4615_v1 = vor.u32 %v5910_v55, %v4612_v56  ;;  %v5908_v2 = vld [vmem:[#allocation2 + $0x274] sm:$0xf]  ;;  %v4691_v6 = vor.u32 %v5931_v59, %v4690_v57  ;;  %v4682_v7 = vld [vmem:[#allocation2 + $0x310] sm:$0xf] }
  0x5f   : > { %4435 = vmatmul.msk.bf16.gmra.mxu0 %vm548_vm2, %v6312_v3  ;;  %v4631_v3 = vor.u32 %v5914_v34, %v4628_v35  ;;  %1336 = vmatpush.bf16.msrb.mxu2 %v4611_v29  ;;  %v990_v5 = vld [vmem:[%s6287_s21] sm:$0xfc]  ;;  %v4604_v10 = vld [vmem:[#allocation2 + $0x278] sm:$0xf0]  ;;  %v5929_v11 = vld [vmem:[#allocation2 + $0x314] sm:$0xf0] }
  0x60   : > { %889 = vmatmul.bf16.gmra.mxu1 %v6377_v13  ;;  %908 = vmatmul.bf16.gmra.mxu3 %v6381_v14  ;;  %v5932_v12 = vld [vmem:[#allocation2 + $0x334] sm:$0xf]  ;;  %v4700_v15 = vld [vmem:[#allocation2 + $0x338] sm:$0xf0]  ;;  %v993_v16 = vld [vmem:[%s6287_s21 + $0x18] sm:$0x3]  ;;  %v4607_v17 = vor.u32 %v5908_v2, %v4604_v10  ;;  %v4683_v24 = vor.u32 %v5929_v11, %v4682_v7 }
  0x61   : > { %956 = vmatpush.bf16.msra.mxu1 %v4531_v0  ;;  %1389 = vmatpush.bf16.msrb.mxu3 %v4647_v8  ;;  %v4708_v0 = vld [vmem:[#allocation2 + $0x348] sm:$0xf0]  ;;  %v1038_v22 = vrot.slane %v990_v5, 2  ;;  %v4674_v26 = vld [vmem:[#allocation2 + $0x300] sm:$0xf] }
  0x62   : > { %940 = vmatpush.bf16.msra.mxu0 %v4443_v21  ;;  %v4711_v8 = vor.u32 %v5934_v60, %v4708_v0  ;;  %v999_v21 = vld [vmem:[%s6287_s21 + $0x48] sm:$0x3]  ;;  %v5930_v29 = vld [vmem:[#allocation2 + $0x324] sm:$0xf]  ;;  %v4596_v31 = vld [vmem:[#allocation2 + $0x268] sm:$0xf0] }
  0x63   : > { %1337 = vmatpush.bf16.msrb.mxu2 %v4603_v39  ;;  %v5906_v30 = vld [vmem:[#allocation2 + $0x264] sm:$0xf]  ;;  %v4882_v34 = vld [vmem:[#allocation2 + $0x480] sm:$0xf]  ;;  %v4666_v35 = vld [vmem:[#allocation2 + $0x2f0] sm:$0xf] }
  0x64   : > { %v4599_v33 = vor.u32 %v5906_v30, %v4596_v31  ;;  %v5925_v36 = vld [vmem:[#allocation2 + $0x2f4] sm:$0xf0]  ;;  %v6416_v62 = vld [vmem:[%s6287_s21 + $0x90] sm:$0xfc]  ;;  %v4684_v41 = vld [vmem:[#allocation2 + $0x318] sm:$0xf0] }
  0x65   : > { %957 = vmatpush.bf16.msra.mxu1 %v4523_v20  ;;  %1390 = vmatpush.bf16.msrb.mxu3 %v4639_v28  ;;  %v996_v20 = vld [vmem:[%s6287_s21 + $0x30] sm:$0xfc]  ;;  %v4703_v28 = vor.u32 %v5932_v12, %v4700_v15  ;;  %v6413_v39 = vld [vmem:[%s6287_s21 + $0x78] sm:$0x3]  ;;  %v5942_v46 = vld [vmem:[#allocation2 + $0x384] sm:$0xf] }
  0x66   : > { %1350 = vmatpush.bf16.msrb.mxu0 %v4715_v27  ;;  %v1047_v32 = vrot.slane %v996_v20, 2  ;;  %v5928_v40 = vld [vmem:[#allocation2 + $0x314] sm:$0xf]  ;;  %v4740_v47 = vld [vmem:[#allocation2 + $0x388] sm:$0x30]  ;;  %v1065_v10 = vrot.slane %v6416_v62, 2 }
  0x67   : > { %1338 = vmatpush.bf16.msrb.mxu2 %v4595_v51  ;;  %v4874_v51 = vld [vmem:[#allocation2 + $0x470] sm:$0xf]  ;;  %v5923_v55 = vld [vmem:[#allocation2 + $0x2e4] sm:$0xf0]  ;;  %v4687_v56 = vor.u32 %v5928_v40, %v4684_v41  ;;  %v6427_v59 = vld [vmem:[%s6287_s21 + $0x20] sm:$0x3] }
  0x68   : > { %v6424_v57 = vld [vmem:[%s6287_s21 + $0x8] sm:$0xfc]  ;;  %v5926_v2 = vld [vmem:[#allocation2 + $0x304] sm:$0xf]  ;;  %v6438_v11 = vld [vmem:[%s6287_s21 + $0x50] sm:$0x3] }
  0x69   : > { %958 = vmatpush.bf16.msra.mxu1 %v4515_v23  ;;  %1391 = vmatpush.bf16.msrb.mxu3 %v4631_v3  ;;  %v6410_v3 = vld [vmem:[%s6287_s21 + $0x60] sm:$0xfc]  ;;  %v4676_v5 = vld [vmem:[#allocation2 + $0x308] sm:$0xf0]  ;;  %v1041_v15 = vrot.slane %v6424_v57, 2 }
  0x6a   : > { %1351 = vmatpush.bf16.msrb.mxu0 %v4707_v38  ;;  %v1056_v7 = vrot.slane %v6410_v3, 2  ;;  %v1003_v31 = vld [vmem:[%s6287_s21 + $0x68] sm:$0xfc]  ;;  %v4730_v40 = vld [vmem:[#allocation2 + $0x370] sm:$0xf] }
  0x6b   : > { %1407 = vmatpush.bf16.msra.mxu2 %v4719_v53  ;;  %v4667_v53 = vor.u32 %v5925_v36, %v4666_v35  ;;  %v4858_v35 = vld [vmem:[#allocation2 + $0x450] sm:$0xf]  ;;  %v5969_v36 = vld [vmem:[#allocation2 + $0x454] sm:$0xf0]  ;;  %v5922_v41 = vld [vmem:[#allocation2 + $0x2e4] sm:$0xf] }
  0x6c   : > { %v4820_v57 = vld [vmem:[#allocation2 + $0x408] sm:$0xf0] }
  0x6d   : > { %959 = vmatpush.bf16.msra.mxu1 %v4507_v45  ;;  %1392 = vmatpush.bf16.msrb.mxu3 %v4623_v52  ;;  %v6421_v45 = vld [vmem:[%s6287_s21 + $0xa8] sm:$0x3]  ;;  %v5973_v52 = vld [vmem:[#allocation2 + $0x474] sm:$0xf0] }
  0x6e   : > { %1352 = vmatpush.bf16.msrb.mxu0 %v4699_v48  ;;  %4589 = vmatmul.msk.bf16.gmra.mxu2 %vm548_vm2, %v6397_v58  ;;  %v4875_v60 = vor.u32 %v5973_v52, %v4874_v51  ;;  %v1066_v12 = vrot.slane %v6421_v45, 2  ;;  %v4850_v52 = vld [vmem:[#allocation2 + $0x440] sm:$0xf] }
  0x6f   : > { %941 = vmatmul.bf16.vlgmr.msra.gmra.mxu0 %v6349_v18  ;;  %1408 = vmatpush.bf16.msra.mxu2 %v4711_v8  ;;  %v4692_v18 = vld [vmem:[#allocation2 + $0x328] sm:$0xf0]  ;;  %v1057_v8 = vrot.slane %v6413_v39, 2  ;;  %v1012_v39 = vld [vmem:[%s6287_s21 + $0xb0] sm:$0x3] }
  0x70   : > { %960 = vmatmul.bf16.vlgmr.msra.gmra.mxu1 %v6352_v19  ;;  %4590 = vmatmul.msk.bf16.vlgmr.msra.gmra.mxu3 %vm548_vm2, %v6374_v4  ;;  %v1039_v19 = vrot.slane %v993_v16, 2  ;;  %v1048_v4 = vrot.slane %v999_v21, 2  ;;  %v4695_v37 = vor.u32 %v5930_v29, %v4692_v18  ;;  %v4866_v16 = vld [vmem:[#allocation2 + $0x460] sm:$0xf]  ;;  %v1042_v21 = vrot.slane %v6427_v59, 2 }
  0x71   : > { %6172 = vmatpush.bf16.msrb.mxu1 %v4715_v27  ;;  %1393 = vmatpush.bf16.msrb.mxu3 %v4615_v1  ;;  %v5927_v27 = vld [vmem:[#allocation2 + $0x304] sm:$0xf0]  ;;  %v6432_v1 = vld [vmem:[%s6287_s21 + $0x38] sm:$0xfc]  ;;  %v5924_v29 = vld [vmem:[#allocation2 + $0x2f4] sm:$0xf] }
  0x72   : > { %1353 = vmatpush.bf16.msrb.mxu0 %v4691_v6  ;;  %v4675_v23 = vor.u32 %v5927_v27, %v4674_v26  ;;  %v1040_v25 = vsel %vm555_vm0, %v1038_v22, %v1039_v19  ;;  %v1049_v43 = vsel %vm555_vm0, %v1047_v32, %v1048_v4  ;;  %v1050_v22 = vrot.slane %v6432_v1, 2  ;;  %v4738_v26 = vld [vmem:[#allocation2 + $0x380] sm:$0xf]  ;;  %v5943_v27 = vld [vmem:[#allocation2 + $0x384] sm:$0x30] }
  0x73   : > { %1409 = vmatpush.bf16.msra.mxu2 %v4703_v28  ;;  %v6429_v0 = vpack.c.bf16 %v1049_v43, %v1040_v25  ;;  %v1051_v28 = vrot.slane %v6438_v11, 2  ;;  %v4668_v18 = vld [vmem:[#allocation2 + $0x2f8] sm:$0xf0]  ;;  %v5940_v19 = vld [vmem:[#allocation2 + $0x374] sm:$0xf]  ;;  %v1058_v1 = vsel %vm555_vm0, %v1056_v7, %v1057_v8  ;;  %v1043_v3 = vsel %vm555_vm0, %v1041_v15, %v1042_v21 }
  0x74   : > { %v4732_v32 = vld [vmem:[#allocation2 + $0x378] sm:$0xf0]  ;;  %v4906_v4 = vld [vmem:[#allocation2 + $0x4b0] sm:$0xf]  ;;  %v5938_v43 = vld [vmem:[#allocation2 + $0x364] sm:$0xf] }
  0x75   : > { %6173 = vmatpush.bf16.msrb.mxu1 %v4707_v38  ;;  %1394 = vmatpush.bf16.msrb.mxu3 %v4607_v17  ;;  %v5975_v38 = vld [vmem:[#allocation2 + $0x484] sm:$0xf0]  ;;  %v4735_v25 = vor.u32 %v5940_v19, %v4732_v32  ;;  %v1052_v7 = vsel %vm555_vm0, %v1050_v22, %v1051_v28  ;;  %v4722_v8 = vld [vmem:[#allocation2 + $0x360] sm:$0xf]  ;;  %v5965_v28 = vld [vmem:[#allocation2 + $0x434] sm:$0xf0] }
  0x76   : > { %1354 = vmatpush.bf16.msrb.mxu0 %v4683_v24  ;;  %v4883_v42 = vor.u32 %v5975_v38, %v4882_v34  ;;  %v5971_v17 = vld [vmem:[#allocation2 + $0x464] sm:$0xf0]  ;;  %v4739_v34 = vor.u32 %v5943_v27, %v4738_v26  ;;  %v1009_v38 = vld [vmem:[%s6287_s21 + $0x98] sm:$0xfc]  ;;  %v4842_v26 = vld [vmem:[#allocation2 + $0x430] sm:$0xf]  ;;  %v6473_v15 = vpack.c.bf16 %v1052_v7, %v1043_v3 }
  0x77   : > { %1410 = vmatpush.bf16.msra.mxu2 %v4695_v37  ;;  %v1006_v37 = vld [vmem:[%s6287_s21 + $0x80] sm:$0x3]  ;;  %v1068_v59 = vrot.slane %v1009_v38, 2  ;;  %v5979_v27 = vld [vmem:[#allocation2 + $0x4a4] sm:$0xf0] }
  0x78   : > { %v1326_v51 = vsel %vm555_vm0, %v4739_v34, 0  ;;  %v4898_v22 = vld [vmem:[#allocation2 + $0x4a0] sm:$0xf]  ;;  %v4810_v19 = vld [vmem:[#allocation2 + $0x3f0] sm:$0xf] }
  0x79   : > { %6174 = vmatpush.bf16.msrb.mxu1 %v4699_v48  ;;  %1395 = vmatpush.bf16.msrb.mxu3 %v4599_v33  ;;  %v4658_v48 = vld [vmem:[#allocation2 + $0x2e0] sm:$0xf]  ;;  %v4867_v33 = vor.u32 %v5971_v17, %v4866_v16  ;;  %v5939_v17 = vld [vmem:[#allocation2 + $0x364] sm:$0xf0]  ;;  %v5957_v32 = vld [vmem:[#allocation2 + $0x3f4] sm:$0xf0]  ;;  %v4899_v34 = vor.u32 %v5979_v27, %v4898_v22 }
  0x7a   : > { %1355 = vmatpush.bf16.msrb.mxu0 %v4675_v23  ;;  %v4659_v20 = vor.u32 %v5923_v55, %v4658_v48  ;;  %v1059_v48 = vrot.slane %v1003_v31, 2  ;;  %v5967_v55 = vld [vmem:[#allocation2 + $0x444] sm:$0xf0]  ;;  %v4723_v21 = vor.u32 %v5939_v17, %v4722_v8  ;;  %v998_v38 = vld [vmem:[%s6287_s21 + $0x40] sm:$0xfc] }
  0x7b   : > { %1411 = vmatpush.bf16.msra.mxu2 %v4687_v56  ;;  %v1060_v56 = vrot.slane %v1006_v37, 2  ;;  %v4851_v16 = vor.u32 %v5967_v55, %v4850_v52  ;;  %v995_v37 = vld [vmem:[%s6287_s21 + $0x28] sm:$0x3]  ;;  %v1053_v52 = vrot.slane %v998_v38, 2  ;;  %v4786_v8 = vld [vmem:[#allocation2 + $0x3c0] sm:$0xf] }
  0x7c   : > { %v5951_v17 = vld [vmem:[#allocation2 + $0x3c4] sm:$0xf0]  ;;  %v5949_v22 = vld [vmem:[#allocation2 + $0x3b4] sm:$0xf0]  ;;  %v5948_v27 = vld [vmem:[#allocation2 + $0x3b4] sm:$0xf] }
  0x7d   : > { %6175 = vmatpush.bf16.msrb.mxu1 %v4691_v6  ;;  %1730 = vmatpush.bf16.msra.mxu3 %v4883_v42  ;;  %v4743_v6 = vor.u32 %v5942_v46, %v4740_v47  ;;  %v4660_v42 = vld [vmem:[#allocation2 + $0x2e8] sm:$0xf0]  ;;  %v4859_v47 = vor.u32 %v5969_v36, %v4858_v35  ;;  %v1061_v45 = vsel %vm555_vm0, %v1059_v48, %v1060_v56  ;;  %v4834_v35 = vld [vmem:[#allocation2 + $0x420] sm:$0xf]  ;;  %v5963_v36 = vld [vmem:[#allocation2 + $0x424] sm:$0xf0] }
  0x7e   : > { %1356 = vmatpush.bf16.msrb.mxu0 %v4667_v53  ;;  %1339 = vmatmul.bf16.vlgmr.msrb.gmra.mxu2 %v6429_v0  ;;  %v4724_v46 = vld [vmem:[#allocation2 + $0x368] sm:$0xf0]  ;;  %v4890_v48 = vld [vmem:[#allocation2 + $0x490] sm:$0xf]  ;;  %v4770_v38 = vld [vmem:[#allocation2 + $0x3a0] sm:$0xf] }
  0x7f   : > { %v1329_v30 = vsel %vm555_vm0, %v4743_v6, 0  ;;  %946 = vmatmul.bf16.gmra.mxu0 %v6377_v13  ;;  %v4671_v13 = vor.u32 %v5924_v29, %v4668_v18  ;;  %v992_v18 = vld [vmem:[%s6287_s21 + $0x10] sm:$0xfc] }
  0x80   : > { %965 = vmatmul.bf16.gmra.mxu1 %v6381_v14  ;;  %4591 = vmatmul.msk.bf16.gmra.mxu3 %vm548_vm2, %v6397_v58  ;;  %v5941_v14 = vld [vmem:[#allocation2 + $0x374] sm:$0xf0] }
  0x81   : > { %6176 = vmatpush.bf16.msrb.mxu1 %v4683_v24  ;;  %1731 = vmatpush.bf16.msra.mxu3 %v4875_v60  ;;  %v4679_v24 = vor.u32 %v5926_v2, %v4676_v5  ;;  %v1069_v60 = vrot.slane %v1012_v39, 2  ;;  %v4727_v2 = vor.u32 %v5938_v43, %v4724_v46  ;;  %v1067_v5 = vsel %vm555_vm0, %v1065_v10, %v1066_v12  ;;  %v4818_v10 = vld [vmem:[#allocation2 + $0x400] sm:$0xf]  ;;  %v5959_v12 = vld [vmem:[#allocation2 + $0x404] sm:$0xf0] }
  0x82   : > { %1357 = vmatpush.bf16.msrb.mxu0 %v4659_v20  ;;  %v4731_v6 = vor.u32 %v5941_v14, %v4730_v40  ;;  %v1001_v39 = vld [vmem:[%s6287_s21 + $0x58] sm:$0x3]  ;;  %v4811_v40 = vor.u32 %v5957_v32, %v4810_v19  ;;  %v5954_v14 = vld [vmem:[#allocation2 + $0x3e4] sm:$0xf]  ;;  %v4804_v43 = vld [vmem:[#allocation2 + $0x3e8] sm:$0xf0]  ;;  %v4835_v46 = vor.u32 %v5963_v36, %v4834_v35 }
  0x83   : > { %1412 = vmatpush.bf16.msra.mxu2 %v4679_v24  ;;  %v1070_v62 = vsel %vm555_vm0, %v1068_v59, %v1069_v60  ;;  %v5958_v24 = vld [vmem:[#allocation2 + $0x404] sm:$0xf]  ;;  %v1054_v55 = vrot.slane %v1001_v39, 2  ;;  %v4807_v60 = vor.u32 %v5954_v14, %v4804_v43  ;;  %v1004_v19 = vld [vmem:[%s6287_s21 + $0x70] sm:$0xfc] }
  0x84   : > { %v6475_v29 = vpack.c.bf16 %v1070_v62, %v1061_v45  ;;  %v4823_v31 = vor.u32 %v5958_v24, %v4820_v57  ;;  %v5950_v45 = vld [vmem:[#allocation2 + $0x3c4] sm:$0xf]  ;;  %v4788_v62 = vld [vmem:[#allocation2 + $0x3c8] sm:$0xf0]  ;;  %v5997_v24 = vld [vmem:[#allocation2 + $0x534] sm:$0xf0]  ;;  %v4787_v57 = vor.u32 %v5951_v17, %v4786_v8 }
  0x85   : > { %6177 = vmatpush.bf16.msrb.mxu1 %v4675_v23  ;;  %v5981_v23 = vld [vmem:[#allocation2 + $0x4b4] sm:$0x30]  ;;  %1732 = vmatpush.bf16.msra.mxu3 %v4867_v33  ;;  %v4812_v33 = vld [vmem:[#allocation2 + $0x3f8] sm:$0xf0]  ;;  %v1007_v32 = vld [vmem:[%s6287_s21 + $0x88] sm:$0x3] }
  0x86   : > { %1431 = vmatpush.bf16.msra.mxu0 %v1329_v30  ;;  %v4907_v58 = vor.u32 %v5981_v23, %v4906_v4  ;;  %v4819_v30 = vor.u32 %v5959_v12, %v4818_v10  ;;  %v5956_v4 = vld [vmem:[#allocation2 + $0x3f4] sm:$0xf]  ;;  %v4843_v23 = vor.u32 %v5965_v28, %v4842_v26  ;;  %v4998_v12 = vld [vmem:[#allocation2 + $0x530] sm:$0xf]  ;;  %v4791_v26 = vor.u32 %v5950_v45, %v4788_v62  ;;  %v1013_v36 = vld [vmem:[%s6287_s21 + $0xb8] sm:$0x3] }
  0x87   : > { %1413 = vmatpush.bf16.msra.mxu2 %v4671_v13  ;;  %v1044_v13 = vrot.slane %v992_v18, 2  ;;  %v4999_v28 = vor.u32 %v5997_v24, %v4998_v12  ;;  %v4780_v18 = vld [vmem:[#allocation2 + $0x3b8] sm:$0xf0]  ;;  %v1072_v43 = vrot.slane %v1013_v36, 2  ;;  %v6013_v17 = vld [vmem:[#allocation2 + $0x5b4] sm:$0xf0] }
  0x88   : > { %v1706_v11 = vsel %vm555_vm0, %v4907_v58, 0  ;;  %v4826_v58 = vld [vmem:[#allocation2 + $0x410] sm:$0xf]  ;;  %v5978_v45 = vld [vmem:[#allocation2 + $0x4a4] sm:$0xf] }
  0x89   : > { %6178 = vmatpush.bf16.msrb.mxu1 %v4667_v53  ;;  %v4663_v53 = vor.u32 %v5922_v41, %v4660_v42  ;;  %1733 = vmatpush.bf16.msra.mxu3 %v4859_v47  ;;  %v4815_v41 = vor.u32 %v5956_v4, %v4812_v33  ;;  %v4802_v42 = vld [vmem:[#allocation2 + $0x3e0] sm:$0xf]  ;;  %v5961_v47 = vld [vmem:[#allocation2 + $0x414] sm:$0xf0]  ;;  %v4900_v62 = vld [vmem:[#allocation2 + $0x4a8] sm:$0xf0] }
  0x8a   : > { %1432 = vmatpush.bf16.msra.mxu0 %v4735_v25  ;;  %v5955_v25 = vld [vmem:[#allocation2 + $0x3e4] sm:$0xf0]  ;;  %v1010_v33 = vld [vmem:[%s6287_s21 + $0xa0] sm:$0xfc]  ;;  %v5972_v12 = vld [vmem:[#allocation2 + $0x474] sm:$0xf] }
  0x8b   : > { %1414 = vmatpush.bf16.msra.mxu2 %v4663_v53  ;;  %v4803_v59 = vor.u32 %v5955_v25, %v4802_v42  ;;  %v4794_v53 = vld [vmem:[#allocation2 + $0x3d0] sm:$0xf]  ;;  %v4772_v42 = vld [vmem:[#allocation2 + $0x3a8] sm:$0xf0]  ;;  %v1062_v25 = vrot.slane %v1004_v19, 2  ;;  %v1071_v14 = vrot.slane %v1010_v33, 2 }
  0x8c   : > { %v4876_v24 = vld [vmem:[#allocation2 + $0x478] sm:$0xf0]  ;;  %v5970_v33 = vld [vmem:[#allocation2 + $0x464] sm:$0xf] }
  0x8d   : > { %6179 = vmatpush.bf16.msrb.mxu1 %v4659_v20  ;;  %v6471_v20 = vpack.c.bf16 %v1067_v5, %v1058_v1  ;;  %1734 = vmatpush.bf16.msra.mxu3 %v4851_v16  ;;  %v5953_v1 = vld [vmem:[#allocation2 + $0x3d4] sm:$0xf0]  ;;  %v4796_v5 = vld [vmem:[#allocation2 + $0x3d8] sm:$0xf0]  ;;  %v1055_v16 = vsel %vm555_vm0, %v1053_v52, %v1054_v55  ;;  %v5944_v55 = vld [vmem:[#allocation2 + $0x394] sm:$0xf]  ;;  %v4879_v19 = vor.u32 %v5972_v12, %v4876_v24 }
  0x8e   : > { %1433 = vmatpush.bf16.msra.mxu0 %v4727_v2  ;;  %v5952_v2 = vld [vmem:[#allocation2 + $0x3d4] sm:$0xf]  ;;  %v4795_v3 = vor.u32 %v5953_v1, %v4794_v53  ;;  %v5945_v52 = vld [vmem:[#allocation2 + $0x394] sm:$0xf0]  ;;  %v1073_v1 = vsel %vm555_vm0, %v1071_v14, %v1072_v43  ;;  %v4950_v14 = vld [vmem:[#allocation2 + $0x4d0] sm:$0xf] }
  0x8f   : > { %1754 = vmatpush.bf16.msrb.mxu2 %v1706_v11  ;;  %1358 = vmatmul.bf16.vlgmr.msrb.gmra.mxu0 %v6473_v15  ;;  %v4799_v7 = vor.u32 %v5952_v2, %v4796_v5  ;;  %v4974_v2 = vld [vmem:[#allocation2 + $0x500] sm:$0xf]  ;;  %v5991_v5 = vld [vmem:[#allocation2 + $0x504] sm:$0xf0]  ;;  %v5985_v43 = vld [vmem:[#allocation2 + $0x4d4] sm:$0xf0] }
  0x90   : > { %1344 = vmatmul.bf16.gmra.mxu2 %v6471_v20  ;;  %1363 = vmatmul.bf16.vlgmr.msrb.gmra.mxu1 %v6475_v29 }
  0x91   : > { %1374 = vmatpush.bf16.msra.mxu1 %v1326_v51  ;;  %1396 = vmatmul.bf16.vlgmr.msrb.gmra.mxu3 %v6429_v0  ;;  %v5977_v51 = vld [vmem:[#allocation2 + $0x494] sm:$0xf0]  ;;  %v1045_v0 = vrot.slane %v995_v37, 2  ;;  %v4783_v37 = vor.u32 %v5948_v27, %v4780_v18 }
  0x92   : > { %1768 = vmatpush.bf16.msrb.mxu0 %v4823_v31  ;;  %1735 = vmatpush.bf16.msra.mxu3 %v4843_v23  ;;  %v4891_v56 = vor.u32 %v5977_v51, %v4890_v48  ;;  %v4908_v31 = vld [vmem:[#allocation2 + $0x4b8] sm:$0x30]  ;;  %v5995_v23 = vld [vmem:[#allocation2 + $0x524] sm:$0xf0]  ;;  %v4762_v51 = vld [vmem:[#allocation2 + $0x390] sm:$0xf] }
  0x93   : > { %1755 = vmatpush.bf16.msrb.mxu2 %v4899_v34  ;;  %v1046_v11 = vsel %vm555_vm0, %v1044_v13, %v1045_v0  ;;  %v4990_v34 = vld [vmem:[#allocation2 + $0x520] sm:$0xf]  ;;  %v5989_v27 = vld [vmem:[#allocation2 + $0x4f4] sm:$0xf0] }
  0x94   : > { %v1088_v10 = vpack.c.bf16 %v1055_v16, %v1046_v11  ;;  %v4991_v13 = vor.u32 %v5995_v23, %v4990_v34  ;;  %v4763_v11 = vor.u32 %v5945_v52, %v4762_v51  ;;  %v4958_v34 = vld [vmem:[#allocation2 + $0x4e0] sm:$0xf]  ;;  %v5987_v23 = vld [vmem:[#allocation2 + $0x4e4] sm:$0xf0]  ;;  %v5000_v51 = vld [vmem:[#allocation2 + $0x538] sm:$0xf0] }
  0x95   : > { %1375 = vmatpush.bf16.msra.mxu1 %v4731_v6  ;;  %v4827_v6 = vor.u32 %v5961_v47, %v4826_v58  ;;  %v5993_v58 = vld [vmem:[#allocation2 + $0x514] sm:$0xf0] }
  0x96   : > { %1769 = vmatpush.bf16.msrb.mxu0 %v4815_v41  ;;  %1736 = vmatpush.bf16.msra.mxu3 %v4835_v46  ;;  %v5946_v41 = vld [vmem:[#allocation2 + $0x3a4] sm:$0xf]  ;;  %v4982_v46 = vld [vmem:[#allocation2 + $0x510] sm:$0xf] }
  0x97   : > { %1756 = vmatpush.bf16.msrb.mxu2 %v4891_v56  ;;  %v4775_v48 = vor.u32 %v5946_v41, %v4772_v42  ;;  %v4983_v0 = vor.u32 %v5993_v58, %v4982_v46  ;;  %v4764_v56 = vld [vmem:[#allocation2 + $0x398] sm:$0xf0] }
  0x98   : > { %v4767_v16 = vor.u32 %v5944_v55, %v4764_v56  ;;  %v5038_v55 = vld [vmem:[#allocation2 + $0x580] sm:$0xf]  ;;  %v6007_v56 = vld [vmem:[#allocation2 + $0x584] sm:$0xf0] }
  0x99   : > { %1376 = vmatpush.bf16.msra.mxu1 %v4723_v21  ;;  %v4778_v21 = vld [vmem:[#allocation2 + $0x3b0] sm:$0xf] }
  0x9a   : > { %1770 = vmatpush.bf16.msrb.mxu0 %v4807_v60  ;;  %1737 = vmatpush.bf16.msra.mxu3 %v4827_v6  ;;  %v4884_v60 = vld [vmem:[#allocation2 + $0x488] sm:$0xf0] }
  0x9d   : > { %1711 = vmatpush.bf16.msrb.mxu1 %v4819_v30  ;;  %v5980_v30 = vld [vmem:[#allocation2 + $0x4b4] sm:$0xf] }
  0x9e   : > { %1771 = vmatpush.bf16.msrb.mxu0 %v4799_v7  ;;  %v4911_v4 = vor.u32 %v5980_v30, %v4908_v31  ;;  %v4975_v7 = vor.u32 %v5991_v5, %v4974_v2  ;;  %v4942_v2 = vld [vmem:[#allocation2 + $0x4c0] sm:$0xf]  ;;  %v5983_v5 = vld [vmem:[#allocation2 + $0x4c4] sm:$0xf0] }
  0x9f   : > { %4746 = vmatmul.msk.bf16.vlgmr.msra.gmra.mxu0 %vm548_vm2, %v1088_v10 }
  0xa0   : > { %1415 = vmatmul.bf16.vlgmr.msra.gmra.mxu2 %v6473_v15  ;;  %4744 = vmatmul.msk.bf16.vlgmr.msra.gmra.mxu1 %vm548_vm2, %v1088_v10  ;;  %v4779_v15 = vor.u32 %v5949_v22, %v4778_v21  ;;  %v1709_v39 = vsel %vm555_vm0, %v4911_v4, 0  ;;  %v6504_v21 = vpack.c.bf16 %v6368_v61, %v6346_v9  ;;  %v4966_v22 = vld [vmem:[#allocation2 + $0x4f0] sm:$0xf]  ;;  %v6011_v4 = vld [vmem:[#allocation2 + $0x5a4] sm:$0xf0] }
  0xa1   : > { %1712 = vmatpush.bf16.msrb.mxu1 %v4811_v40  ;;  %2174 = vmatpush.bf16.msra.mxu2 %v4999_v28  ;;  %v6494_v35 = vpop.f32.mrf.mxu2  ;;  %v5947_v40 = vld [vmem:[#allocation2 + $0x3a4] sm:$0xf0]  ;;  %v4967_v30 = vor.u32 %v5989_v27, %v4966_v22  ;;  %v4868_v9 = vld [vmem:[#allocation2 + $0x468] sm:$0xf0]  ;;  %v5964_v22 = vld [vmem:[#allocation2 + $0x434] sm:$0xf] }
  0xa2   : > { %1401 = vmatmul.bf16.gmra.mxu3 %v6471_v20  ;;  %1772 = vmatpush.bf16.msrb.mxu0 %v4791_v26  ;;  %v1063_v20 = vrot.slane %v1007_v32, 2  ;;  %v4771_v47 = vor.u32 %v5947_v40, %v4770_v38  ;;  %v5054_v32 = vld [vmem:[#allocation2 + $0x5a0] sm:$0xf]  ;;  %v4892_v38 = vld [vmem:[#allocation2 + $0x498] sm:$0xf0] }
  0xa3   : > { %1811 = vmatpush.bf16.msrb.mxu3 %v1709_v39  ;;  %v4871_v39 = vor.u32 %v5970_v33, %v4868_v9  ;;  %v6009_v40 = vld [vmem:[#allocation2 + $0x594] sm:$0xf0]  ;;  %v4844_v27 = vld [vmem:[#allocation2 + $0x438] sm:$0xf0]  ;;  %v6003_v33 = vld [vmem:[#allocation2 + $0x564] sm:$0xf0] }
  0xa4   : > { %v1064_v53 = vsel %vm555_vm0, %v1062_v25, %v1063_v20  ;;  %v5968_v25 = vld [vmem:[#allocation2 + $0x454] sm:$0xf] }
  0xa5   : > { %1713 = vmatpush.bf16.msrb.mxu1 %v4803_v59  ;;  %2175 = vmatpush.bf16.msra.mxu2 %v4991_v13  ;;  %v5974_v59 = vld [vmem:[#allocation2 + $0x484] sm:$0xf]  ;;  %v1091_v10 = vpack.c.bf16 %v1073_v1, %v1064_v53  ;;  %v5046_v13 = vld [vmem:[#allocation2 + $0x590] sm:$0xf]  ;;  %v4852_v53 = vld [vmem:[#allocation2 + $0x448] sm:$0xf0] }
  0xa6   : > { %1773 = vmatpush.bf16.msrb.mxu0 %v4783_v37  ;;  %v4887_v8 = vor.u32 %v5974_v59, %v4884_v60  ;;  %v5976_v37 = vld [vmem:[#allocation2 + $0x494] sm:$0xf]  ;;  %v5047_v58 = vor.u32 %v6009_v40, %v5046_v13  ;;  %v5966_v60 = vld [vmem:[#allocation2 + $0x444] sm:$0xf] }
  0xa7   : > { %v4895_v41 = vor.u32 %v5976_v37, %v4892_v38  ;;  %v6010_v37 = vld [vmem:[#allocation2 + $0x5a4] sm:$0xf]  ;;  %v5056_v38 = vld [vmem:[#allocation2 + $0x5a8] sm:$0xf0] }
  0xa8   : > { %v5059_v40 = vor.u32 %v6010_v37, %v5056_v38 }
  0xa9   : > { %1714 = vmatpush.bf16.msrb.mxu1 %v4795_v3  ;;  %2176 = vmatpush.bf16.msra.mxu2 %v4983_v0  ;;  %v6500_v6 = vpop.f32.mrf.mxu2  ;;  %v5062_v3 = vld [vmem:[#allocation2 + $0x5b0] sm:$0xf] }
  0xaa   : > { %1774 = vmatpush.bf16.msrb.mxu0 %v4775_v48  ;;  %v5063_v18 = vor.u32 %v6013_v17, %v5062_v3  ;;  %v5996_v48 = vld [vmem:[#allocation2 + $0x534] sm:$0xf]  ;;  %v5039_v3 = vor.u32 %v6007_v56, %v5038_v55  ;;  %v4992_v17 = vld [vmem:[#allocation2 + $0x528] sm:$0xf0] }
  0xab   : > { %v5003_v59 = vor.u32 %v5996_v48, %v5000_v51  ;;  %v6008_v51 = vld [vmem:[#allocation2 + $0x594] sm:$0xf] }
  0xac   : > { %v571_v26 = vpop.f32.mrf.mxu0  ;;  %v4759_v56 = vld [vmem:[%s6287_s21 + $0xd0] sm:$0xff] }
  0xad   : > { %1715 = vmatpush.bf16.msrb.mxu1 %v4787_v57  ;;  %v4903_v57 = vor.u32 %v5978_v45, %v4900_v62  ;;  %2177 = vmatpush.bf16.msra.mxu2 %v4975_v7  ;;  %v590_v28 = vpop.f32.mrf.mxu1  ;;  %v4943_v7 = vor.u32 %v5983_v5, %v4942_v2  ;;  %v6525_v45 = vpack.c.bf16 %v6390_v49, %v6361_v44  ;;  %v5030_v62 = vld [vmem:[#allocation2 + $0x570] sm:$0xf]  ;;  %v6012_v49 = vld [vmem:[#allocation2 + $0x5b4] sm:$0xf]  ;;  %v4968_v2 = vld [vmem:[#allocation2 + $0x4f8] sm:$0xf0] }
  0xae   : > { %1775 = vmatpush.bf16.msrb.mxu0 %v4767_v16  ;;  %v591_v31 = vadd.f32 %v590_v28, %v571_v26  ;;  %v4758_v16 = vld [vmem:[%s6287_s21 + $0xc8] sm:$0xff] }
  0xaf   : > { %4747 = vmatmul.msk.bf16.gmra.mxu0 %vm548_vm2, %v1091_v10  ;;  %1812 = vmatpush.bf16.msrb.mxu3 %v4903_v57  ;;  %v6204_v57 = vld [vmem:[%s6287_s21 + $0x30] sm:$0xff] }
  0xb0   : > { %1420 = vmatmul.bf16.gmra.mxu2 %v6475_v29  ;;  %4745 = vmatmul.msk.bf16.gmra.mxu1 %vm548_vm2, %v1091_v10  ;;  %v6511_v61 = vadd.f32 %v6494_v35, %v591_v31  ;;  %v5055_v29 = vor.u32 %v6011_v4, %v5054_v32  ;;  %v4860_v35 = vld [vmem:[#allocation2 + $0x458] sm:$0xf0]  ;;  %v6005_v10 = vld [vmem:[#allocation2 + $0x574] sm:$0xf0]  ;;  %v1466_v26 = vpack.c.bf16 %v6364_v54, %v6204_v57  ;;  %v5022_v4 = vld [vmem:[#allocation2 + $0x560] sm:$0xf] }
  0xb1   : > { %1716 = vmatpush.bf16.msrb.mxu1 %v4779_v15  ;;  %v6513_v36 = vpop.f32.mrf.mxu2  ;;  %2178 = vmatpush.bf16.msra.mxu2 %v4967_v30  ;;  %v4959_v15 = vor.u32 %v5987_v23, %v4958_v34  ;;  %v4863_v52 = vor.u32 %v5968_v25, %v4860_v35  ;;  %v5031_v44 = vor.u32 %v6005_v10, %v5030_v62  ;;  %v5064_v31 = vld [vmem:[#allocation2 + $0x5b8] sm:$0xf0]  ;;  %v4836_v23 = vld [vmem:[#allocation2 + $0x428] sm:$0xf0]  ;;  %v4757_v62 = vld [vmem:[%s6287_s21 + $0xc0] sm:$0xff] }
  0xb2   : > { %1738 = vmatmul.bf16.vlgmr.msra.gmra.mxu3 %v6504_v21  ;;  %2193 = vmatpush.bf16.msra.mxu0 %v5063_v18  ;;  %v6532_v18 = vpack.c.bf16 %v4758_v16, %v6371_v63  ;;  %v4847_v54 = vor.u32 %v5964_v22, %v4844_v27  ;;  %v5067_v9 = vor.u32 %v6012_v49, %v5064_v31  ;;  %v4984_v34 = vld [vmem:[#allocation2 + $0x518] sm:$0xf0]  ;;  %v5962_v63 = vld [vmem:[#allocation2 + $0x424] sm:$0xf]  ;;  %v4976_v25 = vld [vmem:[#allocation2 + $0x508] sm:$0xf0] }
  0xb3   : > { %v6515_v42 = vpop.f32.mrf.mxu3  ;;  %1813 = vmatpush.bf16.msrb.mxu3 %v4895_v41  ;;  %v5023_v13 = vor.u32 %v6003_v33, %v5022_v4  ;;  %v5990_v41 = vld [vmem:[#allocation2 + $0x504] sm:$0xf]  ;;  %v5040_v27 = vld [vmem:[#allocation2 + $0x588] sm:$0xf0]  ;;  %v6559_v33 = vld [vmem:[%s6287_s21 + $0x30] sm:$0xfe] }
  0xb4   : > { %v573_v20 = vpop.f32.mrf.mxu0  ;;  %v6006_v22 = vld [vmem:[#allocation2 + $0x584] sm:$0xf] }
  0xb5   : > { %1717 = vmatpush.bf16.msrb.mxu1 %v4771_v47  ;;  %v592_v46 = vpop.f32.mrf.mxu1  ;;  %2179 = vmatpush.bf16.msra.mxu2 %v4959_v15  ;;  %v4951_v47 = vor.u32 %v5985_v43, %v4950_v14  ;;  %v5014_v14 = vld [vmem:[#allocation2 + $0x550] sm:$0xf]  ;;  %v6001_v43 = vld [vmem:[#allocation2 + $0x554] sm:$0xf0]  ;;  %v5043_v31 = vor.u32 %v6006_v22, %v5040_v27  ;;  %v5016_v22 = vld [vmem:[#allocation2 + $0x558] sm:$0xf0] }
  0xb6   : > { %2194 = vmatpush.bf16.msra.mxu0 %v5055_v29  ;;  %v593_v0 = vadd.f32 %v592_v46, %v573_v20  ;;  %v4839_v20 = vor.u32 %v5962_v63, %v4836_v23  ;;  %v4979_v46 = vor.u32 %v5990_v41, %v4976_v25  ;;  %v6566_v23 = vld [vmem:[%s6287_s21 + $0x60] sm:$0xfe]  ;;  %v4952_v41 = vld [vmem:[#allocation2 + $0x4d8] sm:$0xf0] }
  0xb7   : > { %2231 = vmatpush.bf16.msra.mxu3 %v5003_v59  ;;  %v5006_v59 = vld [vmem:[#allocation2 + $0x540] sm:$0xf] }
  0xb8   : > { %v6518_v1 = vadd.f32 %v6500_v6, %v593_v0  ;;  %v4855_v6 = vor.u32 %v5966_v60, %v4852_v53  ;;  %v5048_v0 = vld [vmem:[#allocation2 + $0x598] sm:$0xf0]  ;;  %v5999_v60 = vld [vmem:[#allocation2 + $0x544] sm:$0xf0]  ;;  %v5242_v27 = vld [vmem:[#allocation2 + $0x6e0] sm:$0xf] }
  0xb9   : > { %1718 = vmatpush.bf16.msrb.mxu1 %v4763_v11  ;;  %v6520_v11 = vpop.f32.mrf.mxu2  ;;  %2180 = vmatpush.bf16.msra.mxu2 %v4951_v47  ;;  %v4828_v47 = vld [vmem:[#allocation2 + $0x418] sm:$0xf0]  ;;  %v5051_v53 = vor.u32 %v6008_v51, %v5048_v0  ;;  %v5024_v51 = vld [vmem:[#allocation2 + $0x568] sm:$0xf0]  ;;  %v5982_v0 = vld [vmem:[#allocation2 + $0x4c4] sm:$0xf] }
  0xba   : > { %2195 = vmatpush.bf16.msra.mxu0 %v5047_v58  ;;  %v5960_v58 = vld [vmem:[#allocation2 + $0x414] sm:$0xf] }
  0xbb   : > { %v6527_v24 = vpop.f32.mrf.mxu3  ;;  %v4831_v16 = vor.u32 %v5960_v58, %v4828_v47  ;;  %v4923_v58 = vld [vmem:[%s6287_s21 + $0x68] sm:$0xfe]  ;;  %v4926_v47 = vld [vmem:[%s6287_s21 + $0x80] sm:$0x1] }
  0xbc   : > { %v576_v28 = vpop.f32.mrf.mxu0 }
  0xbd   : > { %1787 = vmatpush.bf16.msra.mxu1 %v4887_v8  ;;  %v5994_v8 = vld [vmem:[#allocation2 + $0x524] sm:$0xf]  ;;  %v595_v30 = vpop.f32.mrf.mxu1  ;;  %2181 = vmatpush.bf16.msra.mxu2 %v4943_v7  ;;  %v6019_v7 = vld [vmem:[#allocation2 + $0x5e4] sm:$0x30] }
  0xbe   : > { %v4995_v12 = vor.u32 %v5994_v8, %v4992_v17  ;;  %2196 = vmatpush.bf16.msra.mxu0 %v5039_v3  ;;  %v596_v32 = vadd.f32 %v595_v30, %v576_v28  ;;  %v5086_v3 = vld [vmem:[#allocation2 + $0x5e0] sm:$0xf]  ;;  %v6018_v8 = vld [vmem:[#allocation2 + $0x5e4] sm:$0xf] }
  0xbf   : > { %1776 = vmatmul.bf16.vlgmr.msrb.gmra.mxu0 %v1466_v26  ;;  %v5087_v10 = vor.u32 %v6019_v7, %v5086_v3  ;;  %v5986_v28 = vld [vmem:[#allocation2 + $0x4e4] sm:$0xf]  ;;  %v1893_v7 = vrot.slane %v4923_v58, 1  ;;  %v5070_v58 = vld [vmem:[#allocation2 + $0x5c0] sm:$0xf] }
  0xc0   : > { %2232 = vmatpush.bf16.msra.mxu3 %v4995_v12  ;;  %4912 = vmatmul.msk.bf16.vlgmr.msrb.gmra.mxu2 %vm548_vm2, %v6525_v45  ;;  %v6538_v15 = vadd.f32 %v6513_v36, %v596_v32  ;;  %v5088_v12 = vld [vmem:[#allocation2 + $0x5e8] sm:$0x30] }
  0xc1   : > { %1788 = vmatpush.bf16.msra.mxu1 %v4879_v19  ;;  %v5992_v19 = vld [vmem:[#allocation2 + $0x514] sm:$0xf]  ;;  %2250 = vmatpush.bf16.msrb.mxu2 %v5067_v9  ;;  %v2169_v49 = vsel %vm555_vm0, %v5087_v10, 0  ;;  %v6562_v9 = vld [vmem:[%s6287_s21 + $0x48] sm:$0x1] }
  0xc2   : > { %v4987_v29 = vor.u32 %v5992_v19, %v4984_v34  ;;  %1719 = vmatmul.bf16.vlgmr.msrb.gmra.mxu1 %v1466_v26  ;;  %1743 = vmatmul.bf16.gmra.mxu3 %v6532_v18  ;;  %v5091_v26 = vor.u32 %v6018_v8, %v5088_v12  ;;  %v4960_v19 = vld [vmem:[#allocation2 + $0x4e8] sm:$0xf0]  ;;  %v1894_v8 = vrot.slane %v4926_v47, 1  ;;  %v6015_v47 = vld [vmem:[#allocation2 + $0x5c4] sm:$0xf0] }
  0xc3   : > { %2197 = vmatpush.bf16.msra.mxu0 %v5031_v44  ;;  %v6541_v36 = vpop.f32.mrf.mxu3  ;;  %v5007_v44 = vor.u32 %v5999_v60, %v5006_v59  ;;  %v4963_v63 = vor.u32 %v5986_v28, %v4960_v19  ;;  %v4944_v60 = vld [vmem:[#allocation2 + $0x4c8] sm:$0xf0] }
  0xc4   : > { %2233 = vmatpush.bf16.msra.mxu3 %v4987_v29  ;;  %v578_v48 = vpop.f32.mrf.mxu0  ;;  %v2172_v34 = vsel %vm555_vm0, %v5091_v26, 0  ;;  %v5032_v29 = vld [vmem:[#allocation2 + $0x578] sm:$0xf0]  ;;  %v6000_v26 = vld [vmem:[#allocation2 + $0x554] sm:$0xf] }
  0xc5   : > { %1789 = vmatpush.bf16.msra.mxu1 %v4871_v39  ;;  %v647_v39 = vpop.f32.mrf.mxu2  ;;  %v597_v55 = vpop.f32.mrf.mxu1  ;;  %2251 = vmatpush.bf16.msrb.mxu2 %v5059_v40  ;;  %v5984_v40 = vld [vmem:[#allocation2 + $0x4d4] sm:$0xf] }
  0xc6   : > { %v648_v35 = vadd.f32 %v647_v39, %v6515_v42  ;;  %v5015_v42 = vor.u32 %v6001_v43, %v5014_v14  ;;  %v598_v5 = vadd.f32 %v597_v55, %v578_v48  ;;  %v4925_v39 = vld [vmem:[%s6287_s21 + $0x78] sm:$0x1]  ;;  %v4917_v14 = vld [vmem:[%s6287_s21 + $0x38] sm:$0xfe]  ;;  %v4920_v43 = vld [vmem:[%s6287_s21 + $0x50] sm:$0x1]  ;;  %v4955_v48 = vor.u32 %v5984_v40, %v4952_v41 }
  0xc7   : > { %2198 = vmatpush.bf16.msra.mxu0 %v5023_v13  ;;  %v1891_v55 = vrot.slane %v4925_v39, 1 }
  0xc8   : > { %2234 = vmatpush.bf16.msra.mxu3 %v4979_v46  ;;  %v6547_v57 = vadd.f32 %v6520_v11, %v598_v5  ;;  %v6554_v11 = vpack.c.bf16 %v4759_v56, %v6393_v50  ;;  %v6004_v50 = vld [vmem:[#allocation2 + $0x574] sm:$0xf]  ;;  %v1890_v46 = vrot.slane %v6566_v23, 1  ;;  %v1884_v56 = vrot.slane %v4917_v14, 1  ;;  %v6017_v5 = vld [vmem:[#allocation2 + $0x5d4] sm:$0xf0] }
  0xc9   : > { %1790 = vmatpush.bf16.msra.mxu1 %v4863_v52  ;;  %v5988_v52 = vld [vmem:[#allocation2 + $0x4f4] sm:$0xf]  ;;  %2252 = vmatpush.bf16.msrb.mxu2 %v5051_v53  ;;  %v5035_v13 = vor.u32 %v6004_v50, %v5032_v29  ;;  %v6601_v50 = vld [vmem:[%s6287_s21 + $0xc0] sm:$0xfe]  ;;  %v6604_v29 = vld [vmem:[%s6287_s21 + $0xd8] sm:$0x1] }
  0xca   : > { %v4971_v17 = vor.u32 %v5988_v52, %v4968_v2  ;;  %v5078_v2 = vld [vmem:[#allocation2 + $0x5d0] sm:$0xf]  ;;  %v6619_v14 = vld [vmem:[%s6287_s21 + $0xc8] sm:$0xfe] }
  0xcb   : > { %2199 = vmatpush.bf16.msra.mxu0 %v5015_v42  ;;  %v1885_v42 = vrot.slane %v4920_v43, 1 }
  0xcc   : > { %2235 = vmatpush.bf16.msra.mxu3 %v4971_v17  ;;  %v5080_v17 = vld [vmem:[#allocation2 + $0x5d8] sm:$0xf0] }
  0xcd   : > { %1791 = vmatpush.bf16.msra.mxu1 %v4855_v6  ;;  %v4754_v6 = vld [vmem:[%s6287_s21 + $0x90] sm:$0xff]  ;;  %v649_v30 = vpop.f32.mrf.mxu2  ;;  %v885_v38 = vpop.f32.mrf.mxu1  ;;  %2253 = vmatpush.bf16.msrb.mxu2 %v5043_v31 }
  0xce   : > { %v6551_v32 = vadd.f32 %v649_v30, %v6527_v24  ;;  %v1469_v4 = vpack.c.bf16 %v4757_v62, %v4754_v6  ;;  %v666_v24 = vpop.f32.mrf.mxu0  ;;  %v886_v25 = vadd.f32 %v885_v38, %v6511_v61  ;;  %v6002_v61 = vld [vmem:[#allocation2 + $0x564] sm:$0xf]  ;;  %v4947_v6 = vor.u32 %v5982_v0, %v4944_v60  ;;  %v6591_v31 = vld [vmem:[%s6287_s21 + $0x90] sm:$0xfe]  ;;  %v5072_v0 = vld [vmem:[#allocation2 + $0x5c8] sm:$0xf0] }
  0xcf   : > { %v6568_v37 = vadd.f32 %v666_v24, %v648_v35  ;;  %2200 = vmatpush.bf16.msra.mxu0 %v5007_v44  ;;  %v1882_v35 = vrot.slane %v6562_v9, 1  ;;  %v5027_v59 = vor.u32 %v6002_v61, %v5024_v51  ;;  %v5019_v30 = vor.u32 %v6000_v26, %v5016_v22  ;;  %v6051_v44 = vld [vmem:[#allocation2 + $0x6e4] sm:$0xf0]  ;;  %v5234_v24 = vld [vmem:[#allocation2 + $0x6d0] sm:$0xf] }
  0xd0   : > { %4913 = vmatmul.msk.bf16.gmra.mxu2 %vm548_vm2, %v6554_v11  ;;  %1781 = vmatmul.bf16.gmra.mxu0 %v1469_v4  ;;  %v5243_v19 = vor.u32 %v6051_v44, %v5242_v27  ;;  %v1895_v9 = vsel %vm266_vm1, %v1893_v7, %v1894_v8  ;;  %v1899_v38 = vrot.slane %v6591_v31, 1  ;;  %v4938_v7 = vld [vmem:[%s6287_s21 + $0xe0] sm:$0x1]  ;;  %v6034_v26 = vld [vmem:[#allocation2 + $0x664] sm:$0xf] }
  0xd1   : > { %1792 = vmatpush.bf16.msra.mxu1 %v4847_v54  ;;  %v6556_v54 = vpop.f32.mrf.mxu3  ;;  %2236 = vmatpush.bf16.msra.mxu3 %v4963_v63  ;;  %v5008_v63 = vld [vmem:[#allocation2 + $0x548] sm:$0xf0]  ;;  %v6045_v44 = vld [vmem:[#allocation2 + $0x6b4] sm:$0xf0]  ;;  %v5258_v31 = vld [vmem:[#allocation2 + $0x700] sm:$0xf] }
  0xd2   : > { %1724 = vmatmul.bf16.gmra.mxu1 %v1469_v4  ;;  %4914 = vmatmul.msk.bf16.vlgmr.msrb.gmra.mxu3 %vm548_vm2, %v6525_v45  ;;  %v5079_v45 = vor.u32 %v6017_v5, %v5078_v2 }
  0xd3   : > { %2274 = vmatpush.bf16.msrb.mxu0 %v2172_v34  ;;  %2254 = vmatpush.bf16.msrb.mxu2 %v5035_v13  ;;  %v6598_v34 = vld [vmem:[%s6287_s21 + $0xa8] sm:$0x1]  ;;  %v6049_v13 = vld [vmem:[#allocation2 + $0x6d4] sm:$0xf0] }
  0xd4   : > { %v5235_v43 = vor.u32 %v6049_v13, %v5234_v24 }
  0xd5   : > { %1793 = vmatpush.bf16.msra.mxu1 %v4839_v20  ;;  %v1881_v20 = vrot.slane %v6559_v33, 1  ;;  %v652_v52 = vpop.f32.mrf.mxu2  ;;  %2237 = vmatpush.bf16.msra.mxu3 %v4955_v48  ;;  %v887_v28 = vpop.f32.mrf.mxu1  ;;  %v1892_v33 = vsel %vm266_vm1, %v1890_v46, %v1891_v55  ;;  %v6014_v48 = vld [vmem:[#allocation2 + $0x5c4] sm:$0xf]  ;;  %v6047_v55 = vld [vmem:[#allocation2 + $0x6c4] sm:$0xf0] }
  0xd6   : > { %v653_v53 = vadd.f32 %v652_v52, %v6541_v36  ;;  %v668_v10 = vpop.f32.mrf.mxu0  ;;  %v5226_v52 = vld [vmem:[#allocation2 + $0x6c0] sm:$0xf]  ;;  %v5075_v60 = vor.u32 %v6014_v48, %v5072_v0  ;;  %v5202_v0 = vld [vmem:[#allocation2 + $0x690] sm:$0xf] }
  0xd7   : > { %v6587_v36 = vadd.f32 %v668_v10, %v6551_v32  ;;  %2255 = vmatpush.bf16.msrb.mxu2 %v5027_v59  ;;  %v1883_v4 = vsel %vm266_vm1, %v1881_v20, %v1882_v35  ;;  %v1886_v32 = vsel %vm266_vm1, %v1884_v56, %v1885_v42  ;;  %v6616_v20 = vld [vmem:[%s6287_s21 + $0xb0] sm:$0x1]  ;;  %v1900_v59 = vrot.slane %v6598_v34, 1  ;;  %v5178_v10 = vld [vmem:[#allocation2 + $0x660] sm:$0xf] }
  0xd8   : > { %v6610_v41 = vpack.c.bf16 %v1892_v33, %v1883_v4  ;;  %v6621_v46 = vpack.c.bf16 %v1895_v9, %v1886_v32  ;;  %v5227_v2 = vor.u32 %v6047_v55, %v5226_v52  ;;  %v5170_v32 = vld [vmem:[#allocation2 + $0x650] sm:$0xf]  ;;  %v6033_v9 = vld [vmem:[#allocation2 + $0x654] sm:$0xf0]  ;;  %v6032_v34 = vld [vmem:[#allocation2 + $0x654] sm:$0xf] }
  0xd9   : > { %1794 = vmatpush.bf16.msra.mxu1 %v4831_v16  ;;  %v6016_v16 = vld [vmem:[#allocation2 + $0x5d4] sm:$0xf]  ;;  %v904_v3 = vpop.f32.mrf.mxu3  ;;  %2238 = vmatpush.bf16.msra.mxu3 %v4947_v6  ;;  %v6057_v6 = vld [vmem:[#allocation2 + $0x714] sm:$0x30]  ;;  %v5171_v24 = vor.u32 %v6033_v9, %v5170_v32  ;;  %v6055_v55 = vld [vmem:[#allocation2 + $0x704] sm:$0xf0] }
  0xda   : > { %v6584_v62 = vadd.f32 %v904_v3, %v886_v25  ;;  %v5083_v12 = vor.u32 %v6016_v16, %v5080_v17  ;;  %v6613_v25 = vld [vmem:[%s6287_s21 + $0x98] sm:$0xfe]  ;;  %v1908_v16 = vrot.slane %v6601_v50, 1  ;;  %v1909_v3 = vrot.slane %v6604_v29, 1  ;;  %v5266_v17 = vld [vmem:[#allocation2 + $0x710] sm:$0xf] }
  0xdb   : > { %2256 = vmatpush.bf16.msrb.mxu2 %v5019_v30  ;;  %v1902_v8 = vrot.slane %v6613_v25, 1  ;;  %v5218_v30 = vld [vmem:[#allocation2 + $0x6b0] sm:$0xf]  ;;  %v5210_v50 = vld [vmem:[#allocation2 + $0x6a0] sm:$0xf] }
  0xdc   : > { %2275 = vmatpush.bf16.msrb.mxu0 %v5083_v12  ;;  %v6035_v12 = vld [vmem:[#allocation2 + $0x664] sm:$0xf0]  ;;  %v6041_v52 = vld [vmem:[#allocation2 + $0x694] sm:$0xf0]  ;;  %v4924_v32 = vld [vmem:[%s6287_s21 + $0x70] sm:$0xfe] }
  0xdd   : > { %2217 = vmatpush.bf16.msrb.mxu1 %v2169_v49  ;;  %v888_v49 = vadd.f32 %v887_v28, %v6518_v1  ;;  %2656 = vmatpush.bf16.msrb.mxu3 %v5243_v19  ;;  %v5998_v1 = vld [vmem:[#allocation2 + $0x544] sm:$0xf]  ;;  %v654_v23 = vpop.f32.mrf.mxu2  ;;  %v890_v42 = vpop.f32.mrf.mxu1  ;;  %v5179_v27 = vor.u32 %v6035_v12, %v5178_v10  ;;  %v5180_v28 = vld [vmem:[#allocation2 + $0x668] sm:$0xf0]  ;;  %v1912_v19 = vrot.slane %v4938_v7, 1 }
  0xde   : > { %v5011_v39 = vor.u32 %v5998_v1, %v5008_v63  ;;  %v6608_v40 = vadd.f32 %v654_v23, %v6556_v54  ;;  %v671_v51 = vpop.f32.mrf.mxu0  ;;  %v5071_v54 = vor.u32 %v6015_v47, %v5070_v58  ;;  %v891_v5 = vadd.f32 %v890_v42, %v6538_v15  ;;  %v5172_v23 = vld [vmem:[#allocation2 + $0x658] sm:$0xf0]  ;;  %v6031_v58 = vld [vmem:[#allocation2 + $0x644] sm:$0xf0]  ;;  %v6030_v47 = vld [vmem:[#allocation2 + $0x644] sm:$0xf] }
  0xdf   : > { %v6625_v56 = vadd.f32 %v671_v51, %v653_v53  ;;  %v1903_v53 = vrot.slane %v6616_v20, 1  ;;  %v5267_v15 = vor.u32 %v6057_v6, %v5266_v17  ;;  %v5183_v4 = vor.u32 %v6034_v26, %v5180_v28  ;;  %v6029_v7 = vld [vmem:[#allocation2 + $0x634] sm:$0xf0]  ;;  %v5194_v6 = vld [vmem:[#allocation2 + $0x680] sm:$0xf] }
  0xe0   : > { %2257 = vmatpush.bf16.msrb.mxu2 %v5011_v39  ;;  %2201 = vmatmul.bf16.vlgmr.msra.gmra.mxu0 %v6621_v46  ;;  %v5175_v13 = vor.u32 %v6032_v34, %v5172_v23  ;;  %v5203_v42 = vor.u32 %v6041_v52, %v5202_v0  ;;  %v4927_v9 = vld [vmem:[%s6287_s21 + $0x88] sm:$0x1]  ;;  %v6681_v0 = vld [vmem:[%s6287_s21 + $0xa0] sm:$0xfe]  ;;  %v6684_v52 = vld [vmem:[%s6287_s21 + $0xb8] sm:$0x1] }
  0xe1   : > { %2218 = vmatpush.bf16.msrb.mxu1 %v5079_v45  ;;  %v906_v35 = vpop.f32.mrf.mxu3  ;;  %2657 = vmatpush.bf16.msrb.mxu3 %v5235_v43  ;;  %v1911_v45 = vrot.slane %v6619_v14, 1  ;;  %v1901_v14 = vsel %vm266_vm1, %v1899_v38, %v1900_v59  ;;  %v1910_v43 = vsel %vm266_vm1, %v1908_v16, %v1909_v3  ;;  %v1904_v48 = vsel %vm266_vm1, %v1902_v8, %v1903_v53  ;;  %v5154_v3 = vld [vmem:[#allocation2 + $0x630] sm:$0xf]  ;;  %v6028_v8 = vld [vmem:[#allocation2 + $0x634] sm:$0xf] }
  0xe2   : > { %v6623_v61 = vadd.f32 %v906_v35, %v888_v49  ;;  %2182 = vmatmul.bf16.vlgmr.msra.gmra.mxu2 %v6610_v41  ;;  %1795 = vmatmul.bf16.vlgmr.msra.gmra.mxu1 %v6504_v21  ;;  %v2632_v21 = vsel %vm555_vm0, %v5267_v15, 0  ;;  %v5162_v35 = vld [vmem:[#allocation2 + $0x640] sm:$0xf]  ;;  %v5155_v17 = vor.u32 %v6029_v7, %v5154_v3  ;;  %v6039_v15 = vld [vmem:[#allocation2 + $0x684] sm:$0xf0] }
  0xe3   : > { %4915 = vmatmul.msk.bf16.gmra.mxu3 %vm548_vm2, %v6554_v11  ;;  %2276 = vmatpush.bf16.msrb.mxu0 %v5075_v60  ;;  %v5219_v11 = vor.u32 %v6045_v44, %v5218_v30  ;;  %v5163_v51 = vor.u32 %v6031_v58, %v5162_v35  ;;  %v6659_v60 = vpack.c.bf16 %v1910_v43, %v1901_v14  ;;  %v4921_v30 = vld [vmem:[%s6287_s21 + $0x58] sm:$0x1]  ;;  %v5146_v44 = vld [vmem:[#allocation2 + $0x620] sm:$0xf]  ;;  %v1896_v35 = vrot.slane %v4924_v32, 1 }
  0xe4   : > { %2680 = vmatpush.bf16.msra.mxu2 %v2632_v21  ;;  %v6026_v21 = vld [vmem:[#allocation2 + $0x624] sm:$0xf]  ;;  %v1897_v58 = vrot.slane %v4927_v9, 1  ;;  %v5097_v32 = vld [vmem:[%s6287_s21 + $0x38] sm:$0xfc] }
  0xe5   : > { %2219 = vmatpush.bf16.msrb.mxu1 %v5071_v54  ;;  %v923_v22 = vpop.f32.mrf.mxu2  ;;  %2658 = vmatpush.bf16.msrb.mxu3 %v5227_v2  ;;  %v892_v39 = vpop.f32.mrf.mxu1  ;;  %v5164_v54 = vld [vmem:[#allocation2 + $0x648] sm:$0xf0]  ;;  %v5259_v2 = vor.u32 %v6055_v55, %v5258_v31  ;;  %v5130_v31 = vld [vmem:[#allocation2 + $0x600] sm:$0xf]  ;;  %v6023_v55 = vld [vmem:[#allocation2 + $0x604] sm:$0xf0] }
  0xe6   : > { %v6641_v49 = vadd.f32 %v923_v22, %v6584_v62  ;;  %v673_v63 = vpop.f32.mrf.mxu0  ;;  %v6043_v62 = vld [vmem:[#allocation2 + $0x6a4] sm:$0xf0]  ;;  %v893_v20 = vadd.f32 %v892_v39, %v6547_v57  ;;  %v5167_v38 = vor.u32 %v6030_v47, %v5164_v54  ;;  %v5195_v22 = vor.u32 %v6039_v15, %v5194_v6  ;;  %v5100_v9 = vld [vmem:[%s6287_s21 + $0x50] sm:$0x3] }
  0xe7   : > { %2694 = vmatpush.bf16.msra.mxu0 %v5183_v4  ;;  %v6647_v29 = vadd.f32 %v673_v63, %v6608_v40  ;;  %v5211_v25 = vor.u32 %v6043_v62, %v5210_v50  ;;  %v1913_v40 = vsel %vm266_vm1, %v1911_v45, %v1912_v19  ;;  %v6027_v19 = vld [vmem:[#allocation2 + $0x624] sm:$0xf0]  ;;  %v5148_v4 = vld [vmem:[#allocation2 + $0x628] sm:$0xf0]  ;;  %v6037_v63 = vld [vmem:[#allocation2 + $0x674] sm:$0xf0] }
  0xe8   : > { %v6661_v16 = vpack.c.bf16 %v1913_v40, %v1904_v48  ;;  %2681 = vmatpush.bf16.msra.mxu2 %v5259_v2  ;;  %v5151_v34 = vor.u32 %v6026_v21, %v5148_v4  ;;  %v5250_v50 = vld [vmem:[#allocation2 + $0x6f0] sm:$0xf]  ;;  %v6053_v62 = vld [vmem:[#allocation2 + $0x6f4] sm:$0xf0]  ;;  %v5140_v48 = vld [vmem:[#allocation2 + $0x618] sm:$0xf0]  ;;  %v1898_v2 = vsel %vm266_vm1, %v1896_v35, %v1897_v58 }
  0xe9   : > { %v909_v33 = vpop.f32.mrf.mxu3  ;;  %2637 = vmatpush.bf16.msra.mxu1 %v5179_v27  ;;  %2659 = vmatpush.bf16.msrb.mxu3 %v5219_v11  ;;  %v4918_v27 = vld [vmem:[%s6287_s21 + $0x40] sm:$0xfe]  ;;  %v6700_v21 = vld [vmem:[%s6287_s21 + $0xe8] sm:$0x1]  ;;  %v2347_v58 = vrot.slane %v5097_v32, 2 }
  0xea   : > { %v6644_v1 = vadd.f32 %v909_v33, %v891_v5  ;;  %v5186_v33 = vld [vmem:[#allocation2 + $0x670] sm:$0xf]  ;;  %v1887_v39 = vrot.slane %v4918_v27, 1  ;;  %v1915_v35 = vrot.slane %v6700_v21, 1  ;;  %v6741_v32 = vld [vmem:[%s6287_s21 + $0x88] sm:$0x3] }
  0xeb   : > { %2695 = vmatpush.bf16.msra.mxu0 %v5175_v13  ;;  %v5187_v23 = vor.u32 %v6037_v63, %v5186_v33  ;;  %v5251_v13 = vor.u32 %v6053_v62, %v5250_v50  ;;  %v6050_v50 = vld [vmem:[#allocation2 + $0x6e4] sm:$0xf]  ;;  %v6056_v62 = vld [vmem:[#allocation2 + $0x714] sm:$0xf] }
  0xed   : > { %2638 = vmatpush.bf16.msra.mxu1 %v5171_v24  ;;  %v925_v57 = vpop.f32.mrf.mxu2  ;;  %2660 = vmatpush.bf16.msrb.mxu3 %v5211_v25  ;;  %v961_v12 = vpop.f32.mrf.mxu1  ;;  %v5138_v25 = vld [vmem:[#allocation2 + $0x610] sm:$0xf] }
  0xee   : > { %v6657_v59 = vadd.f32 %v925_v57, %v6623_v61  ;;  %v942_v45 = vpop.f32.mrf.mxu0  ;;  %v5156_v61 = vld [vmem:[#allocation2 + $0x638] sm:$0xf0]  ;;  %2682 = vmatpush.bf16.msra.mxu2 %v5251_v13 }
  0xef   : > { %2696 = vmatpush.bf16.msra.mxu0 %v5167_v38  ;;  %v943_v10 = vadd.f32 %v942_v45, %v6568_v37  ;;  %v5159_v26 = vor.u32 %v6028_v8, %v5156_v61  ;;  %v5147_v37 = vor.u32 %v6027_v19, %v5146_v44  ;;  %v6022_v38 = vld [vmem:[#allocation2 + $0x604] sm:$0xf]  ;;  %v6692_v45 = vld [vmem:[%s6287_s21 + $0xd0] sm:$0xfe]  ;;  %v1906_v61 = vrot.slane %v6684_v52, 1 }
  0xf0   : > { %2206 = vmatmul.bf16.gmra.mxu0 %v6661_v16  ;;  %v6073_v44 = vld [vmem:[#allocation2 + $0x794] sm:$0xf0]  ;;  %v1914_v4 = vrot.slane %v6692_v45, 1 }
  0xf1   : > { %v911_v5 = vpop.f32.mrf.mxu3  ;;  %2639 = vmatpush.bf16.msra.mxu1 %v5163_v51  ;;  %2661 = vmatpush.bf16.msrb.mxu3 %v5203_v42  ;;  %v962_v28 = vadd.f32 %v961_v12, %v943_v10  ;;  %v5122_v10 = vld [vmem:[#allocation2 + $0x5f0] sm:$0xf]  ;;  %v6021_v12 = vld [vmem:[#allocation2 + $0x5f4] sm:$0xf0] }
  0xf2   : > { %v6663_v53 = vadd.f32 %v911_v5, %v893_v20  ;;  %2187 = vmatmul.bf16.gmra.mxu2 %v6659_v60  ;;  %1800 = vmatmul.bf16.gmra.mxu1 %v6532_v18  ;;  %v6025_v20 = vld [vmem:[#allocation2 + $0x614] sm:$0xf0]  ;;  %v5132_v5 = vld [vmem:[#allocation2 + $0x608] sm:$0xf0]  ;;  %v5123_v27 = vor.u32 %v6021_v12, %v5122_v10  ;;  %v6725_v10 = vld [vmem:[%s6287_s21 + $0x70] sm:$0xfc] }
  0xf3   : > { %2239 = vmatmul.bf16.vlgmr.msra.gmra.mxu3 %v6610_v41  ;;  %2697 = vmatpush.bf16.msra.mxu0 %v5159_v26  ;;  %v1888_v41 = vrot.slane %v4921_v30, 1  ;;  %v5139_v47 = vor.u32 %v6025_v20, %v5138_v25  ;;  %v5135_v7 = vor.u32 %v6022_v38, %v5132_v5  ;;  %v6020_v26 = vld [vmem:[#allocation2 + $0x5f4] sm:$0xf]  ;;  %v5346_v30 = vld [vmem:[#allocation2 + $0x790] sm:$0xf] }
  0xf4   : > { %v6071_v25 = vld [vmem:[#allocation2 + $0x784] sm:$0xf0]  ;;  %v5410_v20 = vld [vmem:[#allocation2 + $0x810] sm:$0xf]  ;;  %v6721_v38 = vld [vmem:[%s6287_s21 + $0x58] sm:$0x3] }
  0xf5   : > { %2640 = vmatpush.bf16.msra.mxu1 %v5155_v17  ;;  %v928_v11 = vpop.f32.mrf.mxu2  ;;  %2662 = vmatpush.bf16.msrb.mxu3 %v5195_v22  ;;  %v963_v51 = vpop.f32.mrf.mxu1  ;;  %v1889_v42 = vsel %vm266_vm1, %v1887_v39, %v1888_v41  ;;  %v1905_v17 = vrot.slane %v6681_v0, 1  ;;  %v5338_v41 = vld [vmem:[#allocation2 + $0x780] sm:$0xf]  ;;  %v2351_v45 = vrot.slane %v6721_v38, 2  ;;  %v6059_v38 = vld [vmem:[#allocation2 + $0x724] sm:$0xf0] }
  0xf6   : > { %v6675_v24 = vadd.f32 %v928_v11, %v6644_v1  ;;  %v944_v43 = vpop.f32.mrf.mxu0  ;;  %v6024_v1 = vld [vmem:[#allocation2 + $0x614] sm:$0xf]  ;;  %v1931_v15 = vpack.c.bf16 %v1898_v2, %v1889_v42  ;;  %v5347_v11 = vor.u32 %v6073_v44, %v5346_v30  ;;  %v5236_v2 = vld [vmem:[#allocation2 + $0x6d8] sm:$0xf0]  ;;  %v6046_v30 = vld [vmem:[#allocation2 + $0x6c4] sm:$0xf] }
  0xf7   : > { %v945_v40 = vadd.f32 %v944_v43, %v6587_v36  ;;  %2698 = vmatpush.bf16.msra.mxu0 %v5151_v34  ;;  %v5143_v54 = vor.u32 %v6024_v1, %v5140_v48  ;;  %v5131_v36 = vor.u32 %v6023_v55, %v5130_v31  ;;  %v5103_v34 = vld [vmem:[%s6287_s21 + $0x68] sm:$0xfc]  ;;  %v6089_v43 = vld [vmem:[#allocation2 + $0x814] sm:$0xf0]  ;;  %v2348_v48 = vrot.slane %v5100_v9, 2 }
  0xf8   : > { %v6048_v42 = vld [vmem:[#allocation2 + $0x6d4] sm:$0xf]  ;;  %v5228_v44 = vld [vmem:[#allocation2 + $0x6c8] sm:$0xf0] }
  0xf9   : > { %v980_v18 = vpop.f32.mrf.mxu3  ;;  %2641 = vmatpush.bf16.msra.mxu1 %v5147_v37  ;;  %2663 = vmatpush.bf16.msrb.mxu3 %v5187_v23  ;;  %v964_v57 = vadd.f32 %v963_v51, %v945_v40  ;;  %v5106_v23 = vld [vmem:[%s6287_s21 + $0x80] sm:$0x3]  ;;  %v2356_v40 = vrot.slane %v5103_v34, 2  ;;  %v2349_v21 = vsel %vm555_vm0, %v2347_v58, %v2348_v48  ;;  %v5231_v0 = vor.u32 %v6046_v30, %v5228_v44  ;;  %v6746_v9 = vld [vmem:[%s6287_s21 + $0x30] sm:$0xfc] }
  0xfa   : > { %v6677_v14 = vadd.f32 %v980_v18, %v962_v28  ;;  %v5124_v28 = vld [vmem:[#allocation2 + $0x5f8] sm:$0xf0]  ;;  %v2357_v51 = vrot.slane %v5106_v23, 2  ;;  %v6749_v23 = vld [vmem:[%s6287_s21 + $0x48] sm:$0x3] }
  0xfb   : > { %2699 = vmatpush.bf16.msra.mxu0 %v5143_v54  ;;  %v5127_v33 = vor.u32 %v6020_v26, %v5124_v28  ;;  %v5268_v18 = vld [vmem:[#allocation2 + $0x718] sm:$0x30]  ;;  %v6715_v54 = vld [vmem:[%s6287_s21 + $0x40] sm:$0xfc] }
  0xfc   : > { %v2350_v12 = vrot.slane %v6715_v54, 2  ;;  %v2358_v52 = vsel %vm555_vm0, %v2356_v40, %v2357_v51 }
  0xfd   : > { %2642 = vmatpush.bf16.msra.mxu1 %v5139_v47  ;;  %v930_v3 = vpop.f32.mrf.mxu2  ;;  %v966_v37 = vpop.f32.mrf.mxu1  ;;  %v5339_v47 = vor.u32 %v6071_v25, %v5338_v41  ;;  %v6761_v41 = vld [vmem:[%s6287_s21 + $0xb0] sm:$0x3]  ;;  %v6044_v25 = vld [vmem:[#allocation2 + $0x6b4] sm:$0xf]  ;;  %v6768_v58 = vpack.c.bf16 %v2358_v52, %v2349_v21 }
  0xfe   : > { %v6689_v8 = vadd.f32 %v930_v3, %v6663_v53  ;;  %v947_v53 = vpop.f32.mrf.mxu0  ;;  %v5239_v3 = vor.u32 %v6048_v42, %v5236_v2  ;;  %v5386_v42 = vld [vmem:[#allocation2 + $0x7e0] sm:$0xf]  ;;  %v6083_v2 = vld [vmem:[#allocation2 + $0x7e4] sm:$0xf0]  ;;  %v5378_v21 = vld [vmem:[#allocation2 + $0x7d0] sm:$0xf] }
  0xff   : > { %v948_v19 = vadd.f32 %v947_v53, %v6625_v56  ;;  %2700 = vmatpush.bf16.msra.mxu0 %v5135_v7  ;;  %v5244_v56 = vld [vmem:[#allocation2 + $0x6e8] sm:$0xf0]  ;;  %v5330_v7 = vld [vmem:[#allocation2 + $0x770] sm:$0xf]  ;;  %v6087_v53 = vld [vmem:[#allocation2 + $0x804] sm:$0xf0] }
 0x100   : > { %5094 = vmatmul.msk.bf16.vlgmr.msrb.gmra.mxu0 %vm548_vm2, %v1931_v15  ;;  %v5247_v39 = vor.u32 %v6050_v50, %v5244_v56  ;;  %v6752_v50 = vld [vmem:[%s6287_s21 + $0x60] sm:$0xfc]  ;;  %v6755_v56 = vld [vmem:[%s6287_s21 + $0x78] sm:$0x3] }
 0x101   : > { %v982_v6 = vpop.f32.mrf.mxu3  ;;  %2643 = vmatpush.bf16.msra.mxu1 %v5131_v36  ;;  %v967_v63 = vadd.f32 %v966_v37, %v948_v19  ;;  %v5394_v19 = vld [vmem:[#allocation2 + $0x7f0] sm:$0xf]  ;;  %v1916_v37 = vsel %vm266_vm1, %v1914_v4, %v1915_v35  ;;  %v2359_v4 = vrot.slane %v6725_v10, 2 }
 0x102   : > { %v6696_v22 = vadd.f32 %v982_v6, %v964_v57  ;;  %2258 = vmatmul.bf16.vlgmr.msrb.gmra.mxu2 %v6621_v46  ;;  %5092 = vmatmul.msk.bf16.vlgmr.msrb.gmra.mxu1 %vm548_vm2, %v1931_v15  ;;  %v5271_v46 = vor.u32 %v6056_v62, %v5268_v18  ;;  %v6069_v6 = vld [vmem:[#allocation2 + $0x774] sm:$0xf0]  ;;  %v5402_v15 = vld [vmem:[#allocation2 + $0x800] sm:$0xf] }
 0x103   : > { %2244 = vmatmul.bf16.gmra.mxu3 %v6659_v60  ;;  %2701 = vmatpush.bf16.msra.mxu0 %v5127_v33  ;;  %v5411_v60 = vor.u32 %v6089_v43, %v5410_v20  ;;  %v5331_v26 = vor.u32 %v6069_v6, %v5330_v7  ;;  %v5403_v28 = vor.u32 %v6087_v53, %v5402_v15  ;;  %v6085_v33 = vld [vmem:[#allocation2 + $0x7f4] sm:$0xf0]  ;;  %v5220_v20 = vld [vmem:[#allocation2 + $0x6b8] sm:$0xf0]  ;;  %v2353_v6 = vrot.slane %v6752_v50, 2 }
 0x104   : > { %3017 = vmatpush.bf16.msrb.mxu2 %v5347_v11  ;;  %v2635_v57 = vsel %vm555_vm0, %v5271_v46, 0  ;;  %v6758_v62 = vld [vmem:[%s6287_s21 + $0x98] sm:$0xfc]  ;;  %v6764_v46 = vld [vmem:[%s6287_s21 + $0xc8] sm:$0xfc]  ;;  %v5387_v7 = vor.u32 %v6083_v2, %v5386_v42  ;;  %v2354_v15 = vrot.slane %v6755_v56, 2 }
 0x105   : > { %2644 = vmatpush.bf16.msra.mxu1 %v5123_v27  ;;  %v6711_v13 = vpop.f32.mrf.mxu2  ;;  %2737 = vmatpush.bf16.msra.mxu3 %v2635_v57  ;;  %v968_v5 = vpop.f32.mrf.mxu1  ;;  %v5223_v57 = vor.u32 %v6044_v25, %v5220_v20  ;;  %v2366_v53 = vrot.slane %v6761_v41, 2  ;;  %v5370_v50 = vld [vmem:[#allocation2 + $0x7c0] sm:$0xf]  ;;  %v5362_v42 = vld [vmem:[#allocation2 + $0x7b0] sm:$0xf] }
 0x106   : > { %v949_v55 = vpop.f32.mrf.mxu0 }
 0x107   : > { %3036 = vmatpush.bf16.msrb.mxu0 %v5411_v60  ;;  %v950_v36 = vadd.f32 %v949_v55, %v6647_v29  ;;  %v1907_v29 = vsel %vm266_vm1, %v1905_v17, %v1906_v61  ;;  %v5322_v17 = vld [vmem:[#allocation2 + $0x760] sm:$0xf]  ;;  %v6067_v61 = vld [vmem:[#allocation2 + $0x764] sm:$0xf0]  ;;  %v5260_v60 = vld [vmem:[#allocation2 + $0x708] sm:$0xf0] }
 0x108   : > { %3018 = vmatpush.bf16.msrb.mxu2 %v5339_v47  ;;  %v5323_v34 = vor.u32 %v6067_v61, %v5322_v17  ;;  %v6054_v47 = vld [vmem:[#allocation2 + $0x704] sm:$0xf]  ;;  %v6065_v55 = vld [vmem:[#allocation2 + $0x754] sm:$0xf0]  ;;  %v6052_v61 = vld [vmem:[#allocation2 + $0x6f4] sm:$0xf] }
 0x109   : > { %2713 = vmatpush.bf16.msrb.mxu1 %v5247_v39  ;;  %v985_v1 = vpop.f32.mrf.mxu3  ;;  %v969_v27 = vadd.f32 %v968_v5, %v950_v36  ;;  %v1934_v39 = vpack.c.bf16 %v1916_v37, %v1907_v29  ;;  %v5263_v51 = vor.u32 %v6054_v47, %v5260_v60  ;;  %v2360_v36 = vrot.slane %v6741_v32, 2  ;;  %v6042_v29 = vld [vmem:[#allocation2 + $0x6a4] sm:$0xf]  ;;  %v6063_v37 = vld [vmem:[#allocation2 + $0x744] sm:$0xf0] }
 0x10a   : > { %v6718_v31 = vadd.f32 %v985_v1, %v967_v63  ;;  %v5395_v63 = vor.u32 %v6085_v33, %v5394_v19  ;;  %v5314_v1 = vld [vmem:[#allocation2 + $0x750] sm:$0xf]  ;;  %v2344_v5 = vrot.slane %v6746_v9, 2  ;;  %v5306_v19 = vld [vmem:[#allocation2 + $0x740] sm:$0xf] }
 0x10b   : > { %3037 = vmatpush.bf16.msrb.mxu0 %v5403_v28  ;;  %2738 = vmatpush.bf16.msra.mxu3 %v5263_v51  ;;  %v5212_v28 = vld [vmem:[#allocation2 + $0x6a8] sm:$0xf0]  ;;  %v6081_v17 = vld [vmem:[#allocation2 + $0x7d4] sm:$0xf0]  ;;  %v5252_v33 = vld [vmem:[#allocation2 + $0x6f8] sm:$0xf0]  ;;  %v2352_v51 = vsel %vm555_vm0, %v2350_v12, %v2351_v45 }
 0x10c   : > { %3019 = vmatpush.bf16.msrb.mxu2 %v5331_v26  ;;  %v2365_v26 = vrot.slane %v6758_v62, 2  ;;  %v5215_v44 = vor.u32 %v6042_v29, %v5212_v28  ;;  %v5379_v9 = vor.u32 %v6081_v17, %v5378_v21  ;;  %v5298_v62 = vld [vmem:[#allocation2 + $0x730] sm:$0xf]  ;;  %v6072_v47 = vld [vmem:[#allocation2 + $0x794] sm:$0xf] }
 0x10d   : > { %2714 = vmatpush.bf16.msrb.mxu1 %v5239_v3  ;;  %v6738_v11 = vpop.f32.mrf.mxu2  ;;  %v1364_v40 = vpop.f32.mrf.mxu1  ;;  %v5315_v3 = vor.u32 %v6065_v55, %v5314_v1  ;;  %v5348_v60 = vld [vmem:[#allocation2 + $0x798] sm:$0xf0]  ;;  %v5196_v55 = vld [vmem:[#allocation2 + $0x688] sm:$0xf0]  ;;  %v6077_v29 = vld [vmem:[#allocation2 + $0x7b4] sm:$0xf0] }
 0x10e   : > { %v1359_v35 = vpop.f32.mrf.mxu0  ;;  %v5188_v28 = vld [vmem:[#allocation2 + $0x678] sm:$0xf0]  ;;  %v5354_v21 = vld [vmem:[#allocation2 + $0x7a0] sm:$0xf] }
 0x10f   : > { %v6771_v48 = vadd.f32 %v1359_v35, %v6711_v13  ;;  %3038 = vmatpush.bf16.msrb.mxu0 %v5395_v63  ;;  %v2345_v13 = vrot.slane %v6749_v23, 2  ;;  %v6040_v63 = vld [vmem:[#allocation2 + $0x694] sm:$0xf]  ;;  %v5204_v23 = vld [vmem:[#allocation2 + $0x698] sm:$0xf0] }
 0x110   : > { %3020 = vmatpush.bf16.msrb.mxu2 %v5323_v34  ;;  %5095 = vmatmul.msk.bf16.gmra.mxu0 %vm548_vm2, %v1934_v39  ;;  %v5255_v34 = vor.u32 %v6052_v61, %v5252_v33  ;;  %v5207_v20 = vor.u32 %v6040_v63, %v5204_v23  ;;  %v6820_v61 = vld [vmem:[%s6287_s21 + $0xd0] sm:$0xfc] }
 0x111   : > { %v987_v18 = vpop.f32.mrf.mxu3  ;;  %2715 = vmatpush.bf16.msrb.mxu1 %v5231_v0  ;;  %v5307_v0 = vor.u32 %v6063_v37, %v5306_v19  ;;  %v2346_v2 = vsel %vm555_vm0, %v2344_v5, %v2345_v13  ;;  %v6814_v19 = vld [vmem:[%s6287_s21 + $0xa0] sm:$0xfc]  ;;  %v6817_v37 = vld [vmem:[%s6287_s21 + $0xb8] sm:$0x3]  ;;  %v6068_v63 = vld [vmem:[#allocation2 + $0x774] sm:$0xf] }
 0x112   : > { %v6766_v43 = vadd.f32 %v987_v18, %v969_v27  ;;  %2263 = vmatmul.bf16.gmra.mxu2 %v6661_v16  ;;  %5093 = vmatmul.msk.bf16.gmra.mxu1 %vm548_vm2, %v1934_v39  ;;  %v5118_v16 = vld [vmem:[%s6287_s21 + $0xe0] sm:$0x3]  ;;  %v2374_v27 = vrot.slane %v6764_v46, 2  ;;  %v6061_v18 = vld [vmem:[#allocation2 + $0x734] sm:$0xf0] }
 0x113   : > { %2664 = vmatmul.bf16.vlgmr.msrb.gmra.mxu3 %v6768_v58  ;;  %3039 = vmatpush.bf16.msrb.mxu0 %v5387_v7  ;;  %v6079_v39 = vld [vmem:[#allocation2 + $0x7c4] sm:$0xf0]  ;;  %v2375_v25 = vrot.slane %v5118_v16, 2  ;;  %v5299_v35 = vor.u32 %v6061_v18, %v5298_v62  ;;  %v2367_v7 = vsel %vm555_vm0, %v2365_v26, %v2366_v53  ;;  %v5290_v16 = vld [vmem:[#allocation2 + $0x720] sm:$0xf] }
 0x114   : > { %3021 = vmatpush.bf16.msrb.mxu2 %v5315_v3  ;;  %2739 = vmatpush.bf16.msra.mxu3 %v5255_v34  ;;  %v5371_v1 = vor.u32 %v6079_v39, %v5370_v50  ;;  %v2355_v3 = vsel %vm555_vm0, %v2353_v6, %v2354_v15  ;;  %v5291_v45 = vor.u32 %v6059_v38, %v5290_v16  ;;  %v5412_v34 = vld [vmem:[#allocation2 + $0x818] sm:$0xf0]  ;;  %v5119_v50 = vld [vmem:[%s6287_s21 + $0xe8] sm:$0x3] }
 0x115   : > { %v1345_v30 = vpop.f32.mrf.mxu2  ;;  %2716 = vmatpush.bf16.msrb.mxu1 %v5223_v57  ;;  %v1366_v46 = vpop.f32.mrf.mxu1  ;;  %v6038_v57 = vld [vmem:[#allocation2 + $0x684] sm:$0xf]  ;;  %v2376_v12 = vsel %vm555_vm0, %v2374_v27, %v2375_v25  ;;  %v5363_v6 = vor.u32 %v6077_v29, %v5362_v42  ;;  %v2392_v53 = vpack.c.bf16 %v2355_v3, %v2346_v2  ;;  %v6036_v27 = vld [vmem:[#allocation2 + $0x674] sm:$0xf]  ;;  %v5332_v39 = vld [vmem:[#allocation2 + $0x778] sm:$0xf0] }
 0x116   : > { %v6786_v52 = vadd.f32 %v1364_v40, %v1345_v30  ;;  %v1361_v56 = vpop.f32.mrf.mxu0  ;;  %v5351_v40 = vor.u32 %v6072_v47, %v5348_v60  ;;  %v5199_v10 = vor.u32 %v6038_v57, %v5196_v55  ;;  %v5191_v33 = vor.u32 %v6036_v27, %v5188_v28  ;;  %v5114_v25 = vld [vmem:[%s6287_s21 + $0xc0] sm:$0xfc]  ;;  %v5404_v60 = vld [vmem:[#allocation2 + $0x808] sm:$0xf0] }
 0x117   : > { %v6791_v41 = vadd.f32 %v1361_v56, %v6738_v11  ;;  %3040 = vmatpush.bf16.msrb.mxu0 %v5379_v9  ;;  %v2361_v11 = vsel %vm555_vm0, %v2359_v4, %v2360_v36  ;;  %v6070_v4 = vld [vmem:[#allocation2 + $0x784] sm:$0xf]  ;;  %v5340_v36 = vld [vmem:[#allocation2 + $0x788] sm:$0xf0]  ;;  %v6088_v9 = vld [vmem:[#allocation2 + $0x814] sm:$0xf] }
 0x118   : > { %3022 = vmatpush.bf16.msrb.mxu2 %v5307_v0  ;;  %3074 = vmatpush.bf16.msrb.mxu3 %v5351_v40  ;;  %v6807_v13 = vpack.c.bf16 %v2361_v11, %v2352_v51  ;;  %v5343_v15 = vor.u32 %v6070_v4, %v5340_v36  ;;  %v6075_v0 = vld [vmem:[#allocation2 + $0x7a4] sm:$0xf0]  ;;  %v5108_v56 = vld [vmem:[%s6287_s21 + $0x90] sm:$0xfc]  ;;  %v5415_v18 = vor.u32 %v6088_v9, %v5412_v34  ;;  %v2368_v51 = vrot.slane %v6814_v19, 2 }
 0x119   : > { %v6788_v32 = vpop.f32.mrf.mxu3  ;;  %2717 = vmatpush.bf16.msrb.mxu1 %v5215_v44  ;;  %v6811_v44 = vpack.c.bf16 %v2376_v12, %v2367_v7  ;;  %v5355_v62 = vor.u32 %v6075_v0, %v5354_v21  ;;  %v2369_v11 = vrot.slane %v6817_v37, 2  ;;  %v5324_v55 = vld [vmem:[#allocation2 + $0x768] sm:$0xf0]  ;;  %v2378_v2 = vrot.slane %v5119_v50, 2  ;;  %v5396_v4 = vld [vmem:[#allocation2 + $0x7f8] sm:$0xf0] }
 0x11a   : > { %v2362_v16 = vrot.slane %v5108_v56, 2  ;;  %v2371_v29 = vrot.slane %v5114_v25, 2  ;;  %v6064_v36 = vld [vmem:[#allocation2 + $0x754] sm:$0xf]  ;;  %v5434_v28 = vld [vmem:[#allocation2 + $0x840] sm:$0xf] }
 0x11b   : > { %3041 = vmatpush.bf16.msrb.mxu0 %v5371_v1  ;;  %v6066_v1 = vld [vmem:[#allocation2 + $0x764] sm:$0xf]  ;;  %v6095_v19 = vld [vmem:[#allocation2 + $0x844] sm:$0x30] }
 0x11c   : > { %3023 = vmatpush.bf16.msrb.mxu2 %v5299_v35  ;;  %3075 = vmatpush.bf16.msrb.mxu3 %v5343_v15  ;;  %v5335_v35 = vor.u32 %v6068_v63, %v5332_v39  ;;  %v5327_v3 = vor.u32 %v6066_v1, %v5324_v55  ;;  %v5316_v15 = vld [vmem:[#allocation2 + $0x758] sm:$0xf0]  ;;  %v6094_v37 = vld [vmem:[#allocation2 + $0x844] sm:$0xf]  ;;  %v5388_v63 = vld [vmem:[#allocation2 + $0x7e8] sm:$0xf0] }
 0x11d   : > { %v1347_v54 = vpop.f32.mrf.mxu2  ;;  %2718 = vmatpush.bf16.msrb.mxu1 %v5207_v20  ;;  %v1378_v17 = vpop.f32.mrf.mxu1  ;;  %v5117_v20 = vld [vmem:[%s6287_s21 + $0xd8] sm:$0x3]  ;;  %v5319_v21 = vor.u32 %v6064_v36, %v5316_v15  ;;  %v6080_v1 = vld [vmem:[#allocation2 + $0x7d4] sm:$0xf]  ;;  %v5428_v15 = vld [vmem:[#allocation2 + $0x838] sm:$0xf0] }
 0x11e   : > { %v6805_v5 = vadd.f32 %v1366_v46, %v1347_v54  ;;  %v1435_v30 = vpop.f32.mrf.mxu0  ;;  %v1379_v23 = vadd.f32 %v1378_v17, %v6771_v48  ;;  %v5111_v46 = vld [vmem:[%s6287_s21 + $0xa8] sm:$0x3]  ;;  %v6086_v48 = vld [vmem:[#allocation2 + $0x804] sm:$0xf]  ;;  %v2372_v54 = vrot.slane %v5117_v20, 2  ;;  %v5435_v17 = vor.u32 %v6095_v19, %v5434_v28 }
 0x11f   : > { %3042 = vmatpush.bf16.msrb.mxu0 %v5363_v6  ;;  %v5407_v57 = vor.u32 %v6086_v48, %v5404_v60  ;;  %v2363_v38 = vrot.slane %v5111_v46, 2  ;;  %v6093_v36 = vld [vmem:[#allocation2 + $0x834] sm:$0xf0]  ;;  %v5364_v28 = vld [vmem:[#allocation2 + $0x7b8] sm:$0xf0] }
 0x120   : > { %3024 = vmatpush.bf16.msrb.mxu2 %v5291_v45  ;;  %2702 = vmatmul.bf16.vlgmr.msra.gmra.mxu0 %v2392_v53  ;;  %v6831_v47 = vadd.f32 %v1379_v23, %v6641_v49  ;;  %v2377_v49 = vrot.slane %v6820_v61, 2  ;;  %v6084_v45 = vld [vmem:[#allocation2 + $0x7f4] sm:$0xf]  ;;  %v5436_v61 = vld [vmem:[#allocation2 + $0x848] sm:$0x30]  ;;  %v3012_v56 = vsel %vm555_vm0, %v5435_v17, 0 }
 0x121   : > { %v6809_v26 = vpop.f32.mrf.mxu3  ;;  %2719 = vmatpush.bf16.msrb.mxu1 %v5199_v10  ;;  %3076 = vmatpush.bf16.msrb.mxu3 %v5335_v35  ;;  %v2364_v9 = vsel %vm555_vm0, %v2362_v16, %v2363_v38  ;;  %v5439_v34 = vor.u32 %v6094_v37, %v5436_v61  ;;  %v6062_v23 = vld [vmem:[#allocation2 + $0x744] sm:$0xf]  ;;  %v5372_v16 = vld [vmem:[#allocation2 + $0x7c8] sm:$0xf0]  ;;  %v6127_v17 = vld [vmem:[#allocation2 + $0x944] sm:$0xf0] }
 0x122   : > { %5272 = vmatmul.msk.bf16.vlgmr.msra.gmra.mxu2 %vm548_vm2, %v6807_v13  ;;  %2645 = vmatmul.bf16.vlgmr.msra.gmra.mxu1 %v2392_v53  ;;  %v2379_v0 = vsel %vm555_vm0, %v2377_v49, %v2378_v2  ;;  %v6058_v38 = vld [vmem:[#allocation2 + $0x724] sm:$0xf]  ;;  %v5279_v61 = vld [vmem:[%s6287_s21 + $0x90] sm:$0xff] }
 0x123   : > { %2669 = vmatmul.bf16.gmra.mxu3 %v6811_v44  ;;  %3043 = vmatpush.bf16.msrb.mxu0 %v5355_v62  ;;  %v5276_v37 = vld [vmem:[%s6287_s21 + $0x60] sm:$0xff] }
 0x124   : > { %3093 = vmatpush.bf16.msra.mxu2 %v5415_v18  ;;  %v5308_v18 = vld [vmem:[#allocation2 + $0x748] sm:$0xf0] }
 0x125   : > { %v1416_v40 = vpop.f32.mrf.mxu2  ;;  %2720 = vmatpush.bf16.msrb.mxu1 %v5191_v33  ;;  %v1380_v6 = vpop.f32.mrf.mxu1  ;;  %3077 = vmatpush.bf16.msrb.mxu3 %v5327_v3  ;;  %v5311_v25 = vor.u32 %v6062_v23, %v5308_v18  ;;  %v6078_v3 = vld [vmem:[#allocation2 + $0x7c4] sm:$0xf]  ;;  %v5582_v23 = vld [vmem:[#allocation2 + $0x930] sm:$0xf]  ;;  %v6882_v18 = vpack.c.bf16 %v5279_v61, %v5276_v37  ;;  %v5558_v37 = vld [vmem:[#allocation2 + $0x900] sm:$0xf] }
 0x126   : > { %v1417_v42 = vadd.f32 %v1416_v40, %v6788_v32  ;;  %v1437_v10 = vpop.f32.mrf.mxu0  ;;  %v5399_v32 = vor.u32 %v6084_v45, %v5396_v4  ;;  %v1381_v27 = vadd.f32 %v1380_v6, %v6791_v41  ;;  %v6082_v41 = vld [vmem:[#allocation2 + $0x7e4] sm:$0xf]  ;;  %v5380_v40 = vld [vmem:[#allocation2 + $0x7d8] sm:$0xf0]  ;;  %v5426_v4 = vld [vmem:[#allocation2 + $0x830] sm:$0xf] }
 0x127   : > { %v5391_v62 = vor.u32 %v6082_v41, %v5388_v63  ;;  %v6092_v6 = vld [vmem:[#allocation2 + $0x834] sm:$0xf]  ;;  %v6074_v63 = vld [vmem:[#allocation2 + $0x7a4] sm:$0xf] }
 0x128   : > { %v1436_v12 = vadd.f32 %v1435_v30, %v1417_v42  ;;  %3094 = vmatpush.bf16.msra.mxu2 %v5407_v57  ;;  %v2370_v30 = vsel %vm555_vm0, %v2368_v51, %v2369_v11  ;;  %v6847_v33 = vadd.f32 %v1381_v27, %v6657_v59  ;;  %v3015_v59 = vsel %vm555_vm0, %v5439_v34, 0  ;;  %v6060_v51 = vld [vmem:[#allocation2 + $0x734] sm:$0xf] }
 0x129   : > { %v6838_v7 = vpop.f32.mrf.mxu3  ;;  %v6853_v46 = vpack.c.bf16 %v2379_v0, %v2370_v30  ;;  %3060 = vmatpush.bf16.msra.mxu1 %v3012_v56  ;;  %3078 = vmatpush.bf16.msrb.mxu3 %v5319_v21  ;;  %v5383_v57 = vor.u32 %v6080_v1, %v5380_v40  ;;  %v6076_v27 = vld [vmem:[#allocation2 + $0x7b4] sm:$0xf]  ;;  %v5431_v21 = vor.u32 %v6092_v6, %v5428_v15  ;;  %v5590_v0 = vld [vmem:[#allocation2 + $0x940] sm:$0xf]  ;;  %v6125_v56 = vld [vmem:[#allocation2 + $0x934] sm:$0xf0] }
 0x12a   : > { %v6841_v53 = vadd.f32 %v1436_v12, %v6677_v14  ;;  %v2373_v14 = vsel %vm555_vm0, %v2371_v29, %v2372_v54  ;;  %3117 = vmatpush.bf16.msra.mxu0 %v3015_v59  ;;  %v5375_v29 = vor.u32 %v6078_v3, %v5372_v16  ;;  %v5367_v30 = vor.u32 %v6076_v27, %v5364_v28  ;;  %v5526_v16 = vld [vmem:[#allocation2 + $0x8c0] sm:$0xf] }
 0x12b   : > { %v2395_v35 = vpack.c.bf16 %v2373_v14, %v2364_v9  ;;  %v5277_v9 = vld [vmem:[%s6287_s21 + $0x68] sm:$0xff]  ;;  %v5280_v14 = vld [vmem:[%s6287_s21 + $0x98] sm:$0xff]  ;;  %v5591_v34 = vor.u32 %v6127_v17, %v5590_v0  ;;  %v5282_v0 = vld [vmem:[%s6287_s21 + $0xc0] sm:$0xff] }
 0x12c   : > { %3095 = vmatpush.bf16.msra.mxu2 %v5399_v32  ;;  %v5427_v32 = vor.u32 %v6093_v36, %v5426_v4  ;;  %v5614_v4 = vld [vmem:[#allocation2 + $0x970] sm:$0xf]  ;;  %v6133_v36 = vld [vmem:[#allocation2 + $0x974] sm:$0x30] }
 0x12d   : > { %v1418_v50 = vpop.f32.mrf.mxu2  ;;  %v1383_v11 = vpop.f32.mrf.mxu1  ;;  %3079 = vmatpush.bf16.msrb.mxu3 %v5311_v25  ;;  %v6884_v25 = vpack.c.bf16 %v5280_v14, %v5277_v9 }
 0x12e   : > { %v1419_v39 = vadd.f32 %v1418_v50, %v6809_v26  ;;  %v1440_v60 = vpop.f32.mrf.mxu0  ;;  %v5300_v26 = vld [vmem:[#allocation2 + $0x738] sm:$0xf0]  ;;  %v1384_v42 = vadd.f32 %v1383_v11, %v6786_v52  ;;  %v5292_v52 = vld [vmem:[#allocation2 + $0x728] sm:$0xf0]  ;;  %3061 = vmatpush.bf16.msra.mxu1 %v5427_v32  ;;  %3118 = vmatpush.bf16.msra.mxu0 %v5431_v21  ;;  %v5574_v11 = vld [vmem:[#allocation2 + $0x920] sm:$0xf] }
 0x12f   : > { %v5303_v49 = vor.u32 %v6060_v51, %v5300_v26  ;;  %v5295_v12 = vor.u32 %v6058_v38, %v5292_v52  ;;  %v5420_v51 = vld [vmem:[#allocation2 + $0x828] sm:$0xf0]  ;;  %v6111_v38 = vld [vmem:[#allocation2 + $0x8c4] sm:$0xf0]  ;;  %v6108_v32 = vld [vmem:[#allocation2 + $0x8b4] sm:$0xf] }
 0x130   : > { %v1438_v48 = vadd.f32 %v1437_v10, %v1419_v39  ;;  %3096 = vmatpush.bf16.msra.mxu2 %v5391_v62  ;;  %2707 = vmatmul.bf16.gmra.mxu0 %v2395_v35  ;;  %v6865_v2 = vadd.f32 %v1384_v42, %v6675_v24  ;;  %v5583_v39 = vor.u32 %v6125_v56, %v5582_v23  ;;  %v5528_v52 = vld [vmem:[#allocation2 + $0x8c8] sm:$0xf0]  ;;  %v6119_v21 = vld [vmem:[#allocation2 + $0x904] sm:$0xf0] }
 0x131   : > { %v6856_v20 = vpop.f32.mrf.mxu3  ;;  %3080 = vmatpush.bf16.msrb.mxu3 %v5303_v49  ;;  %v5559_v9 = vor.u32 %v6119_v21, %v5558_v37  ;;  %v6107_v23 = vld [vmem:[#allocation2 + $0x8a4] sm:$0xf0]  ;;  %v5512_v56 = vld [vmem:[#allocation2 + $0x8a8] sm:$0xf0]  ;;  %v5598_v37 = vld [vmem:[#allocation2 + $0x950] sm:$0xf] }
 0x132   : > { %v6859_v55 = vadd.f32 %v1438_v48, %v6696_v22  ;;  %5273 = vmatmul.msk.bf16.gmra.mxu2 %vm548_vm2, %v6853_v46  ;;  %2650 = vmatmul.bf16.gmra.mxu1 %v2395_v35  ;;  %v5418_v35 = vld [vmem:[#allocation2 + $0x820] sm:$0xf]  ;;  %v6090_v48 = vld [vmem:[#allocation2 + $0x824] sm:$0xf]  ;;  %v6129_v21 = vld [vmem:[#allocation2 + $0x954] sm:$0xf0] }
 0x133   : > { %5274 = vmatmul.msk.bf16.vlgmr.msra.gmra.mxu3 %vm548_vm2, %v6807_v13 }
 0x134   : > { %3097 = vmatpush.bf16.msra.mxu2 %v5383_v57  ;;  %v6123_v57 = vld [vmem:[#allocation2 + $0x924] sm:$0xf0] }
 0x135   : > { %v1421_v22 = vpop.f32.mrf.mxu2  ;;  %v1385_v13 = vpop.f32.mrf.mxu1  ;;  %3081 = vmatpush.bf16.msrb.mxu3 %v5295_v12  ;;  %v5575_v42 = vor.u32 %v6123_v57, %v5574_v11  ;;  %v6121_v12 = vld [vmem:[#allocation2 + $0x914] sm:$0xf0] }
 0x136   : > { %v1422_v54 = vadd.f32 %v1421_v22, %v6838_v7  ;;  %v1442_v24 = vpop.f32.mrf.mxu0  ;;  %v1386_v19 = vadd.f32 %v1385_v13, %v6805_v5  ;;  %v6110_v22 = vld [vmem:[#allocation2 + $0x8c4] sm:$0xf]  ;;  %v5615_v13 = vor.u32 %v6133_v36, %v5614_v4 }
 0x137   : > { %v6102_v4 = vld [vmem:[#allocation2 + $0x884] sm:$0xf] }
 0x138   : > { %v1441_v45 = vadd.f32 %v1440_v60, %v1422_v54  ;;  %3098 = vmatpush.bf16.msra.mxu2 %v5375_v29  ;;  %v6879_v41 = vadd.f32 %v1386_v19, %v6689_v8  ;;  %v6091_v8 = vld [vmem:[#allocation2 + $0x824] sm:$0xf0]  ;;  %v5527_v29 = vor.u32 %v6111_v38, %v5526_v16  ;;  %v5566_v54 = vld [vmem:[#allocation2 + $0x910] sm:$0xf]  ;;  %v5520_v19 = vld [vmem:[#allocation2 + $0x8b8] sm:$0xf0] }
 0x139   : > { %v1739_v10 = vpop.f32.mrf.mxu3  ;;  %3499 = vmatpush.bf16.msra.mxu3 %v5591_v34  ;;  %v5419_v40 = vor.u32 %v6091_v8, %v5418_v35  ;;  %v3475_v17 = vsel %vm555_vm0, %v5615_v13, 0  ;;  %v5523_v61 = vor.u32 %v6108_v32, %v5520_v19  ;;  %v5285_v34 = vld [vmem:[%s6287_s21 + $0xf0] sm:$0xff]  ;;  %v5496_v13 = vld [vmem:[#allocation2 + $0x888] sm:$0xf0] }
 0x13a   : > { %v6871_v7 = vadd.f32 %v1441_v45, %v6718_v31  ;;  %v5356_v31 = vld [vmem:[#allocation2 + $0x7a8] sm:$0xf0]  ;;  %v5567_v45 = vor.u32 %v6121_v12, %v5566_v54  ;;  %v6115_v54 = vld [vmem:[#allocation2 + $0x8e4] sm:$0xf0] }
 0x13b   : > { %v5359_v5 = vor.u32 %v6074_v63, %v5356_v31  ;;  %3062 = vmatpush.bf16.msra.mxu1 %v5419_v40  ;;  %v5283_v63 = vld [vmem:[%s6287_s21 + $0xc8] sm:$0xff]  ;;  %v5286_v31 = vld [vmem:[%s6287_s21 + $0xf8] sm:$0xff]  ;;  %v6906_v40 = vpack.c.bf16 %v5285_v34, %v5282_v0  ;;  %v5599_v0 = vor.u32 %v6129_v21, %v5598_v37  ;;  %v5770_v37 = vld [vmem:[#allocation2 + $0xa70] sm:$0xf] }
 0x13c   : > { %3099 = vmatpush.bf16.msra.mxu2 %v5367_v30  ;;  %v6908_v57 = vpack.c.bf16 %v5286_v31, %v5283_v63  ;;  %v5488_v34 = vld [vmem:[#allocation2 + $0x878] sm:$0xf0]  ;;  %v6165_v21 = vld [vmem:[#allocation2 + $0xa74] sm:$0xf0] }
 0x13d   : > { %v1423_v50 = vpop.f32.mrf.mxu2  ;;  %3500 = vmatpush.bf16.msra.mxu3 %v5583_v39  ;;  %v6117_v39 = vld [vmem:[#allocation2 + $0x8f4] sm:$0xf0] }
 0x13e   : > { %v1424_v62 = vadd.f32 %v1423_v50, %v6856_v20  ;;  %v6886_v1 = vpop.f32.mrf.mxu0  ;;  %v5423_v20 = vor.u32 %v6090_v48, %v5420_v51  ;;  %v6106_v50 = vld [vmem:[#allocation2 + $0x8a4] sm:$0xf]  ;;  %v6131_v51 = vld [vmem:[#allocation2 + $0x964] sm:$0xf0] }
 0x13f   : > { %v1720_v26 = vpop.f32.mrf.mxu1  ;;  %v5515_v8 = vor.u32 %v6106_v50, %v5512_v56  ;;  %v6099_v50 = vld [vmem:[#allocation2 + $0x864] sm:$0xf0]  ;;  %v5278_v56 = vld [vmem:[%s6287_s21 + $0x70] sm:$0xff] }
 0x140   : > { %v1443_v60 = vadd.f32 %v1442_v24, %v1424_v62  ;;  %3100 = vmatpush.bf16.msra.mxu2 %v5359_v5  ;;  %v1740_v3 = vadd.f32 %v1739_v10, %v1720_v26  ;;  %3044 = vmatmul.bf16.vlgmr.msrb.gmra.mxu0 %v6884_v25  ;;  %v5531_v10 = vor.u32 %v6110_v22, %v5528_v52  ;;  %v5550_v62 = vld [vmem:[#allocation2 + $0x8f0] sm:$0xf]  ;;  %v5542_v52 = vld [vmem:[#allocation2 + $0x8e0] sm:$0xf] }
 0x141   : > { %v1741_v59 = vpop.f32.mrf.mxu3  ;;  %3119 = vmatpush.bf16.msra.mxu0 %v5423_v20  ;;  %3501 = vmatpush.bf16.msra.mxu3 %v5575_v42  ;;  %v5551_v48 = vor.u32 %v6117_v39, %v5550_v62  ;;  %v5502_v20 = vld [vmem:[#allocation2 + $0x890] sm:$0xf]  ;;  %v6105_v42 = vld [vmem:[#allocation2 + $0x894] sm:$0xf0]  ;;  %v5480_v39 = vld [vmem:[#allocation2 + $0x868] sm:$0xf0] }
 0x142   : > { %v6889_v49 = vadd.f32 %v1443_v60, %v6766_v43  ;;  %3025 = vmatmul.bf16.vlgmr.msrb.gmra.mxu2 %v6882_v18  ;;  %2721 = vmatmul.bf16.vlgmr.msrb.gmra.mxu1 %v6768_v58  ;;  %v5518_v58 = vld [vmem:[#allocation2 + $0x8b0] sm:$0xf]  ;;  %v5503_v22 = vor.u32 %v6105_v42, %v5502_v20  ;;  %v6096_v20 = vld [vmem:[#allocation2 + $0x854] sm:$0xf] }
 0x143   : > { %5275 = vmatmul.msk.bf16.gmra.mxu3 %vm548_vm2, %v6853_v46  ;;  %3480 = vmatpush.bf16.msrb.mxu1 %v5527_v29  ;;  %v6109_v46 = vld [vmem:[#allocation2 + $0x8b4] sm:$0xf0]  ;;  %v5504_v29 = vld [vmem:[#allocation2 + $0x898] sm:$0xf0] }
 0x144   : > { %v5519_v28 = vor.u32 %v6109_v46, %v5518_v58  ;;  %3523 = vmatpush.bf16.msrb.mxu2 %v3475_v17  ;;  %v5534_v58 = vld [vmem:[#allocation2 + $0x8d0] sm:$0xf]  ;;  %v6113_v46 = vld [vmem:[#allocation2 + $0x8d4] sm:$0xf0] }
 0x145   : > { %v1758_v43 = vpop.f32.mrf.mxu2  ;;  %3537 = vmatpush.bf16.msrb.mxu0 %v5531_v10  ;;  %3502 = vmatpush.bf16.msra.mxu3 %v5567_v45  ;;  %v5543_v10 = vor.u32 %v6115_v54, %v5542_v52  ;;  %v5486_v17 = vld [vmem:[#allocation2 + $0x870] sm:$0xf]  ;;  %v6149_v54 = vld [vmem:[#allocation2 + $0x9f4] sm:$0xf0] }
 0x146   : > { %v1759_v24 = vadd.f32 %v1758_v43, %v1740_v3  ;;  %v6899_v27 = vpop.f32.mrf.mxu0  ;;  %v6104_v3 = vld [vmem:[#allocation2 + $0x894] sm:$0xf]  ;;  %v5706_v52 = vld [vmem:[#allocation2 + $0x9f0] sm:$0xf] }
 0x147   : > { %v1722_v30 = vpop.f32.mrf.mxu1  ;;  %3481 = vmatpush.bf16.msrb.mxu1 %v5519_v28  ;;  %v5507_v43 = vor.u32 %v6104_v3, %v5504_v29  ;;  %v5535_v28 = vor.u32 %v6113_v46, %v5534_v58  ;;  %v5472_v29 = vld [vmem:[#allocation2 + $0x858] sm:$0xf0]  ;;  %v6132_v46 = vld [vmem:[#allocation2 + $0x974] sm:$0xf] }
 0x148   : > { %v6897_v15 = vadd.f32 %v1759_v24, %v6831_v47  ;;  %v1742_v14 = vadd.f32 %v1741_v59, %v1722_v30  ;;  %v5510_v47 = vld [vmem:[#allocation2 + $0x8a0] sm:$0xf] }
 0x149   : > { %v1744_v6 = vpop.f32.mrf.mxu3  ;;  %3538 = vmatpush.bf16.msrb.mxu0 %v5523_v61  ;;  %v5511_v5 = vor.u32 %v6107_v23, %v5510_v47  ;;  %3503 = vmatpush.bf16.msra.mxu3 %v5559_v9  ;;  %v5606_v59 = vld [vmem:[#allocation2 + $0x960] sm:$0xf]  ;;  %v6101_v61 = vld [vmem:[#allocation2 + $0x874] sm:$0xf0] }
 0x14a   : > { %v5607_v26 = vor.u32 %v6131_v51, %v5606_v59  ;;  %v5494_v24 = vld [vmem:[#allocation2 + $0x880] sm:$0xf]  ;;  %v5487_v9 = vor.u32 %v6101_v61, %v5486_v17 }
 0x14b   : > { %3482 = vmatpush.bf16.msrb.mxu1 %v5511_v5  ;;  %v5478_v23 = vld [vmem:[#allocation2 + $0x860] sm:$0xf]  ;;  %v6098_v5 = vld [vmem:[#allocation2 + $0x864] sm:$0xf] }
 0x14c   : > { %3524 = vmatpush.bf16.msrb.mxu2 %v5607_v26  ;;  %v5479_v62 = vor.u32 %v6099_v50, %v5478_v23  ;;  %v6097_v26 = vld [vmem:[#allocation2 + $0x854] sm:$0xf0]  ;;  %v6124_v23 = vld [vmem:[#allocation2 + $0x934] sm:$0xf]  ;;  %v5584_v50 = vld [vmem:[#allocation2 + $0x938] sm:$0xf0] }
 0x14d   : > { %v1760_v35 = vpop.f32.mrf.mxu2  ;;  %3539 = vmatpush.bf16.msrb.mxu0 %v5515_v8  ;;  %3504 = vmatpush.bf16.msra.mxu3 %v5551_v48  ;;  %v5483_v8 = vor.u32 %v6098_v5, %v5480_v39  ;;  %v5762_v39 = vld [vmem:[#allocation2 + $0xa60] sm:$0xf] }
 0x14e   : > { %v1761_v60 = vadd.f32 %v1760_v35, %v1742_v14  ;;  %v6913_v38 = vpop.f32.mrf.mxu0  ;;  %v6100_v14 = vld [vmem:[#allocation2 + $0x874] sm:$0xf] }
 0x14f   : > { %v1725_v12 = vpop.f32.mrf.mxu1  ;;  %3483 = vmatpush.bf16.msrb.mxu1 %v5503_v22  ;;  %v5491_v31 = vor.u32 %v6100_v14, %v5488_v34  ;;  %v6951_v34 = vld [vmem:[%s6287_s21 + $0x70] sm:$0xfe] }
 0x150   : > { %v6911_v16 = vadd.f32 %v1761_v60, %v6847_v33  ;;  %v1745_v45 = vadd.f32 %v1744_v6, %v1725_v12  ;;  %3049 = vmatmul.bf16.gmra.mxu0 %v6908_v57  ;;  %v6103_v33 = vld [vmem:[#allocation2 + $0x884] sm:$0xf0]  ;;  %v5499_v6 = vor.u32 %v6102_v4, %v5496_v13  ;;  %3525 = vmatpush.bf16.msrb.mxu2 %v5599_v0  ;;  %v5454_v4 = vld [vmem:[%s6287_s21 + $0xb0] sm:$0x1]  ;;  %v5592_v13 = vld [vmem:[#allocation2 + $0x948] sm:$0xf0] }
 0x151   : > { %v1746_v11 = vpop.f32.mrf.mxu3  ;;  %v5495_v36 = vor.u32 %v6103_v33, %v5494_v24  ;;  %3540 = vmatpush.bf16.msrb.mxu0 %v5507_v43  ;;  %3505 = vmatpush.bf16.msra.mxu3 %v5543_v10  ;;  %v6927_v60 = vld [vmem:[%s6287_s21 + $0x68] sm:$0xfe]  ;;  %v5475_v43 = vor.u32 %v6096_v20, %v5472_v29  ;;  %v5707_v10 = vor.u32 %v6149_v54, %v5706_v52  ;;  %v5448_v24 = vld [vmem:[%s6287_s21 + $0x80] sm:$0x1]  ;;  %v5451_v33 = vld [vmem:[%s6287_s21 + $0x98] sm:$0xfe] }
 0x152   : > { %3030 = vmatmul.bf16.gmra.mxu2 %v6906_v40  ;;  %2726 = vmatmul.bf16.gmra.mxu1 %v6811_v44  ;;  %v3191_v17 = vrot.slane %v5448_v24, 1  ;;  %v3200_v14 = vrot.slane %v5454_v4, 1  ;;  %v5754_v29 = vld [vmem:[#allocation2 + $0xa50] sm:$0xf] }
 0x153   : > { %3082 = vmatmul.bf16.vlgmr.msrb.gmra.mxu3 %v6882_v18  ;;  %3484 = vmatpush.bf16.msrb.mxu1 %v5495_v36  ;;  %v6126_v36 = vld [vmem:[#allocation2 + $0x944] sm:$0xf] }
 0x155   : > { %v1763_v32 = vpop.f32.mrf.mxu2  ;;  %3541 = vmatpush.bf16.msrb.mxu0 %v5499_v6  ;;  %3506 = vmatpush.bf16.msra.mxu3 %v5535_v28 }
 0x156   : > { %v1764_v19 = vadd.f32 %v1763_v32, %v1745_v45  ;;  %v6922_v18 = vpop.f32.mrf.mxu0  ;;  %v5595_v32 = vor.u32 %v6126_v36, %v5592_v13 }
 0x157   : > { %v1727_v63 = vpop.f32.mrf.mxu1  ;;  %3485 = vmatpush.bf16.msrb.mxu1 %v5487_v9  ;;  %v3199_v9 = vrot.slane %v5451_v33, 1  ;;  %v6968_v33 = vld [vmem:[%s6287_s21 + $0xb8] sm:$0x1] }
 0x158   : > { %v6920_v44 = vadd.f32 %v1764_v19, %v6865_v2  ;;  %v1747_v47 = vadd.f32 %v1746_v11, %v1727_v63  ;;  %v5281_v2 = vld [vmem:[%s6287_s21 + $0xa0] sm:$0xff]  ;;  %v5470_v11 = vld [vmem:[#allocation2 + $0x850] sm:$0xf]  ;;  %v6147_v19 = vld [vmem:[#allocation2 + $0x9e4] sm:$0xf0] }
 0x159   : > { %v1815_v30 = vpop.f32.mrf.mxu3  ;;  %3542 = vmatpush.bf16.msrb.mxu0 %v5491_v31  ;;  %v2774_v51 = vpack.c.bf16 %v5281_v2, %v5278_v56  ;;  %v5471_v22 = vor.u32 %v6097_v26, %v5470_v11  ;;  %v5771_v31 = vor.u32 %v6165_v21, %v5770_v37  ;;  %v5587_v56 = vor.u32 %v6124_v23, %v5584_v50  ;;  %v5690_v2 = vld [vmem:[#allocation2 + $0x9d0] sm:$0xf]  ;;  %v6163_v26 = vld [vmem:[#allocation2 + $0xa64] sm:$0xf0]  ;;  %v6995_v37 = vld [vmem:[%s6287_s21 + $0xe0] sm:$0x1] }
 0x15a   : > { %v5763_v20 = vor.u32 %v6163_v26, %v5762_v39  ;;  %v5568_v21 = vld [vmem:[#allocation2 + $0x918] sm:$0xf0]  ;;  %v6141_v50 = vld [vmem:[#allocation2 + $0x9b4] sm:$0xf0] }
 0x15b   : > { %3486 = vmatpush.bf16.msrb.mxu1 %v5479_v62  ;;  %v6145_v62 = vld [vmem:[#allocation2 + $0x9d4] sm:$0xf0] }
 0x15c   : > { %v5691_v11 = vor.u32 %v6145_v62, %v5690_v2  ;;  %v3203_v62 = vrot.slane %v6968_v33, 1  ;;  %v6157_v33 = vld [vmem:[#allocation2 + $0xa34] sm:$0xf0] }
 0x15d   : > { %v1765_v35 = vpop.f32.mrf.mxu2  ;;  %3543 = vmatpush.bf16.msrb.mxu0 %v5483_v8  ;;  %v5284_v8 = vld [vmem:[%s6287_s21 + $0xd0] sm:$0xff] }
 0x15e   : > { %v1766_v48 = vadd.f32 %v1765_v35, %v1747_v47  ;;  %v2202_v3 = vpop.f32.mrf.mxu0 }
 0x15f   : > { %v1796_v12 = vpop.f32.mrf.mxu1  ;;  %3487 = vmatpush.bf16.msrb.mxu1 %v5471_v22  ;;  %v5576_v22 = vld [vmem:[#allocation2 + $0x928] sm:$0xf0] }
 0x160   : > { %v6932_v42 = vadd.f32 %v1766_v48, %v6879_v41  ;;  %v1797_v45 = vadd.f32 %v1796_v12, %v6886_v1  ;;  %5442 = vmatmul.msk.bf16.vlgmr.msra.gmra.mxu0 %vm548_vm2, %v2774_v51  ;;  %v3190_v41 = vrot.slane %v6927_v60, 1  ;;  %v5616_v1 = vld [vmem:[#allocation2 + $0x978] sm:$0x30]  ;;  %v5287_v48 = vld [vmem:[%s6287_s21 + $0x100] sm:$0xff] }
 0x161   : > { %v6929_v59 = vpop.f32.mrf.mxu3  ;;  %3544 = vmatpush.bf16.msrb.mxu0 %v5475_v43  ;;  %v5619_v28 = vor.u32 %v6132_v46, %v5616_v1  ;;  %v6961_v60 = vld [vmem:[%s6287_s21 + $0xa0] sm:$0xfe]  ;;  %v6981_v1 = vld [vmem:[%s6287_s21 + $0x78] sm:$0x1] }
 0x162   : > { %3101 = vmatmul.bf16.vlgmr.msra.gmra.mxu2 %v6884_v25  ;;  %v1816_v58 = vadd.f32 %v1815_v30, %v1797_v45  ;;  %5440 = vmatmul.msk.bf16.vlgmr.msra.gmra.mxu1 %vm548_vm2, %v2774_v51  ;;  %v5698_v25 = vld [vmem:[#allocation2 + $0x9e0] sm:$0xf]  ;;  %v3193_v51 = vrot.slane %v6951_v34, 1  ;;  %v3192_v54 = vsel %vm266_vm1, %v3190_v41, %v3191_v17  ;;  %v6161_v45 = vld [vmem:[#allocation2 + $0xa54] sm:$0xf0]  ;;  %v3202_v4 = vrot.slane %v6961_v60, 1 }
 0x163   : > { %3943 = vmatpush.bf16.msra.mxu2 %v5707_v10  ;;  %3087 = vmatmul.bf16.gmra.mxu3 %v6906_v40  ;;  %v5699_v40 = vor.u32 %v6147_v19, %v5698_v25  ;;  %v3478_v63 = vsel %vm555_vm0, %v5619_v28, 0  ;;  %v5682_v43 = vld [vmem:[#allocation2 + $0x9c0] sm:$0xf]  ;;  %v6143_v10 = vld [vmem:[#allocation2 + $0x9c4] sm:$0xf0]  ;;  %v5755_v36 = vor.u32 %v6161_v45, %v5754_v29  ;;  %v2777_v28 = vpack.c.bf16 %v5287_v48, %v5284_v8 }
 0x164   : > { %v6944_v0 = vadd.f32 %v1816_v58, %v6841_v53  ;;  %3556 = vmatpush.bf16.msra.mxu1 %v5595_v32  ;;  %v6955_v53 = vld [vmem:[%s6287_s21 + $0x88] sm:$0x1]  ;;  %3580 = vmatpush.bf16.msrb.mxu3 %v3478_v63  ;;  %v5683_v41 = vor.u32 %v6143_v10, %v5682_v43  ;;  %v6978_v46 = vld [vmem:[%s6287_s21 + $0x60] sm:$0xfe]  ;;  %v6984_v32 = vld [vmem:[%s6287_s21 + $0x90] sm:$0xfe] }
 0x165   : > { %v2183_v6 = vpop.f32.mrf.mxu2  ;;  %3962 = vmatpush.bf16.msra.mxu0 %v5771_v31  ;;  %v6987_v25 = vld [vmem:[%s6287_s21 + $0xa8] sm:$0x1]  ;;  %v6992_v19 = vld [vmem:[%s6287_s21 + $0xc8] sm:$0xfe]  ;;  %v5674_v63 = vld [vmem:[#allocation2 + $0x9b0] sm:$0xf] }
 0x166   : > { %v6946_v30 = vadd.f32 %v2202_v3, %v2183_v6  ;;  %v2204_v47 = vpop.f32.mrf.mxu0  ;;  %v6122_v3 = vld [vmem:[#allocation2 + $0x924] sm:$0xf]  ;;  %v5675_v39 = vor.u32 %v6141_v50, %v5674_v63  ;;  %v3187_v8 = vrot.slane %v6978_v46, 1  ;;  %v3188_v48 = vrot.slane %v6981_v1, 1  ;;  %v6139_v43 = vld [vmem:[#allocation2 + $0x9a4] sm:$0xf0] }
 0x167   : > { %3944 = vmatpush.bf16.msra.mxu2 %v5699_v40  ;;  %v1798_v5 = vpop.f32.mrf.mxu1  ;;  %v5579_v12 = vor.u32 %v6122_v3, %v5576_v22  ;;  %v3197_v26 = vrot.slane %v6987_v25, 1  ;;  %v3208_v3 = vrot.slane %v6992_v19, 1  ;;  %v3209_v22 = vrot.slane %v6995_v37, 1  ;;  %v6118_v29 = vld [vmem:[#allocation2 + $0x904] sm:$0xf] }
 0x168   : > { %v1799_v35 = vadd.f32 %v1798_v5, %v6899_v27  ;;  %3557 = vmatpush.bf16.msra.mxu1 %v5587_v56  ;;  %v3201_v27 = vsel %vm266_vm1, %v3199_v9, %v3200_v14  ;;  %v6130_v9 = vld [vmem:[#allocation2 + $0x964] sm:$0xf]  ;;  %v5608_v14 = vld [vmem:[#allocation2 + $0x968] sm:$0xf0]  ;;  %v5746_v5 = vld [vmem:[#allocation2 + $0xa40] sm:$0xf] }
 0x169   : > { %v6948_v61 = vpop.f32.mrf.mxu3  ;;  %3963 = vmatpush.bf16.msra.mxu0 %v5763_v20  ;;  %v6997_v40 = vpack.c.bf16 %v3201_v27, %v3192_v54  ;;  %v6159_v56 = vld [vmem:[#allocation2 + $0xa44] sm:$0xf0]  ;;  %v5738_v10 = vld [vmem:[#allocation2 + $0xa30] sm:$0xf]  ;;  %v6116_v25 = vld [vmem:[#allocation2 + $0x8f4] sm:$0xf] }
 0x16a   : > { %v1818_v52 = vadd.f32 %v6929_v59, %v1799_v35  ;;  %v3194_v59 = vrot.slane %v6955_v53, 1  ;;  %v5747_v35 = vor.u32 %v6159_v56, %v5746_v5  ;;  %v5739_v1 = vor.u32 %v6157_v33, %v5738_v10  ;;  %v5730_v19 = vld [vmem:[#allocation2 + $0xa20] sm:$0xf]  ;;  %v6148_v50 = vld [vmem:[#allocation2 + $0x9f4] sm:$0xf] }
 0x16b   : > { %3945 = vmatpush.bf16.msra.mxu2 %v5691_v11  ;;  %v3196_v11 = vrot.slane %v6984_v32, 1  ;;  %v5708_v53 = vld [vmem:[#allocation2 + $0x9f8] sm:$0xf0]  ;;  %v5544_v5 = vld [vmem:[#allocation2 + $0x8e8] sm:$0xf0] }
 0x16c   : > { %v6973_v13 = vadd.f32 %v1818_v52, %v6859_v55  ;;  %3558 = vmatpush.bf16.msra.mxu1 %v5579_v12  ;;  %v6120_v55 = vld [vmem:[#allocation2 + $0x914] sm:$0xf]  ;;  %v5560_v52 = vld [vmem:[#allocation2 + $0x908] sm:$0xf0]  ;;  %v5666_v12 = vld [vmem:[#allocation2 + $0x9a0] sm:$0xf]  ;;  %v5711_v60 = vor.u32 %v6148_v50, %v5708_v53 }
 0x16d   : > { %v2185_v24 = vpop.f32.mrf.mxu2  ;;  %3964 = vmatpush.bf16.msra.mxu0 %v5755_v36  ;;  %v5571_v23 = vor.u32 %v6120_v55, %v5568_v21  ;;  %v5563_v27 = vor.u32 %v6118_v29, %v5560_v52  ;;  %v5600_v36 = vld [vmem:[#allocation2 + $0x958] sm:$0xf0]  ;;  %v3204_v55 = vsel %vm266_vm1, %v3202_v4, %v3203_v62  ;;  %v5658_v21 = vld [vmem:[#allocation2 + $0x990] sm:$0xf]  ;;  %v6114_v4 = vld [vmem:[#allocation2 + $0x8e4] sm:$0xf]  ;;  %v3189_v62 = vsel %vm266_vm1, %v3187_v8, %v3188_v48 }
 0x16e   : > { %v6975_v58 = vadd.f32 %v2204_v47, %v2185_v24  ;;  %v2207_v17 = vpop.f32.mrf.mxu0  ;;  %v5611_v47 = vor.u32 %v6130_v9, %v5608_v14  ;;  %v5667_v24 = vor.u32 %v6139_v43, %v5666_v12  ;;  %v6155_v9 = vld [vmem:[#allocation2 + $0xa24] sm:$0xf0]  ;;  %v5722_v56 = vld [vmem:[#allocation2 + $0xa10] sm:$0xf]  ;;  %v5547_v52 = vor.u32 %v6114_v4, %v5544_v5  ;;  %v6112_v12 = vld [vmem:[#allocation2 + $0x8d4] sm:$0xf] }
 0x16f   : > { %3946 = vmatpush.bf16.msra.mxu2 %v5683_v41  ;;  %v1801_v31 = vpop.f32.mrf.mxu1  ;;  %v6128_v41 = vld [vmem:[#allocation2 + $0x954] sm:$0xf]  ;;  %v5536_v43 = vld [vmem:[#allocation2 + $0x8d8] sm:$0xf0]  ;;  %v6162_v50 = vld [vmem:[#allocation2 + $0xa64] sm:$0xf] }
 0x170   : > { %v1802_v2 = vadd.f32 %v1801_v31, %v6913_v38  ;;  %5443 = vmatmul.msk.bf16.gmra.mxu0 %vm548_vm2, %v2777_v28  ;;  %3581 = vmatpush.bf16.msrb.mxu3 %v5611_v47  ;;  %v5466_v38 = vld [vmem:[%s6287_s21 + $0x110] sm:$0x1]  ;;  %v5603_v32 = vor.u32 %v6128_v41, %v5600_v36  ;;  %v7047_v33 = vld [vmem:[%s6287_s21 + $0xd0] sm:$0xfe]  ;;  %v7050_v41 = vld [vmem:[%s6287_s21 + $0xe8] sm:$0x1] }
 0x171   : > { %v6989_v6 = vpop.f32.mrf.mxu3  ;;  %3559 = vmatpush.bf16.msra.mxu1 %v5571_v23  ;;  %3965 = vmatpush.bf16.msra.mxu0 %v5747_v35  ;;  %v3218_v31 = vrot.slane %v5466_v38, 1  ;;  %v3210_v35 = vsel %vm266_vm1, %v3208_v3, %v3209_v22  ;;  %v6151_v36 = vld [vmem:[#allocation2 + $0xa04] sm:$0xf0]  ;;  %v5764_v53 = vld [vmem:[#allocation2 + $0xa68] sm:$0xf0] }
 0x172   : > { %3106 = vmatmul.bf16.gmra.mxu2 %v6908_v57  ;;  %v1821_v20 = vadd.f32 %v6948_v61, %v1802_v2  ;;  %5441 = vmatmul.msk.bf16.gmra.mxu1 %vm548_vm2, %v2777_v28  ;;  %v5463_v57 = vld [vmem:[%s6287_s21 + $0xf8] sm:$0xfe]  ;;  %v5767_v4 = vor.u32 %v6162_v50, %v5764_v53  ;;  %v6142_v5 = vld [vmem:[#allocation2 + $0x9c4] sm:$0xf] }
 0x173   : > { %3507 = vmatmul.bf16.vlgmr.msra.gmra.mxu3 %v6997_v40  ;;  %3947 = vmatpush.bf16.msra.mxu2 %v5675_v39  ;;  %v5552_v28 = vld [vmem:[#allocation2 + $0x8f8] sm:$0xf0]  ;;  %v3217_v63 = vrot.slane %v5463_v57, 1  ;;  %v3198_v39 = vsel %vm266_vm1, %v3196_v11, %v3197_v26  ;;  %v6153_v57 = vld [vmem:[#allocation2 + $0xa14] sm:$0xf0] }
 0x174   : > { %v7015_v61 = vadd.f32 %v1821_v20, %v6871_v7  ;;  %v3195_v7 = vsel %vm266_vm1, %v3193_v51, %v3194_v59  ;;  %v5555_v47 = vor.u32 %v6116_v25, %v5552_v28  ;;  %3582 = vmatpush.bf16.msrb.mxu3 %v5603_v32  ;;  %v5731_v51 = vor.u32 %v6155_v9, %v5730_v19  ;;  %v5650_v20 = vld [vmem:[#allocation2 + $0x980] sm:$0xf]  ;;  %v6164_v25 = vld [vmem:[#allocation2 + $0xa74] sm:$0xf]  ;;  %v5772_v28 = vld [vmem:[#allocation2 + $0xa78] sm:$0xf0] }
 0x175   : > { %v2188_v54 = vpop.f32.mrf.mxu2  ;;  %3560 = vmatpush.bf16.msra.mxu1 %v5563_v27  ;;  %3966 = vmatpush.bf16.msra.mxu0 %v5739_v1  ;;  %v7030_v59 = vpack.c.bf16 %v3204_v55, %v3195_v7  ;;  %v3219_v29 = vsel %vm266_vm1, %v3217_v63, %v3218_v31  ;;  %v5700_v27 = vld [vmem:[#allocation2 + $0x9e8] sm:$0xf0]  ;;  %v5723_v11 = vor.u32 %v6153_v57, %v5722_v56  ;;  %v6144_v19 = vld [vmem:[#allocation2 + $0x9d4] sm:$0xf]  ;;  %v5464_v7 = vld [vmem:[%s6287_s21 + $0x100] sm:$0xfe] }
 0x176   : > { %v7017_v45 = vadd.f32 %v2207_v17, %v2188_v54  ;;  %v2209_v37 = vpop.f32.mrf.mxu0  ;;  %v6137_v17 = vld [vmem:[#allocation2 + $0x994] sm:$0xf0]  ;;  %v3235_v22 = vpack.c.bf16 %v3198_v39, %v3189_v62  ;;  %v5539_v32 = vor.u32 %v6112_v12, %v5536_v43  ;;  %v5692_v9 = vld [vmem:[#allocation2 + $0x9d8] sm:$0xf0]  ;;  %v5462_v31 = vld [vmem:[%s6287_s21 + $0xf0] sm:$0xfe] }
 0x177   : > { %v1803_v14 = vpop.f32.mrf.mxu1  ;;  %3948 = vmatpush.bf16.msra.mxu2 %v5667_v24  ;;  %v5659_v23 = vor.u32 %v6137_v17, %v5658_v21  ;;  %v7044_v24 = vpack.c.bf16 %v3219_v29, %v3210_v35  ;;  %v5467_v55 = vld [vmem:[%s6287_s21 + $0x118] sm:$0x1]  ;;  %v5775_v17 = vor.u32 %v6164_v25, %v5772_v28  ;;  %v5684_v56 = vld [vmem:[#allocation2 + $0x9c8] sm:$0xf0]  ;;  %v3214_v57 = vrot.slane %v5462_v31, 1 }
 0x178   : > { %v1804_v34 = vadd.f32 %v1803_v14, %v6922_v18  ;;  %4000 = vmatpush.bf16.msra.mxu3 %v5711_v60  ;;  %v6135_v18 = vld [vmem:[#allocation2 + $0x984] sm:$0xf0]  ;;  %v5456_v14 = vld [vmem:[%s6287_s21 + $0xc0] sm:$0xfe]  ;;  %v5459_v63 = vld [vmem:[%s6287_s21 + $0xd8] sm:$0x1]  ;;  %v5687_v39 = vor.u32 %v6142_v5, %v5684_v56 }
 0x179   : > { %v7019_v46 = vpop.f32.mrf.mxu3  ;;  %3561 = vmatpush.bf16.msra.mxu1 %v5555_v47  ;;  %v5651_v54 = vor.u32 %v6135_v18, %v5650_v20  ;;  %3967 = vmatpush.bf16.msra.mxu0 %v5731_v51  ;;  %v5695_v47 = vor.u32 %v6144_v19, %v5692_v9  ;;  %v3211_v51 = vrot.slane %v7047_v33, 1  ;;  %v3212_v60 = vrot.slane %v7050_v41, 1  ;;  %v5794_v43 = vld [vmem:[#allocation2 + $0xaa0] sm:$0xf]  ;;  %v6171_v33 = vld [vmem:[#allocation2 + $0xaa4] sm:$0x30] }
 0x17a   : > { %v1823_v2 = vadd.f32 %v6989_v6, %v1804_v34  ;;  %v6146_v6 = vld [vmem:[#allocation2 + $0x9e4] sm:$0xf]  ;;  %v3221_v62 = vrot.slane %v5467_v55, 1  ;;  %v3205_v20 = vrot.slane %v5456_v14, 1  ;;  %v3206_v18 = vrot.slane %v5459_v63, 1 }
 0x17b   : > { %3949 = vmatpush.bf16.msra.mxu2 %v5659_v23  ;;  %v5703_v26 = vor.u32 %v6146_v6, %v5700_v27  ;;  %v5756_v6 = vld [vmem:[#allocation2 + $0xa58] sm:$0xf0]  ;;  %v6140_v27 = vld [vmem:[#allocation2 + $0x9b4] sm:$0xf]  ;;  %v6170_v41 = vld [vmem:[#allocation2 + $0xaa4] sm:$0xf] }
 0x17c   : > { %v7038_v8 = vadd.f32 %v1823_v2, %v6889_v49  ;;  %v5714_v49 = vld [vmem:[#allocation2 + $0xa00] sm:$0xf]  ;;  %v3207_v28 = vsel %vm266_vm1, %v3205_v20, %v3206_v18  ;;  %v5668_v9 = vld [vmem:[#allocation2 + $0x9a8] sm:$0xf0]  ;;  %v6136_v56 = vld [vmem:[#allocation2 + $0x994] sm:$0xf] }
 0x17d   : > { %v2190_v38 = vpop.f32.mrf.mxu2  ;;  %4001 = vmatpush.bf16.msra.mxu3 %v5703_v26  ;;  %3562 = vmatpush.bf16.msra.mxu1 %v5547_v52  ;;  %v5715_v21 = vor.u32 %v6151_v36, %v5714_v49  ;;  %v5633_v20 = vld [vmem:[%s6287_s21 + $0xa8] sm:$0x3]  ;;  %v5625_v18 = vld [vmem:[%s6287_s21 + $0x68] sm:$0xfc] }
 0x17e   : > { %v7040_v48 = vadd.f32 %v2209_v37, %v2190_v38  ;;  %v2278_v10 = vpop.f32.mrf.mxu0  ;;  %3968 = vmatpush.bf16.msra.mxu0 %v5723_v11 }
 0x17f   : > { %v2221_v1 = vpop.f32.mrf.mxu1  ;;  %3950 = vmatpush.bf16.msra.mxu2 %v5651_v54  ;;  %v6160_v54 = vld [vmem:[#allocation2 + $0xa54] sm:$0xf] }
 0x180   : > { %v2222_v37 = vadd.f32 %v2221_v1, %v6946_v30  ;;  %3545 = vmatmul.bf16.vlgmr.msrb.gmra.mxu0 %v3235_v22  ;;  %v5465_v30 = vld [vmem:[%s6287_s21 + $0x108] sm:$0x1]  ;;  %v5759_v26 = vor.u32 %v6160_v54, %v5756_v6  ;;  %v5795_v1 = vor.u32 %v6171_v33, %v5794_v43  ;;  %v6134_v6 = vld [vmem:[#allocation2 + $0x984] sm:$0xf] }
 0x181   : > { %v7042_v3 = vpop.f32.mrf.mxu3  ;;  %3563 = vmatpush.bf16.msra.mxu1 %v5539_v32  ;;  %4002 = vmatpush.bf16.msra.mxu3 %v5695_v47  ;;  %v3215_v38 = vrot.slane %v5465_v30, 1  ;;  %v5796_v32 = vld [vmem:[#allocation2 + $0xaa8] sm:$0x30] }
 0x182   : > { %5620 = vmatmul.msk.bf16.vlgmr.msrb.gmra.mxu2 %vm548_vm2, %v7030_v59  ;;  %v7061_v23 = vadd.f32 %v2222_v37, %v6897_v15  ;;  %3488 = vmatmul.bf16.vlgmr.msrb.gmra.mxu1 %v3235_v22  ;;  %v3220_v15 = vrot.slane %v5464_v7, 1  ;;  %v5799_v19 = vor.u32 %v6170_v41, %v5796_v32  ;;  %v5748_v37 = vld [vmem:[#allocation2 + $0xa48] sm:$0xf0]  ;;  %v6138_v7 = vld [vmem:[#allocation2 + $0x9a4] sm:$0xf]  ;;  %v3660_v41 = vrot.slane %v5633_v20, 2 }
 0x183   : > { %3512 = vmatmul.bf16.gmra.mxu3 %v7044_v24  ;;  %4019 = vmatpush.bf16.msrb.mxu2 %v5775_v17  ;;  %v5671_v31 = vor.u32 %v6138_v7, %v5668_v9 }
 0x184   : > { %3969 = vmatpush.bf16.msra.mxu0 %v5715_v21  ;;  %v3222_v36 = vsel %vm266_vm1, %v3220_v15, %v3221_v62  ;;  %v3938_v21 = vsel %vm555_vm0, %v5795_v1, 0  ;;  %v3941_v63 = vsel %vm555_vm0, %v5799_v19, 0  ;;  %v6169_v19 = vld [vmem:[#allocation2 + $0xa94] sm:$0xf0] }
 0x185   : > { %v2259_v34 = vpop.f32.mrf.mxu2  ;;  %4003 = vmatpush.bf16.msra.mxu3 %v5687_v39  ;;  %3986 = vmatpush.bf16.msrb.mxu1 %v3938_v21  ;;  %v5630_v39 = vld [vmem:[%s6287_s21 + $0x90] sm:$0xfc] }
 0x186   : > { %v2260_v2 = vadd.f32 %v2259_v34, %v7019_v46  ;;  %v2280_v52 = vpop.f32.mrf.mxu0  ;;  %v5676_v46 = vld [vmem:[#allocation2 + $0x9b8] sm:$0xf0]  ;;  %v5624_v34 = vld [vmem:[%s6287_s21 + $0x60] sm:$0xfc]  ;;  %v3659_v33 = vrot.slane %v5630_v39, 2 }
 0x187   : > { %v2223_v11 = vpop.f32.mrf.mxu1  ;;  %4020 = vmatpush.bf16.msrb.mxu2 %v5767_v4  ;;  %v5679_v49 = vor.u32 %v6140_v27, %v5676_v46  ;;  %v5627_v4 = vld [vmem:[%s6287_s21 + $0x78] sm:$0x3]  ;;  %v6152_v21 = vld [vmem:[#allocation2 + $0xa14] sm:$0xf] }
 0x188   : > { %v2279_v29 = vadd.f32 %v2278_v10, %v2260_v2  ;;  %v2224_v12 = vadd.f32 %v2223_v11, %v6975_v58  ;;  %v3213_v10 = vsel %vm266_vm1, %v3211_v51, %v3212_v60  ;;  %v6158_v58 = vld [vmem:[#allocation2 + $0xa44] sm:$0xf]  ;;  %4043 = vmatpush.bf16.msrb.mxu0 %v3941_v63  ;;  %v6156_v51 = vld [vmem:[#allocation2 + $0xa34] sm:$0xf]  ;;  %v5660_v2 = vld [vmem:[#allocation2 + $0x998] sm:$0xf0] }
 0x189   : > { %v7068_v35 = vpop.f32.mrf.mxu3  ;;  %v5751_v17 = vor.u32 %v6158_v58, %v5748_v37  ;;  %4004 = vmatpush.bf16.msra.mxu3 %v5679_v49  ;;  %v3650_v11 = vrot.slane %v5624_v34, 2  ;;  %v6168_v58 = vld [vmem:[#allocation2 + $0xa94] sm:$0xf] }
 0x18a   : > { %v7071_v22 = vadd.f32 %v2279_v29, %v6944_v0  ;;  %v7077_v25 = vadd.f32 %v2224_v12, %v6911_v16  ;;  %v3216_v0 = vsel %vm266_vm1, %v3214_v57, %v3215_v38  ;;  %v7083_v16 = vpack.c.bf16 %v3222_v36, %v3213_v10  ;;  %v5628_v57 = vld [vmem:[%s6287_s21 + $0x80] sm:$0x3]  ;;  %v5631_v38 = vld [vmem:[%s6287_s21 + $0x98] sm:$0xfc]  ;;  %v5634_v29 = vld [vmem:[%s6287_s21 + $0xb0] sm:$0x3] }
 0x18b   : > { %4021 = vmatpush.bf16.msrb.mxu2 %v5759_v26  ;;  %v3238_v30 = vpack.c.bf16 %v3216_v0, %v3207_v28  ;;  %v3651_v26 = vrot.slane %v5627_v4, 2  ;;  %v5652_v12 = vld [vmem:[#allocation2 + $0x988] sm:$0xf0]  ;;  %v3653_v10 = vrot.slane %v5625_v18, 2  ;;  %v3654_v36 = vrot.slane %v5628_v57, 2 }
 0x18c   : > { %v3662_v1 = vrot.slane %v5631_v38, 2  ;;  %v5786_v0 = vld [vmem:[#allocation2 + $0xa90] sm:$0xf]  ;;  %v5780_v57 = vld [vmem:[#allocation2 + $0xa88] sm:$0xf0] }
 0x18d   : > { %v2261_v55 = vpop.f32.mrf.mxu2  ;;  %4005 = vmatpush.bf16.msra.mxu3 %v5671_v31  ;;  %v5787_v7 = vor.u32 %v6169_v19, %v5786_v0  ;;  %v3652_v31 = vsel %vm555_vm0, %v3650_v11, %v3651_v26  ;;  %v5637_v11 = vld [vmem:[%s6287_s21 + $0xc8] sm:$0xfc] }
 0x18e   : > { %v2262_v14 = vadd.f32 %v2261_v55, %v7042_v3  ;;  %v2283_v53 = vpop.f32.mrf.mxu0  ;;  %v5740_v3 = vld [vmem:[#allocation2 + $0xa38] sm:$0xf0] }
 0x18f   : > { %v2226_v60 = vpop.f32.mrf.mxu1  ;;  %4022 = vmatpush.bf16.msrb.mxu2 %v5751_v17  ;;  %v5743_v5 = vor.u32 %v6156_v51, %v5740_v3  ;;  %v5788_v55 = vld [vmem:[#allocation2 + $0xa98] sm:$0xf0]  ;;  %3987 = vmatpush.bf16.msrb.mxu1 %v5787_v7  ;;  %v5716_v51 = vld [vmem:[#allocation2 + $0xa08] sm:$0xf0] }
 0x190   : > { %v2281_v50 = vadd.f32 %v2280_v52, %v2262_v14  ;;  %v2227_v62 = vadd.f32 %v2226_v60, %v7017_v45  ;;  %3550 = vmatmul.bf16.gmra.mxu0 %v3238_v30  ;;  %v5663_v52 = vor.u32 %v6136_v56, %v5660_v2  ;;  %v5732_v45 = vld [vmem:[#allocation2 + $0xa28] sm:$0xf0]  ;;  %v5791_v14 = vor.u32 %v6168_v58, %v5788_v55  ;;  %v5778_v2 = vld [vmem:[#allocation2 + $0xa80] sm:$0xf] }
 0x191   : > { %v7086_v47 = vpop.f32.mrf.mxu3 }
 0x192   : > { %v7091_v15 = vadd.f32 %v2281_v50, %v6973_v13  ;;  %5621 = vmatmul.msk.bf16.gmra.mxu2 %vm548_vm2, %v7083_v16  ;;  %v7103_v54 = vadd.f32 %v2227_v62, %v6920_v44  ;;  %3493 = vmatmul.bf16.gmra.mxu1 %v3238_v30  ;;  %v6154_v13 = vld [vmem:[#allocation2 + $0xa24] sm:$0xf]  ;;  %v5655_v44 = vor.u32 %v6134_v6, %v5652_v12  ;;  %v5642_v6 = vld [vmem:[%s6287_s21 + $0xf0] sm:$0xfc]  ;;  %v5643_v12 = vld [vmem:[%s6287_s21 + $0xf8] sm:$0xfc] }
 0x193   : > { %5622 = vmatmul.msk.bf16.vlgmr.msrb.gmra.mxu3 %vm548_vm2, %v7030_v59  ;;  %4023 = vmatpush.bf16.msrb.mxu2 %v5743_v5  ;;  %v5735_v46 = vor.u32 %v6154_v13, %v5732_v45  ;;  %v3663_v59 = vrot.slane %v5634_v29, 2  ;;  %v3661_v30 = vsel %vm555_vm0, %v3659_v33, %v3660_v41  ;;  %v6166_v62 = vld [vmem:[#allocation2 + $0xa84] sm:$0xf]  ;;  %v5639_v45 = vld [vmem:[%s6287_s21 + $0xd8] sm:$0x3] }
 0x194   : > { %4006 = vmatpush.bf16.msra.mxu3 %v5663_v52  ;;  %4044 = vmatpush.bf16.msrb.mxu0 %v5791_v14  ;;  %v3698_v4 = vpack.c.bf16 %v3661_v30, %v3652_v31  ;;  %v5636_v13 = vld [vmem:[%s6287_s21 + $0xc0] sm:$0xfc] }
 0x195   : > { %v2264_v27 = vpop.f32.mrf.mxu2  ;;  %v3664_v34 = vsel %vm555_vm0, %v3662_v1, %v3663_v59  ;;  %v3668_v33 = vrot.slane %v5636_v13, 2  ;;  %v3680_v59 = vrot.slane %v5643_v12, 2  ;;  %v5641_v12 = vld [vmem:[%s6287_s21 + $0xe8] sm:$0x3] }
 0x196   : > { %v2265_v43 = vadd.f32 %v2264_v27, %v7068_v35  ;;  %v2285_v28 = vpop.f32.mrf.mxu0  ;;  %v5724_v35 = vld [vmem:[#allocation2 + $0xa18] sm:$0xf0]  ;;  %v5645_v27 = vld [vmem:[%s6287_s21 + $0x108] sm:$0x3] }
 0x197   : > { %v2228_v37 = vpop.f32.mrf.mxu1  ;;  %4024 = vmatpush.bf16.msrb.mxu2 %v5735_v46  ;;  %v5727_v63 = vor.u32 %v6152_v21, %v5724_v35  ;;  %v5640_v46 = vld [vmem:[%s6287_s21 + $0xe0] sm:$0x3] }
 0x198   : > { %v2284_v32 = vadd.f32 %v2283_v53, %v2265_v43  ;;  %v2229_v9 = vadd.f32 %v2228_v37, %v7040_v48  ;;  %4007 = vmatpush.bf16.msra.mxu3 %v5655_v44  ;;  %v3655_v53 = vsel %vm555_vm0, %v3653_v10, %v3654_v36  ;;  %v3669_v44 = vrot.slane %v5639_v45, 2 }
 0x199   : > { %v2665_v49 = vpop.f32.mrf.mxu3  ;;  %v7120_v56 = vpack.c.bf16 %v3664_v34, %v3655_v53  ;;  %v3678_v10 = vrot.slane %v5645_v27, 2  ;;  %v3671_v36 = vrot.slane %v5637_v11, 2  ;;  %v5626_v53 = vld [vmem:[%s6287_s21 + $0x70] sm:$0xfc] }
 0x19a   : > { %v7109_v17 = vadd.f32 %v2284_v32, %v7015_v61  ;;  %v7115_v50 = vadd.f32 %v2229_v9, %v6932_v42  ;;  %v6150_v61 = vld [vmem:[#allocation2 + $0xa04] sm:$0xf]  ;;  %v6167_v42 = vld [vmem:[#allocation2 + $0xa84] sm:$0xf0]  ;;  %v3670_v19 = vsel %vm555_vm0, %v3668_v33, %v3669_v44 }
 0x19b   : > { %4025 = vmatpush.bf16.msrb.mxu2 %v5727_v63  ;;  %v5719_v48 = vor.u32 %v6150_v61, %v5716_v51  ;;  %v5779_v18 = vor.u32 %v6167_v42, %v5778_v2  ;;  %v5629_v61 = vld [vmem:[%s6287_s21 + $0x88] sm:$0x3]  ;;  %v5632_v51 = vld [vmem:[%s6287_s21 + $0xa0] sm:$0xfc] }
 0x19c   : > { %v3657_v42 = vrot.slane %v5629_v61, 2 }
 0x19d   : > { %v2266_v3 = vpop.f32.mrf.mxu2  ;;  %3988 = vmatpush.bf16.msrb.mxu1 %v5779_v18 }
 0x19e   : > { %v2267_v60 = vadd.f32 %v2266_v3, %v7086_v47  ;;  %v7122_v20 = vpop.f32.mrf.mxu0  ;;  %v5783_v47 = vor.u32 %v6166_v62, %v5780_v57  ;;  %v5635_v3 = vld [vmem:[%s6287_s21 + $0xb8] sm:$0x3]  ;;  %v3665_v62 = vrot.slane %v5632_v51, 2 }
 0x19f   : > { %v2646_v38 = vpop.f32.mrf.mxu1  ;;  %4026 = vmatpush.bf16.msrb.mxu2 %v5719_v48 }
 0x1a0   : > { %v2286_v39 = vadd.f32 %v2285_v28, %v2267_v60  ;;  %v2666_v52 = vadd.f32 %v2665_v49, %v2646_v38  ;;  %3970 = vmatmul.bf16.vlgmr.msra.gmra.mxu0 %v7120_v56  ;;  %v3677_v49 = vrot.slane %v5642_v6, 2 }
 0x1a1   : > { %v2667_v5 = vpop.f32.mrf.mxu3  ;;  %4045 = vmatpush.bf16.msrb.mxu0 %v5783_v47 }
 0x1a2   : > { %v7125_v29 = vadd.f32 %v2286_v39, %v7038_v8  ;;  %3951 = vmatmul.bf16.vlgmr.msra.gmra.mxu2 %v3698_v4  ;;  %3564 = vmatmul.bf16.vlgmr.msra.gmra.mxu1 %v6997_v40  ;;  %v5646_v8 = vld [vmem:[%s6287_s21 + $0x110] sm:$0x3]  ;;  %v3679_v58 = vsel %vm555_vm0, %v3677_v49, %v3678_v10  ;;  %v3666_v39 = vrot.slane %v5635_v3, 2 }
 0x1a3   : > { %5623 = vmatmul.msk.bf16.gmra.mxu3 %vm548_vm2, %v7083_v16  ;;  %v3672_v16 = vrot.slane %v5640_v46, 2  ;;  %v3681_v32 = vrot.slane %v5646_v8, 2  ;;  %v3701_v21 = vpack.c.bf16 %v3679_v58, %v3670_v19  ;;  %v5644_v8 = vld [vmem:[%s6287_s21 + $0x100] sm:$0xfc] }
 0x1a4   : > { %v3683_v10 = vrot.slane %v5644_v8, 2 }
 0x1a5   : > { %v2684_v26 = vpop.f32.mrf.mxu2  ;;  %v3673_v37 = vsel %vm555_vm0, %v3671_v36, %v3672_v16  ;;  %v3682_v7 = vsel %vm555_vm0, %v3680_v59, %v3681_v32 }
 0x1a6   : > { %v2685_v43 = vadd.f32 %v2684_v26, %v2666_v52  ;;  %v7142_v1 = vpop.f32.mrf.mxu0  ;;  %v7148_v9 = vpack.c.bf16 %v3682_v7, %v3673_v37  ;;  %v5638_v26 = vld [vmem:[%s6287_s21 + $0xd0] sm:$0xfc] }
 0x1a7   : > { %v2648_v28 = vpop.f32.mrf.mxu1  ;;  %v3674_v49 = vrot.slane %v5638_v26, 2 }
 0x1a8   : > { %v7140_v40 = vadd.f32 %v2685_v43, %v7061_v23  ;;  %v2668_v0 = vadd.f32 %v2667_v5, %v2648_v28  ;;  %v3656_v5 = vrot.slane %v5626_v53, 2  ;;  %v5647_v43 = vld [vmem:[%s6287_s21 + $0x118] sm:$0x3] }
 0x1a9   : > { %v2670_v41 = vpop.f32.mrf.mxu3 }
 0x1ad   : > { %v2686_v55 = vpop.f32.mrf.mxu2 }
 0x1ae   : > { %v2687_v23 = vadd.f32 %v2686_v55, %v2668_v0  ;;  %v2708_v63 = vpop.f32.mrf.mxu0 }
 0x1af   : > { %v2651_v31 = vpop.f32.mrf.mxu1 }
 0x1b0   : > { %v7151_v14 = vadd.f32 %v2687_v23, %v7077_v25  ;;  %v2671_v30 = vadd.f32 %v2670_v41, %v2651_v31  ;;  %3975 = vmatmul.bf16.gmra.mxu0 %v7148_v9 }
 0x1b1   : > { %v2672_v35 = vpop.f32.mrf.mxu3 }
 0x1b2   : > { %3956 = vmatmul.bf16.gmra.mxu2 %v3701_v21  ;;  %3569 = vmatmul.bf16.gmra.mxu1 %v7044_v24  ;;  %v3658_v24 = vsel %vm555_vm0, %v3656_v5, %v3657_v42 }
 0x1b3   : > { %4008 = vmatmul.bf16.vlgmr.msra.gmra.mxu3 %v3698_v4  ;;  %v3667_v4 = vsel %vm555_vm0, %v3665_v62, %v3666_v39 }
 0x1b4   : > { %v3700_v13 = vpack.c.bf16 %v3667_v4, %v3658_v24 }
 0x1b5   : > { %v2689_v34 = vpop.f32.mrf.mxu2 }
 0x1b6   : > { %v2690_v48 = vadd.f32 %v2689_v34, %v2671_v30  ;;  %v2710_v2 = vpop.f32.mrf.mxu0 }
 0x1b7   : > { %v2653_v18 = vpop.f32.mrf.mxu1 }
 0x1b8   : > { %v7160_v25 = vadd.f32 %v2690_v48, %v7103_v54  ;;  %v2673_v57 = vadd.f32 %v2672_v35, %v2653_v18 }
 0x1b9   : > { %v2741_v60 = vpop.f32.mrf.mxu3 }
 0x1bd   : > { %v2691_v38 = vpop.f32.mrf.mxu2 }
 0x1be   : > { %v2692_v47 = vadd.f32 %v2691_v38, %v2673_v57  ;;  %v3045_v45 = vpop.f32.mrf.mxu0 }
 0x1bf   : > { %v2722_v6 = vpop.f32.mrf.mxu1 }
 0x1c0   : > { %v7165_v54 = vadd.f32 %v2692_v47, %v7115_v50  ;;  %v2723_v27 = vadd.f32 %v2722_v6, %v7122_v20  ;;  %5802 = vmatmul.msk.bf16.vlgmr.msrb.gmra.mxu0 %vm548_vm2, %v3700_v13  ;;  %v3675_v20 = vrot.slane %v5641_v12, 2 }
 0x1c1   : > { %v2743_v52 = vpop.f32.mrf.mxu3 }
 0x1c2   : > { %4027 = vmatmul.bf16.vlgmr.msrb.gmra.mxu2 %v7120_v56  ;;  %v2742_v11 = vadd.f32 %v2741_v60, %v2723_v27  ;;  %5800 = vmatmul.msk.bf16.vlgmr.msrb.gmra.mxu1 %vm548_vm2, %v3700_v13  ;;  %v3684_v56 = vrot.slane %v5647_v43, 2  ;;  %v3676_v32 = vsel %vm555_vm0, %v3674_v49, %v3675_v20 }
 0x1c3   : > { %4013 = vmatmul.bf16.gmra.mxu3 %v3701_v21 }
 0x1c4   : > { %v2752_v50 = vadd.f32 %v2742_v11, %v7071_v22  ;;  %v3685_v28 = vsel %vm555_vm0, %v3683_v10, %v3684_v56  ;;  %vm4184_vm0 = vcmask 106496  }
 0x1c5   : > { %v3026_v46 = vpop.f32.mrf.mxu2  ;;  %v3703_v37 = vpack.c.bf16 %v3685_v28, %v3676_v32 }
 0x1c6   : > { %v3046_v33 = vadd.f32 %v3045_v45, %v3026_v46  ;;  %v3047_v44 = vpop.f32.mrf.mxu0 }
 0x1c7   : > { %v2724_v36 = vpop.f32.mrf.mxu1 }
 0x1c8   : > { %v2725_v16 = vadd.f32 %v2724_v36, %v7142_v1 }
 0x1c9   : > { %v2746_v41 = vpop.f32.mrf.mxu3 }
 0x1ca   : > { %v2744_v59 = vadd.f32 %v2743_v52, %v2725_v16 }
 0x1cc   : > { %v2754_v19 = vadd.f32 %v2744_v59, %v7091_v15 }
 0x1cd   : > { %v3028_v0 = vpop.f32.mrf.mxu2 }
 0x1ce   : > { %v3048_v58 = vadd.f32 %v3047_v44, %v3028_v0  ;;  %v3050_v7 = vpop.f32.mrf.mxu0 }
 0x1cf   : > { %v2727_v55 = vpop.f32.mrf.mxu1 }
 0x1d0   : > { %v2728_v23 = vadd.f32 %v2727_v55, %v2708_v63  ;;  %5803 = vmatmul.msk.bf16.gmra.mxu0 %vm548_vm2, %v3703_v37 }
 0x1d1   : > { %v2748_v22 = vpop.f32.mrf.mxu3 }
 0x1d2   : > { %4032 = vmatmul.bf16.gmra.mxu2 %v7148_v9  ;;  %v2747_v21 = vadd.f32 %v2746_v41, %v2728_v23  ;;  %5801 = vmatmul.msk.bf16.gmra.mxu1 %vm548_vm2, %v3703_v37 }
 0x1d4   : > { %v2756_v35 = vadd.f32 %v2747_v21, %v7109_v17 }
 0x1d5   : > { %v3031_v1 = vpop.f32.mrf.mxu2 }
 0x1d6   : > { %v3051_v31 = vadd.f32 %v3050_v7, %v3031_v1  ;;  %v3052_v53 = vpop.f32.mrf.mxu0 }
 0x1d7   : > { %v2729_v15 = vpop.f32.mrf.mxu1 }
 0x1d8   : > { %v2730_v34 = vadd.f32 %v2729_v15, %v2710_v2 }
 0x1d9   : > { %v3083_v30 = vpop.f32.mrf.mxu3 }
 0x1da   : > { %v2749_v61 = vadd.f32 %v2748_v22, %v2730_v34 }
 0x1dc   : > { %v2758_v3 = vadd.f32 %v2749_v61, %v7125_v29 }
 0x1dd   : > { %v3033_v51 = vpop.f32.mrf.mxu2 }
 0x1de   : > { %v3053_v63 = vadd.f32 %v3052_v53, %v3033_v51  ;;  %v3121_v9 = vpop.f32.mrf.mxu0 }
 0x1df   : > { %v3064_v60 = vpop.f32.mrf.mxu1 }
 0x1e0   : > { %v3065_v5 = vadd.f32 %v3064_v60, %v3046_v33 }
 0x1e1   : > { %v3085_v48 = vpop.f32.mrf.mxu3 }
 0x1e2   : > { %v7186_v42 = vadd.f32 %v3065_v5, %v7140_v40 }
 0x1e5   : > { %v3102_v62 = vpop.f32.mrf.mxu2 }
 0x1e6   : > { %v3103_v39 = vadd.f32 %v3102_v62, %v3083_v30  ;;  %v3123_v57 = vpop.f32.mrf.mxu0 }
 0x1e7   : > { %v3066_v24 = vpop.f32.mrf.mxu1 }
 0x1e8   : > { %v3122_v18 = vadd.f32 %v3121_v9, %v3103_v39  ;;  %v3067_v2 = vadd.f32 %v3066_v24, %v3048_v58 }
 0x1e9   : > { %v3088_v17 = vpop.f32.mrf.mxu3 }
 0x1ea   : > { %v7188_v4 = vadd.f32 %v3122_v18, %v2752_v50  ;;  %v7191_v38 = vadd.f32 %v3067_v2, %v7151_v14 }
 0x1ed   : > { %v3104_v29 = vpop.f32.mrf.mxu2 }
 0x1ee   : > { %v3105_v47 = vadd.f32 %v3104_v29, %v3085_v48  ;;  %v3126_v45 = vpop.f32.mrf.mxu0 }
 0x1ef   : > { %v3069_v6 = vpop.f32.mrf.mxu1 }
 0x1f0   : > { %v3124_v13 = vadd.f32 %v3123_v57, %v3105_v47  ;;  %v3070_v27 = vadd.f32 %v3069_v6, %v3051_v31 }
 0x1f1   : > { %v3090_v52 = vpop.f32.mrf.mxu3 }
 0x1f2   : > { %v7193_v40 = vadd.f32 %v3124_v13, %v2754_v19  ;;  %v7196_v11 = vadd.f32 %v3070_v27, %v7160_v25 }
 0x1f5   : > { %v3107_v26 = vpop.f32.mrf.mxu2 }
 0x1f6   : > { %v3108_v46 = vadd.f32 %v3107_v26, %v3088_v17  ;;  %v3128_v43 = vpop.f32.mrf.mxu0 }
 0x1f7   : > { %v3071_v50 = vpop.f32.mrf.mxu1 }
 0x1f8   : > { %v3127_v8 = vadd.f32 %v3126_v45, %v3108_v46  ;;  %v3072_v33 = vadd.f32 %v3071_v50, %v3053_v63 }
 0x1f9   : > { %v3508_v12 = vpop.f32.mrf.mxu3 }
 0x1fa   : > { %v7198_v14 = vadd.f32 %v3127_v8, %v2756_v35  ;;  %v7201_v41 = vadd.f32 %v3072_v33, %v7165_v54 }
 0x1fd   : > { %v3109_v44 = vpop.f32.mrf.mxu2 }
 0x1fe   : > { %v3110_v49 = vadd.f32 %v3109_v44, %v3090_v52  ;;  %v3546_v56 = vpop.f32.mrf.mxu0 }
 0x1ff   : > { %v3489_v36 = vpop.f32.mrf.mxu1 }
 0x200   : > { %v3129_v10 = vadd.f32 %v3128_v43, %v3110_v49  ;;  %v3509_v60 = vadd.f32 %v3508_v12, %v3489_v36 }
 0x201   : > { %v3510_v20 = vpop.f32.mrf.mxu3 }
 0x202   : > { %v7203_v25 = vadd.f32 %v3129_v10, %v2758_v3 }
 0x205   : > { %v3527_v16 = vpop.f32.mrf.mxu2 }
 0x206   : > { %v3548_v32 = vpop.f32.mrf.mxu0  ;;  %v3528_v62 = vadd.f32 %v3527_v16, %v3509_v60 }
 0x207   : > { %v3491_v28 = vpop.f32.mrf.mxu1 }
 0x208   : > { %v3594_v2 = vadd.f32 %v3528_v62, %v7186_v42  ;;  %v3511_v29 = vadd.f32 %v3510_v20, %v3491_v28 }
 0x209   : > { %v3513_v59 = vpop.f32.mrf.mxu3 }
 0x20d   : > { %v3529_v0 = vpop.f32.mrf.mxu2 }
 0x20e   : > { %v7207_v58 = vpop.f32.mrf.mxu0  ;;  %v3530_v6 = vadd.f32 %v3529_v0, %v3511_v29 }
 0x20f   : > { %v3494_v22 = vpop.f32.mrf.mxu1 }
 0x210   : > { %v3514_v33 = vadd.f32 %v3513_v59, %v3494_v22  ;;  %v3596_v20 = vadd.f32 %v3530_v6, %v7191_v38 }
 0x211   : > { %v7205_v19 = vpop.f32.mrf.mxu3 }
 0x215   : > { %v3532_v54 = vpop.f32.mrf.mxu2 }
 0x216   : > { %v7209_v7 = vpop.f32.mrf.mxu0  ;;  %v3533_v38 = vadd.f32 %v3532_v54, %v3514_v33 }
 0x217   : > { %v7211_v55 = vpop.f32.mrf.mxu1 }
 0x219   : > { %v3584_v37 = vpop.f32.mrf.mxu3 }
 0x21d   : > { %v7213_v23 = vpop.f32.mrf.mxu2 }
 0x21e   : > { %v3971_v21 = vpop.f32.mrf.mxu0 }
 0x21f   : > { %v3565_v1 = vpop.f32.mrf.mxu1 }
 0x220   : > { %v3566_v39 = vadd.f32 %v3565_v1, %v3546_v56  ;;  %v6250_v56 = vmov 0.0  }
 0x221   : > { %v3586_v35 = vpop.f32.mrf.mxu3  ;;  %4089 = vst [vmem:[%s7232_s24] sm:$0xff] %v6250_v56 }
 0x222   : > { %v3585_v52 = vadd.f32 %v3584_v37, %v3566_v39  ;;  %4090 = vst [vmem:[%s7232_s24 + $0x8] sm:$0xff] %v6250_v56 }
 0x223   : > { %4091 = vst.msk [vmem:[%s7232_s24 + $0x10] sm:$0xff] %vm548_vm2, %v6250_v56 }
 0x224   : > { %v3595_v46 = vadd.f32 %v3585_v52, %v7188_v4  ;;  %4092 = vst [vmem:[%s7232_s24 + $0x18] sm:$0x3] %v6250_v56 }
 0x225   : > { %v3952_v31 = vpop.f32.mrf.mxu2  ;;  %4093 = vst [vmem:[%s7232_s24 + $0x20] sm:$0x3] %v6250_v56 }
 0x226   : > { %v3973_v30 = vpop.f32.mrf.mxu0  ;;  %v3972_v18 = vadd.f32 %v3971_v21, %v3952_v31  ;;  %4108 = vst [vmem:[%s7232_s24 + $0x90] sm:$0xff] %v6250_v56 }
 0x227   : > { %v3567_v53 = vpop.f32.mrf.mxu1  ;;  %4111 = vst [vmem:[%s7232_s24 + $0xa8] sm:$0x3] %v6250_v56 }
 0x228   : > { %v3568_v12 = vadd.f32 %v3567_v53, %v3548_v32  ;;  %4120 = vst [vmem:[%s7232_s24 + $0xf0] sm:$0xff] %v6250_v56 }
 0x229   : > { %v7215_v15 = vpop.f32.mrf.mxu3  ;;  %4121 = vst [vmem:[%s7232_s24 + $0xf8] sm:$0xff] %v6250_v56 }
 0x22a   : > { %v3587_v16 = vadd.f32 %v3586_v35, %v3568_v12  ;;  %4122 = vst.msk [vmem:[%s7232_s24 + $0x100] sm:$0xff] %vm548_vm2, %v6250_v56 }
 0x22b   : > { %4123 = vst [vmem:[%s7232_s24 + $0x108] sm:$0x3] %v6250_v56 }
 0x22c   : > { %v3597_v1 = vadd.f32 %v3587_v16, %v7193_v40  ;;  %4124 = vst [vmem:[%s7232_s24 + $0x110] sm:$0x3] %v6250_v56 }
 0x22d   : > { %v3954_v34 = vpop.f32.mrf.mxu2  ;;  %4096 = vst [vmem:[%s7232_s24 + $0x30] sm:$0xff] %v6250_v56 }
 0x22e   : > { %v3976_v61 = vpop.f32.mrf.mxu0  ;;  %v3974_v8 = vadd.f32 %v3973_v30, %v3954_v34  ;;  %v3516_v30 = vadd.f32 %v7205_v19, %v7211_v55  ;;  %4097 = vst [vmem:[%s7232_s24 + $0x38] sm:$0xff] %v6250_v56 }
 0x22f   : > { %v3570_v51 = vpop.f32.mrf.mxu1  ;;  %4098 = vst.msk [vmem:[%s7232_s24 + $0x40] sm:$0xff] %vm548_vm2, %v6250_v56 }
 0x230   : > { %v3571_v21 = vadd.f32 %v3570_v51, %v7207_v58  ;;  %v3598_v58 = vadd.f32 %v3533_v38, %v7196_v11  ;;  %v3535_v55 = vadd.f32 %v7213_v23, %v3516_v30  ;;  %4099 = vst [vmem:[%s7232_s24 + $0x48] sm:$0x3] %v6250_v56 }
 0x231   : > { %v7217_v3 = vpop.f32.mrf.mxu3  ;;  %4100 = vst [vmem:[%s7232_s24 + $0x50] sm:$0x3] %v6250_v56 }
 0x232   : > { %4102 = vst [vmem:[%s7232_s24 + $0x60] sm:$0xff] %v6250_v56 }
 0x233   : > { %4103 = vst [vmem:[%s7232_s24 + $0x68] sm:$0xff] %v6250_v56 }
 0x234   : > { %4104 = vst.msk [vmem:[%s7232_s24 + $0x70] sm:$0xff] %vm548_vm2, %v6250_v56 }
 0x235   : > { %v3957_v63 = vpop.f32.mrf.mxu2  ;;  %4105 = vst [vmem:[%s7232_s24 + $0x78] sm:$0x3] %v6250_v56 }
 0x236   : > { %v7219_v48 = vpop.f32.mrf.mxu0  ;;  %v3977_v35 = vadd.f32 %v3976_v61, %v3957_v63  ;;  %v3590_v61 = vadd.f32 %v7215_v15, %v3571_v21  ;;  %4106 = vst [vmem:[%s7232_s24 + $0x80] sm:$0x3] %v6250_v56 }
 0x237   : > { %v7221_v9 = vpop.f32.mrf.mxu1  ;;  %4109 = vst [vmem:[%s7232_s24 + $0x98] sm:$0xff] %v6250_v56 }
 0x238   : > { %v3573_v23 = vadd.f32 %v7221_v9, %v7209_v7  ;;  %4110 = vst.msk [vmem:[%s7232_s24 + $0xa0] sm:$0xff] %vm548_vm2, %v6250_v56 }
 0x239   : > { %v4009_v17 = vpop.f32.mrf.mxu3  ;;  %4112 = vst [vmem:[%s7232_s24 + $0xb0] sm:$0x3] %v6250_v56 }
 0x23a   : > { %v3592_v7 = vadd.f32 %v7217_v3, %v3573_v23  ;;  %4114 = vst [vmem:[%s7232_s24 + $0xc0] sm:$0xff] %v6250_v56 }
 0x23b   : > { %4115 = vst [vmem:[%s7232_s24 + $0xc8] sm:$0xff] %v6250_v56 }
 0x23c   : > { %v3601_v12 = vadd.f32 %v3592_v7, %v7203_v25  ;;  %4116 = vst.msk [vmem:[%s7232_s24 + $0xd0] sm:$0xff] %vm548_vm2, %v6250_v56 }
 0x23d   : > { %v7223_v5 = vpop.f32.mrf.mxu2  ;;  %4117 = vst [vmem:[%s7232_s24 + $0xd8] sm:$0x3] %v6250_v56 }
 0x23e   : > { %v4047_v24 = vpop.f32.mrf.mxu0  ;;  %4118 = vst [vmem:[%s7232_s24 + $0xe0] sm:$0x3] %v6250_v56 }
 0x23f   : > { %v3990_v57 = vpop.f32.mrf.mxu1  ;;  %4095 = vst.msk [vmem:[%s7232_s24 + $0x28] sm:$0x3] %vm4094_vm11, %v6250_v56 }
 0x240   : > { %v3991_v47 = vadd.f32 %v3990_v57, %v3972_v18  ;;  %v3599_v57 = vadd.f32 %v3590_v61, %v7198_v14  ;;  %v3600_v14 = vadd.f32 %v3535_v55, %v7201_v41  ;;  %4113 = vst.msk [vmem:[%s7232_s24 + $0xb8] sm:$0x3] %vm4094_vm11, %v6250_v56 }
 0x241   : > { %v4011_v44 = vpop.f32.mrf.mxu3  ;;  %4125 = vst.msk [vmem:[%s7232_s24 + $0x118] sm:$0x3] %vm4094_vm11, %v6250_v56 }
 0x242   : > { %v4057_v13 = vadd.f32 %v3991_v47, %v3594_v2  ;;  %4101 = vst.msk [vmem:[%s7232_s24 + $0x58] sm:$0x3] %vm4094_vm11, %v6250_v56 }
 0x243   : > { %4107 = vst.msk [vmem:[%s7232_s24 + $0x88] sm:$0x3] %vm4094_vm11, %v6250_v56 }
 0x244   : > { %vm4065_vm3 = vcmp.ge.f32.partialorder %v4057_v13, 0.0  ;;  %v4073_v26 = vmul.f32 0.01, %v4057_v13  ;;  %4119 = vst.msk [vmem:[%s7232_s24 + $0xe8] sm:$0x3] %vm4094_vm11, %v6250_v56 }
 0x245   : > { %v4028_v45 = vpop.f32.mrf.mxu2 }
 0x246   : > { %v4029_v27 = vadd.f32 %v4028_v45, %v4009_v17  ;;  %v4081_v50 = vsel %vm4065_vm3, %v4057_v13, %v4073_v26  ;;  %v4049_v36 = vpop.f32.mrf.mxu0 }
 0x247   : > { %v3992_v49 = vpop.f32.mrf.mxu1  ;;  %v4134_v42 = vrot.slane %v4081_v50, 7 }
 0x248   : > { %v4048_v43 = vadd.f32 %v4047_v24, %v4029_v27  ;;  %v3993_v10 = vadd.f32 %v3992_v49, %v3974_v8  ;;  %v3979_v24 = vadd.f32 %v7219_v48, %v7223_v5 }
 0x249   : > { %4142 = vrot.lane.b32.xlu0 %v4134_v42, %s6251_s25  ;;  %v4014_v63 = vpop.f32.mrf.mxu3 }
 0x24a   : > { %v4058_v4 = vadd.f32 %v4048_v43, %v3595_v46  ;;  %v4059_v59 = vadd.f32 %v3993_v10, %v3596_v20 }
 0x24c   : > { %vm4066_vm4 = vcmp.ge.f32.partialorder %v4058_v4, 0.0  ;;  %v4074_v32 = vmul.f32 0.01, %v4058_v4  ;;  %vm4067_vm5 = vcmp.ge.f32.partialorder %v4059_v59, 0.0  ;;  %v4075_v22 = vmul.f32 0.01, %v4059_v59 }
 0x24d   : > { %v4030_v28 = vpop.f32.mrf.mxu2 }
 0x24e   : > { %v4031_v0 = vadd.f32 %v4030_v28, %v4011_v44  ;;  %v4082_v37 = vsel %vm4066_vm4, %v4058_v4, %v4074_v32  ;;  %v4083_v54 = vsel %vm4067_vm5, %v4059_v59, %v4075_v22  ;;  %v4052_v62 = vpop.f32.mrf.mxu0 }
 0x24f   : > { %v3995_v53 = vpop.f32.mrf.mxu1  ;;  %v4136_v34 = vrot.slane %v4083_v54, 7  ;;  %v4135_v60 = vrot.slane %v4082_v37, 7 }
 0x250   : > { %v4050_v31 = vadd.f32 %v4049_v36, %v4031_v0  ;;  %v3996_v40 = vadd.f32 %v3995_v53, %v3977_v35 }
 0x251   : > { %4146 = vrot.lane.b32.xlu1 %v4136_v34, %s6251_s25  ;;  %4144 = vrot.lane.b32.xlu0 %v4135_v60, %s6251_s25  ;;  %v4016_v41 = vpop.f32.mrf.mxu3 }
 0x252   : > { %v4060_v51 = vadd.f32 %v4050_v31, %v3597_v1  ;;  %v4061_v19 = vadd.f32 %v3996_v40, %v3598_v58 }
 0x254   : > { %vm4068_vm6 = vcmp.ge.f32.partialorder %v4060_v51, 0.0  ;;  %v4076_v11 = vmul.f32 0.01, %v4060_v51  ;;  %vm4069_vm7 = vcmp.ge.f32.partialorder %v4061_v19, 0.0  ;;  %v4077_v17 = vmul.f32 0.01, %v4061_v19 }
 0x255   : > { %v4033_v15 = vpop.f32.mrf.mxu2 }
 0x256   : > { %v4034_v39 = vadd.f32 %v4033_v15, %v4014_v63  ;;  %v4084_v18 = vsel %vm4068_vm6, %v4060_v51, %v4076_v11  ;;  %v4085_v29 = vsel %vm4069_vm7, %v4061_v19, %v4077_v17  ;;  %v4054_v3 = vpop.f32.mrf.mxu0 }
 0x257   : > { %v3997_v47 = vpop.f32.mrf.mxu1  ;;  %v4138_v52 = vrot.slane %v4085_v29, 7  ;;  %v4137_v13 = vrot.slane %v4084_v18, 7 }
 0x258   : > { %v4053_v2 = vadd.f32 %v4052_v62, %v4034_v39  ;;  %v3998_v6 = vadd.f32 %v3997_v47, %v3979_v24 }
 0x259   : > { %4150 = vrot.lane.b32.xlu2 %v4138_v52, %s6251_s25  ;;  %4148 = vrot.lane.b32.xlu1 %v4137_v13, %s6251_s25 }
 0x25a   : > { %v4062_v45 = vadd.f32 %v4053_v2, %v3599_v57  ;;  %v4063_v48 = vadd.f32 %v3998_v6, %v3600_v14 }
 0x25c   : > { %vm4070_vm8 = vcmp.ge.f32.partialorder %v4062_v45, 0.0  ;;  %v4078_v9 = vmul.f32 0.01, %v4062_v45  ;;  %v4079_v27 = vmul.f32 0.01, %v4063_v48  ;;  %vm4071_vm9 = vcmp.ge.f32.partialorder %v4063_v48, 0.0 }
 0x25d   : > { %v4035_v5 = vpop.f32.mrf.mxu2 }
 0x25e   : > { %v4036_v26 = vadd.f32 %v4035_v5, %v4016_v41  ;;  %v4086_v46 = vsel %vm4070_vm8, %v4062_v45, %v4078_v9  ;;  %v4087_v43 = vsel %vm4071_vm9, %v4063_v48, %v4079_v27 }
 0x25f   : > { %v4139_v50 = vrot.slane %v4086_v46, 7  ;;  %v4140_v33 = vrot.slane %v4087_v43, 7 }
 0x260   : > { %v4055_v8 = vadd.f32 %v4054_v3, %v4036_v26 }
 0x261   : > { %4152 = vrot.lane.b32.xlu2 %v4139_v50, %s6251_s25  ;;  %4154 = vrot.lane.b32.xlu0 %v4140_v33, %s6251_s25 }
 0x262   : > { %v4064_v44 = vadd.f32 %v4055_v8, %v3601_v12 }
 0x264   : > { %vm4072_vm10 = vcmp.ge.f32.partialorder %v4064_v44, 0.0  ;;  %v4080_v25 = vmul.f32 0.01, %v4064_v44 }
 0x266   : > { %v4088_v49 = vsel %vm4072_vm10, %v4064_v44, %v4080_v25 }
 0x267   : > { %v4141_v42 = vrot.slane %v4088_v49, 7 }
 0x269   : > { %4156 = vrot.lane.b32.xlu1 %v4141_v42, %s6251_s25 }
 0x2b3   : > { %v4151_v20 = vpop.permute.xlu2 %4150 }
 0x2b4   : > { %5816 = vst.msk [vmem:[%s7232_s24 + $0x90] sm:$0xfe] %vm4176_vm12, %v4151_v20 }
 0x2b5   : > { %5819 = vst.msk [vmem:[%s7232_s24 + $0xa8] sm:$0x1] %vm4181_vm13, %v4151_v20 }
 0x2bb   : > { %v4153_v4 = vpop.permute.xlu2 %4152  ;;  %v4143_v10 = vpop.permute.xlu0 %4142 }
 0x2bc   : > { %v4161_v56 = vsel %vm4158_vm14, %v4151_v20, %v4153_v4  ;;  %5818 = vst.msk [vmem:[%s7232_s24 + $0xa0] sm:$0xfe] %vm4179_vm15, %v4153_v4 }
 0x2bd   : > { %5817 = vst [vmem:[%s7232_s24 + $0x98] sm:$0xfe] %v4161_v56 }
 0x2be   : > { %5820 = vst [vmem:[%s7232_s24 + $0xb0] sm:$0x1] %v4161_v56 }
 0x2bf   : > { %5821 = vst.msk [vmem:[%s7232_s24 + $0xb8] sm:$0x1] %vm4184_vm0, %v4153_v4 }
 0x2c0   : > { %5804 = vst.msk [vmem:[%s7232_s24 + $0x30] sm:$0xfe] %vm4176_vm12, %v4143_v10 }
 0x2c1   : > { %5807 = vst.msk [vmem:[%s7232_s24 + $0x48] sm:$0x1] %vm4181_vm13, %v4143_v10 }
 0x2c3   : > { %v4147_v36 = vpop.permute.xlu1 %4146  ;;  %v4145_v16 = vpop.permute.xlu0 %4144 }
 0x2c4   : > { %5810 = vst.msk [vmem:[%s7232_s24 + $0x60] sm:$0xfe] %vm4176_vm12, %v4147_v36  ;;  %v4159_v59 = vsel %vm4158_vm14, %v4143_v10, %v4145_v16 }
 0x2c5   : > { %5813 = vst.msk [vmem:[%s7232_s24 + $0x78] sm:$0x1] %vm4181_vm13, %v4147_v36 }
 0x2c6   : > { %5805 = vst [vmem:[%s7232_s24 + $0x38] sm:$0xfe] %v4159_v59 }
 0x2c7   : > { %5806 = vst.msk [vmem:[%s7232_s24 + $0x40] sm:$0xfe] %vm4179_vm15, %v4145_v16 }
 0x2c8   : > { %5808 = vst [vmem:[%s7232_s24 + $0x50] sm:$0x1] %v4159_v59 }
 0x2c9   : > { %5809 = vst.msk [vmem:[%s7232_s24 + $0x58] sm:$0x1] %vm4184_vm0, %v4145_v16 }
 0x2cb   : > { %v4149_v32 = vpop.permute.xlu1 %4148 }
 0x2cc   : > { %v4160_v38 = vsel %vm4158_vm14, %v4147_v36, %v4149_v32  ;;  %5812 = vst.msk [vmem:[%s7232_s24 + $0x70] sm:$0xfe] %vm4179_vm15, %v4149_v32 }
 0x2cd   : > { %5811 = vst [vmem:[%s7232_s24 + $0x68] sm:$0xfe] %v4160_v38 }
 0x2ce   : > { %5814 = vst [vmem:[%s7232_s24 + $0x80] sm:$0x1] %v4160_v38 }
 0x2cf   : > { %5815 = vst.msk [vmem:[%s7232_s24 + $0x88] sm:$0x1] %vm4184_vm0, %v4149_v32 }
 0x2d3   : > { %v4155_v28 = vpop.permute.xlu0 %4154 }
 0x2d4   : > { %5822 = vst.msk [vmem:[%s7232_s24 + $0xc0] sm:$0xfe] %vm4176_vm12, %v4155_v28 }
 0x2d5   : > { %5825 = vst.msk [vmem:[%s7232_s24 + $0xd8] sm:$0x1] %vm4181_vm13, %v4155_v28 }
 0x2db   : > { %v4157_v0 = vpop.permute.xlu1 %4156 }
 0x2dc   : > { %v4162_v22 = vsel %vm4158_vm14, %v4155_v28, %v4157_v0  ;;  %5824 = vst.msk [vmem:[%s7232_s24 + $0xd0] sm:$0xfe] %vm4179_vm15, %v4157_v0 }
 0x2dd   : > { %5823 = vst [vmem:[%s7232_s24 + $0xc8] sm:$0xfe] %v4162_v22 }
 0x2de   : > { %5826 = vst [vmem:[%s7232_s24 + $0xe0] sm:$0x1] %v4162_v22 }
 0x2df   : > { %5827 = vst.msk [vmem:[%s7232_s24 + $0xe8] sm:$0x1] %vm4184_vm0, %v4157_v0 }
 0x2e0 PF: > { %s13_s9 = sadd.s32 1, %s6245_s9  }
 0x2e1   : > { %p10_p7 = scmp.ge.s32.totalorder %s13_s9, 4  }
 0x2e3   :  { %12 = sbr.rel (!%p10_p7) target bundleno = 1 (0x1), region = 74 }
 0x2e8   :  { %4225 = vsyncpa [#allocation3], 1 }
 0x2e9   :  { %4227 = vsyncpa [#allocation3 + $0x1], 1 }

// kernel: tpu_custom_call.1
= control target key start
LH: loop header
LB: loop body
LE: loop exit
PB: predicated region body
PF: predicated region fallthrough
CT: control target
= control target key end

     0   :  { %7 = vsyncpa [#allocation3], 0  ;;  %s6267_s9 = smov 0   ;;  %s7383_s0 = inlined_call_operand.vmem [shape: f32[2,6,10,300], index: 0, kind: input, shape index: {}]   ;;  %s7384_s1 = inlined_call_operand.hbm [shape: bf16[9,300,240], index: 1, kind: input, shape index: {}]   ;;  %s7385_s2 = inlined_call_operand.vmem [shape: f32[2,6,10,300], index: 2, kind: output, shape index: {}]  }
   0x1 LB: > { %s102_s12 = sshll.u32 %s7384_s1, 4  ;;  %s4271_s13 = sadd.s32 4294967295, %s6245_s9   ;;  %s6245_s9 = sphi %s6267_s9, %s13_s9   ;;  %s103_s12 = int_to_ptr.hbm [resolvable:$true] %s102_s12 }
   0x2   : > { %p4273_p0 = scmp.ge.s32.totalorder %s6245_s9, 1  ;;  %p91_p1 = scmp.lt.s32.totalorder %s6245_s9, 3 }
   0x3   : > { %p6189_p2 = scmp.eq.s32.totalorder %s4271_s13, 0  ;;  %s6247_s14 = smov [#allocation2]  }
   0x4   : > { %p92_p3 = pnand %p4273_p0, %p91_p1  ;;  %s104_s15 = sshll.u32 %s6247_s14, 4  ;;  %s105_s15 = int_to_ptr.vmem [resolvable:$true] %s104_s15 }
   0x5   : > { %s6248_s16 = smov 128   ;;  %s6249_s17 = smov 8  }
   0x6   : > { %p6185_p4 = pneg %p92_p3  ;;  %128 = sbr.rel (%p92_p3) target bundleno = 736 (0x2e0), region = 28 }
   0x8   : > { %p6186_p5 = pnand %p6189_p2, %p6185_p4 }
   0xa   : > { %6188 = dma.hbm_to_vmem [thread:$0]  (!%p6186_p5), %s103_s12, 43776, %s105_s15, [#allocation3], %s6248_s16, %s6248_s16, %s6249_s17  }
   0xb   : > { %6240 = dma.done.wait (%p6189_p2), [#allocation3], 43776  }
   0xc   : > { %6242 = vsyncadd (%p6189_p2), [#allocation3], 4294923520  ;;  %p151_p6 = scmp.lt.s32.totalorder %s4271_s13, 1  ;;  %vm555_vm0 = vcmask 1045504   ;;  %v4338_v0 = vld [vmem:[#allocation2 + $0x1a0] sm:$0xf] }
   0xd   : > { %v5883_v1 = vld [vmem:[#allocation2 + $0x1a4] sm:$0xf0]  ;;  %v4402_v2 = vld [vmem:[#allocation2 + $0x220] sm:$0xf]  ;;  %v5882_v5 = vld [vmem:[#allocation2 + $0x1a4] sm:$0xf] }
   0xe   : > { %s7387_s13 = smov (!%p151_p6, %s4271_s13), 1  ;;  %v4339_v3 = vor.u32 %v5883_v1, %v4338_v0  ;;  %v5899_v4 = vld [vmem:[#allocation2 + $0x224] sm:$0xf0]  ;;  %v4340_v6 = vld [vmem:[#allocation2 + $0x1a8] sm:$0xf0]  ;;  %vm266_vm1 = vcmask 1046528  }
   0xf   : > { %s6180_s18 = smul.u32 288, %s7387_s13  ;;  %v4403_v7 = vor.u32 %v5899_v4, %v4402_v2  ;;  %v4343_v8 = vor.u32 %v5882_v5, %v4340_v6  ;;  %v4426_v9 = vld [vmem:[#allocation2 + $0x250] sm:$0xf]  ;;  %v5905_v10 = vld [vmem:[#allocation2 + $0x254] sm:$0x30]  ;;  %vm548_vm2 = vcmask 359424  }
  0x10   : > { %v4330_v11 = vld [vmem:[#allocation2 + $0x190] sm:$0xf]  ;;  %562 = vmatpush.bf16.msra.mxu0 %v4339_v3  ;;  %v4427_v12 = vor.u32 %v5905_v10, %v4426_v9  ;;  %v5881_v13 = vld [vmem:[#allocation2 + $0x194] sm:$0xf0]  ;;  %v5880_v18 = vld [vmem:[#allocation2 + $0x194] sm:$0xf] }
  0x11   : > { %v4394_v14 = vld [vmem:[#allocation2 + $0x210] sm:$0xf]  ;;  %v5897_v15 = vld [vmem:[#allocation2 + $0x214] sm:$0xf0]  ;;  %581 = vmatpush.bf16.msra.mxu1 %v4403_v7  ;;  %619 = vmatpush.bf16.msra.mxu3 %v4343_v8  ;;  %v4331_v16 = vor.u32 %v5881_v13, %v4330_v11  ;;  %v4332_v19 = vld [vmem:[#allocation2 + $0x198] sm:$0xf0]  ;;  %s6287_s21 = scalar_lea.vmem %s7383_s0, %s6180_s18  ;;  %s7232_s24 = scalar_lea.vmem %s7385_s2, %s6180_s18 }
  0x12   : > { %v4395_v17 = vor.u32 %v5897_v15, %v4394_v14  ;;  %v4418_v20 = vld [vmem:[#allocation2 + $0x240] sm:$0xf]  ;;  %v557_v21 = vsel %vm555_vm0, %v4427_v12, 0  ;;  %v4335_v22 = vor.u32 %v5880_v18, %v4332_v19  ;;  %v5903_v23 = vld [vmem:[#allocation2 + $0x244] sm:$0xf0]  ;;  %s6251_s25 = smov 30  }
  0x13   : > { %v4322_v24 = vld [vmem:[#allocation2 + $0x180] sm:$0xf]  ;;  %605 = vmatpush.bf16.msra.mxu2 %v557_v21  ;;  %v4419_v25 = vor.u32 %v5903_v23, %v4418_v20  ;;  %v5879_v26 = vld [vmem:[#allocation2 + $0x184] sm:$0xf0]  ;;  %v5878_v30 = vld [vmem:[#allocation2 + $0x184] sm:$0xf] }
  0x14   : > { %v4386_v27 = vld [vmem:[#allocation2 + $0x200] sm:$0xf]  ;;  %v5895_v28 = vld [vmem:[#allocation2 + $0x204] sm:$0xf0]  ;;  %563 = vmatpush.bf16.msra.mxu0 %v4331_v16  ;;  %v4323_v29 = vor.u32 %v5879_v26, %v4322_v24  ;;  %v4324_v31 = vld [vmem:[#allocation2 + $0x188] sm:$0xf0] }
  0x15   : > { %v4410_v32 = vld [vmem:[#allocation2 + $0x230] sm:$0xf]  ;;  %582 = vmatpush.bf16.msra.mxu1 %v4395_v17  ;;  %620 = vmatpush.bf16.msra.mxu3 %v4335_v22  ;;  %v4387_v33 = vor.u32 %v5895_v28, %v4386_v27  ;;  %v4327_v34 = vor.u32 %v5878_v30, %v4324_v31  ;;  %v5901_v35 = vld [vmem:[#allocation2 + $0x234] sm:$0xf0]  ;;  %v223_v43 = vld [vmem:[%s6287_s21 + $0x28] sm:$0x1] }
  0x16   : > { %v4314_v36 = vld [vmem:[#allocation2 + $0x170] sm:$0xf]  ;;  %v5877_v37 = vld [vmem:[#allocation2 + $0x174] sm:$0xf0]  ;;  %v4411_v41 = vor.u32 %v5901_v35, %v4410_v32  ;;  %v226_v44 = vld [vmem:[%s6287_s21 + $0x40] sm:$0xfe] }
  0x17   : > { %v4378_v38 = vld [vmem:[#allocation2 + $0x1f0] sm:$0xf]  ;;  %v5893_v39 = vld [vmem:[#allocation2 + $0x1f4] sm:$0xf0]  ;;  %606 = vmatpush.bf16.msra.mxu2 %v4419_v25  ;;  %v4315_v42 = vor.u32 %v5877_v37, %v4314_v36  ;;  %v274_v47 = vrot.slane %v223_v43, 1  ;;  %v282_v48 = vrot.slane %v226_v44, 1 }
  0x18   : > { %v220_v40 = vld [vmem:[%s6287_s21 + $0x10] sm:$0xfe]  ;;  %v229_v45 = vld [vmem:[%s6287_s21 + $0x58] sm:$0x1]  ;;  %564 = vmatpush.bf16.msra.mxu0 %v4323_v29  ;;  %v4379_v51 = vor.u32 %v5893_v39, %v4378_v38  ;;  %v4316_v52 = vld [vmem:[#allocation2 + $0x178] sm:$0xf0] }
  0x19   : > { %v273_v46 = vrot.slane %v220_v40, 1  ;;  %v283_v49 = vrot.slane %v229_v45, 1  ;;  %v5876_v50 = vld [vmem:[#allocation2 + $0x174] sm:$0xf]  ;;  %583 = vmatpush.bf16.msra.mxu1 %v4387_v33  ;;  %621 = vmatpush.bf16.msra.mxu3 %v4327_v34  ;;  %v5898_v53 = vld [vmem:[#allocation2 + $0x224] sm:$0xf] }
  0x1a   : > { %v4404_v54 = vld [vmem:[#allocation2 + $0x228] sm:$0xf0]  ;;  %v4319_v57 = vor.u32 %v5876_v50, %v4316_v52  ;;  %v4306_v59 = vld [vmem:[#allocation2 + $0x160] sm:$0xf]  ;;  %v5875_v60 = vld [vmem:[#allocation2 + $0x164] sm:$0xf0] }
  0x1b   : > { %v275_v55 = vsel %vm266_vm1, %v273_v46, %v274_v47  ;;  %v284_v56 = vsel %vm266_vm1, %v282_v48, %v283_v49  ;;  %v4407_v58 = vor.u32 %v5898_v53, %v4404_v54  ;;  %v4370_v61 = vld [vmem:[#allocation2 + $0x1e0] sm:$0xf]  ;;  %607 = vmatpush.bf16.msra.mxu2 %v4411_v41  ;;  %v5891_v63 = vld [vmem:[#allocation2 + $0x1e4] sm:$0xf0]  ;;  %v5874_v0 = vld [vmem:[#allocation2 + $0x164] sm:$0xf]  ;;  %v4307_v2 = vor.u32 %v5875_v60, %v4306_v59 }
  0x1c   : > { %v6295_v62 = vpack.c.bf16 %v284_v56, %v275_v55  ;;  %v4308_v1 = vld [vmem:[#allocation2 + $0x168] sm:$0xf0]  ;;  %565 = vmatpush.bf16.msra.mxu0 %v4315_v42  ;;  %v5896_v3 = vld [vmem:[#allocation2 + $0x214] sm:$0xf]  ;;  %v4396_v4 = vld [vmem:[#allocation2 + $0x218] sm:$0xf0]  ;;  %v4371_v6 = vor.u32 %v5891_v63, %v4370_v61 }
  0x1d   : > { %v4298_v5 = vld [vmem:[#allocation2 + $0x150] sm:$0xf]  ;;  %584 = vmatpush.bf16.msra.mxu1 %v4379_v51  ;;  %622 = vmatpush.bf16.msra.mxu3 %v4319_v57  ;;  %v4311_v7 = vor.u32 %v5874_v0, %v4308_v1  ;;  %v4399_v8 = vor.u32 %v5896_v3, %v4396_v4  ;;  %v5873_v9 = vld [vmem:[#allocation2 + $0x154] sm:$0xf0]  ;;  %v5872_v12 = vld [vmem:[#allocation2 + $0x154] sm:$0xf] }
  0x1e   : > { %v4362_v10 = vld [vmem:[#allocation2 + $0x1d0] sm:$0xf]  ;;  %v5889_v11 = vld [vmem:[#allocation2 + $0x1d4] sm:$0xf0]  ;;  %4432 = vmatmul.msk.bf16.vlgmr.msra.gmra.mxu2 %vm548_vm2, %v6295_v62  ;;  %v4300_v13 = vld [vmem:[#allocation2 + $0x158] sm:$0xf0]  ;;  %v4299_v16 = vor.u32 %v5873_v9, %v4298_v5 }
  0x1f   : > { %638 = vmatpush.bf16.msrb.mxu2 %v4407_v58  ;;  %v5894_v14 = vld [vmem:[#allocation2 + $0x204] sm:$0xf]  ;;  %v4388_v15 = vld [vmem:[#allocation2 + $0x208] sm:$0xf0]  ;;  %v4290_v18 = vld [vmem:[#allocation2 + $0x140] sm:$0xf]  ;;  %v4363_v21 = vor.u32 %v5889_v11, %v4362_v10  ;;  %v4303_v22 = vor.u32 %v5872_v12, %v4300_v13 }
  0x20   : > { %566 = vmatpush.bf16.msra.mxu0 %v4307_v2  ;;  %v4391_v17 = vor.u32 %v5894_v14, %v4388_v15  ;;  %v5871_v19 = vld [vmem:[#allocation2 + $0x144] sm:$0xf0]  ;;  %v4354_v20 = vld [vmem:[#allocation2 + $0x1c0] sm:$0xf]  ;;  %v5892_v24 = vld [vmem:[#allocation2 + $0x1f4] sm:$0xf] }
  0x21   : > { %585 = vmatpush.bf16.msra.mxu1 %v4371_v6  ;;  %623 = vmatpush.bf16.msra.mxu3 %v4311_v7  ;;  %v5887_v23 = vld [vmem:[#allocation2 + $0x1c4] sm:$0xf0]  ;;  %v4380_v25 = vld [vmem:[#allocation2 + $0x1f8] sm:$0xf0]  ;;  %v5870_v26 = vld [vmem:[#allocation2 + $0x144] sm:$0xf]  ;;  %v4291_v32 = vor.u32 %v5871_v19, %v4290_v18 }
  0x22   : > { %v4292_v27 = vld [vmem:[#allocation2 + $0x148] sm:$0xf0]  ;;  %v4282_v28 = vld [vmem:[#allocation2 + $0x130] sm:$0xf]  ;;  %v5869_v29 = vld [vmem:[#allocation2 + $0x134] sm:$0xf0]  ;;  %v4383_v33 = vor.u32 %v5892_v24, %v4380_v25  ;;  %v4355_v40 = vor.u32 %v5887_v23, %v4354_v20 }
  0x23   : > { %639 = vmatpush.bf16.msrb.mxu2 %v4399_v8  ;;  %v232_v30 = vld [vmem:[%s6287_s21 + $0x70] sm:$0xfe]  ;;  %v235_v31 = vld [vmem:[%s6287_s21 + $0x88] sm:$0x1]  ;;  %v5885_v35 = vld [vmem:[#allocation2 + $0x1b4] sm:$0xf0]  ;;  %v4295_v41 = vor.u32 %v5870_v26, %v4292_v27  ;;  %v4283_v49 = vor.u32 %v5869_v29, %v4282_v28 }
  0x24   : > { %567 = vmatpush.bf16.msra.mxu0 %v4299_v16  ;;  %v4346_v34 = vld [vmem:[#allocation2 + $0x1b0] sm:$0xf]  ;;  %v238_v36 = vld [vmem:[%s6287_s21 + $0xa0] sm:$0xfe]  ;;  %v241_v37 = vld [vmem:[%s6287_s21 + $0xb8] sm:$0x1] }
  0x25   : > { %v291_v38 = vrot.slane %v232_v30, 1  ;;  %v292_v39 = vrot.slane %v235_v31, 1  ;;  %586 = vmatpush.bf16.msra.mxu1 %v4363_v21  ;;  %624 = vmatpush.bf16.msra.mxu3 %v4303_v22  ;;  %v300_v42 = vrot.slane %v238_v36, 1  ;;  %v301_v43 = vrot.slane %v241_v37, 1  ;;  %v5868_v44 = vld [vmem:[#allocation2 + $0x134] sm:$0xf] }
  0x26   : > { %v4284_v45 = vld [vmem:[#allocation2 + $0x138] sm:$0xf0]  ;;  %v5890_v46 = vld [vmem:[#allocation2 + $0x1e4] sm:$0xf]  ;;  %v4372_v47 = vld [vmem:[#allocation2 + $0x1e8] sm:$0xf0]  ;;  %v4347_v60 = vor.u32 %v5885_v35, %v4346_v34 }
  0x27   : > { %640 = vmatpush.bf16.msrb.mxu2 %v4391_v17  ;;  %v218_v48 = vld [vmem:[%s6287_s21] sm:$0xfe]  ;;  %v293_v50 = vsel %vm266_vm1, %v291_v38, %v292_v39  ;;  %v302_v51 = vsel %vm266_vm1, %v300_v42, %v301_v43  ;;  %v221_v52 = vld [vmem:[%s6287_s21 + $0x18] sm:$0x1]  ;;  %v224_v53 = vld [vmem:[%s6287_s21 + $0x30] sm:$0xfe]  ;;  %v4375_v55 = vor.u32 %v5890_v46, %v4372_v47  ;;  %v4287_v61 = vor.u32 %v5868_v44, %v4284_v45 }
  0x28   : > { %v227_v54 = vld [vmem:[%s6287_s21 + $0x48] sm:$0x1]  ;;  %568 = vmatpush.bf16.msra.mxu0 %v4291_v32  ;;  %v267_v56 = vrot.slane %v218_v48, 1  ;;  %v268_v57 = vrot.slane %v221_v52, 1  ;;  %v276_v58 = vrot.slane %v224_v53, 1  ;;  %v6312_v3 = vpack.c.bf16 %v302_v51, %v293_v50 }
  0x29   : > { %v219_v59 = vld [vmem:[%s6287_s21 + $0x8] sm:$0xfe]  ;;  %587 = vmatpush.bf16.msra.mxu1 %v4355_v40  ;;  %625 = vmatpush.bf16.msra.mxu3 %v4295_v41  ;;  %v277_v63 = vrot.slane %v227_v54, 1  ;;  %v222_v0 = vld [vmem:[%s6287_s21 + $0x20] sm:$0x1]  ;;  %vm4094_vm11 = vcmask 353280  }
  0x2a   : > { %v225_v1 = vld [vmem:[%s6287_s21 + $0x38] sm:$0xfe]  ;;  %v270_v2 = vrot.slane %v219_v59, 1  ;;  %v269_v4 = vsel %vm266_vm1, %v267_v56, %v268_v57  ;;  %v228_v5 = vld [vmem:[%s6287_s21 + $0x50] sm:$0x1]  ;;  %v271_v6 = vrot.slane %v222_v0, 1 }
  0x2b   : > { %641 = vmatpush.bf16.msrb.mxu2 %v4383_v33  ;;  %v279_v7 = vrot.slane %v225_v1, 1  ;;  %v5888_v8 = vld [vmem:[#allocation2 + $0x1d4] sm:$0xf]  ;;  %v278_v9 = vsel %vm266_vm1, %v276_v58, %v277_v63  ;;  %v280_v10 = vrot.slane %v228_v5, 1  ;;  %v4364_v11 = vld [vmem:[#allocation2 + $0x1d8] sm:$0xf0] }
  0x2c   : > { %v4494_v12 = vld [vmem:[#allocation2 + $0x70] sm:$0xf]  ;;  %569 = vmatpush.bf16.msra.mxu0 %v4283_v49  ;;  %v315_v13 = vpack.c.bf16 %v278_v9, %v269_v4  ;;  %v272_v14 = vsel %vm266_vm1, %v270_v2, %v271_v6  ;;  %v4367_v15 = vor.u32 %v5888_v8, %v4364_v11  ;;  %v5845_v16 = vld [vmem:[#allocation2 + $0x74] sm:$0xf0]  ;;  %v5886_v22 = vld [vmem:[#allocation2 + $0x1c4] sm:$0xf] }
  0x2d   : > { %v4558_v17 = vld [vmem:[#allocation2 + $0xf0] sm:$0xf]  ;;  %v5861_v18 = vld [vmem:[#allocation2 + $0xf4] sm:$0xf0]  ;;  %588 = vmatpush.bf16.msra.mxu1 %v4347_v60  ;;  %626 = vmatpush.bf16.msra.mxu3 %v4287_v61  ;;  %v281_v19 = vsel %vm266_vm1, %v279_v7, %v280_v10  ;;  %v4495_v20 = vor.u32 %v5845_v16, %v4494_v12  ;;  %v4356_v23 = vld [vmem:[#allocation2 + $0x1c8] sm:$0xf0] }
  0x2e   : > { %v4559_v21 = vor.u32 %v5861_v18, %v4558_v17  ;;  %v5904_v24 = vld [vmem:[#allocation2 + $0x254] sm:$0xf]  ;;  %4433 = vmatmul.msk.bf16.gmra.mxu2 %vm548_vm2, %v6312_v3  ;;  %v6321_v25 = vpack.c.bf16 %v281_v19, %v272_v14  ;;  %v4428_v26 = vld [vmem:[#allocation2 + $0x258] sm:$0x30]  ;;  %v4486_v27 = vld [vmem:[#allocation2 + $0x60] sm:$0xf]  ;;  %v4359_v35 = vor.u32 %v5886_v22, %v4356_v23 }
  0x2f   : > { %642 = vmatpush.bf16.msrb.mxu2 %v4375_v55  ;;  %v5843_v28 = vld [vmem:[#allocation2 + $0x64] sm:$0xf0]  ;;  %570 = vmatmul.bf16.vlgmr.msra.gmra.mxu0 %v315_v13  ;;  %v4431_v29 = vor.u32 %v5904_v24, %v4428_v26  ;;  %v4550_v31 = vld [vmem:[#allocation2 + $0xe0] sm:$0xf]  ;;  %v4478_v33 = vld [vmem:[#allocation2 + $0x50] sm:$0xf] }
  0x30   : > { %v4487_v30 = vor.u32 %v5843_v28, %v4486_v27  ;;  %v5859_v32 = vld [vmem:[#allocation2 + $0xe4] sm:$0xf0]  ;;  %589 = vmatmul.bf16.vlgmr.msra.gmra.mxu1 %v6321_v25  ;;  %627 = vmatmul.bf16.vlgmr.msra.gmra.mxu3 %v315_v13  ;;  %v5841_v34 = vld [vmem:[#allocation2 + $0x54] sm:$0xf0]  ;;  %v5884_v38 = vld [vmem:[#allocation2 + $0x1b4] sm:$0xf] }
  0x31   : > { %876 = vmatpush.bf16.msrb.mxu1 %v4495_v20  ;;  %895 = vmatpush.bf16.msrb.mxu3 %v4559_v21  ;;  %v560_v36 = vsel %vm555_vm0, %v4431_v29, 0  ;;  %v4551_v37 = vor.u32 %v5859_v32, %v4550_v31  ;;  %v4348_v39 = vld [vmem:[#allocation2 + $0x1b8] sm:$0xf0]  ;;  %v4542_v40 = vld [vmem:[#allocation2 + $0xd0] sm:$0xf]  ;;  %v4479_v43 = vor.u32 %v5841_v34, %v4478_v33  ;;  %vm4176_vm12 = vcmask 1047793  }
  0x32   : > { %662 = vmatpush.bf16.msrb.mxu0 %v560_v36  ;;  %v5857_v41 = vld [vmem:[#allocation2 + $0xd4] sm:$0xf0]  ;;  %v4470_v42 = vld [vmem:[#allocation2 + $0x40] sm:$0xf]  ;;  %v5839_v44 = vld [vmem:[#allocation2 + $0x44] sm:$0xf0]  ;;  %v4351_v47 = vor.u32 %v5884_v38, %v4348_v39 }
  0x33   : > { %643 = vmatpush.bf16.msrb.mxu2 %v4367_v15  ;;  %v4582_v45 = vld [vmem:[#allocation2 + $0x120] sm:$0xf]  ;;  %v5867_v46 = vld [vmem:[#allocation2 + $0x124] sm:$0x30]  ;;  %v233_v52 = vld [vmem:[%s6287_s21 + $0x78] sm:$0x1]  ;;  %v4543_v54 = vor.u32 %v5857_v41, %v4542_v40  ;;  %v4471_v0 = vor.u32 %v5839_v44, %v4470_v42 }
  0x34   : > { %v4534_v48 = vld [vmem:[#allocation2 + $0xc0] sm:$0xf]  ;;  %v5855_v49 = vld [vmem:[#allocation2 + $0xc4] sm:$0xf0]  ;;  %v4583_v50 = vor.u32 %v5867_v46, %v4582_v45  ;;  %v236_v53 = vld [vmem:[%s6287_s21 + $0x90] sm:$0xfe] }
  0x35   : > { %877 = vmatpush.bf16.msrb.mxu1 %v4487_v30  ;;  %v230_v51 = vld [vmem:[%s6287_s21 + $0x60] sm:$0xfe]  ;;  %896 = vmatpush.bf16.msrb.mxu3 %v4551_v37  ;;  %v239_v55 = vld [vmem:[%s6287_s21 + $0xa8] sm:$0x1]  ;;  %v286_v57 = vrot.slane %v233_v52, 1  ;;  %v294_v58 = vrot.slane %v236_v53, 1  ;;  %v4535_v12 = vor.u32 %v5855_v49, %v4534_v48 }
  0x36   : > { %v285_v56 = vrot.slane %v230_v51, 1  ;;  %v871_v59 = vsel %vm555_vm0, %v4583_v50, 0  ;;  %v295_v60 = vrot.slane %v239_v55, 1  ;;  %v231_v61 = vld [vmem:[%s6287_s21 + $0x68] sm:$0xfe]  ;;  %vm4181_vm13 = vcmask 1040624  }
  0x37   : > { %644 = vmatpush.bf16.msrb.mxu2 %v4359_v35  ;;  %v234_v63 = vld [vmem:[%s6287_s21 + $0x80] sm:$0x1]  ;;  %v237_v1 = vld [vmem:[%s6287_s21 + $0x98] sm:$0xfe]  ;;  %v240_v2 = vld [vmem:[%s6287_s21 + $0xb0] sm:$0x1] }
  0x38   : > { %v288_v4 = vrot.slane %v231_v61, 1  ;;  %v289_v5 = vrot.slane %v234_v63, 1  ;;  %v287_v6 = vsel %vm266_vm1, %v285_v56, %v286_v57  ;;  %v296_v7 = vsel %vm266_vm1, %v294_v58, %v295_v60  ;;  %v5902_v10 = vld [vmem:[#allocation2 + $0x244] sm:$0xf]  ;;  %v4420_v11 = vld [vmem:[#allocation2 + $0x248] sm:$0xf0] }
  0x39   : > { %878 = vmatpush.bf16.msrb.mxu1 %v4479_v43  ;;  %v297_v8 = vrot.slane %v237_v1, 1  ;;  %v298_v9 = vrot.slane %v240_v2, 1  ;;  %897 = vmatpush.bf16.msrb.mxu3 %v4543_v54  ;;  %v4423_v14 = vor.u32 %v5902_v10, %v4420_v11  ;;  %v4462_v15 = vld [vmem:[#allocation2 + $0x30] sm:$0xf]  ;;  %v5837_v16 = vld [vmem:[#allocation2 + $0x34] sm:$0xf0]  ;;  %v318_v20 = vpack.c.bf16 %v296_v7, %v287_v6 }
  0x3a   : > { %v290_v13 = vsel %vm266_vm1, %v288_v4, %v289_v5  ;;  %v4526_v18 = vld [vmem:[#allocation2 + $0xb0] sm:$0xf]  ;;  %v5853_v19 = vld [vmem:[#allocation2 + $0xb4] sm:$0xf0]  ;;  %v4463_v21 = vor.u32 %v5837_v16, %v4462_v15  ;;  %v4454_v24 = vld [vmem:[#allocation2 + $0x20] sm:$0xf] }
  0x3b   : > { %645 = vmatpush.bf16.msrb.mxu2 %v4351_v47  ;;  %v299_v17 = vsel %vm266_vm1, %v297_v8, %v298_v9  ;;  %663 = vmatpush.bf16.msrb.mxu0 %v4423_v14  ;;  %v4574_v22 = vld [vmem:[#allocation2 + $0x110] sm:$0xf]  ;;  %v5835_v26 = vld [vmem:[#allocation2 + $0x24] sm:$0xf0]  ;;  %v5865_v27 = vld [vmem:[#allocation2 + $0x114] sm:$0xf0]  ;;  %v4527_v28 = vor.u32 %v5853_v19, %v4526_v18 }
  0x3c   : > { %v6338_v23 = vpack.c.bf16 %v299_v17, %v290_v13  ;;  %v4575_v29 = vor.u32 %v5865_v27, %v4574_v22  ;;  %v5900_v30 = vld [vmem:[#allocation2 + $0x234] sm:$0xf]  ;;  %v4518_v31 = vld [vmem:[#allocation2 + $0xa0] sm:$0xf]  ;;  %v5851_v32 = vld [vmem:[#allocation2 + $0xa4] sm:$0xf0]  ;;  %v4455_v34 = vor.u32 %v5835_v26, %v4454_v24 }
  0x3d   : > { %879 = vmatpush.bf16.msrb.mxu1 %v4471_v0  ;;  %898 = vmatpush.bf16.msrb.mxu3 %v4535_v12  ;;  %v4412_v33 = vld [vmem:[#allocation2 + $0x238] sm:$0xf0]  ;;  %v4446_v35 = vld [vmem:[#allocation2 + $0x10] sm:$0xf]  ;;  %v5833_v37 = vld [vmem:[#allocation2 + $0x14] sm:$0xf0]  ;;  %v4519_v40 = vor.u32 %v5851_v32, %v4518_v31 }
  0x3e   : > { %646 = vmatmul.bf16.vlgmr.msrb.gmra.mxu2 %v6321_v25  ;;  %v4415_v36 = vor.u32 %v5900_v30, %v4412_v33  ;;  %v5844_v38 = vld [vmem:[#allocation2 + $0x74] sm:$0xf]  ;;  %v4496_v39 = vld [vmem:[#allocation2 + $0x78] sm:$0xf0]  ;;  %v4510_v41 = vld [vmem:[#allocation2 + $0x90] sm:$0xf]  ;;  %v4447_v47 = vor.u32 %v5833_v37, %v4446_v35 }
  0x3f   : > { %919 = vmatpush.bf16.msra.mxu2 %v871_v59  ;;  %575 = vmatmul.bf16.gmra.mxu0 %v318_v20  ;;  %v5849_v42 = vld [vmem:[#allocation2 + $0x94] sm:$0xf0]  ;;  %v4499_v25 = vor.u32 %v5844_v38, %v4496_v39  ;;  %v4566_v43 = vld [vmem:[#allocation2 + $0x100] sm:$0xf]  ;;  %v5863_v44 = vld [vmem:[#allocation2 + $0x104] sm:$0xf0] }
  0x40   : > { %594 = vmatmul.bf16.gmra.mxu1 %v6338_v23  ;;  %632 = vmatmul.bf16.gmra.mxu3 %v318_v20  ;;  %v5842_v45 = vld [vmem:[#allocation2 + $0x64] sm:$0xf]  ;;  %v4488_v46 = vld [vmem:[#allocation2 + $0x68] sm:$0xf0]  ;;  %v4438_v48 = vld [vmem:[#allocation2] sm:$0xf]  ;;  %v4567_v49 = vor.u32 %v5863_v44, %v4566_v43  ;;  %v4511_v54 = vor.u32 %v5849_v42, %v4510_v41 }
  0x41   : > { %880 = vmatpush.bf16.msrb.mxu1 %v4463_v21  ;;  %899 = vmatpush.bf16.msrb.mxu3 %v4527_v28  ;;  %v4491_v50 = vor.u32 %v5842_v45, %v4488_v46  ;;  %v5831_v51 = vld [vmem:[#allocation2 + $0x4] sm:$0xf0]  ;;  %v5840_v52 = vld [vmem:[#allocation2 + $0x54] sm:$0xf]  ;;  %v4480_v53 = vld [vmem:[#allocation2 + $0x58] sm:$0xf0] }
  0x42   : > { %664 = vmatpush.bf16.msrb.mxu0 %v4415_v36  ;;  %v5860_v55 = vld [vmem:[#allocation2 + $0xf4] sm:$0xf]  ;;  %v4560_v56 = vld [vmem:[#allocation2 + $0xf8] sm:$0xf0]  ;;  %v4502_v57 = vld [vmem:[#allocation2 + $0x80] sm:$0xf]  ;;  %v4439_v59 = vor.u32 %v5831_v51, %v4438_v48  ;;  %v4483_v60 = vor.u32 %v5840_v52, %v4480_v53 }
  0x43   : > { %920 = vmatpush.bf16.msra.mxu2 %v4575_v29  ;;  %v5847_v58 = vld [vmem:[#allocation2 + $0x84] sm:$0xf0]  ;;  %v5866_v61 = vld [vmem:[#allocation2 + $0x124] sm:$0xf]  ;;  %v4584_v63 = vld [vmem:[#allocation2 + $0x128] sm:$0x30]  ;;  %v4563_v4 = vor.u32 %v5860_v55, %v4560_v56 }
  0x44   : > { %v4650_v0 = vld [vmem:[#allocation2 + $0x2d0] sm:$0xf]  ;;  %v162_v1 = vld [vmem:[%s6287_s21] sm:$0xff]  ;;  %v4587_v5 = vor.u32 %v5866_v61, %v4584_v63  ;;  %v5921_v6 = vld [vmem:[#allocation2 + $0x2d4] sm:$0xf0]  ;;  %v4503_v7 = vor.u32 %v5847_v58, %v4502_v57  ;;  %vm4158_vm14 = vcmask 244736  }
  0x45   : > { %881 = vmatpush.bf16.msrb.mxu1 %v4455_v34  ;;  %900 = vmatpush.bf16.msrb.mxu3 %v4519_v40  ;;  %v165_v2 = vld [vmem:[%s6287_s21 + $0x30] sm:$0xff]  ;;  %v163_v8 = vld [vmem:[%s6287_s21 + $0x8] sm:$0xff]  ;;  %v6346_v9 = vld [vmem:[%s6287_s21 + $0x38] sm:$0xff]  ;;  %v4651_v11 = vor.u32 %v5921_v6, %v4650_v0  ;;  %vm4179_vm15 = vcmask 113665  }
  0x46   : > { %933 = vmatpush.bf16.msra.mxu0 %v4499_v25  ;;  %v5858_v10 = vld [vmem:[#allocation2 + $0xe4] sm:$0xf]  ;;  %v4552_v12 = vld [vmem:[#allocation2 + $0xe8] sm:$0xf0]  ;;  %v874_v15 = vsel %vm555_vm0, %v4587_v5, 0  ;;  %v6349_v18 = vpack.c.bf16 %v165_v2, %v162_v1  ;;  %v6352_v19 = vpack.c.bf16 %v6346_v9, %v163_v8  ;;  %v164_v43 = vld [vmem:[%s6287_s21 + $0x10] sm:$0xff] }
  0x47   : > { %921 = vmatpush.bf16.msra.mxu2 %v4567_v49  ;;  %v5838_v13 = vld [vmem:[#allocation2 + $0x44] sm:$0xf]  ;;  %v4472_v14 = vld [vmem:[#allocation2 + $0x48] sm:$0xf0]  ;;  %v4642_v16 = vld [vmem:[#allocation2 + $0x2c0] sm:$0xf]  ;;  %v4555_v20 = vor.u32 %v5858_v10, %v4552_v12 }
  0x48   : > { %v5919_v17 = vld [vmem:[#allocation2 + $0x2c4] sm:$0xf0]  ;;  %v5856_v21 = vld [vmem:[#allocation2 + $0xd4] sm:$0xf]  ;;  %v4544_v22 = vld [vmem:[#allocation2 + $0xd8] sm:$0xf0]  ;;  %v4475_v24 = vor.u32 %v5838_v13, %v4472_v14 }
  0x49   : > { %882 = vmatpush.bf16.msrb.mxu1 %v4447_v47  ;;  %901 = vmatpush.bf16.msrb.mxu3 %v4511_v54  ;;  %v5836_v26 = vld [vmem:[#allocation2 + $0x34] sm:$0xf]  ;;  %v4464_v27 = vld [vmem:[#allocation2 + $0x38] sm:$0xf0]  ;;  %v4643_v28 = vor.u32 %v5919_v17, %v4642_v16  ;;  %v4634_v31 = vld [vmem:[#allocation2 + $0x2b0] sm:$0xf]  ;;  %v4547_v34 = vor.u32 %v5856_v21, %v4544_v22 }
  0x4a   : > { %934 = vmatpush.bf16.msra.mxu0 %v4491_v50  ;;  %v5864_v29 = vld [vmem:[#allocation2 + $0x114] sm:$0xf]  ;;  %v4576_v30 = vld [vmem:[#allocation2 + $0x118] sm:$0xf0]  ;;  %v5917_v32 = vld [vmem:[#allocation2 + $0x2b4] sm:$0xf0]  ;;  %v4467_v36 = vor.u32 %v5836_v26, %v4464_v27 }
  0x4b   : > { %1331 = vmatpush.bf16.msrb.mxu2 %v4651_v11  ;;  %v4579_v33 = vor.u32 %v5864_v29, %v4576_v30  ;;  %v4536_v35 = vld [vmem:[#allocation2 + $0xc8] sm:$0xf0]  ;;  %v5834_v37 = vld [vmem:[#allocation2 + $0x24] sm:$0xf]  ;;  %v4635_v39 = vor.u32 %v5917_v32, %v4634_v31  ;;  %v4626_v41 = vld [vmem:[#allocation2 + $0x2a0] sm:$0xf] }
  0x4c   : > { %v4456_v38 = vld [vmem:[#allocation2 + $0x28] sm:$0xf0]  ;;  %v5915_v42 = vld [vmem:[#allocation2 + $0x2a4] sm:$0xf0]  ;;  %v6361_v44 = vld [vmem:[%s6287_s21 + $0x40] sm:$0xff] }
  0x4d   : > { %883 = vmatpush.bf16.msrb.mxu1 %v4439_v59  ;;  %902 = vmatpush.bf16.msrb.mxu3 %v4503_v7  ;;  %v4568_v40 = vld [vmem:[#allocation2 + $0x108] sm:$0xf0]  ;;  %v5852_v46 = vld [vmem:[#allocation2 + $0xb4] sm:$0xf]  ;;  %v4528_v47 = vld [vmem:[#allocation2 + $0xb8] sm:$0xf0]  ;;  %v4459_v48 = vor.u32 %v5834_v37, %v4456_v38  ;;  %v4627_v51 = vor.u32 %v5915_v42, %v4626_v41 }
  0x4e   : > { %935 = vmatpush.bf16.msra.mxu0 %v4483_v60  ;;  %651 = vmatmul.bf16.gmra.mxu2 %v6338_v23  ;;  %v5854_v23 = vld [vmem:[#allocation2 + $0xc4] sm:$0xf]  ;;  %v5832_v49 = vld [vmem:[#allocation2 + $0x14] sm:$0xf]  ;;  %v4448_v50 = vld [vmem:[#allocation2 + $0x18] sm:$0xf0]  ;;  %v4531_v0 = vor.u32 %v5852_v46, %v4528_v47 }
  0x4f   : > { %4434 = vmatmul.msk.bf16.vlgmr.msrb.gmra.mxu0 %vm548_vm2, %v6295_v62  ;;  %1332 = vmatpush.bf16.msrb.mxu2 %v4643_v28  ;;  %v5862_v62 = vld [vmem:[#allocation2 + $0x104] sm:$0xf]  ;;  %v4539_v45 = vor.u32 %v5854_v23, %v4536_v35  ;;  %v5920_v52 = vld [vmem:[#allocation2 + $0x2d4] sm:$0xf]  ;;  %v4652_v53 = vld [vmem:[#allocation2 + $0x2d8] sm:$0xf0]  ;;  %v4451_v2 = vor.u32 %v5832_v49, %v4448_v50 }
  0x50   : > { %884 = vmatmul.bf16.vlgmr.msrb.gmra.mxu1 %v6349_v18  ;;  %903 = vmatmul.bf16.vlgmr.msrb.gmra.mxu3 %v6352_v19  ;;  %v4571_v25 = vor.u32 %v5862_v62, %v4568_v40  ;;  %v6364_v54 = vld [vmem:[%s6287_s21 + $0x60] sm:$0xff]  ;;  %v171_v55 = vld [vmem:[%s6287_s21 + $0x90] sm:$0xff]  ;;  %v4655_v57 = vor.u32 %v5920_v52, %v4652_v53  ;;  %v5913_v58 = vld [vmem:[#allocation2 + $0x294] sm:$0xf0] }
  0x51   : > { %952 = vmatpush.bf16.msra.mxu1 %v4563_v4  ;;  %976 = vmatpush.bf16.msra.mxu3 %v874_v15  ;;  %v4618_v56 = vld [vmem:[#allocation2 + $0x290] sm:$0xf]  ;;  %v5918_v59 = vld [vmem:[#allocation2 + $0x2c4] sm:$0xf]  ;;  %v4644_v60 = vld [vmem:[#allocation2 + $0x2c8] sm:$0xf0]  ;;  %v6374_v4 = vpack.c.bf16 %v6361_v44, %v164_v43  ;;  %v6377_v13 = vpack.c.bf16 %v171_v55, %v6364_v54 }
  0x52   : > { %936 = vmatpush.bf16.msra.mxu0 %v4475_v24  ;;  %v6368_v61 = vld [vmem:[%s6287_s21 + $0x68] sm:$0xff]  ;;  %v6371_v63 = vld [vmem:[%s6287_s21 + $0x98] sm:$0xff]  ;;  %v5850_v1 = vld [vmem:[#allocation2 + $0xa4] sm:$0xf]  ;;  %v4647_v8 = vor.u32 %v5918_v59, %v4644_v60  ;;  %v4619_v10 = vor.u32 %v5913_v58, %v4618_v56 }
  0x53   : > { %1333 = vmatpush.bf16.msrb.mxu2 %v4635_v39  ;;  %v4520_v5 = vld [vmem:[#allocation2 + $0xa8] sm:$0xf0]  ;;  %v5830_v6 = vld [vmem:[#allocation2 + $0x4] sm:$0xf]  ;;  %v4714_v11 = vld [vmem:[#allocation2 + $0x350] sm:$0xf]  ;;  %v6381_v14 = vpack.c.bf16 %v6371_v63, %v6368_v61 }
  0x54   : > { %v4440_v7 = vld [vmem:[#allocation2 + $0x8] sm:$0xf0]  ;;  %v5937_v12 = vld [vmem:[#allocation2 + $0x354] sm:$0xf0]  ;;  %v4610_v15 = vld [vmem:[#allocation2 + $0x280] sm:$0xf] }
  0x55   : > { %953 = vmatpush.bf16.msra.mxu1 %v4555_v20  ;;  %977 = vmatpush.bf16.msra.mxu3 %v4579_v33  ;;  %v5911_v16 = vld [vmem:[#allocation2 + $0x284] sm:$0xf0]  ;;  %v5916_v17 = vld [vmem:[#allocation2 + $0x2b4] sm:$0xf]  ;;  %v4523_v20 = vor.u32 %v5850_v1, %v4520_v5  ;;  %v4443_v21 = vor.u32 %v5830_v6, %v4440_v7  ;;  %v4636_v22 = vld [vmem:[#allocation2 + $0x2b8] sm:$0xf0]  ;;  %v4715_v27 = vor.u32 %v5937_v12, %v4714_v11 }
  0x56   : > { %937 = vmatpush.bf16.msra.mxu0 %v4467_v36  ;;  %v5848_v24 = vld [vmem:[#allocation2 + $0x94] sm:$0xf]  ;;  %v4512_v26 = vld [vmem:[#allocation2 + $0x98] sm:$0xf0]  ;;  %v4639_v28 = vor.u32 %v5916_v17, %v4636_v22  ;;  %v4611_v29 = vor.u32 %v5911_v16, %v4610_v15  ;;  %v4706_v30 = vld [vmem:[#allocation2 + $0x340] sm:$0xf] }
  0x57   : > { %1334 = vmatpush.bf16.msrb.mxu2 %v4627_v51  ;;  %v5935_v31 = vld [vmem:[#allocation2 + $0x344] sm:$0xf0]  ;;  %v4602_v32 = vld [vmem:[#allocation2 + $0x270] sm:$0xf]  ;;  %v5909_v33 = vld [vmem:[#allocation2 + $0x274] sm:$0xf0]  ;;  %v4515_v23 = vor.u32 %v5848_v24, %v4512_v26 }
  0x58   : > { %v4628_v35 = vld [vmem:[#allocation2 + $0x2a8] sm:$0xf0]  ;;  %v5846_v36 = vld [vmem:[#allocation2 + $0x84] sm:$0xf]  ;;  %v4707_v38 = vor.u32 %v5935_v31, %v4706_v30  ;;  %v4603_v39 = vor.u32 %v5909_v33, %v4602_v32  ;;  %v4594_v62 = vld [vmem:[#allocation2 + $0x260] sm:$0xf] }
  0x59   : > { %954 = vmatpush.bf16.msra.mxu1 %v4547_v34  ;;  %978 = vmatpush.bf16.msra.mxu3 %v4571_v25  ;;  %v5914_v34 = vld [vmem:[#allocation2 + $0x2a4] sm:$0xf]  ;;  %v4504_v37 = vld [vmem:[#allocation2 + $0x88] sm:$0xf0]  ;;  %v4698_v40 = vld [vmem:[#allocation2 + $0x330] sm:$0xf] }
  0x5a   : > { %938 = vmatpush.bf16.msra.mxu0 %v4459_v48  ;;  %v5933_v41 = vld [vmem:[#allocation2 + $0x334] sm:$0xf0]  ;;  %v5907_v42 = vld [vmem:[#allocation2 + $0x264] sm:$0xf0]  ;;  %v5912_v25 = vld [vmem:[#allocation2 + $0x294] sm:$0xf] }
  0x5b   : > { %1335 = vmatpush.bf16.msrb.mxu2 %v4619_v10  ;;  %v4620_v43 = vld [vmem:[#allocation2 + $0x298] sm:$0xf0]  ;;  %v5936_v46 = vld [vmem:[#allocation2 + $0x354] sm:$0xf]  ;;  %v4699_v48 = vor.u32 %v5933_v41, %v4698_v40  ;;  %v6393_v50 = vld [vmem:[%s6287_s21 + $0xa0] sm:$0xff]  ;;  %v4595_v51 = vor.u32 %v5907_v42, %v4594_v62 }
  0x5c   : > { %v4716_v47 = vld [vmem:[#allocation2 + $0x358] sm:$0xf0]  ;;  %v6390_v49 = vld [vmem:[%s6287_s21 + $0x70] sm:$0xff]  ;;  %v4623_v52 = vor.u32 %v5912_v25, %v4620_v43  ;;  %v5910_v55 = vld [vmem:[#allocation2 + $0x284] sm:$0xf] }
  0x5d   : > { %955 = vmatpush.bf16.msra.mxu1 %v4539_v45  ;;  %1388 = vmatpush.bf16.msrb.mxu3 %v4655_v57  ;;  %v4507_v45 = vor.u32 %v5846_v36, %v4504_v37  ;;  %v4719_v53 = vor.u32 %v5936_v46, %v4716_v47  ;;  %v4612_v56 = vld [vmem:[#allocation2 + $0x288] sm:$0xf0]  ;;  %v4690_v57 = vld [vmem:[#allocation2 + $0x320] sm:$0xf]  ;;  %v6397_v58 = vpack.c.bf16 %v6393_v50, %v6390_v49  ;;  %v5931_v59 = vld [vmem:[#allocation2 + $0x324] sm:$0xf0] }
  0x5e   : > { %939 = vmatpush.bf16.msra.mxu0 %v4451_v2  ;;  %4588 = vmatmul.msk.bf16.vlgmr.msra.gmra.mxu2 %vm548_vm2, %v6374_v4  ;;  %v5934_v60 = vld [vmem:[#allocation2 + $0x344] sm:$0xf]  ;;  %v4615_v1 = vor.u32 %v5910_v55, %v4612_v56  ;;  %v5908_v2 = vld [vmem:[#allocation2 + $0x274] sm:$0xf]  ;;  %v4691_v6 = vor.u32 %v5931_v59, %v4690_v57  ;;  %v4682_v7 = vld [vmem:[#allocation2 + $0x310] sm:$0xf] }
  0x5f   : > { %4435 = vmatmul.msk.bf16.gmra.mxu0 %vm548_vm2, %v6312_v3  ;;  %v4631_v3 = vor.u32 %v5914_v34, %v4628_v35  ;;  %1336 = vmatpush.bf16.msrb.mxu2 %v4611_v29  ;;  %v990_v5 = vld [vmem:[%s6287_s21] sm:$0xfc]  ;;  %v4604_v10 = vld [vmem:[#allocation2 + $0x278] sm:$0xf0]  ;;  %v5929_v11 = vld [vmem:[#allocation2 + $0x314] sm:$0xf0] }
  0x60   : > { %889 = vmatmul.bf16.gmra.mxu1 %v6377_v13  ;;  %908 = vmatmul.bf16.gmra.mxu3 %v6381_v14  ;;  %v5932_v12 = vld [vmem:[#allocation2 + $0x334] sm:$0xf]  ;;  %v4700_v15 = vld [vmem:[#allocation2 + $0x338] sm:$0xf0]  ;;  %v993_v16 = vld [vmem:[%s6287_s21 + $0x18] sm:$0x3]  ;;  %v4607_v17 = vor.u32 %v5908_v2, %v4604_v10  ;;  %v4683_v24 = vor.u32 %v5929_v11, %v4682_v7 }
  0x61   : > { %956 = vmatpush.bf16.msra.mxu1 %v4531_v0  ;;  %1389 = vmatpush.bf16.msrb.mxu3 %v4647_v8  ;;  %v4708_v0 = vld [vmem:[#allocation2 + $0x348] sm:$0xf0]  ;;  %v1038_v22 = vrot.slane %v990_v5, 2  ;;  %v4674_v26 = vld [vmem:[#allocation2 + $0x300] sm:$0xf] }
  0x62   : > { %940 = vmatpush.bf16.msra.mxu0 %v4443_v21  ;;  %v4711_v8 = vor.u32 %v5934_v60, %v4708_v0  ;;  %v999_v21 = vld [vmem:[%s6287_s21 + $0x48] sm:$0x3]  ;;  %v5930_v29 = vld [vmem:[#allocation2 + $0x324] sm:$0xf]  ;;  %v4596_v31 = vld [vmem:[#allocation2 + $0x268] sm:$0xf0] }
  0x63   : > { %1337 = vmatpush.bf16.msrb.mxu2 %v4603_v39  ;;  %v5906_v30 = vld [vmem:[#allocation2 + $0x264] sm:$0xf]  ;;  %v4882_v34 = vld [vmem:[#allocation2 + $0x480] sm:$0xf]  ;;  %v4666_v35 = vld [vmem:[#allocation2 + $0x2f0] sm:$0xf] }
  0x64   : > { %v4599_v33 = vor.u32 %v5906_v30, %v4596_v31  ;;  %v5925_v36 = vld [vmem:[#allocation2 + $0x2f4] sm:$0xf0]  ;;  %v6416_v62 = vld [vmem:[%s6287_s21 + $0x90] sm:$0xfc]  ;;  %v4684_v41 = vld [vmem:[#allocation2 + $0x318] sm:$0xf0] }
  0x65   : > { %957 = vmatpush.bf16.msra.mxu1 %v4523_v20  ;;  %1390 = vmatpush.bf16.msrb.mxu3 %v4639_v28  ;;  %v996_v20 = vld [vmem:[%s6287_s21 + $0x30] sm:$0xfc]  ;;  %v4703_v28 = vor.u32 %v5932_v12, %v4700_v15  ;;  %v6413_v39 = vld [vmem:[%s6287_s21 + $0x78] sm:$0x3]  ;;  %v5942_v46 = vld [vmem:[#allocation2 + $0x384] sm:$0xf] }
  0x66   : > { %1350 = vmatpush.bf16.msrb.mxu0 %v4715_v27  ;;  %v1047_v32 = vrot.slane %v996_v20, 2  ;;  %v5928_v40 = vld [vmem:[#allocation2 + $0x314] sm:$0xf]  ;;  %v4740_v47 = vld [vmem:[#allocation2 + $0x388] sm:$0x30]  ;;  %v1065_v10 = vrot.slane %v6416_v62, 2 }
  0x67   : > { %1338 = vmatpush.bf16.msrb.mxu2 %v4595_v51  ;;  %v4874_v51 = vld [vmem:[#allocation2 + $0x470] sm:$0xf]  ;;  %v5923_v55 = vld [vmem:[#allocation2 + $0x2e4] sm:$0xf0]  ;;  %v4687_v56 = vor.u32 %v5928_v40, %v4684_v41  ;;  %v6427_v59 = vld [vmem:[%s6287_s21 + $0x20] sm:$0x3] }
  0x68   : > { %v6424_v57 = vld [vmem:[%s6287_s21 + $0x8] sm:$0xfc]  ;;  %v5926_v2 = vld [vmem:[#allocation2 + $0x304] sm:$0xf]  ;;  %v6438_v11 = vld [vmem:[%s6287_s21 + $0x50] sm:$0x3] }
  0x69   : > { %958 = vmatpush.bf16.msra.mxu1 %v4515_v23  ;;  %1391 = vmatpush.bf16.msrb.mxu3 %v4631_v3  ;;  %v6410_v3 = vld [vmem:[%s6287_s21 + $0x60] sm:$0xfc]  ;;  %v4676_v5 = vld [vmem:[#allocation2 + $0x308] sm:$0xf0]  ;;  %v1041_v15 = vrot.slane %v6424_v57, 2 }
  0x6a   : > { %1351 = vmatpush.bf16.msrb.mxu0 %v4707_v38  ;;  %v1056_v7 = vrot.slane %v6410_v3, 2  ;;  %v1003_v31 = vld [vmem:[%s6287_s21 + $0x68] sm:$0xfc]  ;;  %v4730_v40 = vld [vmem:[#allocation2 + $0x370] sm:$0xf] }
  0x6b   : > { %1407 = vmatpush.bf16.msra.mxu2 %v4719_v53  ;;  %v4667_v53 = vor.u32 %v5925_v36, %v4666_v35  ;;  %v4858_v35 = vld [vmem:[#allocation2 + $0x450] sm:$0xf]  ;;  %v5969_v36 = vld [vmem:[#allocation2 + $0x454] sm:$0xf0]  ;;  %v5922_v41 = vld [vmem:[#allocation2 + $0x2e4] sm:$0xf] }
  0x6c   : > { %v4820_v57 = vld [vmem:[#allocation2 + $0x408] sm:$0xf0] }
  0x6d   : > { %959 = vmatpush.bf16.msra.mxu1 %v4507_v45  ;;  %1392 = vmatpush.bf16.msrb.mxu3 %v4623_v52  ;;  %v6421_v45 = vld [vmem:[%s6287_s21 + $0xa8] sm:$0x3]  ;;  %v5973_v52 = vld [vmem:[#allocation2 + $0x474] sm:$0xf0] }
  0x6e   : > { %1352 = vmatpush.bf16.msrb.mxu0 %v4699_v48  ;;  %4589 = vmatmul.msk.bf16.gmra.mxu2 %vm548_vm2, %v6397_v58  ;;  %v4875_v60 = vor.u32 %v5973_v52, %v4874_v51  ;;  %v1066_v12 = vrot.slane %v6421_v45, 2  ;;  %v4850_v52 = vld [vmem:[#allocation2 + $0x440] sm:$0xf] }
  0x6f   : > { %941 = vmatmul.bf16.vlgmr.msra.gmra.mxu0 %v6349_v18  ;;  %1408 = vmatpush.bf16.msra.mxu2 %v4711_v8  ;;  %v4692_v18 = vld [vmem:[#allocation2 + $0x328] sm:$0xf0]  ;;  %v1057_v8 = vrot.slane %v6413_v39, 2  ;;  %v1012_v39 = vld [vmem:[%s6287_s21 + $0xb0] sm:$0x3] }
  0x70   : > { %960 = vmatmul.bf16.vlgmr.msra.gmra.mxu1 %v6352_v19  ;;  %4590 = vmatmul.msk.bf16.vlgmr.msra.gmra.mxu3 %vm548_vm2, %v6374_v4  ;;  %v1039_v19 = vrot.slane %v993_v16, 2  ;;  %v1048_v4 = vrot.slane %v999_v21, 2  ;;  %v4695_v37 = vor.u32 %v5930_v29, %v4692_v18  ;;  %v4866_v16 = vld [vmem:[#allocation2 + $0x460] sm:$0xf]  ;;  %v1042_v21 = vrot.slane %v6427_v59, 2 }
  0x71   : > { %6172 = vmatpush.bf16.msrb.mxu1 %v4715_v27  ;;  %1393 = vmatpush.bf16.msrb.mxu3 %v4615_v1  ;;  %v5927_v27 = vld [vmem:[#allocation2 + $0x304] sm:$0xf0]  ;;  %v6432_v1 = vld [vmem:[%s6287_s21 + $0x38] sm:$0xfc]  ;;  %v5924_v29 = vld [vmem:[#allocation2 + $0x2f4] sm:$0xf] }
  0x72   : > { %1353 = vmatpush.bf16.msrb.mxu0 %v4691_v6  ;;  %v4675_v23 = vor.u32 %v5927_v27, %v4674_v26  ;;  %v1040_v25 = vsel %vm555_vm0, %v1038_v22, %v1039_v19  ;;  %v1049_v43 = vsel %vm555_vm0, %v1047_v32, %v1048_v4  ;;  %v1050_v22 = vrot.slane %v6432_v1, 2  ;;  %v4738_v26 = vld [vmem:[#allocation2 + $0x380] sm:$0xf]  ;;  %v5943_v27 = vld [vmem:[#allocation2 + $0x384] sm:$0x30] }
  0x73   : > { %1409 = vmatpush.bf16.msra.mxu2 %v4703_v28  ;;  %v6429_v0 = vpack.c.bf16 %v1049_v43, %v1040_v25  ;;  %v1051_v28 = vrot.slane %v6438_v11, 2  ;;  %v4668_v18 = vld [vmem:[#allocation2 + $0x2f8] sm:$0xf0]  ;;  %v5940_v19 = vld [vmem:[#allocation2 + $0x374] sm:$0xf]  ;;  %v1058_v1 = vsel %vm555_vm0, %v1056_v7, %v1057_v8  ;;  %v1043_v3 = vsel %vm555_vm0, %v1041_v15, %v1042_v21 }
  0x74   : > { %v4732_v32 = vld [vmem:[#allocation2 + $0x378] sm:$0xf0]  ;;  %v4906_v4 = vld [vmem:[#allocation2 + $0x4b0] sm:$0xf]  ;;  %v5938_v43 = vld [vmem:[#allocation2 + $0x364] sm:$0xf] }
  0x75   : > { %6173 = vmatpush.bf16.msrb.mxu1 %v4707_v38  ;;  %1394 = vmatpush.bf16.msrb.mxu3 %v4607_v17  ;;  %v5975_v38 = vld [vmem:[#allocation2 + $0x484] sm:$0xf0]  ;;  %v4735_v25 = vor.u32 %v5940_v19, %v4732_v32  ;;  %v1052_v7 = vsel %vm555_vm0, %v1050_v22, %v1051_v28  ;;  %v4722_v8 = vld [vmem:[#allocation2 + $0x360] sm:$0xf]  ;;  %v5965_v28 = vld [vmem:[#allocation2 + $0x434] sm:$0xf0] }
  0x76   : > { %1354 = vmatpush.bf16.msrb.mxu0 %v4683_v24  ;;  %v4883_v42 = vor.u32 %v5975_v38, %v4882_v34  ;;  %v5971_v17 = vld [vmem:[#allocation2 + $0x464] sm:$0xf0]  ;;  %v4739_v34 = vor.u32 %v5943_v27, %v4738_v26  ;;  %v1009_v38 = vld [vmem:[%s6287_s21 + $0x98] sm:$0xfc]  ;;  %v4842_v26 = vld [vmem:[#allocation2 + $0x430] sm:$0xf]  ;;  %v6473_v15 = vpack.c.bf16 %v1052_v7, %v1043_v3 }
  0x77   : > { %1410 = vmatpush.bf16.msra.mxu2 %v4695_v37  ;;  %v1006_v37 = vld [vmem:[%s6287_s21 + $0x80] sm:$0x3]  ;;  %v1068_v59 = vrot.slane %v1009_v38, 2  ;;  %v5979_v27 = vld [vmem:[#allocation2 + $0x4a4] sm:$0xf0] }
  0x78   : > { %v1326_v51 = vsel %vm555_vm0, %v4739_v34, 0  ;;  %v4898_v22 = vld [vmem:[#allocation2 + $0x4a0] sm:$0xf]  ;;  %v4810_v19 = vld [vmem:[#allocation2 + $0x3f0] sm:$0xf] }
  0x79   : > { %6174 = vmatpush.bf16.msrb.mxu1 %v4699_v48  ;;  %1395 = vmatpush.bf16.msrb.mxu3 %v4599_v33  ;;  %v4658_v48 = vld [vmem:[#allocation2 + $0x2e0] sm:$0xf]  ;;  %v4867_v33 = vor.u32 %v5971_v17, %v4866_v16  ;;  %v5939_v17 = vld [vmem:[#allocation2 + $0x364] sm:$0xf0]  ;;  %v5957_v32 = vld [vmem:[#allocation2 + $0x3f4] sm:$0xf0]  ;;  %v4899_v34 = vor.u32 %v5979_v27, %v4898_v22 }
  0x7a   : > { %1355 = vmatpush.bf16.msrb.mxu0 %v4675_v23  ;;  %v4659_v20 = vor.u32 %v5923_v55, %v4658_v48  ;;  %v1059_v48 = vrot.slane %v1003_v31, 2  ;;  %v5967_v55 = vld [vmem:[#allocation2 + $0x444] sm:$0xf0]  ;;  %v4723_v21 = vor.u32 %v5939_v17, %v4722_v8  ;;  %v998_v38 = vld [vmem:[%s6287_s21 + $0x40] sm:$0xfc] }
  0x7b   : > { %1411 = vmatpush.bf16.msra.mxu2 %v4687_v56  ;;  %v1060_v56 = vrot.slane %v1006_v37, 2  ;;  %v4851_v16 = vor.u32 %v5967_v55, %v4850_v52  ;;  %v995_v37 = vld [vmem:[%s6287_s21 + $0x28] sm:$0x3]  ;;  %v1053_v52 = vrot.slane %v998_v38, 2  ;;  %v4786_v8 = vld [vmem:[#allocation2 + $0x3c0] sm:$0xf] }
  0x7c   : > { %v5951_v17 = vld [vmem:[#allocation2 + $0x3c4] sm:$0xf0]  ;;  %v5949_v22 = vld [vmem:[#allocation2 + $0x3b4] sm:$0xf0]  ;;  %v5948_v27 = vld [vmem:[#allocation2 + $0x3b4] sm:$0xf] }
  0x7d   : > { %6175 = vmatpush.bf16.msrb.mxu1 %v4691_v6  ;;  %1730 = vmatpush.bf16.msra.mxu3 %v4883_v42  ;;  %v4743_v6 = vor.u32 %v5942_v46, %v4740_v47  ;;  %v4660_v42 = vld [vmem:[#allocation2 + $0x2e8] sm:$0xf0]  ;;  %v4859_v47 = vor.u32 %v5969_v36, %v4858_v35  ;;  %v1061_v45 = vsel %vm555_vm0, %v1059_v48, %v1060_v56  ;;  %v4834_v35 = vld [vmem:[#allocation2 + $0x420] sm:$0xf]  ;;  %v5963_v36 = vld [vmem:[#allocation2 + $0x424] sm:$0xf0] }
  0x7e   : > { %1356 = vmatpush.bf16.msrb.mxu0 %v4667_v53  ;;  %1339 = vmatmul.bf16.vlgmr.msrb.gmra.mxu2 %v6429_v0  ;;  %v4724_v46 = vld [vmem:[#allocation2 + $0x368] sm:$0xf0]  ;;  %v4890_v48 = vld [vmem:[#allocation2 + $0x490] sm:$0xf]  ;;  %v4770_v38 = vld [vmem:[#allocation2 + $0x3a0] sm:$0xf] }
  0x7f   : > { %v1329_v30 = vsel %vm555_vm0, %v4743_v6, 0  ;;  %946 = vmatmul.bf16.gmra.mxu0 %v6377_v13  ;;  %v4671_v13 = vor.u32 %v5924_v29, %v4668_v18  ;;  %v992_v18 = vld [vmem:[%s6287_s21 + $0x10] sm:$0xfc] }
  0x80   : > { %965 = vmatmul.bf16.gmra.mxu1 %v6381_v14  ;;  %4591 = vmatmul.msk.bf16.gmra.mxu3 %vm548_vm2, %v6397_v58  ;;  %v5941_v14 = vld [vmem:[#allocation2 + $0x374] sm:$0xf0] }
  0x81   : > { %6176 = vmatpush.bf16.msrb.mxu1 %v4683_v24  ;;  %1731 = vmatpush.bf16.msra.mxu3 %v4875_v60  ;;  %v4679_v24 = vor.u32 %v5926_v2, %v4676_v5  ;;  %v1069_v60 = vrot.slane %v1012_v39, 2  ;;  %v4727_v2 = vor.u32 %v5938_v43, %v4724_v46  ;;  %v1067_v5 = vsel %vm555_vm0, %v1065_v10, %v1066_v12  ;;  %v4818_v10 = vld [vmem:[#allocation2 + $0x400] sm:$0xf]  ;;  %v5959_v12 = vld [vmem:[#allocation2 + $0x404] sm:$0xf0] }
  0x82   : > { %1357 = vmatpush.bf16.msrb.mxu0 %v4659_v20  ;;  %v4731_v6 = vor.u32 %v5941_v14, %v4730_v40  ;;  %v1001_v39 = vld [vmem:[%s6287_s21 + $0x58] sm:$0x3]  ;;  %v4811_v40 = vor.u32 %v5957_v32, %v4810_v19  ;;  %v5954_v14 = vld [vmem:[#allocation2 + $0x3e4] sm:$0xf]  ;;  %v4804_v43 = vld [vmem:[#allocation2 + $0x3e8] sm:$0xf0]  ;;  %v4835_v46 = vor.u32 %v5963_v36, %v4834_v35 }
  0x83   : > { %1412 = vmatpush.bf16.msra.mxu2 %v4679_v24  ;;  %v1070_v62 = vsel %vm555_vm0, %v1068_v59, %v1069_v60  ;;  %v5958_v24 = vld [vmem:[#allocation2 + $0x404] sm:$0xf]  ;;  %v1054_v55 = vrot.slane %v1001_v39, 2  ;;  %v4807_v60 = vor.u32 %v5954_v14, %v4804_v43  ;;  %v1004_v19 = vld [vmem:[%s6287_s21 + $0x70] sm:$0xfc] }
  0x84   : > { %v6475_v29 = vpack.c.bf16 %v1070_v62, %v1061_v45  ;;  %v4823_v31 = vor.u32 %v5958_v24, %v4820_v57  ;;  %v5950_v45 = vld [vmem:[#allocation2 + $0x3c4] sm:$0xf]  ;;  %v4788_v62 = vld [vmem:[#allocation2 + $0x3c8] sm:$0xf0]  ;;  %v5997_v24 = vld [vmem:[#allocation2 + $0x534] sm:$0xf0]  ;;  %v4787_v57 = vor.u32 %v5951_v17, %v4786_v8 }
  0x85   : > { %6177 = vmatpush.bf16.msrb.mxu1 %v4675_v23  ;;  %v5981_v23 = vld [vmem:[#allocation2 + $0x4b4] sm:$0x30]  ;;  %1732 = vmatpush.bf16.msra.mxu3 %v4867_v33  ;;  %v4812_v33 = vld [vmem:[#allocation2 + $0x3f8] sm:$0xf0]  ;;  %v1007_v32 = vld [vmem:[%s6287_s21 + $0x88] sm:$0x3] }
  0x86   : > { %1431 = vmatpush.bf16.msra.mxu0 %v1329_v30  ;;  %v4907_v58 = vor.u32 %v5981_v23, %v4906_v4  ;;  %v4819_v30 = vor.u32 %v5959_v12, %v4818_v10  ;;  %v5956_v4 = vld [vmem:[#allocation2 + $0x3f4] sm:$0xf]  ;;  %v4843_v23 = vor.u32 %v5965_v28, %v4842_v26  ;;  %v4998_v12 = vld [vmem:[#allocation2 + $0x530] sm:$0xf]  ;;  %v4791_v26 = vor.u32 %v5950_v45, %v4788_v62  ;;  %v1013_v36 = vld [vmem:[%s6287_s21 + $0xb8] sm:$0x3] }
  0x87   : > { %1413 = vmatpush.bf16.msra.mxu2 %v4671_v13  ;;  %v1044_v13 = vrot.slane %v992_v18, 2  ;;  %v4999_v28 = vor.u32 %v5997_v24, %v4998_v12  ;;  %v4780_v18 = vld [vmem:[#allocation2 + $0x3b8] sm:$0xf0]  ;;  %v1072_v43 = vrot.slane %v1013_v36, 2  ;;  %v6013_v17 = vld [vmem:[#allocation2 + $0x5b4] sm:$0xf0] }
  0x88   : > { %v1706_v11 = vsel %vm555_vm0, %v4907_v58, 0  ;;  %v4826_v58 = vld [vmem:[#allocation2 + $0x410] sm:$0xf]  ;;  %v5978_v45 = vld [vmem:[#allocation2 + $0x4a4] sm:$0xf] }
  0x89   : > { %6178 = vmatpush.bf16.msrb.mxu1 %v4667_v53  ;;  %v4663_v53 = vor.u32 %v5922_v41, %v4660_v42  ;;  %1733 = vmatpush.bf16.msra.mxu3 %v4859_v47  ;;  %v4815_v41 = vor.u32 %v5956_v4, %v4812_v33  ;;  %v4802_v42 = vld [vmem:[#allocation2 + $0x3e0] sm:$0xf]  ;;  %v5961_v47 = vld [vmem:[#allocation2 + $0x414] sm:$0xf0]  ;;  %v4900_v62 = vld [vmem:[#allocation2 + $0x4a8] sm:$0xf0] }
  0x8a   : > { %1432 = vmatpush.bf16.msra.mxu0 %v4735_v25  ;;  %v5955_v25 = vld [vmem:[#allocation2 + $0x3e4] sm:$0xf0]  ;;  %v1010_v33 = vld [vmem:[%s6287_s21 + $0xa0] sm:$0xfc]  ;;  %v5972_v12 = vld [vmem:[#allocation2 + $0x474] sm:$0xf] }
  0x8b   : > { %1414 = vmatpush.bf16.msra.mxu2 %v4663_v53  ;;  %v4803_v59 = vor.u32 %v5955_v25, %v4802_v42  ;;  %v4794_v53 = vld [vmem:[#allocation2 + $0x3d0] sm:$0xf]  ;;  %v4772_v42 = vld [vmem:[#allocation2 + $0x3a8] sm:$0xf0]  ;;  %v1062_v25 = vrot.slane %v1004_v19, 2  ;;  %v1071_v14 = vrot.slane %v1010_v33, 2 }
  0x8c   : > { %v4876_v24 = vld [vmem:[#allocation2 + $0x478] sm:$0xf0]  ;;  %v5970_v33 = vld [vmem:[#allocation2 + $0x464] sm:$0xf] }
  0x8d   : > { %6179 = vmatpush.bf16.msrb.mxu1 %v4659_v20  ;;  %v6471_v20 = vpack.c.bf16 %v1067_v5, %v1058_v1  ;;  %1734 = vmatpush.bf16.msra.mxu3 %v4851_v16  ;;  %v5953_v1 = vld [vmem:[#allocation2 + $0x3d4] sm:$0xf0]  ;;  %v4796_v5 = vld [vmem:[#allocation2 + $0x3d8] sm:$0xf0]  ;;  %v1055_v16 = vsel %vm555_vm0, %v1053_v52, %v1054_v55  ;;  %v5944_v55 = vld [vmem:[#allocation2 + $0x394] sm:$0xf]  ;;  %v4879_v19 = vor.u32 %v5972_v12, %v4876_v24 }
  0x8e   : > { %1433 = vmatpush.bf16.msra.mxu0 %v4727_v2  ;;  %v5952_v2 = vld [vmem:[#allocation2 + $0x3d4] sm:$0xf]  ;;  %v4795_v3 = vor.u32 %v5953_v1, %v4794_v53  ;;  %v5945_v52 = vld [vmem:[#allocation2 + $0x394] sm:$0xf0]  ;;  %v1073_v1 = vsel %vm555_vm0, %v1071_v14, %v1072_v43  ;;  %v4950_v14 = vld [vmem:[#allocation2 + $0x4d0] sm:$0xf] }
  0x8f   : > { %1754 = vmatpush.bf16.msrb.mxu2 %v1706_v11  ;;  %1358 = vmatmul.bf16.vlgmr.msrb.gmra.mxu0 %v6473_v15  ;;  %v4799_v7 = vor.u32 %v5952_v2, %v4796_v5  ;;  %v4974_v2 = vld [vmem:[#allocation2 + $0x500] sm:$0xf]  ;;  %v5991_v5 = vld [vmem:[#allocation2 + $0x504] sm:$0xf0]  ;;  %v5985_v43 = vld [vmem:[#allocation2 + $0x4d4] sm:$0xf0] }
  0x90   : > { %1344 = vmatmul.bf16.gmra.mxu2 %v6471_v20  ;;  %1363 = vmatmul.bf16.vlgmr.msrb.gmra.mxu1 %v6475_v29 }
  0x91   : > { %1374 = vmatpush.bf16.msra.mxu1 %v1326_v51  ;;  %1396 = vmatmul.bf16.vlgmr.msrb.gmra.mxu3 %v6429_v0  ;;  %v5977_v51 = vld [vmem:[#allocation2 + $0x494] sm:$0xf0]  ;;  %v1045_v0 = vrot.slane %v995_v37, 2  ;;  %v4783_v37 = vor.u32 %v5948_v27, %v4780_v18 }
  0x92   : > { %1768 = vmatpush.bf16.msrb.mxu0 %v4823_v31  ;;  %1735 = vmatpush.bf16.msra.mxu3 %v4843_v23  ;;  %v4891_v56 = vor.u32 %v5977_v51, %v4890_v48  ;;  %v4908_v31 = vld [vmem:[#allocation2 + $0x4b8] sm:$0x30]  ;;  %v5995_v23 = vld [vmem:[#allocation2 + $0x524] sm:$0xf0]  ;;  %v4762_v51 = vld [vmem:[#allocation2 + $0x390] sm:$0xf] }
  0x93   : > { %1755 = vmatpush.bf16.msrb.mxu2 %v4899_v34  ;;  %v1046_v11 = vsel %vm555_vm0, %v1044_v13, %v1045_v0  ;;  %v4990_v34 = vld [vmem:[#allocation2 + $0x520] sm:$0xf]  ;;  %v5989_v27 = vld [vmem:[#allocation2 + $0x4f4] sm:$0xf0] }
  0x94   : > { %v1088_v10 = vpack.c.bf16 %v1055_v16, %v1046_v11  ;;  %v4991_v13 = vor.u32 %v5995_v23, %v4990_v34  ;;  %v4763_v11 = vor.u32 %v5945_v52, %v4762_v51  ;;  %v4958_v34 = vld [vmem:[#allocation2 + $0x4e0] sm:$0xf]  ;;  %v5987_v23 = vld [vmem:[#allocation2 + $0x4e4] sm:$0xf0]  ;;  %v5000_v51 = vld [vmem:[#allocation2 + $0x538] sm:$0xf0] }
  0x95   : > { %1375 = vmatpush.bf16.msra.mxu1 %v4731_v6  ;;  %v4827_v6 = vor.u32 %v5961_v47, %v4826_v58  ;;  %v5993_v58 = vld [vmem:[#allocation2 + $0x514] sm:$0xf0] }
  0x96   : > { %1769 = vmatpush.bf16.msrb.mxu0 %v4815_v41  ;;  %1736 = vmatpush.bf16.msra.mxu3 %v4835_v46  ;;  %v5946_v41 = vld [vmem:[#allocation2 + $0x3a4] sm:$0xf]  ;;  %v4982_v46 = vld [vmem:[#allocation2 + $0x510] sm:$0xf] }
  0x97   : > { %1756 = vmatpush.bf16.msrb.mxu2 %v4891_v56  ;;  %v4775_v48 = vor.u32 %v5946_v41, %v4772_v42  ;;  %v4983_v0 = vor.u32 %v5993_v58, %v4982_v46  ;;  %v4764_v56 = vld [vmem:[#allocation2 + $0x398] sm:$0xf0] }
  0x98   : > { %v4767_v16 = vor.u32 %v5944_v55, %v4764_v56  ;;  %v5038_v55 = vld [vmem:[#allocation2 + $0x580] sm:$0xf]  ;;  %v6007_v56 = vld [vmem:[#allocation2 + $0x584] sm:$0xf0] }
  0x99   : > { %1376 = vmatpush.bf16.msra.mxu1 %v4723_v21  ;;  %v4778_v21 = vld [vmem:[#allocation2 + $0x3b0] sm:$0xf] }
  0x9a   : > { %1770 = vmatpush.bf16.msrb.mxu0 %v4807_v60  ;;  %1737 = vmatpush.bf16.msra.mxu3 %v4827_v6  ;;  %v4884_v60 = vld [vmem:[#allocation2 + $0x488] sm:$0xf0] }
  0x9d   : > { %1711 = vmatpush.bf16.msrb.mxu1 %v4819_v30  ;;  %v5980_v30 = vld [vmem:[#allocation2 + $0x4b4] sm:$0xf] }
  0x9e   : > { %1771 = vmatpush.bf16.msrb.mxu0 %v4799_v7  ;;  %v4911_v4 = vor.u32 %v5980_v30, %v4908_v31  ;;  %v4975_v7 = vor.u32 %v5991_v5, %v4974_v2  ;;  %v4942_v2 = vld [vmem:[#allocation2 + $0x4c0] sm:$0xf]  ;;  %v5983_v5 = vld [vmem:[#allocation2 + $0x4c4] sm:$0xf0] }
  0x9f   : > { %4746 = vmatmul.msk.bf16.vlgmr.msra.gmra.mxu0 %vm548_vm2, %v1088_v10 }
  0xa0   : > { %1415 = vmatmul.bf16.vlgmr.msra.gmra.mxu2 %v6473_v15  ;;  %4744 = vmatmul.msk.bf16.vlgmr.msra.gmra.mxu1 %vm548_vm2, %v1088_v10  ;;  %v4779_v15 = vor.u32 %v5949_v22, %v4778_v21  ;;  %v1709_v39 = vsel %vm555_vm0, %v4911_v4, 0  ;;  %v6504_v21 = vpack.c.bf16 %v6368_v61, %v6346_v9  ;;  %v4966_v22 = vld [vmem:[#allocation2 + $0x4f0] sm:$0xf]  ;;  %v6011_v4 = vld [vmem:[#allocation2 + $0x5a4] sm:$0xf0] }
  0xa1   : > { %1712 = vmatpush.bf16.msrb.mxu1 %v4811_v40  ;;  %2174 = vmatpush.bf16.msra.mxu2 %v4999_v28  ;;  %v6494_v35 = vpop.f32.mrf.mxu2  ;;  %v5947_v40 = vld [vmem:[#allocation2 + $0x3a4] sm:$0xf0]  ;;  %v4967_v30 = vor.u32 %v5989_v27, %v4966_v22  ;;  %v4868_v9 = vld [vmem:[#allocation2 + $0x468] sm:$0xf0]  ;;  %v5964_v22 = vld [vmem:[#allocation2 + $0x434] sm:$0xf] }
  0xa2   : > { %1401 = vmatmul.bf16.gmra.mxu3 %v6471_v20  ;;  %1772 = vmatpush.bf16.msrb.mxu0 %v4791_v26  ;;  %v1063_v20 = vrot.slane %v1007_v32, 2  ;;  %v4771_v47 = vor.u32 %v5947_v40, %v4770_v38  ;;  %v5054_v32 = vld [vmem:[#allocation2 + $0x5a0] sm:$0xf]  ;;  %v4892_v38 = vld [vmem:[#allocation2 + $0x498] sm:$0xf0] }
  0xa3   : > { %1811 = vmatpush.bf16.msrb.mxu3 %v1709_v39  ;;  %v4871_v39 = vor.u32 %v5970_v33, %v4868_v9  ;;  %v6009_v40 = vld [vmem:[#allocation2 + $0x594] sm:$0xf0]  ;;  %v4844_v27 = vld [vmem:[#allocation2 + $0x438] sm:$0xf0]  ;;  %v6003_v33 = vld [vmem:[#allocation2 + $0x564] sm:$0xf0] }
  0xa4   : > { %v1064_v53 = vsel %vm555_vm0, %v1062_v25, %v1063_v20  ;;  %v5968_v25 = vld [vmem:[#allocation2 + $0x454] sm:$0xf] }
  0xa5   : > { %1713 = vmatpush.bf16.msrb.mxu1 %v4803_v59  ;;  %2175 = vmatpush.bf16.msra.mxu2 %v4991_v13  ;;  %v5974_v59 = vld [vmem:[#allocation2 + $0x484] sm:$0xf]  ;;  %v1091_v10 = vpack.c.bf16 %v1073_v1, %v1064_v53  ;;  %v5046_v13 = vld [vmem:[#allocation2 + $0x590] sm:$0xf]  ;;  %v4852_v53 = vld [vmem:[#allocation2 + $0x448] sm:$0xf0] }
  0xa6   : > { %1773 = vmatpush.bf16.msrb.mxu0 %v4783_v37  ;;  %v4887_v8 = vor.u32 %v5974_v59, %v4884_v60  ;;  %v5976_v37 = vld [vmem:[#allocation2 + $0x494] sm:$0xf]  ;;  %v5047_v58 = vor.u32 %v6009_v40, %v5046_v13  ;;  %v5966_v60 = vld [vmem:[#allocation2 + $0x444] sm:$0xf] }
  0xa7   : > { %v4895_v41 = vor.u32 %v5976_v37, %v4892_v38  ;;  %v6010_v37 = vld [vmem:[#allocation2 + $0x5a4] sm:$0xf]  ;;  %v5056_v38 = vld [vmem:[#allocation2 + $0x5a8] sm:$0xf0] }
  0xa8   : > { %v5059_v40 = vor.u32 %v6010_v37, %v5056_v38 }
  0xa9   : > { %1714 = vmatpush.bf16.msrb.mxu1 %v4795_v3  ;;  %2176 = vmatpush.bf16.msra.mxu2 %v4983_v0  ;;  %v6500_v6 = vpop.f32.mrf.mxu2  ;;  %v5062_v3 = vld [vmem:[#allocation2 + $0x5b0] sm:$0xf] }
  0xaa   : > { %1774 = vmatpush.bf16.msrb.mxu0 %v4775_v48  ;;  %v5063_v18 = vor.u32 %v6013_v17, %v5062_v3  ;;  %v5996_v48 = vld [vmem:[#allocation2 + $0x534] sm:$0xf]  ;;  %v5039_v3 = vor.u32 %v6007_v56, %v5038_v55  ;;  %v4992_v17 = vld [vmem:[#allocation2 + $0x528] sm:$0xf0] }
  0xab   : > { %v5003_v59 = vor.u32 %v5996_v48, %v5000_v51  ;;  %v6008_v51 = vld [vmem:[#allocation2 + $0x594] sm:$0xf] }
  0xac   : > { %v571_v26 = vpop.f32.mrf.mxu0  ;;  %v4759_v56 = vld [vmem:[%s6287_s21 + $0xd0] sm:$0xff] }
  0xad   : > { %1715 = vmatpush.bf16.msrb.mxu1 %v4787_v57  ;;  %v4903_v57 = vor.u32 %v5978_v45, %v4900_v62  ;;  %2177 = vmatpush.bf16.msra.mxu2 %v4975_v7  ;;  %v590_v28 = vpop.f32.mrf.mxu1  ;;  %v4943_v7 = vor.u32 %v5983_v5, %v4942_v2  ;;  %v6525_v45 = vpack.c.bf16 %v6390_v49, %v6361_v44  ;;  %v5030_v62 = vld [vmem:[#allocation2 + $0x570] sm:$0xf]  ;;  %v6012_v49 = vld [vmem:[#allocation2 + $0x5b4] sm:$0xf]  ;;  %v4968_v2 = vld [vmem:[#allocation2 + $0x4f8] sm:$0xf0] }
  0xae   : > { %1775 = vmatpush.bf16.msrb.mxu0 %v4767_v16  ;;  %v591_v31 = vadd.f32 %v590_v28, %v571_v26  ;;  %v4758_v16 = vld [vmem:[%s6287_s21 + $0xc8] sm:$0xff] }
  0xaf   : > { %4747 = vmatmul.msk.bf16.gmra.mxu0 %vm548_vm2, %v1091_v10  ;;  %1812 = vmatpush.bf16.msrb.mxu3 %v4903_v57  ;;  %v6204_v57 = vld [vmem:[%s6287_s21 + $0x30] sm:$0xff] }
  0xb0   : > { %1420 = vmatmul.bf16.gmra.mxu2 %v6475_v29  ;;  %4745 = vmatmul.msk.bf16.gmra.mxu1 %vm548_vm2, %v1091_v10  ;;  %v6511_v61 = vadd.f32 %v6494_v35, %v591_v31  ;;  %v5055_v29 = vor.u32 %v6011_v4, %v5054_v32  ;;  %v4860_v35 = vld [vmem:[#allocation2 + $0x458] sm:$0xf0]  ;;  %v6005_v10 = vld [vmem:[#allocation2 + $0x574] sm:$0xf0]  ;;  %v1466_v26 = vpack.c.bf16 %v6364_v54, %v6204_v57  ;;  %v5022_v4 = vld [vmem:[#allocation2 + $0x560] sm:$0xf] }
  0xb1   : > { %1716 = vmatpush.bf16.msrb.mxu1 %v4779_v15  ;;  %v6513_v36 = vpop.f32.mrf.mxu2  ;;  %2178 = vmatpush.bf16.msra.mxu2 %v4967_v30  ;;  %v4959_v15 = vor.u32 %v5987_v23, %v4958_v34  ;;  %v4863_v52 = vor.u32 %v5968_v25, %v4860_v35  ;;  %v5031_v44 = vor.u32 %v6005_v10, %v5030_v62  ;;  %v5064_v31 = vld [vmem:[#allocation2 + $0x5b8] sm:$0xf0]  ;;  %v4836_v23 = vld [vmem:[#allocation2 + $0x428] sm:$0xf0]  ;;  %v4757_v62 = vld [vmem:[%s6287_s21 + $0xc0] sm:$0xff] }
  0xb2   : > { %1738 = vmatmul.bf16.vlgmr.msra.gmra.mxu3 %v6504_v21  ;;  %2193 = vmatpush.bf16.msra.mxu0 %v5063_v18  ;;  %v6532_v18 = vpack.c.bf16 %v4758_v16, %v6371_v63  ;;  %v4847_v54 = vor.u32 %v5964_v22, %v4844_v27  ;;  %v5067_v9 = vor.u32 %v6012_v49, %v5064_v31  ;;  %v4984_v34 = vld [vmem:[#allocation2 + $0x518] sm:$0xf0]  ;;  %v5962_v63 = vld [vmem:[#allocation2 + $0x424] sm:$0xf]  ;;  %v4976_v25 = vld [vmem:[#allocation2 + $0x508] sm:$0xf0] }
  0xb3   : > { %v6515_v42 = vpop.f32.mrf.mxu3  ;;  %1813 = vmatpush.bf16.msrb.mxu3 %v4895_v41  ;;  %v5023_v13 = vor.u32 %v6003_v33, %v5022_v4  ;;  %v5990_v41 = vld [vmem:[#allocation2 + $0x504] sm:$0xf]  ;;  %v5040_v27 = vld [vmem:[#allocation2 + $0x588] sm:$0xf0]  ;;  %v6559_v33 = vld [vmem:[%s6287_s21 + $0x30] sm:$0xfe] }
  0xb4   : > { %v573_v20 = vpop.f32.mrf.mxu0  ;;  %v6006_v22 = vld [vmem:[#allocation2 + $0x584] sm:$0xf] }
  0xb5   : > { %1717 = vmatpush.bf16.msrb.mxu1 %v4771_v47  ;;  %v592_v46 = vpop.f32.mrf.mxu1  ;;  %2179 = vmatpush.bf16.msra.mxu2 %v4959_v15  ;;  %v4951_v47 = vor.u32 %v5985_v43, %v4950_v14  ;;  %v5014_v14 = vld [vmem:[#allocation2 + $0x550] sm:$0xf]  ;;  %v6001_v43 = vld [vmem:[#allocation2 + $0x554] sm:$0xf0]  ;;  %v5043_v31 = vor.u32 %v6006_v22, %v5040_v27  ;;  %v5016_v22 = vld [vmem:[#allocation2 + $0x558] sm:$0xf0] }
  0xb6   : > { %2194 = vmatpush.bf16.msra.mxu0 %v5055_v29  ;;  %v593_v0 = vadd.f32 %v592_v46, %v573_v20  ;;  %v4839_v20 = vor.u32 %v5962_v63, %v4836_v23  ;;  %v4979_v46 = vor.u32 %v5990_v41, %v4976_v25  ;;  %v6566_v23 = vld [vmem:[%s6287_s21 + $0x60] sm:$0xfe]  ;;  %v4952_v41 = vld [vmem:[#allocation2 + $0x4d8] sm:$0xf0] }
  0xb7   : > { %2231 = vmatpush.bf16.msra.mxu3 %v5003_v59  ;;  %v5006_v59 = vld [vmem:[#allocation2 + $0x540] sm:$0xf] }
  0xb8   : > { %v6518_v1 = vadd.f32 %v6500_v6, %v593_v0  ;;  %v4855_v6 = vor.u32 %v5966_v60, %v4852_v53  ;;  %v5048_v0 = vld [vmem:[#allocation2 + $0x598] sm:$0xf0]  ;;  %v5999_v60 = vld [vmem:[#allocation2 + $0x544] sm:$0xf0]  ;;  %v5242_v27 = vld [vmem:[#allocation2 + $0x6e0] sm:$0xf] }
  0xb9   : > { %1718 = vmatpush.bf16.msrb.mxu1 %v4763_v11  ;;  %v6520_v11 = vpop.f32.mrf.mxu2  ;;  %2180 = vmatpush.bf16.msra.mxu2 %v4951_v47  ;;  %v4828_v47 = vld [vmem:[#allocation2 + $0x418] sm:$0xf0]  ;;  %v5051_v53 = vor.u32 %v6008_v51, %v5048_v0  ;;  %v5024_v51 = vld [vmem:[#allocation2 + $0x568] sm:$0xf0]  ;;  %v5982_v0 = vld [vmem:[#allocation2 + $0x4c4] sm:$0xf] }
  0xba   : > { %2195 = vmatpush.bf16.msra.mxu0 %v5047_v58  ;;  %v5960_v58 = vld [vmem:[#allocation2 + $0x414] sm:$0xf] }
  0xbb   : > { %v6527_v24 = vpop.f32.mrf.mxu3  ;;  %v4831_v16 = vor.u32 %v5960_v58, %v4828_v47  ;;  %v4923_v58 = vld [vmem:[%s6287_s21 + $0x68] sm:$0xfe]  ;;  %v4926_v47 = vld [vmem:[%s6287_s21 + $0x80] sm:$0x1] }
  0xbc   : > { %v576_v28 = vpop.f32.mrf.mxu0 }
  0xbd   : > { %1787 = vmatpush.bf16.msra.mxu1 %v4887_v8  ;;  %v5994_v8 = vld [vmem:[#allocation2 + $0x524] sm:$0xf]  ;;  %v595_v30 = vpop.f32.mrf.mxu1  ;;  %2181 = vmatpush.bf16.msra.mxu2 %v4943_v7  ;;  %v6019_v7 = vld [vmem:[#allocation2 + $0x5e4] sm:$0x30] }
  0xbe   : > { %v4995_v12 = vor.u32 %v5994_v8, %v4992_v17  ;;  %2196 = vmatpush.bf16.msra.mxu0 %v5039_v3  ;;  %v596_v32 = vadd.f32 %v595_v30, %v576_v28  ;;  %v5086_v3 = vld [vmem:[#allocation2 + $0x5e0] sm:$0xf]  ;;  %v6018_v8 = vld [vmem:[#allocation2 + $0x5e4] sm:$0xf] }
  0xbf   : > { %1776 = vmatmul.bf16.vlgmr.msrb.gmra.mxu0 %v1466_v26  ;;  %v5087_v10 = vor.u32 %v6019_v7, %v5086_v3  ;;  %v5986_v28 = vld [vmem:[#allocation2 + $0x4e4] sm:$0xf]  ;;  %v1893_v7 = vrot.slane %v4923_v58, 1  ;;  %v5070_v58 = vld [vmem:[#allocation2 + $0x5c0] sm:$0xf] }
  0xc0   : > { %2232 = vmatpush.bf16.msra.mxu3 %v4995_v12  ;;  %4912 = vmatmul.msk.bf16.vlgmr.msrb.gmra.mxu2 %vm548_vm2, %v6525_v45  ;;  %v6538_v15 = vadd.f32 %v6513_v36, %v596_v32  ;;  %v5088_v12 = vld [vmem:[#allocation2 + $0x5e8] sm:$0x30] }
  0xc1   : > { %1788 = vmatpush.bf16.msra.mxu1 %v4879_v19  ;;  %v5992_v19 = vld [vmem:[#allocation2 + $0x514] sm:$0xf]  ;;  %2250 = vmatpush.bf16.msrb.mxu2 %v5067_v9  ;;  %v2169_v49 = vsel %vm555_vm0, %v5087_v10, 0  ;;  %v6562_v9 = vld [vmem:[%s6287_s21 + $0x48] sm:$0x1] }
  0xc2   : > { %v4987_v29 = vor.u32 %v5992_v19, %v4984_v34  ;;  %1719 = vmatmul.bf16.vlgmr.msrb.gmra.mxu1 %v1466_v26  ;;  %1743 = vmatmul.bf16.gmra.mxu3 %v6532_v18  ;;  %v5091_v26 = vor.u32 %v6018_v8, %v5088_v12  ;;  %v4960_v19 = vld [vmem:[#allocation2 + $0x4e8] sm:$0xf0]  ;;  %v1894_v8 = vrot.slane %v4926_v47, 1  ;;  %v6015_v47 = vld [vmem:[#allocation2 + $0x5c4] sm:$0xf0] }
  0xc3   : > { %2197 = vmatpush.bf16.msra.mxu0 %v5031_v44  ;;  %v6541_v36 = vpop.f32.mrf.mxu3  ;;  %v5007_v44 = vor.u32 %v5999_v60, %v5006_v59  ;;  %v4963_v63 = vor.u32 %v5986_v28, %v4960_v19  ;;  %v4944_v60 = vld [vmem:[#allocation2 + $0x4c8] sm:$0xf0] }
  0xc4   : > { %2233 = vmatpush.bf16.msra.mxu3 %v4987_v29  ;;  %v578_v48 = vpop.f32.mrf.mxu0  ;;  %v2172_v34 = vsel %vm555_vm0, %v5091_v26, 0  ;;  %v5032_v29 = vld [vmem:[#allocation2 + $0x578] sm:$0xf0]  ;;  %v6000_v26 = vld [vmem:[#allocation2 + $0x554] sm:$0xf] }
  0xc5   : > { %1789 = vmatpush.bf16.msra.mxu1 %v4871_v39  ;;  %v647_v39 = vpop.f32.mrf.mxu2  ;;  %v597_v55 = vpop.f32.mrf.mxu1  ;;  %2251 = vmatpush.bf16.msrb.mxu2 %v5059_v40  ;;  %v5984_v40 = vld [vmem:[#allocation2 + $0x4d4] sm:$0xf] }
  0xc6   : > { %v648_v35 = vadd.f32 %v647_v39, %v6515_v42  ;;  %v5015_v42 = vor.u32 %v6001_v43, %v5014_v14  ;;  %v598_v5 = vadd.f32 %v597_v55, %v578_v48  ;;  %v4925_v39 = vld [vmem:[%s6287_s21 + $0x78] sm:$0x1]  ;;  %v4917_v14 = vld [vmem:[%s6287_s21 + $0x38] sm:$0xfe]  ;;  %v4920_v43 = vld [vmem:[%s6287_s21 + $0x50] sm:$0x1]  ;;  %v4955_v48 = vor.u32 %v5984_v40, %v4952_v41 }
  0xc7   : > { %2198 = vmatpush.bf16.msra.mxu0 %v5023_v13  ;;  %v1891_v55 = vrot.slane %v4925_v39, 1 }
  0xc8   : > { %2234 = vmatpush.bf16.msra.mxu3 %v4979_v46  ;;  %v6547_v57 = vadd.f32 %v6520_v11, %v598_v5  ;;  %v6554_v11 = vpack.c.bf16 %v4759_v56, %v6393_v50  ;;  %v6004_v50 = vld [vmem:[#allocation2 + $0x574] sm:$0xf]  ;;  %v1890_v46 = vrot.slane %v6566_v23, 1  ;;  %v1884_v56 = vrot.slane %v4917_v14, 1  ;;  %v6017_v5 = vld [vmem:[#allocation2 + $0x5d4] sm:$0xf0] }
  0xc9   : > { %1790 = vmatpush.bf16.msra.mxu1 %v4863_v52  ;;  %v5988_v52 = vld [vmem:[#allocation2 + $0x4f4] sm:$0xf]  ;;  %2252 = vmatpush.bf16.msrb.mxu2 %v5051_v53  ;;  %v5035_v13 = vor.u32 %v6004_v50, %v5032_v29  ;;  %v6601_v50 = vld [vmem:[%s6287_s21 + $0xc0] sm:$0xfe]  ;;  %v6604_v29 = vld [vmem:[%s6287_s21 + $0xd8] sm:$0x1] }
  0xca   : > { %v4971_v17 = vor.u32 %v5988_v52, %v4968_v2  ;;  %v5078_v2 = vld [vmem:[#allocation2 + $0x5d0] sm:$0xf]  ;;  %v6619_v14 = vld [vmem:[%s6287_s21 + $0xc8] sm:$0xfe] }
  0xcb   : > { %2199 = vmatpush.bf16.msra.mxu0 %v5015_v42  ;;  %v1885_v42 = vrot.slane %v4920_v43, 1 }
  0xcc   : > { %2235 = vmatpush.bf16.msra.mxu3 %v4971_v17  ;;  %v5080_v17 = vld [vmem:[#allocation2 + $0x5d8] sm:$0xf0] }
  0xcd   : > { %1791 = vmatpush.bf16.msra.mxu1 %v4855_v6  ;;  %v4754_v6 = vld [vmem:[%s6287_s21 + $0x90] sm:$0xff]  ;;  %v649_v30 = vpop.f32.mrf.mxu2  ;;  %v885_v38 = vpop.f32.mrf.mxu1  ;;  %2253 = vmatpush.bf16.msrb.mxu2 %v5043_v31 }
  0xce   : > { %v6551_v32 = vadd.f32 %v649_v30, %v6527_v24  ;;  %v1469_v4 = vpack.c.bf16 %v4757_v62, %v4754_v6  ;;  %v666_v24 = vpop.f32.mrf.mxu0  ;;  %v886_v25 = vadd.f32 %v885_v38, %v6511_v61  ;;  %v6002_v61 = vld [vmem:[#allocation2 + $0x564] sm:$0xf]  ;;  %v4947_v6 = vor.u32 %v5982_v0, %v4944_v60  ;;  %v6591_v31 = vld [vmem:[%s6287_s21 + $0x90] sm:$0xfe]  ;;  %v5072_v0 = vld [vmem:[#allocation2 + $0x5c8] sm:$0xf0] }
  0xcf   : > { %v6568_v37 = vadd.f32 %v666_v24, %v648_v35  ;;  %2200 = vmatpush.bf16.msra.mxu0 %v5007_v44  ;;  %v1882_v35 = vrot.slane %v6562_v9, 1  ;;  %v5027_v59 = vor.u32 %v6002_v61, %v5024_v51  ;;  %v5019_v30 = vor.u32 %v6000_v26, %v5016_v22  ;;  %v6051_v44 = vld [vmem:[#allocation2 + $0x6e4] sm:$0xf0]  ;;  %v5234_v24 = vld [vmem:[#allocation2 + $0x6d0] sm:$0xf] }
  0xd0   : > { %4913 = vmatmul.msk.bf16.gmra.mxu2 %vm548_vm2, %v6554_v11  ;;  %1781 = vmatmul.bf16.gmra.mxu0 %v1469_v4  ;;  %v5243_v19 = vor.u32 %v6051_v44, %v5242_v27  ;;  %v1895_v9 = vsel %vm266_vm1, %v1893_v7, %v1894_v8  ;;  %v1899_v38 = vrot.slane %v6591_v31, 1  ;;  %v4938_v7 = vld [vmem:[%s6287_s21 + $0xe0] sm:$0x1]  ;;  %v6034_v26 = vld [vmem:[#allocation2 + $0x664] sm:$0xf] }
  0xd1   : > { %1792 = vmatpush.bf16.msra.mxu1 %v4847_v54  ;;  %v6556_v54 = vpop.f32.mrf.mxu3  ;;  %2236 = vmatpush.bf16.msra.mxu3 %v4963_v63  ;;  %v5008_v63 = vld [vmem:[#allocation2 + $0x548] sm:$0xf0]  ;;  %v6045_v44 = vld [vmem:[#allocation2 + $0x6b4] sm:$0xf0]  ;;  %v5258_v31 = vld [vmem:[#allocation2 + $0x700] sm:$0xf] }
  0xd2   : > { %1724 = vmatmul.bf16.gmra.mxu1 %v1469_v4  ;;  %4914 = vmatmul.msk.bf16.vlgmr.msrb.gmra.mxu3 %vm548_vm2, %v6525_v45  ;;  %v5079_v45 = vor.u32 %v6017_v5, %v5078_v2 }
  0xd3   : > { %2274 = vmatpush.bf16.msrb.mxu0 %v2172_v34  ;;  %2254 = vmatpush.bf16.msrb.mxu2 %v5035_v13  ;;  %v6598_v34 = vld [vmem:[%s6287_s21 + $0xa8] sm:$0x1]  ;;  %v6049_v13 = vld [vmem:[#allocation2 + $0x6d4] sm:$0xf0] }
  0xd4   : > { %v5235_v43 = vor.u32 %v6049_v13, %v5234_v24 }
  0xd5   : > { %1793 = vmatpush.bf16.msra.mxu1 %v4839_v20  ;;  %v1881_v20 = vrot.slane %v6559_v33, 1  ;;  %v652_v52 = vpop.f32.mrf.mxu2  ;;  %2237 = vmatpush.bf16.msra.mxu3 %v4955_v48  ;;  %v887_v28 = vpop.f32.mrf.mxu1  ;;  %v1892_v33 = vsel %vm266_vm1, %v1890_v46, %v1891_v55  ;;  %v6014_v48 = vld [vmem:[#allocation2 + $0x5c4] sm:$0xf]  ;;  %v6047_v55 = vld [vmem:[#allocation2 + $0x6c4] sm:$0xf0] }
  0xd6   : > { %v653_v53 = vadd.f32 %v652_v52, %v6541_v36  ;;  %v668_v10 = vpop.f32.mrf.mxu0  ;;  %v5226_v52 = vld [vmem:[#allocation2 + $0x6c0] sm:$0xf]  ;;  %v5075_v60 = vor.u32 %v6014_v48, %v5072_v0  ;;  %v5202_v0 = vld [vmem:[#allocation2 + $0x690] sm:$0xf] }
  0xd7   : > { %v6587_v36 = vadd.f32 %v668_v10, %v6551_v32  ;;  %2255 = vmatpush.bf16.msrb.mxu2 %v5027_v59  ;;  %v1883_v4 = vsel %vm266_vm1, %v1881_v20, %v1882_v35  ;;  %v1886_v32 = vsel %vm266_vm1, %v1884_v56, %v1885_v42  ;;  %v6616_v20 = vld [vmem:[%s6287_s21 + $0xb0] sm:$0x1]  ;;  %v1900_v59 = vrot.slane %v6598_v34, 1  ;;  %v5178_v10 = vld [vmem:[#allocation2 + $0x660] sm:$0xf] }
  0xd8   : > { %v6610_v41 = vpack.c.bf16 %v1892_v33, %v1883_v4  ;;  %v6621_v46 = vpack.c.bf16 %v1895_v9, %v1886_v32  ;;  %v5227_v2 = vor.u32 %v6047_v55, %v5226_v52  ;;  %v5170_v32 = vld [vmem:[#allocation2 + $0x650] sm:$0xf]  ;;  %v6033_v9 = vld [vmem:[#allocation2 + $0x654] sm:$0xf0]  ;;  %v6032_v34 = vld [vmem:[#allocation2 + $0x654] sm:$0xf] }
  0xd9   : > { %1794 = vmatpush.bf16.msra.mxu1 %v4831_v16  ;;  %v6016_v16 = vld [vmem:[#allocation2 + $0x5d4] sm:$0xf]  ;;  %v904_v3 = vpop.f32.mrf.mxu3  ;;  %2238 = vmatpush.bf16.msra.mxu3 %v4947_v6  ;;  %v6057_v6 = vld [vmem:[#allocation2 + $0x714] sm:$0x30]  ;;  %v5171_v24 = vor.u32 %v6033_v9, %v5170_v32  ;;  %v6055_v55 = vld [vmem:[#allocation2 + $0x704] sm:$0xf0] }
  0xda   : > { %v6584_v62 = vadd.f32 %v904_v3, %v886_v25  ;;  %v5083_v12 = vor.u32 %v6016_v16, %v5080_v17  ;;  %v6613_v25 = vld [vmem:[%s6287_s21 + $0x98] sm:$0xfe]  ;;  %v1908_v16 = vrot.slane %v6601_v50, 1  ;;  %v1909_v3 = vrot.slane %v6604_v29, 1  ;;  %v5266_v17 = vld [vmem:[#allocation2 + $0x710] sm:$0xf] }
  0xdb   : > { %2256 = vmatpush.bf16.msrb.mxu2 %v5019_v30  ;;  %v1902_v8 = vrot.slane %v6613_v25, 1  ;;  %v5218_v30 = vld [vmem:[#allocation2 + $0x6b0] sm:$0xf]  ;;  %v5210_v50 = vld [vmem:[#allocation2 + $0x6a0] sm:$0xf] }
  0xdc   : > { %2275 = vmatpush.bf16.msrb.mxu0 %v5083_v12  ;;  %v6035_v12 = vld [vmem:[#allocation2 + $0x664] sm:$0xf0]  ;;  %v6041_v52 = vld [vmem:[#allocation2 + $0x694] sm:$0xf0]  ;;  %v4924_v32 = vld [vmem:[%s6287_s21 + $0x70] sm:$0xfe] }
  0xdd   : > { %2217 = vmatpush.bf16.msrb.mxu1 %v2169_v49  ;;  %v888_v49 = vadd.f32 %v887_v28, %v6518_v1  ;;  %2656 = vmatpush.bf16.msrb.mxu3 %v5243_v19  ;;  %v5998_v1 = vld [vmem:[#allocation2 + $0x544] sm:$0xf]  ;;  %v654_v23 = vpop.f32.mrf.mxu2  ;;  %v890_v42 = vpop.f32.mrf.mxu1  ;;  %v5179_v27 = vor.u32 %v6035_v12, %v5178_v10  ;;  %v5180_v28 = vld [vmem:[#allocation2 + $0x668] sm:$0xf0]  ;;  %v1912_v19 = vrot.slane %v4938_v7, 1 }
  0xde   : > { %v5011_v39 = vor.u32 %v5998_v1, %v5008_v63  ;;  %v6608_v40 = vadd.f32 %v654_v23, %v6556_v54  ;;  %v671_v51 = vpop.f32.mrf.mxu0  ;;  %v5071_v54 = vor.u32 %v6015_v47, %v5070_v58  ;;  %v891_v5 = vadd.f32 %v890_v42, %v6538_v15  ;;  %v5172_v23 = vld [vmem:[#allocation2 + $0x658] sm:$0xf0]  ;;  %v6031_v58 = vld [vmem:[#allocation2 + $0x644] sm:$0xf0]  ;;  %v6030_v47 = vld [vmem:[#allocation2 + $0x644] sm:$0xf] }
  0xdf   : > { %v6625_v56 = vadd.f32 %v671_v51, %v653_v53  ;;  %v1903_v53 = vrot.slane %v6616_v20, 1  ;;  %v5267_v15 = vor.u32 %v6057_v6, %v5266_v17  ;;  %v5183_v4 = vor.u32 %v6034_v26, %v5180_v28  ;;  %v6029_v7 = vld [vmem:[#allocation2 + $0x634] sm:$0xf0]  ;;  %v5194_v6 = vld [vmem:[#allocation2 + $0x680] sm:$0xf] }
  0xe0   : > { %2257 = vmatpush.bf16.msrb.mxu2 %v5011_v39  ;;  %2201 = vmatmul.bf16.vlgmr.msra.gmra.mxu0 %v6621_v46  ;;  %v5175_v13 = vor.u32 %v6032_v34, %v5172_v23  ;;  %v5203_v42 = vor.u32 %v6041_v52, %v5202_v0  ;;  %v4927_v9 = vld [vmem:[%s6287_s21 + $0x88] sm:$0x1]  ;;  %v6681_v0 = vld [vmem:[%s6287_s21 + $0xa0] sm:$0xfe]  ;;  %v6684_v52 = vld [vmem:[%s6287_s21 + $0xb8] sm:$0x1] }
  0xe1   : > { %2218 = vmatpush.bf16.msrb.mxu1 %v5079_v45  ;;  %v906_v35 = vpop.f32.mrf.mxu3  ;;  %2657 = vmatpush.bf16.msrb.mxu3 %v5235_v43  ;;  %v1911_v45 = vrot.slane %v6619_v14, 1  ;;  %v1901_v14 = vsel %vm266_vm1, %v1899_v38, %v1900_v59  ;;  %v1910_v43 = vsel %vm266_vm1, %v1908_v16, %v1909_v3  ;;  %v1904_v48 = vsel %vm266_vm1, %v1902_v8, %v1903_v53  ;;  %v5154_v3 = vld [vmem:[#allocation2 + $0x630] sm:$0xf]  ;;  %v6028_v8 = vld [vmem:[#allocation2 + $0x634] sm:$0xf] }
  0xe2   : > { %v6623_v61 = vadd.f32 %v906_v35, %v888_v49  ;;  %2182 = vmatmul.bf16.vlgmr.msra.gmra.mxu2 %v6610_v41  ;;  %1795 = vmatmul.bf16.vlgmr.msra.gmra.mxu1 %v6504_v21  ;;  %v2632_v21 = vsel %vm555_vm0, %v5267_v15, 0  ;;  %v5162_v35 = vld [vmem:[#allocation2 + $0x640] sm:$0xf]  ;;  %v5155_v17 = vor.u32 %v6029_v7, %v5154_v3  ;;  %v6039_v15 = vld [vmem:[#allocation2 + $0x684] sm:$0xf0] }
  0xe3   : > { %4915 = vmatmul.msk.bf16.gmra.mxu3 %vm548_vm2, %v6554_v11  ;;  %2276 = vmatpush.bf16.msrb.mxu0 %v5075_v60  ;;  %v5219_v11 = vor.u32 %v6045_v44, %v5218_v30  ;;  %v5163_v51 = vor.u32 %v6031_v58, %v5162_v35  ;;  %v6659_v60 = vpack.c.bf16 %v1910_v43, %v1901_v14  ;;  %v4921_v30 = vld [vmem:[%s6287_s21 + $0x58] sm:$0x1]  ;;  %v5146_v44 = vld [vmem:[#allocation2 + $0x620] sm:$0xf]  ;;  %v1896_v35 = vrot.slane %v4924_v32, 1 }
  0xe4   : > { %2680 = vmatpush.bf16.msra.mxu2 %v2632_v21  ;;  %v6026_v21 = vld [vmem:[#allocation2 + $0x624] sm:$0xf]  ;;  %v1897_v58 = vrot.slane %v4927_v9, 1  ;;  %v5097_v32 = vld [vmem:[%s6287_s21 + $0x38] sm:$0xfc] }
  0xe5   : > { %2219 = vmatpush.bf16.msrb.mxu1 %v5071_v54  ;;  %v923_v22 = vpop.f32.mrf.mxu2  ;;  %2658 = vmatpush.bf16.msrb.mxu3 %v5227_v2  ;;  %v892_v39 = vpop.f32.mrf.mxu1  ;;  %v5164_v54 = vld [vmem:[#allocation2 + $0x648] sm:$0xf0]  ;;  %v5259_v2 = vor.u32 %v6055_v55, %v5258_v31  ;;  %v5130_v31 = vld [vmem:[#allocation2 + $0x600] sm:$0xf]  ;;  %v6023_v55 = vld [vmem:[#allocation2 + $0x604] sm:$0xf0] }
  0xe6   : > { %v6641_v49 = vadd.f32 %v923_v22, %v6584_v62  ;;  %v673_v63 = vpop.f32.mrf.mxu0  ;;  %v6043_v62 = vld [vmem:[#allocation2 + $0x6a4] sm:$0xf0]  ;;  %v893_v20 = vadd.f32 %v892_v39, %v6547_v57  ;;  %v5167_v38 = vor.u32 %v6030_v47, %v5164_v54  ;;  %v5195_v22 = vor.u32 %v6039_v15, %v5194_v6  ;;  %v5100_v9 = vld [vmem:[%s6287_s21 + $0x50] sm:$0x3] }
  0xe7   : > { %2694 = vmatpush.bf16.msra.mxu0 %v5183_v4  ;;  %v6647_v29 = vadd.f32 %v673_v63, %v6608_v40  ;;  %v5211_v25 = vor.u32 %v6043_v62, %v5210_v50  ;;  %v1913_v40 = vsel %vm266_vm1, %v1911_v45, %v1912_v19  ;;  %v6027_v19 = vld [vmem:[#allocation2 + $0x624] sm:$0xf0]  ;;  %v5148_v4 = vld [vmem:[#allocation2 + $0x628] sm:$0xf0]  ;;  %v6037_v63 = vld [vmem:[#allocation2 + $0x674] sm:$0xf0] }
  0xe8   : > { %v6661_v16 = vpack.c.bf16 %v1913_v40, %v1904_v48  ;;  %2681 = vmatpush.bf16.msra.mxu2 %v5259_v2  ;;  %v5151_v34 = vor.u32 %v6026_v21, %v5148_v4  ;;  %v5250_v50 = vld [vmem:[#allocation2 + $0x6f0] sm:$0xf]  ;;  %v6053_v62 = vld [vmem:[#allocation2 + $0x6f4] sm:$0xf0]  ;;  %v5140_v48 = vld [vmem:[#allocation2 + $0x618] sm:$0xf0]  ;;  %v1898_v2 = vsel %vm266_vm1, %v1896_v35, %v1897_v58 }
  0xe9   : > { %v909_v33 = vpop.f32.mrf.mxu3  ;;  %2637 = vmatpush.bf16.msra.mxu1 %v5179_v27  ;;  %2659 = vmatpush.bf16.msrb.mxu3 %v5219_v11  ;;  %v4918_v27 = vld [vmem:[%s6287_s21 + $0x40] sm:$0xfe]  ;;  %v6700_v21 = vld [vmem:[%s6287_s21 + $0xe8] sm:$0x1]  ;;  %v2347_v58 = vrot.slane %v5097_v32, 2 }
  0xea   : > { %v6644_v1 = vadd.f32 %v909_v33, %v891_v5  ;;  %v5186_v33 = vld [vmem:[#allocation2 + $0x670] sm:$0xf]  ;;  %v1887_v39 = vrot.slane %v4918_v27, 1  ;;  %v1915_v35 = vrot.slane %v6700_v21, 1  ;;  %v6741_v32 = vld [vmem:[%s6287_s21 + $0x88] sm:$0x3] }
  0xeb   : > { %2695 = vmatpush.bf16.msra.mxu0 %v5175_v13  ;;  %v5187_v23 = vor.u32 %v6037_v63, %v5186_v33  ;;  %v5251_v13 = vor.u32 %v6053_v62, %v5250_v50  ;;  %v6050_v50 = vld [vmem:[#allocation2 + $0x6e4] sm:$0xf]  ;;  %v6056_v62 = vld [vmem:[#allocation2 + $0x714] sm:$0xf] }
  0xed   : > { %2638 = vmatpush.bf16.msra.mxu1 %v5171_v24  ;;  %v925_v57 = vpop.f32.mrf.mxu2  ;;  %2660 = vmatpush.bf16.msrb.mxu3 %v5211_v25  ;;  %v961_v12 = vpop.f32.mrf.mxu1  ;;  %v5138_v25 = vld [vmem:[#allocation2 + $0x610] sm:$0xf] }
  0xee   : > { %v6657_v59 = vadd.f32 %v925_v57, %v6623_v61  ;;  %v942_v45 = vpop.f32.mrf.mxu0  ;;  %v5156_v61 = vld [vmem:[#allocation2 + $0x638] sm:$0xf0]  ;;  %2682 = vmatpush.bf16.msra.mxu2 %v5251_v13 }
  0xef   : > { %2696 = vmatpush.bf16.msra.mxu0 %v5167_v38  ;;  %v943_v10 = vadd.f32 %v942_v45, %v6568_v37  ;;  %v5159_v26 = vor.u32 %v6028_v8, %v5156_v61  ;;  %v5147_v37 = vor.u32 %v6027_v19, %v5146_v44  ;;  %v6022_v38 = vld [vmem:[#allocation2 + $0x604] sm:$0xf]  ;;  %v6692_v45 = vld [vmem:[%s6287_s21 + $0xd0] sm:$0xfe]  ;;  %v1906_v61 = vrot.slane %v6684_v52, 1 }
  0xf0   : > { %2206 = vmatmul.bf16.gmra.mxu0 %v6661_v16  ;;  %v6073_v44 = vld [vmem:[#allocation2 + $0x794] sm:$0xf0]  ;;  %v1914_v4 = vrot.slane %v6692_v45, 1 }
  0xf1   : > { %v911_v5 = vpop.f32.mrf.mxu3  ;;  %2639 = vmatpush.bf16.msra.mxu1 %v5163_v51  ;;  %2661 = vmatpush.bf16.msrb.mxu3 %v5203_v42  ;;  %v962_v28 = vadd.f32 %v961_v12, %v943_v10  ;;  %v5122_v10 = vld [vmem:[#allocation2 + $0x5f0] sm:$0xf]  ;;  %v6021_v12 = vld [vmem:[#allocation2 + $0x5f4] sm:$0xf0] }
  0xf2   : > { %v6663_v53 = vadd.f32 %v911_v5, %v893_v20  ;;  %2187 = vmatmul.bf16.gmra.mxu2 %v6659_v60  ;;  %1800 = vmatmul.bf16.gmra.mxu1 %v6532_v18  ;;  %v6025_v20 = vld [vmem:[#allocation2 + $0x614] sm:$0xf0]  ;;  %v5132_v5 = vld [vmem:[#allocation2 + $0x608] sm:$0xf0]  ;;  %v5123_v27 = vor.u32 %v6021_v12, %v5122_v10  ;;  %v6725_v10 = vld [vmem:[%s6287_s21 + $0x70] sm:$0xfc] }
  0xf3   : > { %2239 = vmatmul.bf16.vlgmr.msra.gmra.mxu3 %v6610_v41  ;;  %2697 = vmatpush.bf16.msra.mxu0 %v5159_v26  ;;  %v1888_v41 = vrot.slane %v4921_v30, 1  ;;  %v5139_v47 = vor.u32 %v6025_v20, %v5138_v25  ;;  %v5135_v7 = vor.u32 %v6022_v38, %v5132_v5  ;;  %v6020_v26 = vld [vmem:[#allocation2 + $0x5f4] sm:$0xf]  ;;  %v5346_v30 = vld [vmem:[#allocation2 + $0x790] sm:$0xf] }
  0xf4   : > { %v6071_v25 = vld [vmem:[#allocation2 + $0x784] sm:$0xf0]  ;;  %v5410_v20 = vld [vmem:[#allocation2 + $0x810] sm:$0xf]  ;;  %v6721_v38 = vld [vmem:[%s6287_s21 + $0x58] sm:$0x3] }
  0xf5   : > { %2640 = vmatpush.bf16.msra.mxu1 %v5155_v17  ;;  %v928_v11 = vpop.f32.mrf.mxu2  ;;  %2662 = vmatpush.bf16.msrb.mxu3 %v5195_v22  ;;  %v963_v51 = vpop.f32.mrf.mxu1  ;;  %v1889_v42 = vsel %vm266_vm1, %v1887_v39, %v1888_v41  ;;  %v1905_v17 = vrot.slane %v6681_v0, 1  ;;  %v5338_v41 = vld [vmem:[#allocation2 + $0x780] sm:$0xf]  ;;  %v2351_v45 = vrot.slane %v6721_v38, 2  ;;  %v6059_v38 = vld [vmem:[#allocation2 + $0x724] sm:$0xf0] }
  0xf6   : > { %v6675_v24 = vadd.f32 %v928_v11, %v6644_v1  ;;  %v944_v43 = vpop.f32.mrf.mxu0  ;;  %v6024_v1 = vld [vmem:[#allocation2 + $0x614] sm:$0xf]  ;;  %v1931_v15 = vpack.c.bf16 %v1898_v2, %v1889_v42  ;;  %v5347_v11 = vor.u32 %v6073_v44, %v5346_v30  ;;  %v5236_v2 = vld [vmem:[#allocation2 + $0x6d8] sm:$0xf0]  ;;  %v6046_v30 = vld [vmem:[#allocation2 + $0x6c4] sm:$0xf] }
  0xf7   : > { %v945_v40 = vadd.f32 %v944_v43, %v6587_v36  ;;  %2698 = vmatpush.bf16.msra.mxu0 %v5151_v34  ;;  %v5143_v54 = vor.u32 %v6024_v1, %v5140_v48  ;;  %v5131_v36 = vor.u32 %v6023_v55, %v5130_v31  ;;  %v5103_v34 = vld [vmem:[%s6287_s21 + $0x68] sm:$0xfc]  ;;  %v6089_v43 = vld [vmem:[#allocation2 + $0x814] sm:$0xf0]  ;;  %v2348_v48 = vrot.slane %v5100_v9, 2 }
  0xf8   : > { %v6048_v42 = vld [vmem:[#allocation2 + $0x6d4] sm:$0xf]  ;;  %v5228_v44 = vld [vmem:[#allocation2 + $0x6c8] sm:$0xf0] }
  0xf9   : > { %v980_v18 = vpop.f32.mrf.mxu3  ;;  %2641 = vmatpush.bf16.msra.mxu1 %v5147_v37  ;;  %2663 = vmatpush.bf16.msrb.mxu3 %v5187_v23  ;;  %v964_v57 = vadd.f32 %v963_v51, %v945_v40  ;;  %v5106_v23 = vld [vmem:[%s6287_s21 + $0x80] sm:$0x3]  ;;  %v2356_v40 = vrot.slane %v5103_v34, 2  ;;  %v2349_v21 = vsel %vm555_vm0, %v2347_v58, %v2348_v48  ;;  %v5231_v0 = vor.u32 %v6046_v30, %v5228_v44  ;;  %v6746_v9 = vld [vmem:[%s6287_s21 + $0x30] sm:$0xfc] }
  0xfa   : > { %v6677_v14 = vadd.f32 %v980_v18, %v962_v28  ;;  %v5124_v28 = vld [vmem:[#allocation2 + $0x5f8] sm:$0xf0]  ;;  %v2357_v51 = vrot.slane %v5106_v23, 2  ;;  %v6749_v23 = vld [vmem:[%s6287_s21 + $0x48] sm:$0x3] }
  0xfb   : > { %2699 = vmatpush.bf16.msra.mxu0 %v5143_v54  ;;  %v5127_v33 = vor.u32 %v6020_v26, %v5124_v28  ;;  %v5268_v18 = vld [vmem:[#allocation2 + $0x718] sm:$0x30]  ;;  %v6715_v54 = vld [vmem:[%s6287_s21 + $0x40] sm:$0xfc] }
  0xfc   : > { %v2350_v12 = vrot.slane %v6715_v54, 2  ;;  %v2358_v52 = vsel %vm555_vm0, %v2356_v40, %v2357_v51 }
  0xfd   : > { %2642 = vmatpush.bf16.msra.mxu1 %v5139_v47  ;;  %v930_v3 = vpop.f32.mrf.mxu2  ;;  %v966_v37 = vpop.f32.mrf.mxu1  ;;  %v5339_v47 = vor.u32 %v6071_v25, %v5338_v41  ;;  %v6761_v41 = vld [vmem:[%s6287_s21 + $0xb0] sm:$0x3]  ;;  %v6044_v25 = vld [vmem:[#allocation2 + $0x6b4] sm:$0xf]  ;;  %v6768_v58 = vpack.c.bf16 %v2358_v52, %v2349_v21 }
  0xfe   : > { %v6689_v8 = vadd.f32 %v930_v3, %v6663_v53  ;;  %v947_v53 = vpop.f32.mrf.mxu0  ;;  %v5239_v3 = vor.u32 %v6048_v42, %v5236_v2  ;;  %v5386_v42 = vld [vmem:[#allocation2 + $0x7e0] sm:$0xf]  ;;  %v6083_v2 = vld [vmem:[#allocation2 + $0x7e4] sm:$0xf0]  ;;  %v5378_v21 = vld [vmem:[#allocation2 + $0x7d0] sm:$0xf] }
  0xff   : > { %v948_v19 = vadd.f32 %v947_v53, %v6625_v56  ;;  %2700 = vmatpush.bf16.msra.mxu0 %v5135_v7  ;;  %v5244_v56 = vld [vmem:[#allocation2 + $0x6e8] sm:$0xf0]  ;;  %v5330_v7 = vld [vmem:[#allocation2 + $0x770] sm:$0xf]  ;;  %v6087_v53 = vld [vmem:[#allocation2 + $0x804] sm:$0xf0] }
 0x100   : > { %5094 = vmatmul.msk.bf16.vlgmr.msrb.gmra.mxu0 %vm548_vm2, %v1931_v15  ;;  %v5247_v39 = vor.u32 %v6050_v50, %v5244_v56  ;;  %v6752_v50 = vld [vmem:[%s6287_s21 + $0x60] sm:$0xfc]  ;;  %v6755_v56 = vld [vmem:[%s6287_s21 + $0x78] sm:$0x3] }
 0x101   : > { %v982_v6 = vpop.f32.mrf.mxu3  ;;  %2643 = vmatpush.bf16.msra.mxu1 %v5131_v36  ;;  %v967_v63 = vadd.f32 %v966_v37, %v948_v19  ;;  %v5394_v19 = vld [vmem:[#allocation2 + $0x7f0] sm:$0xf]  ;;  %v1916_v37 = vsel %vm266_vm1, %v1914_v4, %v1915_v35  ;;  %v2359_v4 = vrot.slane %v6725_v10, 2 }
 0x102   : > { %v6696_v22 = vadd.f32 %v982_v6, %v964_v57  ;;  %2258 = vmatmul.bf16.vlgmr.msrb.gmra.mxu2 %v6621_v46  ;;  %5092 = vmatmul.msk.bf16.vlgmr.msrb.gmra.mxu1 %vm548_vm2, %v1931_v15  ;;  %v5271_v46 = vor.u32 %v6056_v62, %v5268_v18  ;;  %v6069_v6 = vld [vmem:[#allocation2 + $0x774] sm:$0xf0]  ;;  %v5402_v15 = vld [vmem:[#allocation2 + $0x800] sm:$0xf] }
 0x103   : > { %2244 = vmatmul.bf16.gmra.mxu3 %v6659_v60  ;;  %2701 = vmatpush.bf16.msra.mxu0 %v5127_v33  ;;  %v5411_v60 = vor.u32 %v6089_v43, %v5410_v20  ;;  %v5331_v26 = vor.u32 %v6069_v6, %v5330_v7  ;;  %v5403_v28 = vor.u32 %v6087_v53, %v5402_v15  ;;  %v6085_v33 = vld [vmem:[#allocation2 + $0x7f4] sm:$0xf0]  ;;  %v5220_v20 = vld [vmem:[#allocation2 + $0x6b8] sm:$0xf0]  ;;  %v2353_v6 = vrot.slane %v6752_v50, 2 }
 0x104   : > { %3017 = vmatpush.bf16.msrb.mxu2 %v5347_v11  ;;  %v2635_v57 = vsel %vm555_vm0, %v5271_v46, 0  ;;  %v6758_v62 = vld [vmem:[%s6287_s21 + $0x98] sm:$0xfc]  ;;  %v6764_v46 = vld [vmem:[%s6287_s21 + $0xc8] sm:$0xfc]  ;;  %v5387_v7 = vor.u32 %v6083_v2, %v5386_v42  ;;  %v2354_v15 = vrot.slane %v6755_v56, 2 }
 0x105   : > { %2644 = vmatpush.bf16.msra.mxu1 %v5123_v27  ;;  %v6711_v13 = vpop.f32.mrf.mxu2  ;;  %2737 = vmatpush.bf16.msra.mxu3 %v2635_v57  ;;  %v968_v5 = vpop.f32.mrf.mxu1  ;;  %v5223_v57 = vor.u32 %v6044_v25, %v5220_v20  ;;  %v2366_v53 = vrot.slane %v6761_v41, 2  ;;  %v5370_v50 = vld [vmem:[#allocation2 + $0x7c0] sm:$0xf]  ;;  %v5362_v42 = vld [vmem:[#allocation2 + $0x7b0] sm:$0xf] }
 0x106   : > { %v949_v55 = vpop.f32.mrf.mxu0 }
 0x107   : > { %3036 = vmatpush.bf16.msrb.mxu0 %v5411_v60  ;;  %v950_v36 = vadd.f32 %v949_v55, %v6647_v29  ;;  %v1907_v29 = vsel %vm266_vm1, %v1905_v17, %v1906_v61  ;;  %v5322_v17 = vld [vmem:[#allocation2 + $0x760] sm:$0xf]  ;;  %v6067_v61 = vld [vmem:[#allocation2 + $0x764] sm:$0xf0]  ;;  %v5260_v60 = vld [vmem:[#allocation2 + $0x708] sm:$0xf0] }
 0x108   : > { %3018 = vmatpush.bf16.msrb.mxu2 %v5339_v47  ;;  %v5323_v34 = vor.u32 %v6067_v61, %v5322_v17  ;;  %v6054_v47 = vld [vmem:[#allocation2 + $0x704] sm:$0xf]  ;;  %v6065_v55 = vld [vmem:[#allocation2 + $0x754] sm:$0xf0]  ;;  %v6052_v61 = vld [vmem:[#allocation2 + $0x6f4] sm:$0xf] }
 0x109   : > { %2713 = vmatpush.bf16.msrb.mxu1 %v5247_v39  ;;  %v985_v1 = vpop.f32.mrf.mxu3  ;;  %v969_v27 = vadd.f32 %v968_v5, %v950_v36  ;;  %v1934_v39 = vpack.c.bf16 %v1916_v37, %v1907_v29  ;;  %v5263_v51 = vor.u32 %v6054_v47, %v5260_v60  ;;  %v2360_v36 = vrot.slane %v6741_v32, 2  ;;  %v6042_v29 = vld [vmem:[#allocation2 + $0x6a4] sm:$0xf]  ;;  %v6063_v37 = vld [vmem:[#allocation2 + $0x744] sm:$0xf0] }
 0x10a   : > { %v6718_v31 = vadd.f32 %v985_v1, %v967_v63  ;;  %v5395_v63 = vor.u32 %v6085_v33, %v5394_v19  ;;  %v5314_v1 = vld [vmem:[#allocation2 + $0x750] sm:$0xf]  ;;  %v2344_v5 = vrot.slane %v6746_v9, 2  ;;  %v5306_v19 = vld [vmem:[#allocation2 + $0x740] sm:$0xf] }
 0x10b   : > { %3037 = vmatpush.bf16.msrb.mxu0 %v5403_v28  ;;  %2738 = vmatpush.bf16.msra.mxu3 %v5263_v51  ;;  %v5212_v28 = vld [vmem:[#allocation2 + $0x6a8] sm:$0xf0]  ;;  %v6081_v17 = vld [vmem:[#allocation2 + $0x7d4] sm:$0xf0]  ;;  %v5252_v33 = vld [vmem:[#allocation2 + $0x6f8] sm:$0xf0]  ;;  %v2352_v51 = vsel %vm555_vm0, %v2350_v12, %v2351_v45 }
 0x10c   : > { %3019 = vmatpush.bf16.msrb.mxu2 %v5331_v26  ;;  %v2365_v26 = vrot.slane %v6758_v62, 2  ;;  %v5215_v44 = vor.u32 %v6042_v29, %v5212_v28  ;;  %v5379_v9 = vor.u32 %v6081_v17, %v5378_v21  ;;  %v5298_v62 = vld [vmem:[#allocation2 + $0x730] sm:$0xf]  ;;  %v6072_v47 = vld [vmem:[#allocation2 + $0x794] sm:$0xf] }
 0x10d   : > { %2714 = vmatpush.bf16.msrb.mxu1 %v5239_v3  ;;  %v6738_v11 = vpop.f32.mrf.mxu2  ;;  %v1364_v40 = vpop.f32.mrf.mxu1  ;;  %v5315_v3 = vor.u32 %v6065_v55, %v5314_v1  ;;  %v5348_v60 = vld [vmem:[#allocation2 + $0x798] sm:$0xf0]  ;;  %v5196_v55 = vld [vmem:[#allocation2 + $0x688] sm:$0xf0]  ;;  %v6077_v29 = vld [vmem:[#allocation2 + $0x7b4] sm:$0xf0] }
 0x10e   : > { %v1359_v35 = vpop.f32.mrf.mxu0  ;;  %v5188_v28 = vld [vmem:[#allocation2 + $0x678] sm:$0xf0]  ;;  %v5354_v21 = vld [vmem:[#allocation2 + $0x7a0] sm:$0xf] }
 0x10f   : > { %v6771_v48 = vadd.f32 %v1359_v35, %v6711_v13  ;;  %3038 = vmatpush.bf16.msrb.mxu0 %v5395_v63  ;;  %v2345_v13 = vrot.slane %v6749_v23, 2  ;;  %v6040_v63 = vld [vmem:[#allocation2 + $0x694] sm:$0xf]  ;;  %v5204_v23 = vld [vmem:[#allocation2 + $0x698] sm:$0xf0] }
 0x110   : > { %3020 = vmatpush.bf16.msrb.mxu2 %v5323_v34  ;;  %5095 = vmatmul.msk.bf16.gmra.mxu0 %vm548_vm2, %v1934_v39  ;;  %v5255_v34 = vor.u32 %v6052_v61, %v5252_v33  ;;  %v5207_v20 = vor.u32 %v6040_v63, %v5204_v23  ;;  %v6820_v61 = vld [vmem:[%s6287_s21 + $0xd0] sm:$0xfc] }
 0x111   : > { %v987_v18 = vpop.f32.mrf.mxu3  ;;  %2715 = vmatpush.bf16.msrb.mxu1 %v5231_v0  ;;  %v5307_v0 = vor.u32 %v6063_v37, %v5306_v19  ;;  %v2346_v2 = vsel %vm555_vm0, %v2344_v5, %v2345_v13  ;;  %v6814_v19 = vld [vmem:[%s6287_s21 + $0xa0] sm:$0xfc]  ;;  %v6817_v37 = vld [vmem:[%s6287_s21 + $0xb8] sm:$0x3]  ;;  %v6068_v63 = vld [vmem:[#allocation2 + $0x774] sm:$0xf] }
 0x112   : > { %v6766_v43 = vadd.f32 %v987_v18, %v969_v27  ;;  %2263 = vmatmul.bf16.gmra.mxu2 %v6661_v16  ;;  %5093 = vmatmul.msk.bf16.gmra.mxu1 %vm548_vm2, %v1934_v39  ;;  %v5118_v16 = vld [vmem:[%s6287_s21 + $0xe0] sm:$0x3]  ;;  %v2374_v27 = vrot.slane %v6764_v46, 2  ;;  %v6061_v18 = vld [vmem:[#allocation2 + $0x734] sm:$0xf0] }
 0x113   : > { %2664 = vmatmul.bf16.vlgmr.msrb.gmra.mxu3 %v6768_v58  ;;  %3039 = vmatpush.bf16.msrb.mxu0 %v5387_v7  ;;  %v6079_v39 = vld [vmem:[#allocation2 + $0x7c4] sm:$0xf0]  ;;  %v2375_v25 = vrot.slane %v5118_v16, 2  ;;  %v5299_v35 = vor.u32 %v6061_v18, %v5298_v62  ;;  %v2367_v7 = vsel %vm555_vm0, %v2365_v26, %v2366_v53  ;;  %v5290_v16 = vld [vmem:[#allocation2 + $0x720] sm:$0xf] }
 0x114   : > { %3021 = vmatpush.bf16.msrb.mxu2 %v5315_v3  ;;  %2739 = vmatpush.bf16.msra.mxu3 %v5255_v34  ;;  %v5371_v1 = vor.u32 %v6079_v39, %v5370_v50  ;;  %v2355_v3 = vsel %vm555_vm0, %v2353_v6, %v2354_v15  ;;  %v5291_v45 = vor.u32 %v6059_v38, %v5290_v16  ;;  %v5412_v34 = vld [vmem:[#allocation2 + $0x818] sm:$0xf0]  ;;  %v5119_v50 = vld [vmem:[%s6287_s21 + $0xe8] sm:$0x3] }
 0x115   : > { %v1345_v30 = vpop.f32.mrf.mxu2  ;;  %2716 = vmatpush.bf16.msrb.mxu1 %v5223_v57  ;;  %v1366_v46 = vpop.f32.mrf.mxu1  ;;  %v6038_v57 = vld [vmem:[#allocation2 + $0x684] sm:$0xf]  ;;  %v2376_v12 = vsel %vm555_vm0, %v2374_v27, %v2375_v25  ;;  %v5363_v6 = vor.u32 %v6077_v29, %v5362_v42  ;;  %v2392_v53 = vpack.c.bf16 %v2355_v3, %v2346_v2  ;;  %v6036_v27 = vld [vmem:[#allocation2 + $0x674] sm:$0xf]  ;;  %v5332_v39 = vld [vmem:[#allocation2 + $0x778] sm:$0xf0] }
 0x116   : > { %v6786_v52 = vadd.f32 %v1364_v40, %v1345_v30  ;;  %v1361_v56 = vpop.f32.mrf.mxu0  ;;  %v5351_v40 = vor.u32 %v6072_v47, %v5348_v60  ;;  %v5199_v10 = vor.u32 %v6038_v57, %v5196_v55  ;;  %v5191_v33 = vor.u32 %v6036_v27, %v5188_v28  ;;  %v5114_v25 = vld [vmem:[%s6287_s21 + $0xc0] sm:$0xfc]  ;;  %v5404_v60 = vld [vmem:[#allocation2 + $0x808] sm:$0xf0] }
 0x117   : > { %v6791_v41 = vadd.f32 %v1361_v56, %v6738_v11  ;;  %3040 = vmatpush.bf16.msrb.mxu0 %v5379_v9  ;;  %v2361_v11 = vsel %vm555_vm0, %v2359_v4, %v2360_v36  ;;  %v6070_v4 = vld [vmem:[#allocation2 + $0x784] sm:$0xf]  ;;  %v5340_v36 = vld [vmem:[#allocation2 + $0x788] sm:$0xf0]  ;;  %v6088_v9 = vld [vmem:[#allocation2 + $0x814] sm:$0xf] }
 0x118   : > { %3022 = vmatpush.bf16.msrb.mxu2 %v5307_v0  ;;  %3074 = vmatpush.bf16.msrb.mxu3 %v5351_v40  ;;  %v6807_v13 = vpack.c.bf16 %v2361_v11, %v2352_v51  ;;  %v5343_v15 = vor.u32 %v6070_v4, %v5340_v36  ;;  %v6075_v0 = vld [vmem:[#allocation2 + $0x7a4] sm:$0xf0]  ;;  %v5108_v56 = vld [vmem:[%s6287_s21 + $0x90] sm:$0xfc]  ;;  %v5415_v18 = vor.u32 %v6088_v9, %v5412_v34  ;;  %v2368_v51 = vrot.slane %v6814_v19, 2 }
 0x119   : > { %v6788_v32 = vpop.f32.mrf.mxu3  ;;  %2717 = vmatpush.bf16.msrb.mxu1 %v5215_v44  ;;  %v6811_v44 = vpack.c.bf16 %v2376_v12, %v2367_v7  ;;  %v5355_v62 = vor.u32 %v6075_v0, %v5354_v21  ;;  %v2369_v11 = vrot.slane %v6817_v37, 2  ;;  %v5324_v55 = vld [vmem:[#allocation2 + $0x768] sm:$0xf0]  ;;  %v2378_v2 = vrot.slane %v5119_v50, 2  ;;  %v5396_v4 = vld [vmem:[#allocation2 + $0x7f8] sm:$0xf0] }
 0x11a   : > { %v2362_v16 = vrot.slane %v5108_v56, 2  ;;  %v2371_v29 = vrot.slane %v5114_v25, 2  ;;  %v6064_v36 = vld [vmem:[#allocation2 + $0x754] sm:$0xf]  ;;  %v5434_v28 = vld [vmem:[#allocation2 + $0x840] sm:$0xf] }
 0x11b   : > { %3041 = vmatpush.bf16.msrb.mxu0 %v5371_v1  ;;  %v6066_v1 = vld [vmem:[#allocation2 + $0x764] sm:$0xf]  ;;  %v6095_v19 = vld [vmem:[#allocation2 + $0x844] sm:$0x30] }
 0x11c   : > { %3023 = vmatpush.bf16.msrb.mxu2 %v5299_v35  ;;  %3075 = vmatpush.bf16.msrb.mxu3 %v5343_v15  ;;  %v5335_v35 = vor.u32 %v6068_v63, %v5332_v39  ;;  %v5327_v3 = vor.u32 %v6066_v1, %v5324_v55  ;;  %v5316_v15 = vld [vmem:[#allocation2 + $0x758] sm:$0xf0]  ;;  %v6094_v37 = vld [vmem:[#allocation2 + $0x844] sm:$0xf]  ;;  %v5388_v63 = vld [vmem:[#allocation2 + $0x7e8] sm:$0xf0] }
 0x11d   : > { %v1347_v54 = vpop.f32.mrf.mxu2  ;;  %2718 = vmatpush.bf16.msrb.mxu1 %v5207_v20  ;;  %v1378_v17 = vpop.f32.mrf.mxu1  ;;  %v5117_v20 = vld [vmem:[%s6287_s21 + $0xd8] sm:$0x3]  ;;  %v5319_v21 = vor.u32 %v6064_v36, %v5316_v15  ;;  %v6080_v1 = vld [vmem:[#allocation2 + $0x7d4] sm:$0xf]  ;;  %v5428_v15 = vld [vmem:[#allocation2 + $0x838] sm:$0xf0] }
 0x11e   : > { %v6805_v5 = vadd.f32 %v1366_v46, %v1347_v54  ;;  %v1435_v30 = vpop.f32.mrf.mxu0  ;;  %v1379_v23 = vadd.f32 %v1378_v17, %v6771_v48  ;;  %v5111_v46 = vld [vmem:[%s6287_s21 + $0xa8] sm:$0x3]  ;;  %v6086_v48 = vld [vmem:[#allocation2 + $0x804] sm:$0xf]  ;;  %v2372_v54 = vrot.slane %v5117_v20, 2  ;;  %v5435_v17 = vor.u32 %v6095_v19, %v5434_v28 }
 0x11f   : > { %3042 = vmatpush.bf16.msrb.mxu0 %v5363_v6  ;;  %v5407_v57 = vor.u32 %v6086_v48, %v5404_v60  ;;  %v2363_v38 = vrot.slane %v5111_v46, 2  ;;  %v6093_v36 = vld [vmem:[#allocation2 + $0x834] sm:$0xf0]  ;;  %v5364_v28 = vld [vmem:[#allocation2 + $0x7b8] sm:$0xf0] }
 0x120   : > { %3024 = vmatpush.bf16.msrb.mxu2 %v5291_v45  ;;  %2702 = vmatmul.bf16.vlgmr.msra.gmra.mxu0 %v2392_v53  ;;  %v6831_v47 = vadd.f32 %v1379_v23, %v6641_v49  ;;  %v2377_v49 = vrot.slane %v6820_v61, 2  ;;  %v6084_v45 = vld [vmem:[#allocation2 + $0x7f4] sm:$0xf]  ;;  %v5436_v61 = vld [vmem:[#allocation2 + $0x848] sm:$0x30]  ;;  %v3012_v56 = vsel %vm555_vm0, %v5435_v17, 0 }
 0x121   : > { %v6809_v26 = vpop.f32.mrf.mxu3  ;;  %2719 = vmatpush.bf16.msrb.mxu1 %v5199_v10  ;;  %3076 = vmatpush.bf16.msrb.mxu3 %v5335_v35  ;;  %v2364_v9 = vsel %vm555_vm0, %v2362_v16, %v2363_v38  ;;  %v5439_v34 = vor.u32 %v6094_v37, %v5436_v61  ;;  %v6062_v23 = vld [vmem:[#allocation2 + $0x744] sm:$0xf]  ;;  %v5372_v16 = vld [vmem:[#allocation2 + $0x7c8] sm:$0xf0]  ;;  %v6127_v17 = vld [vmem:[#allocation2 + $0x944] sm:$0xf0] }
 0x122   : > { %5272 = vmatmul.msk.bf16.vlgmr.msra.gmra.mxu2 %vm548_vm2, %v6807_v13  ;;  %2645 = vmatmul.bf16.vlgmr.msra.gmra.mxu1 %v2392_v53  ;;  %v2379_v0 = vsel %vm555_vm0, %v2377_v49, %v2378_v2  ;;  %v6058_v38 = vld [vmem:[#allocation2 + $0x724] sm:$0xf]  ;;  %v5279_v61 = vld [vmem:[%s6287_s21 + $0x90] sm:$0xff] }
 0x123   : > { %2669 = vmatmul.bf16.gmra.mxu3 %v6811_v44  ;;  %3043 = vmatpush.bf16.msrb.mxu0 %v5355_v62  ;;  %v5276_v37 = vld [vmem:[%s6287_s21 + $0x60] sm:$0xff] }
 0x124   : > { %3093 = vmatpush.bf16.msra.mxu2 %v5415_v18  ;;  %v5308_v18 = vld [vmem:[#allocation2 + $0x748] sm:$0xf0] }
 0x125   : > { %v1416_v40 = vpop.f32.mrf.mxu2  ;;  %2720 = vmatpush.bf16.msrb.mxu1 %v5191_v33  ;;  %v1380_v6 = vpop.f32.mrf.mxu1  ;;  %3077 = vmatpush.bf16.msrb.mxu3 %v5327_v3  ;;  %v5311_v25 = vor.u32 %v6062_v23, %v5308_v18  ;;  %v6078_v3 = vld [vmem:[#allocation2 + $0x7c4] sm:$0xf]  ;;  %v5582_v23 = vld [vmem:[#allocation2 + $0x930] sm:$0xf]  ;;  %v6882_v18 = vpack.c.bf16 %v5279_v61, %v5276_v37  ;;  %v5558_v37 = vld [vmem:[#allocation2 + $0x900] sm:$0xf] }
 0x126   : > { %v1417_v42 = vadd.f32 %v1416_v40, %v6788_v32  ;;  %v1437_v10 = vpop.f32.mrf.mxu0  ;;  %v5399_v32 = vor.u32 %v6084_v45, %v5396_v4  ;;  %v1381_v27 = vadd.f32 %v1380_v6, %v6791_v41  ;;  %v6082_v41 = vld [vmem:[#allocation2 + $0x7e4] sm:$0xf]  ;;  %v5380_v40 = vld [vmem:[#allocation2 + $0x7d8] sm:$0xf0]  ;;  %v5426_v4 = vld [vmem:[#allocation2 + $0x830] sm:$0xf] }
 0x127   : > { %v5391_v62 = vor.u32 %v6082_v41, %v5388_v63  ;;  %v6092_v6 = vld [vmem:[#allocation2 + $0x834] sm:$0xf]  ;;  %v6074_v63 = vld [vmem:[#allocation2 + $0x7a4] sm:$0xf] }
 0x128   : > { %v1436_v12 = vadd.f32 %v1435_v30, %v1417_v42  ;;  %3094 = vmatpush.bf16.msra.mxu2 %v5407_v57  ;;  %v2370_v30 = vsel %vm555_vm0, %v2368_v51, %v2369_v11  ;;  %v6847_v33 = vadd.f32 %v1381_v27, %v6657_v59  ;;  %v3015_v59 = vsel %vm555_vm0, %v5439_v34, 0  ;;  %v6060_v51 = vld [vmem:[#allocation2 + $0x734] sm:$0xf] }
 0x129   : > { %v6838_v7 = vpop.f32.mrf.mxu3  ;;  %v6853_v46 = vpack.c.bf16 %v2379_v0, %v2370_v30  ;;  %3060 = vmatpush.bf16.msra.mxu1 %v3012_v56  ;;  %3078 = vmatpush.bf16.msrb.mxu3 %v5319_v21  ;;  %v5383_v57 = vor.u32 %v6080_v1, %v5380_v40  ;;  %v6076_v27 = vld [vmem:[#allocation2 + $0x7b4] sm:$0xf]  ;;  %v5431_v21 = vor.u32 %v6092_v6, %v5428_v15  ;;  %v5590_v0 = vld [vmem:[#allocation2 + $0x940] sm:$0xf]  ;;  %v6125_v56 = vld [vmem:[#allocation2 + $0x934] sm:$0xf0] }
 0x12a   : > { %v6841_v53 = vadd.f32 %v1436_v12, %v6677_v14  ;;  %v2373_v14 = vsel %vm555_vm0, %v2371_v29, %v2372_v54  ;;  %3117 = vmatpush.bf16.msra.mxu0 %v3015_v59  ;;  %v5375_v29 = vor.u32 %v6078_v3, %v5372_v16  ;;  %v5367_v30 = vor.u32 %v6076_v27, %v5364_v28  ;;  %v5526_v16 = vld [vmem:[#allocation2 + $0x8c0] sm:$0xf] }
 0x12b   : > { %v2395_v35 = vpack.c.bf16 %v2373_v14, %v2364_v9  ;;  %v5277_v9 = vld [vmem:[%s6287_s21 + $0x68] sm:$0xff]  ;;  %v5280_v14 = vld [vmem:[%s6287_s21 + $0x98] sm:$0xff]  ;;  %v5591_v34 = vor.u32 %v6127_v17, %v5590_v0  ;;  %v5282_v0 = vld [vmem:[%s6287_s21 + $0xc0] sm:$0xff] }
 0x12c   : > { %3095 = vmatpush.bf16.msra.mxu2 %v5399_v32  ;;  %v5427_v32 = vor.u32 %v6093_v36, %v5426_v4  ;;  %v5614_v4 = vld [vmem:[#allocation2 + $0x970] sm:$0xf]  ;;  %v6133_v36 = vld [vmem:[#allocation2 + $0x974] sm:$0x30] }
 0x12d   : > { %v1418_v50 = vpop.f32.mrf.mxu2  ;;  %v1383_v11 = vpop.f32.mrf.mxu1  ;;  %3079 = vmatpush.bf16.msrb.mxu3 %v5311_v25  ;;  %v6884_v25 = vpack.c.bf16 %v5280_v14, %v5277_v9 }
 0x12e   : > { %v1419_v39 = vadd.f32 %v1418_v50, %v6809_v26  ;;  %v1440_v60 = vpop.f32.mrf.mxu0  ;;  %v5300_v26 = vld [vmem:[#allocation2 + $0x738] sm:$0xf0]  ;;  %v1384_v42 = vadd.f32 %v1383_v11, %v6786_v52  ;;  %v5292_v52 = vld [vmem:[#allocation2 + $0x728] sm:$0xf0]  ;;  %3061 = vmatpush.bf16.msra.mxu1 %v5427_v32  ;;  %3118 = vmatpush.bf16.msra.mxu0 %v5431_v21  ;;  %v5574_v11 = vld [vmem:[#allocation2 + $0x920] sm:$0xf] }
 0x12f   : > { %v5303_v49 = vor.u32 %v6060_v51, %v5300_v26  ;;  %v5295_v12 = vor.u32 %v6058_v38, %v5292_v52  ;;  %v5420_v51 = vld [vmem:[#allocation2 + $0x828] sm:$0xf0]  ;;  %v6111_v38 = vld [vmem:[#allocation2 + $0x8c4] sm:$0xf0]  ;;  %v6108_v32 = vld [vmem:[#allocation2 + $0x8b4] sm:$0xf] }
 0x130   : > { %v1438_v48 = vadd.f32 %v1437_v10, %v1419_v39  ;;  %3096 = vmatpush.bf16.msra.mxu2 %v5391_v62  ;;  %2707 = vmatmul.bf16.gmra.mxu0 %v2395_v35  ;;  %v6865_v2 = vadd.f32 %v1384_v42, %v6675_v24  ;;  %v5583_v39 = vor.u32 %v6125_v56, %v5582_v23  ;;  %v5528_v52 = vld [vmem:[#allocation2 + $0x8c8] sm:$0xf0]  ;;  %v6119_v21 = vld [vmem:[#allocation2 + $0x904] sm:$0xf0] }
 0x131   : > { %v6856_v20 = vpop.f32.mrf.mxu3  ;;  %3080 = vmatpush.bf16.msrb.mxu3 %v5303_v49  ;;  %v5559_v9 = vor.u32 %v6119_v21, %v5558_v37  ;;  %v6107_v23 = vld [vmem:[#allocation2 + $0x8a4] sm:$0xf0]  ;;  %v5512_v56 = vld [vmem:[#allocation2 + $0x8a8] sm:$0xf0]  ;;  %v5598_v37 = vld [vmem:[#allocation2 + $0x950] sm:$0xf] }
 0x132   : > { %v6859_v55 = vadd.f32 %v1438_v48, %v6696_v22  ;;  %5273 = vmatmul.msk.bf16.gmra.mxu2 %vm548_vm2, %v6853_v46  ;;  %2650 = vmatmul.bf16.gmra.mxu1 %v2395_v35  ;;  %v5418_v35 = vld [vmem:[#allocation2 + $0x820] sm:$0xf]  ;;  %v6090_v48 = vld [vmem:[#allocation2 + $0x824] sm:$0xf]  ;;  %v6129_v21 = vld [vmem:[#allocation2 + $0x954] sm:$0xf0] }
 0x133   : > { %5274 = vmatmul.msk.bf16.vlgmr.msra.gmra.mxu3 %vm548_vm2, %v6807_v13 }
 0x134   : > { %3097 = vmatpush.bf16.msra.mxu2 %v5383_v57  ;;  %v6123_v57 = vld [vmem:[#allocation2 + $0x924] sm:$0xf0] }
 0x135   : > { %v1421_v22 = vpop.f32.mrf.mxu2  ;;  %v1385_v13 = vpop.f32.mrf.mxu1  ;;  %3081 = vmatpush.bf16.msrb.mxu3 %v5295_v12  ;;  %v5575_v42 = vor.u32 %v6123_v57, %v5574_v11  ;;  %v6121_v12 = vld [vmem:[#allocation2 + $0x914] sm:$0xf0] }
 0x136   : > { %v1422_v54 = vadd.f32 %v1421_v22, %v6838_v7  ;;  %v1442_v24 = vpop.f32.mrf.mxu0  ;;  %v1386_v19 = vadd.f32 %v1385_v13, %v6805_v5  ;;  %v6110_v22 = vld [vmem:[#allocation2 + $0x8c4] sm:$0xf]  ;;  %v5615_v13 = vor.u32 %v6133_v36, %v5614_v4 }
 0x137   : > { %v6102_v4 = vld [vmem:[#allocation2 + $0x884] sm:$0xf] }
 0x138   : > { %v1441_v45 = vadd.f32 %v1440_v60, %v1422_v54  ;;  %3098 = vmatpush.bf16.msra.mxu2 %v5375_v29  ;;  %v6879_v41 = vadd.f32 %v1386_v19, %v6689_v8  ;;  %v6091_v8 = vld [vmem:[#allocation2 + $0x824] sm:$0xf0]  ;;  %v5527_v29 = vor.u32 %v6111_v38, %v5526_v16  ;;  %v5566_v54 = vld [vmem:[#allocation2 + $0x910] sm:$0xf]  ;;  %v5520_v19 = vld [vmem:[#allocation2 + $0x8b8] sm:$0xf0] }
 0x139   : > { %v1739_v10 = vpop.f32.mrf.mxu3  ;;  %3499 = vmatpush.bf16.msra.mxu3 %v5591_v34  ;;  %v5419_v40 = vor.u32 %v6091_v8, %v5418_v35  ;;  %v3475_v17 = vsel %vm555_vm0, %v5615_v13, 0  ;;  %v5523_v61 = vor.u32 %v6108_v32, %v5520_v19  ;;  %v5285_v34 = vld [vmem:[%s6287_s21 + $0xf0] sm:$0xff]  ;;  %v5496_v13 = vld [vmem:[#allocation2 + $0x888] sm:$0xf0] }
 0x13a   : > { %v6871_v7 = vadd.f32 %v1441_v45, %v6718_v31  ;;  %v5356_v31 = vld [vmem:[#allocation2 + $0x7a8] sm:$0xf0]  ;;  %v5567_v45 = vor.u32 %v6121_v12, %v5566_v54  ;;  %v6115_v54 = vld [vmem:[#allocation2 + $0x8e4] sm:$0xf0] }
 0x13b   : > { %v5359_v5 = vor.u32 %v6074_v63, %v5356_v31  ;;  %3062 = vmatpush.bf16.msra.mxu1 %v5419_v40  ;;  %v5283_v63 = vld [vmem:[%s6287_s21 + $0xc8] sm:$0xff]  ;;  %v5286_v31 = vld [vmem:[%s6287_s21 + $0xf8] sm:$0xff]  ;;  %v6906_v40 = vpack.c.bf16 %v5285_v34, %v5282_v0  ;;  %v5599_v0 = vor.u32 %v6129_v21, %v5598_v37  ;;  %v5770_v37 = vld [vmem:[#allocation2 + $0xa70] sm:$0xf] }
 0x13c   : > { %3099 = vmatpush.bf16.msra.mxu2 %v5367_v30  ;;  %v6908_v57 = vpack.c.bf16 %v5286_v31, %v5283_v63  ;;  %v5488_v34 = vld [vmem:[#allocation2 + $0x878] sm:$0xf0]  ;;  %v6165_v21 = vld [vmem:[#allocation2 + $0xa74] sm:$0xf0] }
 0x13d   : > { %v1423_v50 = vpop.f32.mrf.mxu2  ;;  %3500 = vmatpush.bf16.msra.mxu3 %v5583_v39  ;;  %v6117_v39 = vld [vmem:[#allocation2 + $0x8f4] sm:$0xf0] }
 0x13e   : > { %v1424_v62 = vadd.f32 %v1423_v50, %v6856_v20  ;;  %v6886_v1 = vpop.f32.mrf.mxu0  ;;  %v5423_v20 = vor.u32 %v6090_v48, %v5420_v51  ;;  %v6106_v50 = vld [vmem:[#allocation2 + $0x8a4] sm:$0xf]  ;;  %v6131_v51 = vld [vmem:[#allocation2 + $0x964] sm:$0xf0] }
 0x13f   : > { %v1720_v26 = vpop.f32.mrf.mxu1  ;;  %v5515_v8 = vor.u32 %v6106_v50, %v5512_v56  ;;  %v6099_v50 = vld [vmem:[#allocation2 + $0x864] sm:$0xf0]  ;;  %v5278_v56 = vld [vmem:[%s6287_s21 + $0x70] sm:$0xff] }
 0x140   : > { %v1443_v60 = vadd.f32 %v1442_v24, %v1424_v62  ;;  %3100 = vmatpush.bf16.msra.mxu2 %v5359_v5  ;;  %v1740_v3 = vadd.f32 %v1739_v10, %v1720_v26  ;;  %3044 = vmatmul.bf16.vlgmr.msrb.gmra.mxu0 %v6884_v25  ;;  %v5531_v10 = vor.u32 %v6110_v22, %v5528_v52  ;;  %v5550_v62 = vld [vmem:[#allocation2 + $0x8f0] sm:$0xf]  ;;  %v5542_v52 = vld [vmem:[#allocation2 + $0x8e0] sm:$0xf] }
 0x141   : > { %v1741_v59 = vpop.f32.mrf.mxu3  ;;  %3119 = vmatpush.bf16.msra.mxu0 %v5423_v20  ;;  %3501 = vmatpush.bf16.msra.mxu3 %v5575_v42  ;;  %v5551_v48 = vor.u32 %v6117_v39, %v5550_v62  ;;  %v5502_v20 = vld [vmem:[#allocation2 + $0x890] sm:$0xf]  ;;  %v6105_v42 = vld [vmem:[#allocation2 + $0x894] sm:$0xf0]  ;;  %v5480_v39 = vld [vmem:[#allocation2 + $0x868] sm:$0xf0] }
 0x142   : > { %v6889_v49 = vadd.f32 %v1443_v60, %v6766_v43  ;;  %3025 = vmatmul.bf16.vlgmr.msrb.gmra.mxu2 %v6882_v18  ;;  %2721 = vmatmul.bf16.vlgmr.msrb.gmra.mxu1 %v6768_v58  ;;  %v5518_v58 = vld [vmem:[#allocation2 + $0x8b0] sm:$0xf]  ;;  %v5503_v22 = vor.u32 %v6105_v42, %v5502_v20  ;;  %v6096_v20 = vld [vmem:[#allocation2 + $0x854] sm:$0xf] }
 0x143   : > { %5275 = vmatmul.msk.bf16.gmra.mxu3 %vm548_vm2, %v6853_v46  ;;  %3480 = vmatpush.bf16.msrb.mxu1 %v5527_v29  ;;  %v6109_v46 = vld [vmem:[#allocation2 + $0x8b4] sm:$0xf0]  ;;  %v5504_v29 = vld [vmem:[#allocation2 + $0x898] sm:$0xf0] }
 0x144   : > { %v5519_v28 = vor.u32 %v6109_v46, %v5518_v58  ;;  %3523 = vmatpush.bf16.msrb.mxu2 %v3475_v17  ;;  %v5534_v58 = vld [vmem:[#allocation2 + $0x8d0] sm:$0xf]  ;;  %v6113_v46 = vld [vmem:[#allocation2 + $0x8d4] sm:$0xf0] }
 0x145   : > { %v1758_v43 = vpop.f32.mrf.mxu2  ;;  %3537 = vmatpush.bf16.msrb.mxu0 %v5531_v10  ;;  %3502 = vmatpush.bf16.msra.mxu3 %v5567_v45  ;;  %v5543_v10 = vor.u32 %v6115_v54, %v5542_v52  ;;  %v5486_v17 = vld [vmem:[#allocation2 + $0x870] sm:$0xf]  ;;  %v6149_v54 = vld [vmem:[#allocation2 + $0x9f4] sm:$0xf0] }
 0x146   : > { %v1759_v24 = vadd.f32 %v1758_v43, %v1740_v3  ;;  %v6899_v27 = vpop.f32.mrf.mxu0  ;;  %v6104_v3 = vld [vmem:[#allocation2 + $0x894] sm:$0xf]  ;;  %v5706_v52 = vld [vmem:[#allocation2 + $0x9f0] sm:$0xf] }
 0x147   : > { %v1722_v30 = vpop.f32.mrf.mxu1  ;;  %3481 = vmatpush.bf16.msrb.mxu1 %v5519_v28  ;;  %v5507_v43 = vor.u32 %v6104_v3, %v5504_v29  ;;  %v5535_v28 = vor.u32 %v6113_v46, %v5534_v58  ;;  %v5472_v29 = vld [vmem:[#allocation2 + $0x858] sm:$0xf0]  ;;  %v6132_v46 = vld [vmem:[#allocation2 + $0x974] sm:$0xf] }
 0x148   : > { %v6897_v15 = vadd.f32 %v1759_v24, %v6831_v47  ;;  %v1742_v14 = vadd.f32 %v1741_v59, %v1722_v30  ;;  %v5510_v47 = vld [vmem:[#allocation2 + $0x8a0] sm:$0xf] }
 0x149   : > { %v1744_v6 = vpop.f32.mrf.mxu3  ;;  %3538 = vmatpush.bf16.msrb.mxu0 %v5523_v61  ;;  %v5511_v5 = vor.u32 %v6107_v23, %v5510_v47  ;;  %3503 = vmatpush.bf16.msra.mxu3 %v5559_v9  ;;  %v5606_v59 = vld [vmem:[#allocation2 + $0x960] sm:$0xf]  ;;  %v6101_v61 = vld [vmem:[#allocation2 + $0x874] sm:$0xf0] }
 0x14a   : > { %v5607_v26 = vor.u32 %v6131_v51, %v5606_v59  ;;  %v5494_v24 = vld [vmem:[#allocation2 + $0x880] sm:$0xf]  ;;  %v5487_v9 = vor.u32 %v6101_v61, %v5486_v17 }
 0x14b   : > { %3482 = vmatpush.bf16.msrb.mxu1 %v5511_v5  ;;  %v5478_v23 = vld [vmem:[#allocation2 + $0x860] sm:$0xf]  ;;  %v6098_v5 = vld [vmem:[#allocation2 + $0x864] sm:$0xf] }
 0x14c   : > { %3524 = vmatpush.bf16.msrb.mxu2 %v5607_v26  ;;  %v5479_v62 = vor.u32 %v6099_v50, %v5478_v23  ;;  %v6097_v26 = vld [vmem:[#allocation2 + $0x854] sm:$0xf0]  ;;  %v6124_v23 = vld [vmem:[#allocation2 + $0x934] sm:$0xf]  ;;  %v5584_v50 = vld [vmem:[#allocation2 + $0x938] sm:$0xf0] }
 0x14d   : > { %v1760_v35 = vpop.f32.mrf.mxu2  ;;  %3539 = vmatpush.bf16.msrb.mxu0 %v5515_v8  ;;  %3504 = vmatpush.bf16.msra.mxu3 %v5551_v48  ;;  %v5483_v8 = vor.u32 %v6098_v5, %v5480_v39  ;;  %v5762_v39 = vld [vmem:[#allocation2 + $0xa60] sm:$0xf] }
 0x14e   : > { %v1761_v60 = vadd.f32 %v1760_v35, %v1742_v14  ;;  %v6913_v38 = vpop.f32.mrf.mxu0  ;;  %v6100_v14 = vld [vmem:[#allocation2 + $0x874] sm:$0xf] }
 0x14f   : > { %v1725_v12 = vpop.f32.mrf.mxu1  ;;  %3483 = vmatpush.bf16.msrb.mxu1 %v5503_v22  ;;  %v5491_v31 = vor.u32 %v6100_v14, %v5488_v34  ;;  %v6951_v34 = vld [vmem:[%s6287_s21 + $0x70] sm:$0xfe] }
 0x150   : > { %v6911_v16 = vadd.f32 %v1761_v60, %v6847_v33  ;;  %v1745_v45 = vadd.f32 %v1744_v6, %v1725_v12  ;;  %3049 = vmatmul.bf16.gmra.mxu0 %v6908_v57  ;;  %v6103_v33 = vld [vmem:[#allocation2 + $0x884] sm:$0xf0]  ;;  %v5499_v6 = vor.u32 %v6102_v4, %v5496_v13  ;;  %3525 = vmatpush.bf16.msrb.mxu2 %v5599_v0  ;;  %v5454_v4 = vld [vmem:[%s6287_s21 + $0xb0] sm:$0x1]  ;;  %v5592_v13 = vld [vmem:[#allocation2 + $0x948] sm:$0xf0] }
 0x151   : > { %v1746_v11 = vpop.f32.mrf.mxu3  ;;  %v5495_v36 = vor.u32 %v6103_v33, %v5494_v24  ;;  %3540 = vmatpush.bf16.msrb.mxu0 %v5507_v43  ;;  %3505 = vmatpush.bf16.msra.mxu3 %v5543_v10  ;;  %v6927_v60 = vld [vmem:[%s6287_s21 + $0x68] sm:$0xfe]  ;;  %v5475_v43 = vor.u32 %v6096_v20, %v5472_v29  ;;  %v5707_v10 = vor.u32 %v6149_v54, %v5706_v52  ;;  %v5448_v24 = vld [vmem:[%s6287_s21 + $0x80] sm:$0x1]  ;;  %v5451_v33 = vld [vmem:[%s6287_s21 + $0x98] sm:$0xfe] }
 0x152   : > { %3030 = vmatmul.bf16.gmra.mxu2 %v6906_v40  ;;  %2726 = vmatmul.bf16.gmra.mxu1 %v6811_v44  ;;  %v3191_v17 = vrot.slane %v5448_v24, 1  ;;  %v3200_v14 = vrot.slane %v5454_v4, 1  ;;  %v5754_v29 = vld [vmem:[#allocation2 + $0xa50] sm:$0xf] }
 0x153   : > { %3082 = vmatmul.bf16.vlgmr.msrb.gmra.mxu3 %v6882_v18  ;;  %3484 = vmatpush.bf16.msrb.mxu1 %v5495_v36  ;;  %v6126_v36 = vld [vmem:[#allocation2 + $0x944] sm:$0xf] }
 0x155   : > { %v1763_v32 = vpop.f32.mrf.mxu2  ;;  %3541 = vmatpush.bf16.msrb.mxu0 %v5499_v6  ;;  %3506 = vmatpush.bf16.msra.mxu3 %v5535_v28 }
 0x156   : > { %v1764_v19 = vadd.f32 %v1763_v32, %v1745_v45  ;;  %v6922_v18 = vpop.f32.mrf.mxu0  ;;  %v5595_v32 = vor.u32 %v6126_v36, %v5592_v13 }
 0x157   : > { %v1727_v63 = vpop.f32.mrf.mxu1  ;;  %3485 = vmatpush.bf16.msrb.mxu1 %v5487_v9  ;;  %v3199_v9 = vrot.slane %v5451_v33, 1  ;;  %v6968_v33 = vld [vmem:[%s6287_s21 + $0xb8] sm:$0x1] }
 0x158   : > { %v6920_v44 = vadd.f32 %v1764_v19, %v6865_v2  ;;  %v1747_v47 = vadd.f32 %v1746_v11, %v1727_v63  ;;  %v5281_v2 = vld [vmem:[%s6287_s21 + $0xa0] sm:$0xff]  ;;  %v5470_v11 = vld [vmem:[#allocation2 + $0x850] sm:$0xf]  ;;  %v6147_v19 = vld [vmem:[#allocation2 + $0x9e4] sm:$0xf0] }
 0x159   : > { %v1815_v30 = vpop.f32.mrf.mxu3  ;;  %3542 = vmatpush.bf16.msrb.mxu0 %v5491_v31  ;;  %v2774_v51 = vpack.c.bf16 %v5281_v2, %v5278_v56  ;;  %v5471_v22 = vor.u32 %v6097_v26, %v5470_v11  ;;  %v5771_v31 = vor.u32 %v6165_v21, %v5770_v37  ;;  %v5587_v56 = vor.u32 %v6124_v23, %v5584_v50  ;;  %v5690_v2 = vld [vmem:[#allocation2 + $0x9d0] sm:$0xf]  ;;  %v6163_v26 = vld [vmem:[#allocation2 + $0xa64] sm:$0xf0]  ;;  %v6995_v37 = vld [vmem:[%s6287_s21 + $0xe0] sm:$0x1] }
 0x15a   : > { %v5763_v20 = vor.u32 %v6163_v26, %v5762_v39  ;;  %v5568_v21 = vld [vmem:[#allocation2 + $0x918] sm:$0xf0]  ;;  %v6141_v50 = vld [vmem:[#allocation2 + $0x9b4] sm:$0xf0] }
 0x15b   : > { %3486 = vmatpush.bf16.msrb.mxu1 %v5479_v62  ;;  %v6145_v62 = vld [vmem:[#allocation2 + $0x9d4] sm:$0xf0] }
 0x15c   : > { %v5691_v11 = vor.u32 %v6145_v62, %v5690_v2  ;;  %v3203_v62 = vrot.slane %v6968_v33, 1  ;;  %v6157_v33 = vld [vmem:[#allocation2 + $0xa34] sm:$0xf0] }
 0x15d   : > { %v1765_v35 = vpop.f32.mrf.mxu2  ;;  %3543 = vmatpush.bf16.msrb.mxu0 %v5483_v8  ;;  %v5284_v8 = vld [vmem:[%s6287_s21 + $0xd0] sm:$0xff] }
 0x15e   : > { %v1766_v48 = vadd.f32 %v1765_v35, %v1747_v47  ;;  %v2202_v3 = vpop.f32.mrf.mxu0 }
 0x15f   : > { %v1796_v12 = vpop.f32.mrf.mxu1  ;;  %3487 = vmatpush.bf16.msrb.mxu1 %v5471_v22  ;;  %v5576_v22 = vld [vmem:[#allocation2 + $0x928] sm:$0xf0] }
 0x160   : > { %v6932_v42 = vadd.f32 %v1766_v48, %v6879_v41  ;;  %v1797_v45 = vadd.f32 %v1796_v12, %v6886_v1  ;;  %5442 = vmatmul.msk.bf16.vlgmr.msra.gmra.mxu0 %vm548_vm2, %v2774_v51  ;;  %v3190_v41 = vrot.slane %v6927_v60, 1  ;;  %v5616_v1 = vld [vmem:[#allocation2 + $0x978] sm:$0x30]  ;;  %v5287_v48 = vld [vmem:[%s6287_s21 + $0x100] sm:$0xff] }
 0x161   : > { %v6929_v59 = vpop.f32.mrf.mxu3  ;;  %3544 = vmatpush.bf16.msrb.mxu0 %v5475_v43  ;;  %v5619_v28 = vor.u32 %v6132_v46, %v5616_v1  ;;  %v6961_v60 = vld [vmem:[%s6287_s21 + $0xa0] sm:$0xfe]  ;;  %v6981_v1 = vld [vmem:[%s6287_s21 + $0x78] sm:$0x1] }
 0x162   : > { %3101 = vmatmul.bf16.vlgmr.msra.gmra.mxu2 %v6884_v25  ;;  %v1816_v58 = vadd.f32 %v1815_v30, %v1797_v45  ;;  %5440 = vmatmul.msk.bf16.vlgmr.msra.gmra.mxu1 %vm548_vm2, %v2774_v51  ;;  %v5698_v25 = vld [vmem:[#allocation2 + $0x9e0] sm:$0xf]  ;;  %v3193_v51 = vrot.slane %v6951_v34, 1  ;;  %v3192_v54 = vsel %vm266_vm1, %v3190_v41, %v3191_v17  ;;  %v6161_v45 = vld [vmem:[#allocation2 + $0xa54] sm:$0xf0]  ;;  %v3202_v4 = vrot.slane %v6961_v60, 1 }
 0x163   : > { %3943 = vmatpush.bf16.msra.mxu2 %v5707_v10  ;;  %3087 = vmatmul.bf16.gmra.mxu3 %v6906_v40  ;;  %v5699_v40 = vor.u32 %v6147_v19, %v5698_v25  ;;  %v3478_v63 = vsel %vm555_vm0, %v5619_v28, 0  ;;  %v5682_v43 = vld [vmem:[#allocation2 + $0x9c0] sm:$0xf]  ;;  %v6143_v10 = vld [vmem:[#allocation2 + $0x9c4] sm:$0xf0]  ;;  %v5755_v36 = vor.u32 %v6161_v45, %v5754_v29  ;;  %v2777_v28 = vpack.c.bf16 %v5287_v48, %v5284_v8 }
 0x164   : > { %v6944_v0 = vadd.f32 %v1816_v58, %v6841_v53  ;;  %3556 = vmatpush.bf16.msra.mxu1 %v5595_v32  ;;  %v6955_v53 = vld [vmem:[%s6287_s21 + $0x88] sm:$0x1]  ;;  %3580 = vmatpush.bf16.msrb.mxu3 %v3478_v63  ;;  %v5683_v41 = vor.u32 %v6143_v10, %v5682_v43  ;;  %v6978_v46 = vld [vmem:[%s6287_s21 + $0x60] sm:$0xfe]  ;;  %v6984_v32 = vld [vmem:[%s6287_s21 + $0x90] sm:$0xfe] }
 0x165   : > { %v2183_v6 = vpop.f32.mrf.mxu2  ;;  %3962 = vmatpush.bf16.msra.mxu0 %v5771_v31  ;;  %v6987_v25 = vld [vmem:[%s6287_s21 + $0xa8] sm:$0x1]  ;;  %v6992_v19 = vld [vmem:[%s6287_s21 + $0xc8] sm:$0xfe]  ;;  %v5674_v63 = vld [vmem:[#allocation2 + $0x9b0] sm:$0xf] }
 0x166   : > { %v6946_v30 = vadd.f32 %v2202_v3, %v2183_v6  ;;  %v2204_v47 = vpop.f32.mrf.mxu0  ;;  %v6122_v3 = vld [vmem:[#allocation2 + $0x924] sm:$0xf]  ;;  %v5675_v39 = vor.u32 %v6141_v50, %v5674_v63  ;;  %v3187_v8 = vrot.slane %v6978_v46, 1  ;;  %v3188_v48 = vrot.slane %v6981_v1, 1  ;;  %v6139_v43 = vld [vmem:[#allocation2 + $0x9a4] sm:$0xf0] }
 0x167   : > { %3944 = vmatpush.bf16.msra.mxu2 %v5699_v40  ;;  %v1798_v5 = vpop.f32.mrf.mxu1  ;;  %v5579_v12 = vor.u32 %v6122_v3, %v5576_v22  ;;  %v3197_v26 = vrot.slane %v6987_v25, 1  ;;  %v3208_v3 = vrot.slane %v6992_v19, 1  ;;  %v3209_v22 = vrot.slane %v6995_v37, 1  ;;  %v6118_v29 = vld [vmem:[#allocation2 + $0x904] sm:$0xf] }
 0x168   : > { %v1799_v35 = vadd.f32 %v1798_v5, %v6899_v27  ;;  %3557 = vmatpush.bf16.msra.mxu1 %v5587_v56  ;;  %v3201_v27 = vsel %vm266_vm1, %v3199_v9, %v3200_v14  ;;  %v6130_v9 = vld [vmem:[#allocation2 + $0x964] sm:$0xf]  ;;  %v5608_v14 = vld [vmem:[#allocation2 + $0x968] sm:$0xf0]  ;;  %v5746_v5 = vld [vmem:[#allocation2 + $0xa40] sm:$0xf] }
 0x169   : > { %v6948_v61 = vpop.f32.mrf.mxu3  ;;  %3963 = vmatpush.bf16.msra.mxu0 %v5763_v20  ;;  %v6997_v40 = vpack.c.bf16 %v3201_v27, %v3192_v54  ;;  %v6159_v56 = vld [vmem:[#allocation2 + $0xa44] sm:$0xf0]  ;;  %v5738_v10 = vld [vmem:[#allocation2 + $0xa30] sm:$0xf]  ;;  %v6116_v25 = vld [vmem:[#allocation2 + $0x8f4] sm:$0xf] }
 0x16a   : > { %v1818_v52 = vadd.f32 %v6929_v59, %v1799_v35  ;;  %v3194_v59 = vrot.slane %v6955_v53, 1  ;;  %v5747_v35 = vor.u32 %v6159_v56, %v5746_v5  ;;  %v5739_v1 = vor.u32 %v6157_v33, %v5738_v10  ;;  %v5730_v19 = vld [vmem:[#allocation2 + $0xa20] sm:$0xf]  ;;  %v6148_v50 = vld [vmem:[#allocation2 + $0x9f4] sm:$0xf] }
 0x16b   : > { %3945 = vmatpush.bf16.msra.mxu2 %v5691_v11  ;;  %v3196_v11 = vrot.slane %v6984_v32, 1  ;;  %v5708_v53 = vld [vmem:[#allocation2 + $0x9f8] sm:$0xf0]  ;;  %v5544_v5 = vld [vmem:[#allocation2 + $0x8e8] sm:$0xf0] }
 0x16c   : > { %v6973_v13 = vadd.f32 %v1818_v52, %v6859_v55  ;;  %3558 = vmatpush.bf16.msra.mxu1 %v5579_v12  ;;  %v6120_v55 = vld [vmem:[#allocation2 + $0x914] sm:$0xf]  ;;  %v5560_v52 = vld [vmem:[#allocation2 + $0x908] sm:$0xf0]  ;;  %v5666_v12 = vld [vmem:[#allocation2 + $0x9a0] sm:$0xf]  ;;  %v5711_v60 = vor.u32 %v6148_v50, %v5708_v53 }
 0x16d   : > { %v2185_v24 = vpop.f32.mrf.mxu2  ;;  %3964 = vmatpush.bf16.msra.mxu0 %v5755_v36  ;;  %v5571_v23 = vor.u32 %v6120_v55, %v5568_v21  ;;  %v5563_v27 = vor.u32 %v6118_v29, %v5560_v52  ;;  %v5600_v36 = vld [vmem:[#allocation2 + $0x958] sm:$0xf0]  ;;  %v3204_v55 = vsel %vm266_vm1, %v3202_v4, %v3203_v62  ;;  %v5658_v21 = vld [vmem:[#allocation2 + $0x990] sm:$0xf]  ;;  %v6114_v4 = vld [vmem:[#allocation2 + $0x8e4] sm:$0xf]  ;;  %v3189_v62 = vsel %vm266_vm1, %v3187_v8, %v3188_v48 }
 0x16e   : > { %v6975_v58 = vadd.f32 %v2204_v47, %v2185_v24  ;;  %v2207_v17 = vpop.f32.mrf.mxu0  ;;  %v5611_v47 = vor.u32 %v6130_v9, %v5608_v14  ;;  %v5667_v24 = vor.u32 %v6139_v43, %v5666_v12  ;;  %v6155_v9 = vld [vmem:[#allocation2 + $0xa24] sm:$0xf0]  ;;  %v5722_v56 = vld [vmem:[#allocation2 + $0xa10] sm:$0xf]  ;;  %v5547_v52 = vor.u32 %v6114_v4, %v5544_v5  ;;  %v6112_v12 = vld [vmem:[#allocation2 + $0x8d4] sm:$0xf] }
 0x16f   : > { %3946 = vmatpush.bf16.msra.mxu2 %v5683_v41  ;;  %v1801_v31 = vpop.f32.mrf.mxu1  ;;  %v6128_v41 = vld [vmem:[#allocation2 + $0x954] sm:$0xf]  ;;  %v5536_v43 = vld [vmem:[#allocation2 + $0x8d8] sm:$0xf0]  ;;  %v6162_v50 = vld [vmem:[#allocation2 + $0xa64] sm:$0xf] }
 0x170   : > { %v1802_v2 = vadd.f32 %v1801_v31, %v6913_v38  ;;  %5443 = vmatmul.msk.bf16.gmra.mxu0 %vm548_vm2, %v2777_v28  ;;  %3581 = vmatpush.bf16.msrb.mxu3 %v5611_v47  ;;  %v5466_v38 = vld [vmem:[%s6287_s21 + $0x110] sm:$0x1]  ;;  %v5603_v32 = vor.u32 %v6128_v41, %v5600_v36  ;;  %v7047_v33 = vld [vmem:[%s6287_s21 + $0xd0] sm:$0xfe]  ;;  %v7050_v41 = vld [vmem:[%s6287_s21 + $0xe8] sm:$0x1] }
 0x171   : > { %v6989_v6 = vpop.f32.mrf.mxu3  ;;  %3559 = vmatpush.bf16.msra.mxu1 %v5571_v23  ;;  %3965 = vmatpush.bf16.msra.mxu0 %v5747_v35  ;;  %v3218_v31 = vrot.slane %v5466_v38, 1  ;;  %v3210_v35 = vsel %vm266_vm1, %v3208_v3, %v3209_v22  ;;  %v6151_v36 = vld [vmem:[#allocation2 + $0xa04] sm:$0xf0]  ;;  %v5764_v53 = vld [vmem:[#allocation2 + $0xa68] sm:$0xf0] }
 0x172   : > { %3106 = vmatmul.bf16.gmra.mxu2 %v6908_v57  ;;  %v1821_v20 = vadd.f32 %v6948_v61, %v1802_v2  ;;  %5441 = vmatmul.msk.bf16.gmra.mxu1 %vm548_vm2, %v2777_v28  ;;  %v5463_v57 = vld [vmem:[%s6287_s21 + $0xf8] sm:$0xfe]  ;;  %v5767_v4 = vor.u32 %v6162_v50, %v5764_v53  ;;  %v6142_v5 = vld [vmem:[#allocation2 + $0x9c4] sm:$0xf] }
 0x173   : > { %3507 = vmatmul.bf16.vlgmr.msra.gmra.mxu3 %v6997_v40  ;;  %3947 = vmatpush.bf16.msra.mxu2 %v5675_v39  ;;  %v5552_v28 = vld [vmem:[#allocation2 + $0x8f8] sm:$0xf0]  ;;  %v3217_v63 = vrot.slane %v5463_v57, 1  ;;  %v3198_v39 = vsel %vm266_vm1, %v3196_v11, %v3197_v26  ;;  %v6153_v57 = vld [vmem:[#allocation2 + $0xa14] sm:$0xf0] }
 0x174   : > { %v7015_v61 = vadd.f32 %v1821_v20, %v6871_v7  ;;  %v3195_v7 = vsel %vm266_vm1, %v3193_v51, %v3194_v59  ;;  %v5555_v47 = vor.u32 %v6116_v25, %v5552_v28  ;;  %3582 = vmatpush.bf16.msrb.mxu3 %v5603_v32  ;;  %v5731_v51 = vor.u32 %v6155_v9, %v5730_v19  ;;  %v5650_v20 = vld [vmem:[#allocation2 + $0x980] sm:$0xf]  ;;  %v6164_v25 = vld [vmem:[#allocation2 + $0xa74] sm:$0xf]  ;;  %v5772_v28 = vld [vmem:[#allocation2 + $0xa78] sm:$0xf0] }
 0x175   : > { %v2188_v54 = vpop.f32.mrf.mxu2  ;;  %3560 = vmatpush.bf16.msra.mxu1 %v5563_v27  ;;  %3966 = vmatpush.bf16.msra.mxu0 %v5739_v1  ;;  %v7030_v59 = vpack.c.bf16 %v3204_v55, %v3195_v7  ;;  %v3219_v29 = vsel %vm266_vm1, %v3217_v63, %v3218_v31  ;;  %v5700_v27 = vld [vmem:[#allocation2 + $0x9e8] sm:$0xf0]  ;;  %v5723_v11 = vor.u32 %v6153_v57, %v5722_v56  ;;  %v6144_v19 = vld [vmem:[#allocation2 + $0x9d4] sm:$0xf]  ;;  %v5464_v7 = vld [vmem:[%s6287_s21 + $0x100] sm:$0xfe] }
 0x176   : > { %v7017_v45 = vadd.f32 %v2207_v17, %v2188_v54  ;;  %v2209_v37 = vpop.f32.mrf.mxu0  ;;  %v6137_v17 = vld [vmem:[#allocation2 + $0x994] sm:$0xf0]  ;;  %v3235_v22 = vpack.c.bf16 %v3198_v39, %v3189_v62  ;;  %v5539_v32 = vor.u32 %v6112_v12, %v5536_v43  ;;  %v5692_v9 = vld [vmem:[#allocation2 + $0x9d8] sm:$0xf0]  ;;  %v5462_v31 = vld [vmem:[%s6287_s21 + $0xf0] sm:$0xfe] }
 0x177   : > { %v1803_v14 = vpop.f32.mrf.mxu1  ;;  %3948 = vmatpush.bf16.msra.mxu2 %v5667_v24  ;;  %v5659_v23 = vor.u32 %v6137_v17, %v5658_v21  ;;  %v7044_v24 = vpack.c.bf16 %v3219_v29, %v3210_v35  ;;  %v5467_v55 = vld [vmem:[%s6287_s21 + $0x118] sm:$0x1]  ;;  %v5775_v17 = vor.u32 %v6164_v25, %v5772_v28  ;;  %v5684_v56 = vld [vmem:[#allocation2 + $0x9c8] sm:$0xf0]  ;;  %v3214_v57 = vrot.slane %v5462_v31, 1 }
 0x178   : > { %v1804_v34 = vadd.f32 %v1803_v14, %v6922_v18  ;;  %4000 = vmatpush.bf16.msra.mxu3 %v5711_v60  ;;  %v6135_v18 = vld [vmem:[#allocation2 + $0x984] sm:$0xf0]  ;;  %v5456_v14 = vld [vmem:[%s6287_s21 + $0xc0] sm:$0xfe]  ;;  %v5459_v63 = vld [vmem:[%s6287_s21 + $0xd8] sm:$0x1]  ;;  %v5687_v39 = vor.u32 %v6142_v5, %v5684_v56 }
 0x179   : > { %v7019_v46 = vpop.f32.mrf.mxu3  ;;  %3561 = vmatpush.bf16.msra.mxu1 %v5555_v47  ;;  %v5651_v54 = vor.u32 %v6135_v18, %v5650_v20  ;;  %3967 = vmatpush.bf16.msra.mxu0 %v5731_v51  ;;  %v5695_v47 = vor.u32 %v6144_v19, %v5692_v9  ;;  %v3211_v51 = vrot.slane %v7047_v33, 1  ;;  %v3212_v60 = vrot.slane %v7050_v41, 1  ;;  %v5794_v43 = vld [vmem:[#allocation2 + $0xaa0] sm:$0xf]  ;;  %v6171_v33 = vld [vmem:[#allocation2 + $0xaa4] sm:$0x30] }
 0x17a   : > { %v1823_v2 = vadd.f32 %v6989_v6, %v1804_v34  ;;  %v6146_v6 = vld [vmem:[#allocation2 + $0x9e4] sm:$0xf]  ;;  %v3221_v62 = vrot.slane %v5467_v55, 1  ;;  %v3205_v20 = vrot.slane %v5456_v14, 1  ;;  %v3206_v18 = vrot.slane %v5459_v63, 1 }
 0x17b   : > { %3949 = vmatpush.bf16.msra.mxu2 %v5659_v23  ;;  %v5703_v26 = vor.u32 %v6146_v6, %v5700_v27  ;;  %v5756_v6 = vld [vmem:[#allocation2 + $0xa58] sm:$0xf0]  ;;  %v6140_v27 = vld [vmem:[#allocation2 + $0x9b4] sm:$0xf]  ;;  %v6170_v41 = vld [vmem:[#allocation2 + $0xaa4] sm:$0xf] }
 0x17c   : > { %v7038_v8 = vadd.f32 %v1823_v2, %v6889_v49  ;;  %v5714_v49 = vld [vmem:[#allocation2 + $0xa00] sm:$0xf]  ;;  %v3207_v28 = vsel %vm266_vm1, %v3205_v20, %v3206_v18  ;;  %v5668_v9 = vld [vmem:[#allocation2 + $0x9a8] sm:$0xf0]  ;;  %v6136_v56 = vld [vmem:[#allocation2 + $0x994] sm:$0xf] }
 0x17d   : > { %v2190_v38 = vpop.f32.mrf.mxu2  ;;  %4001 = vmatpush.bf16.msra.mxu3 %v5703_v26  ;;  %3562 = vmatpush.bf16.msra.mxu1 %v5547_v52  ;;  %v5715_v21 = vor.u32 %v6151_v36, %v5714_v49  ;;  %v5633_v20 = vld [vmem:[%s6287_s21 + $0xa8] sm:$0x3]  ;;  %v5625_v18 = vld [vmem:[%s6287_s21 + $0x68] sm:$0xfc] }
 0x17e   : > { %v7040_v48 = vadd.f32 %v2209_v37, %v2190_v38  ;;  %v2278_v10 = vpop.f32.mrf.mxu0  ;;  %3968 = vmatpush.bf16.msra.mxu0 %v5723_v11 }
 0x17f   : > { %v2221_v1 = vpop.f32.mrf.mxu1  ;;  %3950 = vmatpush.bf16.msra.mxu2 %v5651_v54  ;;  %v6160_v54 = vld [vmem:[#allocation2 + $0xa54] sm:$0xf] }
 0x180   : > { %v2222_v37 = vadd.f32 %v2221_v1, %v6946_v30  ;;  %3545 = vmatmul.bf16.vlgmr.msrb.gmra.mxu0 %v3235_v22  ;;  %v5465_v30 = vld [vmem:[%s6287_s21 + $0x108] sm:$0x1]  ;;  %v5759_v26 = vor.u32 %v6160_v54, %v5756_v6  ;;  %v5795_v1 = vor.u32 %v6171_v33, %v5794_v43  ;;  %v6134_v6 = vld [vmem:[#allocation2 + $0x984] sm:$0xf] }
 0x181   : > { %v7042_v3 = vpop.f32.mrf.mxu3  ;;  %3563 = vmatpush.bf16.msra.mxu1 %v5539_v32  ;;  %4002 = vmatpush.bf16.msra.mxu3 %v5695_v47  ;;  %v3215_v38 = vrot.slane %v5465_v30, 1  ;;  %v5796_v32 = vld [vmem:[#allocation2 + $0xaa8] sm:$0x30] }
 0x182   : > { %5620 = vmatmul.msk.bf16.vlgmr.msrb.gmra.mxu2 %vm548_vm2, %v7030_v59  ;;  %v7061_v23 = vadd.f32 %v2222_v37, %v6897_v15  ;;  %3488 = vmatmul.bf16.vlgmr.msrb.gmra.mxu1 %v3235_v22  ;;  %v3220_v15 = vrot.slane %v5464_v7, 1  ;;  %v5799_v19 = vor.u32 %v6170_v41, %v5796_v32  ;;  %v5748_v37 = vld [vmem:[#allocation2 + $0xa48] sm:$0xf0]  ;;  %v6138_v7 = vld [vmem:[#allocation2 + $0x9a4] sm:$0xf]  ;;  %v3660_v41 = vrot.slane %v5633_v20, 2 }
 0x183   : > { %3512 = vmatmul.bf16.gmra.mxu3 %v7044_v24  ;;  %4019 = vmatpush.bf16.msrb.mxu2 %v5775_v17  ;;  %v5671_v31 = vor.u32 %v6138_v7, %v5668_v9 }
 0x184   : > { %3969 = vmatpush.bf16.msra.mxu0 %v5715_v21  ;;  %v3222_v36 = vsel %vm266_vm1, %v3220_v15, %v3221_v62  ;;  %v3938_v21 = vsel %vm555_vm0, %v5795_v1, 0  ;;  %v3941_v63 = vsel %vm555_vm0, %v5799_v19, 0  ;;  %v6169_v19 = vld [vmem:[#allocation2 + $0xa94] sm:$0xf0] }
 0x185   : > { %v2259_v34 = vpop.f32.mrf.mxu2  ;;  %4003 = vmatpush.bf16.msra.mxu3 %v5687_v39  ;;  %3986 = vmatpush.bf16.msrb.mxu1 %v3938_v21  ;;  %v5630_v39 = vld [vmem:[%s6287_s21 + $0x90] sm:$0xfc] }
 0x186   : > { %v2260_v2 = vadd.f32 %v2259_v34, %v7019_v46  ;;  %v2280_v52 = vpop.f32.mrf.mxu0  ;;  %v5676_v46 = vld [vmem:[#allocation2 + $0x9b8] sm:$0xf0]  ;;  %v5624_v34 = vld [vmem:[%s6287_s21 + $0x60] sm:$0xfc]  ;;  %v3659_v33 = vrot.slane %v5630_v39, 2 }
 0x187   : > { %v2223_v11 = vpop.f32.mrf.mxu1  ;;  %4020 = vmatpush.bf16.msrb.mxu2 %v5767_v4  ;;  %v5679_v49 = vor.u32 %v6140_v27, %v5676_v46  ;;  %v5627_v4 = vld [vmem:[%s6287_s21 + $0x78] sm:$0x3]  ;;  %v6152_v21 = vld [vmem:[#allocation2 + $0xa14] sm:$0xf] }
 0x188   : > { %v2279_v29 = vadd.f32 %v2278_v10, %v2260_v2  ;;  %v2224_v12 = vadd.f32 %v2223_v11, %v6975_v58  ;;  %v3213_v10 = vsel %vm266_vm1, %v3211_v51, %v3212_v60  ;;  %v6158_v58 = vld [vmem:[#allocation2 + $0xa44] sm:$0xf]  ;;  %4043 = vmatpush.bf16.msrb.mxu0 %v3941_v63  ;;  %v6156_v51 = vld [vmem:[#allocation2 + $0xa34] sm:$0xf]  ;;  %v5660_v2 = vld [vmem:[#allocation2 + $0x998] sm:$0xf0] }
 0x189   : > { %v7068_v35 = vpop.f32.mrf.mxu3  ;;  %v5751_v17 = vor.u32 %v6158_v58, %v5748_v37  ;;  %4004 = vmatpush.bf16.msra.mxu3 %v5679_v49  ;;  %v3650_v11 = vrot.slane %v5624_v34, 2  ;;  %v6168_v58 = vld [vmem:[#allocation2 + $0xa94] sm:$0xf] }
 0x18a   : > { %v7071_v22 = vadd.f32 %v2279_v29, %v6944_v0  ;;  %v7077_v25 = vadd.f32 %v2224_v12, %v6911_v16  ;;  %v3216_v0 = vsel %vm266_vm1, %v3214_v57, %v3215_v38  ;;  %v7083_v16 = vpack.c.bf16 %v3222_v36, %v3213_v10  ;;  %v5628_v57 = vld [vmem:[%s6287_s21 + $0x80] sm:$0x3]  ;;  %v5631_v38 = vld [vmem:[%s6287_s21 + $0x98] sm:$0xfc]  ;;  %v5634_v29 = vld [vmem:[%s6287_s21 + $0xb0] sm:$0x3] }
 0x18b   : > { %4021 = vmatpush.bf16.msrb.mxu2 %v5759_v26  ;;  %v3238_v30 = vpack.c.bf16 %v3216_v0, %v3207_v28  ;;  %v3651_v26 = vrot.slane %v5627_v4, 2  ;;  %v5652_v12 = vld [vmem:[#allocation2 + $0x988] sm:$0xf0]  ;;  %v3653_v10 = vrot.slane %v5625_v18, 2  ;;  %v3654_v36 = vrot.slane %v5628_v57, 2 }
 0x18c   : > { %v3662_v1 = vrot.slane %v5631_v38, 2  ;;  %v5786_v0 = vld [vmem:[#allocation2 + $0xa90] sm:$0xf]  ;;  %v5780_v57 = vld [vmem:[#allocation2 + $0xa88] sm:$0xf0] }
 0x18d   : > { %v2261_v55 = vpop.f32.mrf.mxu2  ;;  %4005 = vmatpush.bf16.msra.mxu3 %v5671_v31  ;;  %v5787_v7 = vor.u32 %v6169_v19, %v5786_v0  ;;  %v3652_v31 = vsel %vm555_vm0, %v3650_v11, %v3651_v26  ;;  %v5637_v11 = vld [vmem:[%s6287_s21 + $0xc8] sm:$0xfc] }
 0x18e   : > { %v2262_v14 = vadd.f32 %v2261_v55, %v7042_v3  ;;  %v2283_v53 = vpop.f32.mrf.mxu0  ;;  %v5740_v3 = vld [vmem:[#allocation2 + $0xa38] sm:$0xf0] }
 0x18f   : > { %v2226_v60 = vpop.f32.mrf.mxu1  ;;  %4022 = vmatpush.bf16.msrb.mxu2 %v5751_v17  ;;  %v5743_v5 = vor.u32 %v6156_v51, %v5740_v3  ;;  %v5788_v55 = vld [vmem:[#allocation2 + $0xa98] sm:$0xf0]  ;;  %3987 = vmatpush.bf16.msrb.mxu1 %v5787_v7  ;;  %v5716_v51 = vld [vmem:[#allocation2 + $0xa08] sm:$0xf0] }
 0x190   : > { %v2281_v50 = vadd.f32 %v2280_v52, %v2262_v14  ;;  %v2227_v62 = vadd.f32 %v2226_v60, %v7017_v45  ;;  %3550 = vmatmul.bf16.gmra.mxu0 %v3238_v30  ;;  %v5663_v52 = vor.u32 %v6136_v56, %v5660_v2  ;;  %v5732_v45 = vld [vmem:[#allocation2 + $0xa28] sm:$0xf0]  ;;  %v5791_v14 = vor.u32 %v6168_v58, %v5788_v55  ;;  %v5778_v2 = vld [vmem:[#allocation2 + $0xa80] sm:$0xf] }
 0x191   : > { %v7086_v47 = vpop.f32.mrf.mxu3 }
 0x192   : > { %v7091_v15 = vadd.f32 %v2281_v50, %v6973_v13  ;;  %5621 = vmatmul.msk.bf16.gmra.mxu2 %vm548_vm2, %v7083_v16  ;;  %v7103_v54 = vadd.f32 %v2227_v62, %v6920_v44  ;;  %3493 = vmatmul.bf16.gmra.mxu1 %v3238_v30  ;;  %v6154_v13 = vld [vmem:[#allocation2 + $0xa24] sm:$0xf]  ;;  %v5655_v44 = vor.u32 %v6134_v6, %v5652_v12  ;;  %v5642_v6 = vld [vmem:[%s6287_s21 + $0xf0] sm:$0xfc]  ;;  %v5643_v12 = vld [vmem:[%s6287_s21 + $0xf8] sm:$0xfc] }
 0x193   : > { %5622 = vmatmul.msk.bf16.vlgmr.msrb.gmra.mxu3 %vm548_vm2, %v7030_v59  ;;  %4023 = vmatpush.bf16.msrb.mxu2 %v5743_v5  ;;  %v5735_v46 = vor.u32 %v6154_v13, %v5732_v45  ;;  %v3663_v59 = vrot.slane %v5634_v29, 2  ;;  %v3661_v30 = vsel %vm555_vm0, %v3659_v33, %v3660_v41  ;;  %v6166_v62 = vld [vmem:[#allocation2 + $0xa84] sm:$0xf]  ;;  %v5639_v45 = vld [vmem:[%s6287_s21 + $0xd8] sm:$0x3] }
 0x194   : > { %4006 = vmatpush.bf16.msra.mxu3 %v5663_v52  ;;  %4044 = vmatpush.bf16.msrb.mxu0 %v5791_v14  ;;  %v3698_v4 = vpack.c.bf16 %v3661_v30, %v3652_v31  ;;  %v5636_v13 = vld [vmem:[%s6287_s21 + $0xc0] sm:$0xfc] }
 0x195   : > { %v2264_v27 = vpop.f32.mrf.mxu2  ;;  %v3664_v34 = vsel %vm555_vm0, %v3662_v1, %v3663_v59  ;;  %v3668_v33 = vrot.slane %v5636_v13, 2  ;;  %v3680_v59 = vrot.slane %v5643_v12, 2  ;;  %v5641_v12 = vld [vmem:[%s6287_s21 + $0xe8] sm:$0x3] }
 0x196   : > { %v2265_v43 = vadd.f32 %v2264_v27, %v7068_v35  ;;  %v2285_v28 = vpop.f32.mrf.mxu0  ;;  %v5724_v35 = vld [vmem:[#allocation2 + $0xa18] sm:$0xf0]  ;;  %v5645_v27 = vld [vmem:[%s6287_s21 + $0x108] sm:$0x3] }
 0x197   : > { %v2228_v37 = vpop.f32.mrf.mxu1  ;;  %4024 = vmatpush.bf16.msrb.mxu2 %v5735_v46  ;;  %v5727_v63 = vor.u32 %v6152_v21, %v5724_v35  ;;  %v5640_v46 = vld [vmem:[%s6287_s21 + $0xe0] sm:$0x3] }
 0x198   : > { %v2284_v32 = vadd.f32 %v2283_v53, %v2265_v43  ;;  %v2229_v9 = vadd.f32 %v2228_v37, %v7040_v48  ;;  %4007 = vmatpush.bf16.msra.mxu3 %v5655_v44  ;;  %v3655_v53 = vsel %vm555_vm0, %v3653_v10, %v3654_v36  ;;  %v3669_v44 = vrot.slane %v5639_v45, 2 }
 0x199   : > { %v2665_v49 = vpop.f32.mrf.mxu3  ;;  %v7120_v56 = vpack.c.bf16 %v3664_v34, %v3655_v53  ;;  %v3678_v10 = vrot.slane %v5645_v27, 2  ;;  %v3671_v36 = vrot.slane %v5637_v11, 2  ;;  %v5626_v53 = vld [vmem:[%s6287_s21 + $0x70] sm:$0xfc] }
 0x19a   : > { %v7109_v17 = vadd.f32 %v2284_v32, %v7015_v61  ;;  %v7115_v50 = vadd.f32 %v2229_v9, %v6932_v42  ;;  %v6150_v61 = vld [vmem:[#allocation2 + $0xa04] sm:$0xf]  ;;  %v6167_v42 = vld [vmem:[#allocation2 + $0xa84] sm:$0xf0]  ;;  %v3670_v19 = vsel %vm555_vm0, %v3668_v33, %v3669_v44 }
 0x19b   : > { %4025 = vmatpush.bf16.msrb.mxu2 %v5727_v63  ;;  %v5719_v48 = vor.u32 %v6150_v61, %v5716_v51  ;;  %v5779_v18 = vor.u32 %v6167_v42, %v5778_v2  ;;  %v5629_v61 = vld [vmem:[%s6287_s21 + $0x88] sm:$0x3]  ;;  %v5632_v51 = vld [vmem:[%s6287_s21 + $0xa0] sm:$0xfc] }
 0x19c   : > { %v3657_v42 = vrot.slane %v5629_v61, 2 }
 0x19d   : > { %v2266_v3 = vpop.f32.mrf.mxu2  ;;  %3988 = vmatpush.bf16.msrb.mxu1 %v5779_v18 }
 0x19e   : > { %v2267_v60 = vadd.f32 %v2266_v3, %v7086_v47  ;;  %v7122_v20 = vpop.f32.mrf.mxu0  ;;  %v5783_v47 = vor.u32 %v6166_v62, %v5780_v57  ;;  %v5635_v3 = vld [vmem:[%s6287_s21 + $0xb8] sm:$0x3]  ;;  %v3665_v62 = vrot.slane %v5632_v51, 2 }
 0x19f   : > { %v2646_v38 = vpop.f32.mrf.mxu1  ;;  %4026 = vmatpush.bf16.msrb.mxu2 %v5719_v48 }
 0x1a0   : > { %v2286_v39 = vadd.f32 %v2285_v28, %v2267_v60  ;;  %v2666_v52 = vadd.f32 %v2665_v49, %v2646_v38  ;;  %3970 = vmatmul.bf16.vlgmr.msra.gmra.mxu0 %v7120_v56  ;;  %v3677_v49 = vrot.slane %v5642_v6, 2 }
 0x1a1   : > { %v2667_v5 = vpop.f32.mrf.mxu3  ;;  %4045 = vmatpush.bf16.msrb.mxu0 %v5783_v47 }
 0x1a2   : > { %v7125_v29 = vadd.f32 %v2286_v39, %v7038_v8  ;;  %3951 = vmatmul.bf16.vlgmr.msra.gmra.mxu2 %v3698_v4  ;;  %3564 = vmatmul.bf16.vlgmr.msra.gmra.mxu1 %v6997_v40  ;;  %v5646_v8 = vld [vmem:[%s6287_s21 + $0x110] sm:$0x3]  ;;  %v3679_v58 = vsel %vm555_vm0, %v3677_v49, %v3678_v10  ;;  %v3666_v39 = vrot.slane %v5635_v3, 2 }
 0x1a3   : > { %5623 = vmatmul.msk.bf16.gmra.mxu3 %vm548_vm2, %v7083_v16  ;;  %v3672_v16 = vrot.slane %v5640_v46, 2  ;;  %v3681_v32 = vrot.slane %v5646_v8, 2  ;;  %v3701_v21 = vpack.c.bf16 %v3679_v58, %v3670_v19  ;;  %v5644_v8 = vld [vmem:[%s6287_s21 + $0x100] sm:$0xfc] }
 0x1a4   : > { %v3683_v10 = vrot.slane %v5644_v8, 2 }
 0x1a5   : > { %v2684_v26 = vpop.f32.mrf.mxu2  ;;  %v3673_v37 = vsel %vm555_vm0, %v3671_v36, %v3672_v16  ;;  %v3682_v7 = vsel %vm555_vm0, %v3680_v59, %v3681_v32 }
 0x1a6   : > { %v2685_v43 = vadd.f32 %v2684_v26, %v2666_v52  ;;  %v7142_v1 = vpop.f32.mrf.mxu0  ;;  %v7148_v9 = vpack.c.bf16 %v3682_v7, %v3673_v37  ;;  %v5638_v26 = vld [vmem:[%s6287_s21 + $0xd0] sm:$0xfc] }
 0x1a7   : > { %v2648_v28 = vpop.f32.mrf.mxu1  ;;  %v3674_v49 = vrot.slane %v5638_v26, 2 }
 0x1a8   : > { %v7140_v40 = vadd.f32 %v2685_v43, %v7061_v23  ;;  %v2668_v0 = vadd.f32 %v2667_v5, %v2648_v28  ;;  %v3656_v5 = vrot.slane %v5626_v53, 2  ;;  %v5647_v43 = vld [vmem:[%s6287_s21 + $0x118] sm:$0x3] }
 0x1a9   : > { %v2670_v41 = vpop.f32.mrf.mxu3 }
 0x1ad   : > { %v2686_v55 = vpop.f32.mrf.mxu2 }
 0x1ae   : > { %v2687_v23 = vadd.f32 %v2686_v55, %v2668_v0  ;;  %v2708_v63 = vpop.f32.mrf.mxu0 }
 0x1af   : > { %v2651_v31 = vpop.f32.mrf.mxu1 }
 0x1b0   : > { %v7151_v14 = vadd.f32 %v2687_v23, %v7077_v25  ;;  %v2671_v30 = vadd.f32 %v2670_v41, %v2651_v31  ;;  %3975 = vmatmul.bf16.gmra.mxu0 %v7148_v9 }
 0x1b1   : > { %v2672_v35 = vpop.f32.mrf.mxu3 }
 0x1b2   : > { %3956 = vmatmul.bf16.gmra.mxu2 %v3701_v21  ;;  %3569 = vmatmul.bf16.gmra.mxu1 %v7044_v24  ;;  %v3658_v24 = vsel %vm555_vm0, %v3656_v5, %v3657_v42 }
 0x1b3   : > { %4008 = vmatmul.bf16.vlgmr.msra.gmra.mxu3 %v3698_v4  ;;  %v3667_v4 = vsel %vm555_vm0, %v3665_v62, %v3666_v39 }
 0x1b4   : > { %v3700_v13 = vpack.c.bf16 %v3667_v4, %v3658_v24 }
 0x1b5   : > { %v2689_v34 = vpop.f32.mrf.mxu2 }
 0x1b6   : > { %v2690_v48 = vadd.f32 %v2689_v34, %v2671_v30  ;;  %v2710_v2 = vpop.f32.mrf.mxu0 }
 0x1b7   : > { %v2653_v18 = vpop.f32.mrf.mxu1 }
 0x1b8   : > { %v7160_v25 = vadd.f32 %v2690_v48, %v7103_v54  ;;  %v2673_v57 = vadd.f32 %v2672_v35, %v2653_v18 }
 0x1b9   : > { %v2741_v60 = vpop.f32.mrf.mxu3 }
 0x1bd   : > { %v2691_v38 = vpop.f32.mrf.mxu2 }
 0x1be   : > { %v2692_v47 = vadd.f32 %v2691_v38, %v2673_v57  ;;  %v3045_v45 = vpop.f32.mrf.mxu0 }
 0x1bf   : > { %v2722_v6 = vpop.f32.mrf.mxu1 }
 0x1c0   : > { %v7165_v54 = vadd.f32 %v2692_v47, %v7115_v50  ;;  %v2723_v27 = vadd.f32 %v2722_v6, %v7122_v20  ;;  %5802 = vmatmul.msk.bf16.vlgmr.msrb.gmra.mxu0 %vm548_vm2, %v3700_v13  ;;  %v3675_v20 = vrot.slane %v5641_v12, 2 }
 0x1c1   : > { %v2743_v52 = vpop.f32.mrf.mxu3 }
 0x1c2   : > { %4027 = vmatmul.bf16.vlgmr.msrb.gmra.mxu2 %v7120_v56  ;;  %v2742_v11 = vadd.f32 %v2741_v60, %v2723_v27  ;;  %5800 = vmatmul.msk.bf16.vlgmr.msrb.gmra.mxu1 %vm548_vm2, %v3700_v13  ;;  %v3684_v56 = vrot.slane %v5647_v43, 2  ;;  %v3676_v32 = vsel %vm555_vm0, %v3674_v49, %v3675_v20 }
 0x1c3   : > { %4013 = vmatmul.bf16.gmra.mxu3 %v3701_v21 }
 0x1c4   : > { %v2752_v50 = vadd.f32 %v2742_v11, %v7071_v22  ;;  %v3685_v28 = vsel %vm555_vm0, %v3683_v10, %v3684_v56  ;;  %vm4184_vm0 = vcmask 106496  }
 0x1c5   : > { %v3026_v46 = vpop.f32.mrf.mxu2  ;;  %v3703_v37 = vpack.c.bf16 %v3685_v28, %v3676_v32 }
 0x1c6   : > { %v3046_v33 = vadd.f32 %v3045_v45, %v3026_v46  ;;  %v3047_v44 = vpop.f32.mrf.mxu0 }
 0x1c7   : > { %v2724_v36 = vpop.f32.mrf.mxu1 }
 0x1c8   : > { %v2725_v16 = vadd.f32 %v2724_v36, %v7142_v1 }
 0x1c9   : > { %v2746_v41 = vpop.f32.mrf.mxu3 }
 0x1ca   : > { %v2744_v59 = vadd.f32 %v2743_v52, %v2725_v16 }
 0x1cc   : > { %v2754_v19 = vadd.f32 %v2744_v59, %v7091_v15 }
 0x1cd   : > { %v3028_v0 = vpop.f32.mrf.mxu2 }
 0x1ce   : > { %v3048_v58 = vadd.f32 %v3047_v44, %v3028_v0  ;;  %v3050_v7 = vpop.f32.mrf.mxu0 }
 0x1cf   : > { %v2727_v55 = vpop.f32.mrf.mxu1 }
 0x1d0   : > { %v2728_v23 = vadd.f32 %v2727_v55, %v2708_v63  ;;  %5803 = vmatmul.msk.bf16.gmra.mxu0 %vm548_vm2, %v3703_v37 }
 0x1d1   : > { %v2748_v22 = vpop.f32.mrf.mxu3 }
 0x1d2   : > { %4032 = vmatmul.bf16.gmra.mxu2 %v7148_v9  ;;  %v2747_v21 = vadd.f32 %v2746_v41, %v2728_v23  ;;  %5801 = vmatmul.msk.bf16.gmra.mxu1 %vm548_vm2, %v3703_v37 }
 0x1d4   : > { %v2756_v35 = vadd.f32 %v2747_v21, %v7109_v17 }
 0x1d5   : > { %v3031_v1 = vpop.f32.mrf.mxu2 }
 0x1d6   : > { %v3051_v31 = vadd.f32 %v3050_v7, %v3031_v1  ;;  %v3052_v53 = vpop.f32.mrf.mxu0 }
 0x1d7   : > { %v2729_v15 = vpop.f32.mrf.mxu1 }
 0x1d8   : > { %v2730_v34 = vadd.f32 %v2729_v15, %v2710_v2 }
 0x1d9   : > { %v3083_v30 = vpop.f32.mrf.mxu3 }
 0x1da   : > { %v2749_v61 = vadd.f32 %v2748_v22, %v2730_v34 }
 0x1dc   : > { %v2758_v3 = vadd.f32 %v2749_v61, %v7125_v29 }
 0x1dd   : > { %v3033_v51 = vpop.f32.mrf.mxu2 }
 0x1de   : > { %v3053_v63 = vadd.f32 %v3052_v53, %v3033_v51  ;;  %v3121_v9 = vpop.f32.mrf.mxu0 }
 0x1df   : > { %v3064_v60 = vpop.f32.mrf.mxu1 }
 0x1e0   : > { %v3065_v5 = vadd.f32 %v3064_v60, %v3046_v33 }
 0x1e1   : > { %v3085_v48 = vpop.f32.mrf.mxu3 }
 0x1e2   : > { %v7186_v42 = vadd.f32 %v3065_v5, %v7140_v40 }
 0x1e5   : > { %v3102_v62 = vpop.f32.mrf.mxu2 }
 0x1e6   : > { %v3103_v39 = vadd.f32 %v3102_v62, %v3083_v30  ;;  %v3123_v57 = vpop.f32.mrf.mxu0 }
 0x1e7   : > { %v3066_v24 = vpop.f32.mrf.mxu1 }
 0x1e8   : > { %v3122_v18 = vadd.f32 %v3121_v9, %v3103_v39  ;;  %v3067_v2 = vadd.f32 %v3066_v24, %v3048_v58 }
 0x1e9   : > { %v3088_v17 = vpop.f32.mrf.mxu3 }
 0x1ea   : > { %v7188_v4 = vadd.f32 %v3122_v18, %v2752_v50  ;;  %v7191_v38 = vadd.f32 %v3067_v2, %v7151_v14 }
 0x1ed   : > { %v3104_v29 = vpop.f32.mrf.mxu2 }
 0x1ee   : > { %v3105_v47 = vadd.f32 %v3104_v29, %v3085_v48  ;;  %v3126_v45 = vpop.f32.mrf.mxu0 }
 0x1ef   : > { %v3069_v6 = vpop.f32.mrf.mxu1 }
 0x1f0   : > { %v3124_v13 = vadd.f32 %v3123_v57, %v3105_v47  ;;  %v3070_v27 = vadd.f32 %v3069_v6, %v3051_v31 }
 0x1f1   : > { %v3090_v52 = vpop.f32.mrf.mxu3 }
 0x1f2   : > { %v7193_v40 = vadd.f32 %v3124_v13, %v2754_v19  ;;  %v7196_v11 = vadd.f32 %v3070_v27, %v7160_v25 }
 0x1f5   : > { %v3107_v26 = vpop.f32.mrf.mxu2 }
 0x1f6   : > { %v3108_v46 = vadd.f32 %v3107_v26, %v3088_v17  ;;  %v3128_v43 = vpop.f32.mrf.mxu0 }
 0x1f7   : > { %v3071_v50 = vpop.f32.mrf.mxu1 }
 0x1f8   : > { %v3127_v8 = vadd.f32 %v3126_v45, %v3108_v46  ;;  %v3072_v33 = vadd.f32 %v3071_v50, %v3053_v63 }
 0x1f9   : > { %v3508_v12 = vpop.f32.mrf.mxu3 }
 0x1fa   : > { %v7198_v14 = vadd.f32 %v3127_v8, %v2756_v35  ;;  %v7201_v41 = vadd.f32 %v3072_v33, %v7165_v54 }
 0x1fd   : > { %v3109_v44 = vpop.f32.mrf.mxu2 }
 0x1fe   : > { %v3110_v49 = vadd.f32 %v3109_v44, %v3090_v52  ;;  %v3546_v56 = vpop.f32.mrf.mxu0 }
 0x1ff   : > { %v3489_v36 = vpop.f32.mrf.mxu1 }
 0x200   : > { %v3129_v10 = vadd.f32 %v3128_v43, %v3110_v49  ;;  %v3509_v60 = vadd.f32 %v3508_v12, %v3489_v36 }
 0x201   : > { %v3510_v20 = vpop.f32.mrf.mxu3 }
 0x202   : > { %v7203_v25 = vadd.f32 %v3129_v10, %v2758_v3 }
 0x205   : > { %v3527_v16 = vpop.f32.mrf.mxu2 }
 0x206   : > { %v3548_v32 = vpop.f32.mrf.mxu0  ;;  %v3528_v62 = vadd.f32 %v3527_v16, %v3509_v60 }
 0x207   : > { %v3491_v28 = vpop.f32.mrf.mxu1 }
 0x208   : > { %v3594_v2 = vadd.f32 %v3528_v62, %v7186_v42  ;;  %v3511_v29 = vadd.f32 %v3510_v20, %v3491_v28 }
 0x209   : > { %v3513_v59 = vpop.f32.mrf.mxu3 }
 0x20d   : > { %v3529_v0 = vpop.f32.mrf.mxu2 }
 0x20e   : > { %v7207_v58 = vpop.f32.mrf.mxu0  ;;  %v3530_v6 = vadd.f32 %v3529_v0, %v3511_v29 }
 0x20f   : > { %v3494_v22 = vpop.f32.mrf.mxu1 }
 0x210   : > { %v3514_v33 = vadd.f32 %v3513_v59, %v3494_v22  ;;  %v3596_v20 = vadd.f32 %v3530_v6, %v7191_v38 }
 0x211   : > { %v7205_v19 = vpop.f32.mrf.mxu3 }
 0x215   : > { %v3532_v54 = vpop.f32.mrf.mxu2 }
 0x216   : > { %v7209_v7 = vpop.f32.mrf.mxu0  ;;  %v3533_v38 = vadd.f32 %v3532_v54, %v3514_v33 }
 0x217   : > { %v7211_v55 = vpop.f32.mrf.mxu1 }
 0x219   : > { %v3584_v37 = vpop.f32.mrf.mxu3 }
 0x21d   : > { %v7213_v23 = vpop.f32.mrf.mxu2 }
 0x21e   : > { %v3971_v21 = vpop.f32.mrf.mxu0 }
 0x21f   : > { %v3565_v1 = vpop.f32.mrf.mxu1 }
 0x220   : > { %v3566_v39 = vadd.f32 %v3565_v1, %v3546_v56  ;;  %v6250_v56 = vmov 0.0  }
 0x221   : > { %v3586_v35 = vpop.f32.mrf.mxu3  ;;  %4089 = vst [vmem:[%s7232_s24] sm:$0xff] %v6250_v56 }
 0x222   : > { %v3585_v52 = vadd.f32 %v3584_v37, %v3566_v39  ;;  %4090 = vst [vmem:[%s7232_s24 + $0x8] sm:$0xff] %v6250_v56 }
 0x223   : > { %4091 = vst.msk [vmem:[%s7232_s24 + $0x10] sm:$0xff] %vm548_vm2, %v6250_v56 }
 0x224   : > { %v3595_v46 = vadd.f32 %v3585_v52, %v7188_v4  ;;  %4092 = vst [vmem:[%s7232_s24 + $0x18] sm:$0x3] %v6250_v56 }
 0x225   : > { %v3952_v31 = vpop.f32.mrf.mxu2  ;;  %4093 = vst [vmem:[%s7232_s24 + $0x20] sm:$0x3] %v6250_v56 }
 0x226   : > { %v3973_v30 = vpop.f32.mrf.mxu0  ;;  %v3972_v18 = vadd.f32 %v3971_v21, %v3952_v31  ;;  %4108 = vst [vmem:[%s7232_s24 + $0x90] sm:$0xff] %v6250_v56 }
 0x227   : > { %v3567_v53 = vpop.f32.mrf.mxu1  ;;  %4111 = vst [vmem:[%s7232_s24 + $0xa8] sm:$0x3] %v6250_v56 }
 0x228   : > { %v3568_v12 = vadd.f32 %v3567_v53, %v3548_v32  ;;  %4120 = vst [vmem:[%s7232_s24 + $0xf0] sm:$0xff] %v6250_v56 }
 0x229   : > { %v7215_v15 = vpop.f32.mrf.mxu3  ;;  %4121 = vst [vmem:[%s7232_s24 + $0xf8] sm:$0xff] %v6250_v56 }
 0x22a   : > { %v3587_v16 = vadd.f32 %v3586_v35, %v3568_v12  ;;  %4122 = vst.msk [vmem:[%s7232_s24 + $0x100] sm:$0xff] %vm548_vm2, %v6250_v56 }
 0x22b   : > { %4123 = vst [vmem:[%s7232_s24 + $0x108] sm:$0x3] %v6250_v56 }
 0x22c   : > { %v3597_v1 = vadd.f32 %v3587_v16, %v7193_v40  ;;  %4124 = vst [vmem:[%s7232_s24 + $0x110] sm:$0x3] %v6250_v56 }
 0x22d   : > { %v3954_v34 = vpop.f32.mrf.mxu2  ;;  %4096 = vst [vmem:[%s7232_s24 + $0x30] sm:$0xff] %v6250_v56 }
 0x22e   : > { %v3976_v61 = vpop.f32.mrf.mxu0  ;;  %v3974_v8 = vadd.f32 %v3973_v30, %v3954_v34  ;;  %v3516_v30 = vadd.f32 %v7205_v19, %v7211_v55  ;;  %4097 = vst [vmem:[%s7232_s24 + $0x38] sm:$0xff] %v6250_v56 }
 0x22f   : > { %v3570_v51 = vpop.f32.mrf.mxu1  ;;  %4098 = vst.msk [vmem:[%s7232_s24 + $0x40] sm:$0xff] %vm548_vm2, %v6250_v56 }
 0x230   : > { %v3571_v21 = vadd.f32 %v3570_v51, %v7207_v58  ;;  %v3598_v58 = vadd.f32 %v3533_v38, %v7196_v11  ;;  %v3535_v55 = vadd.f32 %v7213_v23, %v3516_v30  ;;  %4099 = vst [vmem:[%s7232_s24 + $0x48] sm:$0x3] %v6250_v56 }
 0x231   : > { %v7217_v3 = vpop.f32.mrf.mxu3  ;;  %4100 = vst [vmem:[%s7232_s24 + $0x50] sm:$0x3] %v6250_v56 }
 0x232   : > { %4102 = vst [vmem:[%s7232_s24 + $0x60] sm:$0xff] %v6250_v56 }
 0x233   : > { %4103 = vst [vmem:[%s7232_s24 + $0x68] sm:$0xff] %v6250_v56 }
 0x234   : > { %4104 = vst.msk [vmem:[%s7232_s24 + $0x70] sm:$0xff] %vm548_vm2, %v6250_v56 }
 0x235   : > { %v3957_v63 = vpop.f32.mrf.mxu2  ;;  %4105 = vst [vmem:[%s7232_s24 + $0x78] sm:$0x3] %v6250_v56 }
 0x236   : > { %v7219_v48 = vpop.f32.mrf.mxu0  ;;  %v3977_v35 = vadd.f32 %v3976_v61, %v3957_v63  ;;  %v3590_v61 = vadd.f32 %v7215_v15, %v3571_v21  ;;  %4106 = vst [vmem:[%s7232_s24 + $0x80] sm:$0x3] %v6250_v56 }
 0x237   : > { %v7221_v9 = vpop.f32.mrf.mxu1  ;;  %4109 = vst [vmem:[%s7232_s24 + $0x98] sm:$0xff] %v6250_v56 }
 0x238   : > { %v3573_v23 = vadd.f32 %v7221_v9, %v7209_v7  ;;  %4110 = vst.msk [vmem:[%s7232_s24 + $0xa0] sm:$0xff] %vm548_vm2, %v6250_v56 }
 0x239   : > { %v4009_v17 = vpop.f32.mrf.mxu3  ;;  %4112 = vst [vmem:[%s7232_s24 + $0xb0] sm:$0x3] %v6250_v56 }
 0x23a   : > { %v3592_v7 = vadd.f32 %v7217_v3, %v3573_v23  ;;  %4114 = vst [vmem:[%s7232_s24 + $0xc0] sm:$0xff] %v6250_v56 }
 0x23b   : > { %4115 = vst [vmem:[%s7232_s24 + $0xc8] sm:$0xff] %v6250_v56 }
 0x23c   : > { %v3601_v12 = vadd.f32 %v3592_v7, %v7203_v25  ;;  %4116 = vst.msk [vmem:[%s7232_s24 + $0xd0] sm:$0xff] %vm548_vm2, %v6250_v56 }
 0x23d   : > { %v7223_v5 = vpop.f32.mrf.mxu2  ;;  %4117 = vst [vmem:[%s7232_s24 + $0xd8] sm:$0x3] %v6250_v56 }
 0x23e   : > { %v4047_v24 = vpop.f32.mrf.mxu0  ;;  %4118 = vst [vmem:[%s7232_s24 + $0xe0] sm:$0x3] %v6250_v56 }
 0x23f   : > { %v3990_v57 = vpop.f32.mrf.mxu1  ;;  %4095 = vst.msk [vmem:[%s7232_s24 + $0x28] sm:$0x3] %vm4094_vm11, %v6250_v56 }
 0x240   : > { %v3991_v47 = vadd.f32 %v3990_v57, %v3972_v18  ;;  %v3599_v57 = vadd.f32 %v3590_v61, %v7198_v14  ;;  %v3600_v14 = vadd.f32 %v3535_v55, %v7201_v41  ;;  %4113 = vst.msk [vmem:[%s7232_s24 + $0xb8] sm:$0x3] %vm4094_vm11, %v6250_v56 }
 0x241   : > { %v4011_v44 = vpop.f32.mrf.mxu3  ;;  %4125 = vst.msk [vmem:[%s7232_s24 + $0x118] sm:$0x3] %vm4094_vm11, %v6250_v56 }
 0x242   : > { %v4057_v13 = vadd.f32 %v3991_v47, %v3594_v2  ;;  %4101 = vst.msk [vmem:[%s7232_s24 + $0x58] sm:$0x3] %vm4094_vm11, %v6250_v56 }
 0x243   : > { %4107 = vst.msk [vmem:[%s7232_s24 + $0x88] sm:$0x3] %vm4094_vm11, %v6250_v56 }
 0x244   : > { %vm4065_vm3 = vcmp.ge.f32.partialorder %v4057_v13, 0.0  ;;  %v4073_v26 = vmul.f32 0.01, %v4057_v13  ;;  %4119 = vst.msk [vmem:[%s7232_s24 + $0xe8] sm:$0x3] %vm4094_vm11, %v6250_v56 }
 0x245   : > { %v4028_v45 = vpop.f32.mrf.mxu2 }
 0x246   : > { %v4029_v27 = vadd.f32 %v4028_v45, %v4009_v17  ;;  %v4081_v50 = vsel %vm4065_vm3, %v4057_v13, %v4073_v26  ;;  %v4049_v36 = vpop.f32.mrf.mxu0 }
 0x247   : > { %v3992_v49 = vpop.f32.mrf.mxu1  ;;  %v4134_v42 = vrot.slane %v4081_v50, 7 }
 0x248   : > { %v4048_v43 = vadd.f32 %v4047_v24, %v4029_v27  ;;  %v3993_v10 = vadd.f32 %v3992_v49, %v3974_v8  ;;  %v3979_v24 = vadd.f32 %v7219_v48, %v7223_v5 }
 0x249   : > { %4142 = vrot.lane.b32.xlu0 %v4134_v42, %s6251_s25  ;;  %v4014_v63 = vpop.f32.mrf.mxu3 }
 0x24a   : > { %v4058_v4 = vadd.f32 %v4048_v43, %v3595_v46  ;;  %v4059_v59 = vadd.f32 %v3993_v10, %v3596_v20 }
 0x24c   : > { %vm4066_vm4 = vcmp.ge.f32.partialorder %v4058_v4, 0.0  ;;  %v4074_v32 = vmul.f32 0.01, %v4058_v4  ;;  %vm4067_vm5 = vcmp.ge.f32.partialorder %v4059_v59, 0.0  ;;  %v4075_v22 = vmul.f32 0.01, %v4059_v59 }
 0x24d   : > { %v4030_v28 = vpop.f32.mrf.mxu2 }
 0x24e   : > { %v4031_v0 = vadd.f32 %v4030_v28, %v4011_v44  ;;  %v4082_v37 = vsel %vm4066_vm4, %v4058_v4, %v4074_v32  ;;  %v4083_v54 = vsel %vm4067_vm5, %v4059_v59, %v4075_v22  ;;  %v4052_v62 = vpop.f32.mrf.mxu0 }
 0x24f   : > { %v3995_v53 = vpop.f32.mrf.mxu1  ;;  %v4136_v34 = vrot.slane %v4083_v54, 7  ;;  %v4135_v60 = vrot.slane %v4082_v37, 7 }
 0x250   : > { %v4050_v31 = vadd.f32 %v4049_v36, %v4031_v0  ;;  %v3996_v40 = vadd.f32 %v3995_v53, %v3977_v35 }
 0x251   : > { %4146 = vrot.lane.b32.xlu1 %v4136_v34, %s6251_s25  ;;  %4144 = vrot.lane.b32.xlu0 %v4135_v60, %s6251_s25  ;;  %v4016_v41 = vpop.f32.mrf.mxu3 }
 0x252   : > { %v4060_v51 = vadd.f32 %v4050_v31, %v3597_v1  ;;  %v4061_v19 = vadd.f32 %v3996_v40, %v3598_v58 }
 0x254   : > { %vm4068_vm6 = vcmp.ge.f32.partialorder %v4060_v51, 0.0  ;;  %v4076_v11 = vmul.f32 0.01, %v4060_v51  ;;  %vm4069_vm7 = vcmp.ge.f32.partialorder %v4061_v19, 0.0  ;;  %v4077_v17 = vmul.f32 0.01, %v4061_v19 }
 0x255   : > { %v4033_v15 = vpop.f32.mrf.mxu2 }
 0x256   : > { %v4034_v39 = vadd.f32 %v4033_v15, %v4014_v63  ;;  %v4084_v18 = vsel %vm4068_vm6, %v4060_v51, %v4076_v11  ;;  %v4085_v29 = vsel %vm4069_vm7, %v4061_v19, %v4077_v17  ;;  %v4054_v3 = vpop.f32.mrf.mxu0 }
 0x257   : > { %v3997_v47 = vpop.f32.mrf.mxu1  ;;  %v4138_v52 = vrot.slane %v4085_v29, 7  ;;  %v4137_v13 = vrot.slane %v4084_v18, 7 }
 0x258   : > { %v4053_v2 = vadd.f32 %v4052_v62, %v4034_v39  ;;  %v3998_v6 = vadd.f32 %v3997_v47, %v3979_v24 }
 0x259   : > { %4150 = vrot.lane.b32.xlu2 %v4138_v52, %s6251_s25  ;;  %4148 = vrot.lane.b32.xlu1 %v4137_v13, %s6251_s25 }
 0x25a   : > { %v4062_v45 = vadd.f32 %v4053_v2, %v3599_v57  ;;  %v4063_v48 = vadd.f32 %v3998_v6, %v3600_v14 }
 0x25c   : > { %vm4070_vm8 = vcmp.ge.f32.partialorder %v4062_v45, 0.0  ;;  %v4078_v9 = vmul.f32 0.01, %v4062_v45  ;;  %v4079_v27 = vmul.f32 0.01, %v4063_v48  ;;  %vm4071_vm9 = vcmp.ge.f32.partialorder %v4063_v48, 0.0 }
 0x25d   : > { %v4035_v5 = vpop.f32.mrf.mxu2 }
 0x25e   : > { %v4036_v26 = vadd.f32 %v4035_v5, %v4016_v41  ;;  %v4086_v46 = vsel %vm4070_vm8, %v4062_v45, %v4078_v9  ;;  %v4087_v43 = vsel %vm4071_vm9, %v4063_v48, %v4079_v27 }
 0x25f   : > { %v4139_v50 = vrot.slane %v4086_v46, 7  ;;  %v4140_v33 = vrot.slane %v4087_v43, 7 }
 0x260   : > { %v4055_v8 = vadd.f32 %v4054_v3, %v4036_v26 }
 0x261   : > { %4152 = vrot.lane.b32.xlu2 %v4139_v50, %s6251_s25  ;;  %4154 = vrot.lane.b32.xlu0 %v4140_v33, %s6251_s25 }
 0x262   : > { %v4064_v44 = vadd.f32 %v4055_v8, %v3601_v12 }
 0x264   : > { %vm4072_vm10 = vcmp.ge.f32.partialorder %v4064_v44, 0.0  ;;  %v4080_v25 = vmul.f32 0.01, %v4064_v44 }
 0x266   : > { %v4088_v49 = vsel %vm4072_vm10, %v4064_v44, %v4080_v25 }
 0x267   : > { %v4141_v42 = vrot.slane %v4088_v49, 7 }
 0x269   : > { %4156 = vrot.lane.b32.xlu1 %v4141_v42, %s6251_s25 }
 0x2b3   : > { %v4151_v20 = vpop.permute.xlu2 %4150 }
 0x2b4   : > { %5816 = vst.msk [vmem:[%s7232_s24 + $0x90] sm:$0xfe] %vm4176_vm12, %v4151_v20 }
 0x2b5   : > { %5819 = vst.msk [vmem:[%s7232_s24 + $0xa8] sm:$0x1] %vm4181_vm13, %v4151_v20 }
 0x2bb   : > { %v4153_v4 = vpop.permute.xlu2 %4152  ;;  %v4143_v10 = vpop.permute.xlu0 %4142 }
 0x2bc   : > { %v4161_v56 = vsel %vm4158_vm14, %v4151_v20, %v4153_v4  ;;  %5818 = vst.msk [vmem:[%s7232_s24 + $0xa0] sm:$0xfe] %vm4179_vm15, %v4153_v4 }
 0x2bd   : > { %5817 = vst [vmem:[%s7232_s24 + $0x98] sm:$0xfe] %v4161_v56 }
 0x2be   : > { %5820 = vst [vmem:[%s7232_s24 + $0xb0] sm:$0x1] %v4161_v56 }
 0x2bf   : > { %5821 = vst.msk [vmem:[%s7232_s24 + $0xb8] sm:$0x1] %vm4184_vm0, %v4153_v4 }
 0x2c0   : > { %5804 = vst.msk [vmem:[%s7232_s24 + $0x30] sm:$0xfe] %vm4176_vm12, %v4143_v10 }
 0x2c1   : > { %5807 = vst.msk [vmem:[%s7232_s24 + $0x48] sm:$0x1] %vm4181_vm13, %v4143_v10 }
 0x2c3   : > { %v4147_v36 = vpop.permute.xlu1 %4146  ;;  %v4145_v16 = vpop.permute.xlu0 %4144 }
 0x2c4   : > { %5810 = vst.msk [vmem:[%s7232_s24 + $0x60] sm:$0xfe] %vm4176_vm12, %v4147_v36  ;;  %v4159_v59 = vsel %vm4158_vm14, %v4143_v10, %v4145_v16 }
 0x2c5   : > { %5813 = vst.msk [vmem:[%s7232_s24 + $0x78] sm:$0x1] %vm4181_vm13, %v4147_v36 }
 0x2c6   : > { %5805 = vst [vmem:[%s7232_s24 + $0x38] sm:$0xfe] %v4159_v59 }
 0x2c7   : > { %5806 = vst.msk [vmem:[%s7232_s24 + $0x40] sm:$0xfe] %vm4179_vm15, %v4145_v16 }
 0x2c8   : > { %5808 = vst [vmem:[%s7232_s24 + $0x50] sm:$0x1] %v4159_v59 }
 0x2c9   : > { %5809 = vst.msk [vmem:[%s7232_s24 + $0x58] sm:$0x1] %vm4184_vm0, %v4145_v16 }
 0x2cb   : > { %v4149_v32 = vpop.permute.xlu1 %4148 }
 0x2cc   : > { %v4160_v38 = vsel %vm4158_vm14, %v4147_v36, %v4149_v32  ;;  %5812 = vst.msk [vmem:[%s7232_s24 + $0x70] sm:$0xfe] %vm4179_vm15, %v4149_v32 }
 0x2cd   : > { %5811 = vst [vmem:[%s7232_s24 + $0x68] sm:$0xfe] %v4160_v38 }
 0x2ce   : > { %5814 = vst [vmem:[%s7232_s24 + $0x80] sm:$0x1] %v4160_v38 }
 0x2cf   : > { %5815 = vst.msk [vmem:[%s7232_s24 + $0x88] sm:$0x1] %vm4184_vm0, %v4149_v32 }
 0x2d3   : > { %v4155_v28 = vpop.permute.xlu0 %4154 }
 0x2d4   : > { %5822 = vst.msk [vmem:[%s7232_s24 + $0xc0] sm:$0xfe] %vm4176_vm12, %v4155_v28 }
 0x2d5   : > { %5825 = vst.msk [vmem:[%s7232_s24 + $0xd8] sm:$0x1] %vm4181_vm13, %v4155_v28 }
 0x2db   : > { %v4157_v0 = vpop.permute.xlu1 %4156 }
 0x2dc   : > { %v4162_v22 = vsel %vm4158_vm14, %v4155_v28, %v4157_v0  ;;  %5824 = vst.msk [vmem:[%s7232_s24 + $0xd0] sm:$0xfe] %vm4179_vm15, %v4157_v0 }
 0x2dd   : > { %5823 = vst [vmem:[%s7232_s24 + $0xc8] sm:$0xfe] %v4162_v22 }
 0x2de   : > { %5826 = vst [vmem:[%s7232_s24 + $0xe0] sm:$0x1] %v4162_v22 }
 0x2df   : > { %5827 = vst.msk [vmem:[%s7232_s24 + $0xe8] sm:$0x1] %vm4184_vm0, %v4157_v0 }
 0x2e0 PF: > { %s13_s9 = sadd.s32 1, %s6245_s9  }
 0x2e1   : > { %p10_p7 = scmp.ge.s32.totalorder %s13_s9, 4  }
 0x2e3   :  { %12 = sbr.rel (!%p10_p7) target bundleno = 1 (0x1), region = 74 }
 0x2e8   :  { %4225 = vsyncpa [#allocation3], 1 }
 0x2e9   :  { %4227 = vsyncpa [#allocation3 + $0x1], 1 }

</bundles_post_ra>
